<compile_context>
chip_gen: v6e
topology: v6e:2x2x1
jax: 0.10.0
libtpu: 0.0.40
codegen_flags: <defaults>
</compile_context>

<pallas_src>
import functools
import math

import jax
import jax.numpy as jnp
from jax import lax
from jax.experimental import pallas as pl
from jax.experimental.pallas import tpu as pltpu

# Finite "minus infinity": exp() underflows to exactly 0.0, no inf/nan arithmetic.
_NEG_BIG = -1e30


def _ds_attention_kernel(*refs, scale, mask_flag, has_delta, n_heads, e_dim,
                         d_dim, mxu_dtype):
    if has_delta:
        (q_ref, k_ref, v_ref, delta_ref, tau_ref, o_ref,
         m_ref, l_ref, acc_ref) = refs
    else:
        (q_ref, k_ref, v_ref, tau_ref, o_ref,
         m_ref, l_ref, acc_ref) = refs
        delta_ref = None

    # q_ref: (tl, H*E)   k_ref: (tk, H*E)   v_ref: (tk, H*D)
    # delta_ref: (1, tk) f32 (already pre-scaled by `scale`)
    # tau_ref: (B,) f32 in SMEM
    # scratch: m_ref/l_ref (H, tl, 1) f32, acc_ref (H, tl, D) f32
    b = pl.program_id(0)
    l_idx = pl.program_id(1)
    kv_idx = pl.program_id(2)
    n_kv = pl.num_programs(2)

    tl = q_ref.shape[0]
    tk = k_ref.shape[0]

    @pl.when(kv_idx == 0)
    def _init():
        m_ref[...] = jnp.full(m_ref.shape, _NEG_BIG, jnp.float32)
        l_ref[...] = jnp.zeros(l_ref.shape, jnp.float32)
        acc_ref[...] = jnp.zeros(acc_ref.shape, jnp.float32)

    # tau * scale folded into one f32 scalar (applied to the f32 scores).
    tau_scale = tau_ref[b] * scale

    def _compute():
        q = q_ref[...]
        k = k_ref[...]
        v = v_ref[...]
        # bf16 MXU operands (f32 accumulation) when inputs arrive as f32.
        if q.dtype != mxu_dtype:
            q = q.astype(mxu_dtype)
            k = k.astype(mxu_dtype)
        if v.dtype != mxu_dtype:
            v = v.astype(mxu_dtype)

        # Fused additive bias: scale*delta merged with the causal mask once per
        # step (one (tl, tk) select shared by all heads, finite -BIG not -inf).
        bias = delta_ref[...] if has_delta else None        # (1, tk) f32
        if mask_flag:
            row = l_idx * tl + lax.broadcasted_iota(jnp.int32, (tl, tk), 0)
            col = kv_idx * tk + lax.broadcasted_iota(jnp.int32, (tl, tk), 1)
            masked = col > row
            if bias is None:
                bias = jnp.where(masked, jnp.float32(_NEG_BIG), jnp.float32(0.0))
            else:
                bias = jnp.where(masked, jnp.float32(_NEG_BIG), bias)

        for h in range(n_heads):        # static unroll; H is small
            qh = q[:, h * e_dim:(h + 1) * e_dim]            # (tl, E)
            kh = k[:, h * e_dim:(h + 1) * e_dim]            # (tk, E)
            vh = v[:, h * d_dim:(h + 1) * d_dim]            # (tk, D)

            # s = scale*tau*(Q K^T) + scale*delta + mask    (MXU, f32 acc)
            s = lax.dot_general(qh, kh, (((1,), (1,)), ((), ())),
                                preferred_element_type=jnp.float32)
            s = s * tau_scale
            if bias is not None:
                s = s + bias

            # Online (flash-style) softmax accumulation across KV tiles.
            m_prev = m_ref[h]                               # (tl, 1)
            m_new = jnp.maximum(m_prev, jnp.max(s, axis=-1, keepdims=True))
            alpha = jnp.exp(m_prev - m_new)
            p = jnp.exp(s - m_new)                          # (tl, tk) f32
            l_ref[h] = alpha * l_ref[h] + jnp.sum(p, axis=-1, keepdims=True)
            acc_ref[h] = alpha * acc_ref[h] + jnp.dot(
                p.astype(mxu_dtype), vh, preferred_element_type=jnp.float32)
            m_ref[h] = m_new

    if mask_flag:
        # Skip KV tiles that are fully masked by the causal mask.
        @pl.when(kv_idx * tk < (l_idx + 1) * tl)
        def _masked_compute():
            _compute()
    else:
        _compute()

    @pl.when(kv_idx == n_kv - 1)
    def _finalize():
        outs = []
        for h in range(n_heads):
            inv = 1.0 / l_ref[h]        # exact normalisation (f32)
            outs.append((acc_ref[h] * inv).astype(o_ref.dtype))
        o_ref[...] = jnp.concatenate(outs, axis=-1)   # single lane-dense store


def _pick_tile(n, candidates):
    for c in candidates:
        if n > c and n % c == 0:
            return c
    return n


def _vmem_limit_bytes(est_bytes):
    # Generation-aware cap: <= 3/4 of physical VMEM when queryable, otherwise a
    # conservative 96 MiB (safe on v5e/v6e; tiles are bounded by KV tiling).
    cap = 96 * 1024 * 1024
    try:
        cap = int(pltpu.get_tpu_info().vmem_capacity_bytes) * 3 // 4
    except Exception:
        pass
    return int(min(cap, max(32 * 1024 * 1024, 2 * est_bytes)))


def ds_attention(queries, keys, values, attn_mask=None, tau=None, delta=None,
                 *, scale=None, mask_flag=True, use_bf16_mxu=True):
    """Matches DSAttention.forward (output_attention=False, dropout in eval mode)."""
    B, L, H, E = queries.shape
    _, S, _, D = values.shape
    if attn_mask is not None:
        raise NotImplementedError(
            "ds_attention: only the built-in triangular causal mask is supported")
    scale_val = float(scale) if scale is not None else 1.0 / math.sqrt(E)

    # Free (metadata-only) reshapes: merge trailing (H, E)/(H, D) dims so the
    # kernel sees lane-dense 2-D tiles — no HBM transpose passes.
    q = queries.reshape(B, L, H * E)
    k = keys.reshape(B, S, H * E)
    v = values.reshape(B, S, H * D)

    tau1 = (jnp.ones((B,), jnp.float32) if tau is None
            else jnp.asarray(tau, jnp.float32).reshape(B))
    has_delta = delta is not None
    if has_delta:
        delta3 = jnp.asarray(delta, jnp.float32).reshape(B, 1, S) * scale_val

    # Tile selection: tl capped at 256 (MXU M fill + megacore grid extent),
    # KV tile bounds the in-VMEM score buffer to (tl, tk).
    tl = _pick_tile(L, (256, 128))
    tk = _pick_tile(S, (512, 256, 128))
    n_l, n_kv = L // tl, S // tk

    if queries.dtype == jnp.float32 and use_bf16_mxu:
        mxu_dtype = jnp.bfloat16
    else:
        mxu_dtype = queries.dtype

    # VMEM estimate: double-buffered I/O tiles + lane-padded f32 scratch + slack.
    itemsize = jnp.dtype(queries.dtype).itemsize
    est = 2 * (tl * H * E + tk * H * E + tk * H * D + tl * H * D) * itemsize
    est += 3 * H * tl * 128 * 4
    est += 6 * tl * tk * 4
    if has_delta:
        est += 2 * tk * 4

    kernel = functools.partial(
        _ds_attention_kernel, scale=scale_val, mask_flag=mask_flag,
        has_delta=has_delta, n_heads=H, e_dim=E, d_dim=D, mxu_dtype=mxu_dtype)

    in_specs = [
        pl.BlockSpec((None, tl, H * E), lambda b, l, kv: (b, l, 0)),
        pl.BlockSpec((None, tk, H * E), lambda b, l, kv: (b, kv, 0)),
        pl.BlockSpec((None, tk, H * D), lambda b, l, kv: (b, kv, 0)),
    ]
    operands = [q, k, v]
    if has_delta:
        in_specs.append(pl.BlockSpec((None, 1, tk), lambda b, l, kv: (b, 0, kv)))
        operands.append(delta3)
    in_specs.append(pl.BlockSpec(memory_space=pltpu.MemorySpace.SMEM))
    operands.append(tau1)

    out = pl.pallas_call(
        kernel,
        out_shape=jax.ShapeDtypeStruct((B, L, H * D), queries.dtype),
        grid_spec=pltpu.PrefetchScalarGridSpec(
            num_scalar_prefetch=0,
            grid=(B, n_l, n_kv),
            in_specs=in_specs,
            out_specs=pl.BlockSpec((None, tl, H * D), lambda b, l, kv: (b, l, 0)),
            scratch_shapes=[
                pltpu.VMEM((H, tl, 1), jnp.float32),   # running max per head
                pltpu.VMEM((H, tl, 1), jnp.float32),   # running denominator
                pltpu.VMEM((H, tl, D), jnp.float32),   # unnormalized PV acc
            ]),
        compiler_params=pltpu.CompilerParams(
            dimension_semantics=("parallel", "parallel", "arbitrary"),
            vmem_limit_bytes=_vmem_limit_bytes(est)),
    )(*operands)

    V = out.reshape(B, L, H, D)   # free split of the trailing dim
    return V, None                # output_attention=False


def _reference(queries, keys_, values, tau, delta, scale, mask_flag):
    """Pure-JAX f32 reference of DSAttention.forward (eval mode)."""
    qf = queries.astype(jnp.float32)
    kf = keys_.astype(jnp.float32)
    vf = values.astype(jnp.float32)
    B, L, H, E = qf.shape
    S = kf.shape[1]
    scores = jnp.einsum('blhe,bshe->bhls', qf, kf,
                        precision=jax.lax.Precision.HIGHEST)
    if tau is not None:
        scores = scores * jnp.asarray(tau, jnp.float32).reshape(B, 1, 1, 1)
    if delta is not None:
        scores = scores + jnp.asarray(delta, jnp.float32).reshape(B, 1, 1, S)
    if mask_flag:
        causal = jnp.triu(jnp.ones((L, S), bool), k=1)
        scores = jnp.where(causal, -jnp.inf, scores)
    A = jax.nn.softmax(scale * scores, axis=-1)
    return jnp.einsum('bhls,bshd->blhd', A, vf,
                      precision=jax.lax.Precision.HIGHEST)


if __name__ == "__main__":
    key = jax.random.PRNGKey(0)
    k1, k2, k3, k4, k5, k6, k7, k8 = jax.random.split(key, 8)

    # ----- Test 1: causal mask + tau/delta, bf16 inputs, multi-tile grid -----
    B, L, S, H, E, D = 2, 256, 256, 4, 32, 32
    queries = jax.random.normal(k1, (B, L, H, E), jnp.float32).astype(jnp.bfloat16)
    keys_ = jax.random.normal(k2, (B, S, H, E), jnp.float32).astype(jnp.bfloat16)
    values = jax.random.normal(k3, (B, S, H, D), jnp.float32).astype(jnp.bfloat16)
    tau = jnp.exp(0.1 * jax.random.normal(k4, (B, 1), jnp.float32))
    delta = 0.1 * jax.random.normal(k5, (B, S), jnp.float32)
    scale = 1.0 / math.sqrt(E)

    V, A = ds_attention(queries, keys_, values, tau=tau, delta=delta,
                        mask_flag=True)
    V = jax.block_until_ready(V)
    assert V.shape == (B, L, H, D)
    V_ref = _reference(queries, keys_, values, tau, delta, scale, True)
    err1 = float(jnp.max(jnp.abs(V.astype(jnp.float32) - V_ref)))
    assert jnp.allclose(V.astype(jnp.float32), V_ref, atol=2e-2, rtol=2e-2), (
        f"causal test mismatch, max abs err = {err1}")

    # ----- Test 2: no mask, no tau/delta (specialised path), L != S -----------
    B2, L2, S2 = 2, 128, 256
    q2 = jax.random.normal(k6, (B2, L2, H, E), jnp.float32).astype(jnp.bfloat16)
    k2_ = jax.random.normal(k7, (B2, S2, H, E), jnp.float32).astype(jnp.bfloat16)
    v2_ = jax.random.normal(k8, (B2, S2, H, D), jnp.float32).astype(jnp.bfloat16)

    V2, _ = ds_attention(q2, k2_, v2_, mask_flag=False)
    V2 = jax.block_until_ready(V2)
    assert V2.shape == (B2, L2, H, D)
    V2_ref = _reference(q2, k2_, v2_, None, None, scale, False)
    err2 = float(jnp.max(jnp.abs(V2.astype(jnp.float32) - V2_ref)))
    assert jnp.allclose(V2.astype(jnp.float32), V2_ref, atol=2e-2, rtol=2e-2), (
        f"no-mask test mismatch, max abs err = {err2}")

    print("KERNEL_OK")
</pallas_src>

<mosaic_0001>
module attributes {stable_mosaic.version = 11 : i64} {
  func.func @_ds_attention_kernel(%arg0: i32, %arg1: i32, %arg2: i32, %arg3: memref<1x128x128xbf16, #tpu.memory_space<vmem>>, %arg4: memref<1x128x128xbf16, #tpu.memory_space<vmem>>, %arg5: memref<1x128x128xbf16, #tpu.memory_space<vmem>>, %arg6: memref<1x1x128xf32, #tpu.memory_space<vmem>>, %arg7: memref<2xf32, #tpu.memory_space<smem>>, %arg8: memref<1x128x128xbf16, #tpu.memory_space<vmem>>, %arg9: memref<4x128x1xf32, #tpu.memory_space<vmem>>, %arg10: memref<4x128x1xf32, #tpu.memory_space<vmem>>, %arg11: memref<4x128x32xf32, #tpu.memory_space<vmem>>) attributes {dimension_semantics = [#tpu.dimension_semantics<parallel>, #tpu.dimension_semantics<parallel>, #tpu.dimension_semantics<arbitrary>], iteration_bounds = array<i64: 2, 2, 2>, scalar_prefetch = 0 : i64, scratch_operands = 3 : i64, tpu.core_type = #tpu.core_type<tc>, window_params = [{transform_indices = @transform_0, window_bounds = array<i64: 1, 128, 128>}, {transform_indices = @transform_1, window_bounds = array<i64: 1, 128, 128>}, {transform_indices = @transform_2, window_bounds = array<i64: 1, 128, 128>}, {transform_indices = @transform_3, window_bounds = array<i64: 1, 1, 128>}, {transform_indices = @transform_4, window_bounds = array<i64: 2>}, {transform_indices = @transform_5, window_bounds = array<i64: 1, 128, 128>}]} {
    %c0_i32 = arith.constant 0 : i32
    %0 = arith.cmpi eq, %arg2, %c0_i32 : i32
    %1 = arith.extui %0 : i1 to i32
    %c0_i32_0 = arith.constant 0 : i32
    %2 = arith.cmpi ne, %1, %c0_i32_0 : i32
    scf.if %2 {
      %cst_5 = arith.constant -1.000000e+30 : f32
      %15 = vector.broadcast %cst_5 : f32 to vector<4x128x1xf32>
      %c0 = arith.constant 0 : index
      %c0_6 = arith.constant 0 : index
      %c0_7 = arith.constant 0 : index
      %16 = vector.load %arg9[%c0, %c0_6, %c0_7] : memref<4x128x1xf32, #tpu.memory_space<vmem>>, vector<4x128x1xf32>
      tpu.vector_store %arg9[%c0, %c0_6, %c0_7], %15 {strides = array<i32>} : memref<4x128x1xf32, #tpu.memory_space<vmem>>, vector<4x128x1xf32>,
      %cst_8 = arith.constant 0.000000e+00 : f32
      %17 = vector.broadcast %cst_8 : f32 to vector<4x128x1xf32>
      %c0_9 = arith.constant 0 : index
      %c0_10 = arith.constant 0 : index
      %c0_11 = arith.constant 0 : index
      %18 = vector.load %arg10[%c0_9, %c0_10, %c0_11] : memref<4x128x1xf32, #tpu.memory_space<vmem>>, vector<4x128x1xf32>
      tpu.vector_store %arg10[%c0_9, %c0_10, %c0_11], %17 {strides = array<i32>} : memref<4x128x1xf32, #tpu.memory_space<vmem>>, vector<4x128x1xf32>,
      %cst_12 = arith.constant 0.000000e+00 : f32
      %19 = vector.broadcast %cst_12 : f32 to vector<4x128x32xf32>
      %c0_13 = arith.constant 0 : index
      %c0_14 = arith.constant 0 : index
      %c0_15 = arith.constant 0 : index
      %20 = vector.load %arg11[%c0_13, %c0_14, %c0_15] : memref<4x128x32xf32, #tpu.memory_space<vmem>>, vector<4x128x32xf32>
      tpu.vector_store %arg11[%c0_13, %c0_14, %c0_15], %19 {strides = array<i32>} : memref<4x128x32xf32, #tpu.memory_space<vmem>>, vector<4x128x32xf32>,
    } else {
    }
    %3 = arith.index_cast %arg0 : i32 to index
    %4 = memref.load %arg7[%3] : memref<2xf32, #tpu.memory_space<smem>>
    %cst = arith.constant 0.176776692 : f32
    %5 = arith.mulf %4, %cst : f32
    %c128_i32 = arith.constant 128 : i32
    %6 = arith.muli %arg2, %c128_i32 : i32
    %c1_i32 = arith.constant 1 : i32
    %7 = arith.addi %arg1, %c1_i32 : i32
    %c128_i32_1 = arith.constant 128 : i32
    %8 = arith.muli %7, %c128_i32_1 : i32
    %9 = arith.cmpi slt, %6, %8 : i32
    %10 = arith.extui %9 : i1 to i32
    %c0_i32_2 = arith.constant 0 : i32
    %11 = arith.cmpi ne, %10, %c0_i32_2 : i32
    scf.if %11 {
      %c0 = arith.constant 0 : index
      %c0_5 = arith.constant 0 : index
      %c0_6 = arith.constant 0 : index
      %15 = vector.load %arg3[%c0, %c0_5, %c0_6] : memref<1x128x128xbf16, #tpu.memory_space<vmem>>, vector<1x128x128xbf16>
      %16 = vector.shape_cast %15 : vector<1x128x128xbf16> to vector<128x128xbf16>
      %c0_7 = arith.constant 0 : index
      %c0_8 = arith.constant 0 : index
      %c0_9 = arith.constant 0 : index
      %17 = vector.load %arg4[%c0_7, %c0_8, %c0_9] : memref<1x128x128xbf16, #tpu.memory_space<vmem>>, vector<1x128x128xbf16>
      %18 = vector.shape_cast %17 : vector<1x128x128xbf16> to vector<128x128xbf16>
      %c0_10 = arith.constant 0 : index
      %c0_11 = arith.constant 0 : index
      %c0_12 = arith.constant 0 : index
      %19 = vector.load %arg5[%c0_10, %c0_11, %c0_12] : memref<1x128x128xbf16, #tpu.memory_space<vmem>>, vector<1x128x128xbf16>
      %20 = vector.shape_cast %19 : vector<1x128x128xbf16> to vector<128x128xbf16>
      %c0_13 = arith.constant 0 : index
      %c0_14 = arith.constant 0 : index
      %c0_15 = arith.constant 0 : index
      %21 = vector.load %arg6[%c0_13, %c0_14, %c0_15] : memref<1x1x128xf32, #tpu.memory_space<vmem>>, vector<1x1x128xf32>
      %22 = vector.shape_cast %21 : vector<1x1x128xf32> to vector<1x128xf32>
      %c128_i32_16 = arith.constant 128 : i32
      %23 = arith.muli %arg1, %c128_i32_16 : i32
      %24 = tpu.iota {dimensions = array<i32: 0>} : vector<128x128xi32>
      %25 = vector.broadcast %23 : i32 to vector<128x128xi32>
      %26 = arith.addi %25, %24 : vector<128x128xi32>
      %c128_i32_17 = arith.constant 128 : i32
      %27 = arith.muli %arg2, %c128_i32_17 : i32
      %28 = tpu.iota {dimensions = array<i32: 1>} : vector<128x128xi32>
      %29 = vector.broadcast %27 : i32 to vector<128x128xi32>
      %30 = arith.addi %29, %28 : vector<128x128xi32>
      %31 = arith.cmpi sgt, %30, %26 : vector<128x128xi32>
      %cst_18 = arith.constant -1.000000e+30 : f32
      %32 = vector.broadcast %cst_18 : f32 to vector<128x128xf32>
      %33 = vector.shape_cast %22 : vector<1x128xf32> to vector<1x128xf32>
      %34 = vector.broadcast %33 : vector<1x128xf32> to vector<128x128xf32>
      %35 = arith.select %31, %32, %34 : vector<128x128xi1>, vector<128x128xf32>
      %36 = vector.extract_strided_slice %16 {offsets = [0, 0], sizes = [128, 32], strides = [1, 1]} : vector<128x128xbf16> to vector<128x32xbf16>
      %37 = vector.extract_strided_slice %18 {offsets = [0, 0], sizes = [128, 32], strides = [1, 1]} : vector<128x128xbf16> to vector<128x32xbf16>
      %38 = vector.extract_strided_slice %20 {offsets = [0, 0], sizes = [128, 32], strides = [1, 1]} : vector<128x128xbf16> to vector<128x32xbf16>
      %cst_19 = arith.constant dense<0.000000e+00> : vector<128x128xf32>
      %39 = tpu.matmul %36, %37, %cst_19 {dimension_numbers = #tpu.dot_dimension_numbers<[1], [1], [0], [0], [0, 0, 1, 0], [], []>} : vector<128x32xbf16>, vector<128x32xbf16>, vector<128x128xf32> -> vector<128x128xf32>
      %40 = vector.broadcast %5 : f32 to vector<128x128xf32>
      %41 = arith.mulf %39, %40 : vector<128x128xf32>
      %42 = arith.addf %41, %35 : vector<128x128xf32>
      %c0_20 = arith.constant 0 : index
      %c0_21 = arith.constant 0 : index
      %c0_22 = arith.constant 0 : index
      %43 = vector.load %arg9[%c0_20, %c0_21, %c0_22] : memref<4x128x1xf32, #tpu.memory_space<vmem>>, vector<1x128x1xf32>
      %44 = vector.shape_cast %43 : vector<1x128x1xf32> to vector<128x1xf32>
      %cst_23 = arith.constant dense<0xFF800000> : vector<128xf32>
      %45 = vector.multi_reduction <maximumf>, %42, %cst_23 [1] : vector<128x128xf32> to vector<128xf32>
      %46 = vector.shape_cast %45 : vector<128xf32> to vector<128x1xf32>
      %47 = arith.maximumf %44, %46 : vector<128x1xf32>
      %48 = arith.subf %44, %47 : vector<128x1xf32>
      %49 = math.exp %48 : vector<128x1xf32>
      %50 = vector.broadcast %47 : vector<128x1xf32> to vector<128x128xf32>
      %51 = arith.subf %42, %50 : vector<128x128xf32>
      %52 = math.exp %51 : vector<128x128xf32>
      %c0_24 = arith.constant 0 : index
      %c0_25 = arith.constant 0 : index
      %c0_26 = arith.constant 0 : index
      %53 = vector.load %arg10[%c0_24, %c0_25, %c0_26] : memref<4x128x1xf32, #tpu.memory_space<vmem>>, vector<1x128x1xf32>
      %54 = vector.shape_cast %53 : vector<1x128x1xf32> to vector<128x1xf32>
      %55 = arith.mulf %49, %54 : vector<128x1xf32>
      %cst_27 = arith.constant dense<0.000000e+00> : vector<128xf32>
      %56 = vector.multi_reduction <add>, %52, %cst_27 [1] : vector<128x128xf32> to vector<128xf32>
      %57 = vector.shape_cast %56 : vector<128xf32> to vector<128x1xf32>
      %58 = arith.addf %55, %57 : vector<128x1xf32>
      %c0_28 = arith.constant 0 : index
      %c0_29 = arith.constant 0 : index
      %c0_30 = arith.constant 0 : index
      %59 = vector.load %arg10[%c0_28, %c0_29, %c0_30] : memref<4x128x1xf32, #tpu.memory_space<vmem>>, vector<1x128x1xf32>
      %60 = vector.shape_cast %59 : vector<1x128x1xf32> to vector<128x1xf32>
      %61 = vector.shape_cast %58 : vector<128x1xf32> to vector<1x128x1xf32>
      tpu.vector_store %arg10[%c0_28, %c0_29, %c0_30], %61 {strides = array<i32>} : memref<4x128x1xf32, #tpu.memory_space<vmem>>, vector<1x128x1xf32>,
      %c0_31 = arith.constant 0 : index
      %c0_32 = arith.constant 0 : index
      %c0_33 = arith.constant 0 : index
      %62 = vector.load %arg11[%c0_31, %c0_32, %c0_33] : memref<4x128x32xf32, #tpu.memory_space<vmem>>, vector<1x128x32xf32>
      %63 = vector.shape_cast %62 : vector<1x128x32xf32> to vector<128x32xf32>
      %64 = vector.broadcast %49 : vector<128x1xf32> to vector<128x32xf32>
      %65 = arith.mulf %64, %63 : vector<128x32xf32>
      %66 = arith.truncf %52 : vector<128x128xf32> to vector<128x128xbf16>
      %cst_34 = arith.constant dense<0.000000e+00> : vector<128x32xf32>
      %67 = tpu.matmul %66, %38, %cst_34 {dimension_numbers = #tpu.dot_dimension_numbers<[1], [0], [0], [1], [0, 0, 1, 1], [], []>} : vector<128x128xbf16>, vector<128x32xbf16>, vector<128x32xf32> -> vector<128x32xf32>
      %68 = arith.addf %65, %67 : vector<128x32xf32>
      %c0_35 = arith.constant 0 : index
      %c0_36 = arith.constant 0 : index
      %c0_37 = arith.constant 0 : index
      %69 = vector.load %arg11[%c0_35, %c0_36, %c0_37] : memref<4x128x32xf32, #tpu.memory_space<vmem>>, vector<1x128x32xf32>
      %70 = vector.shape_cast %69 : vector<1x128x32xf32> to vector<128x32xf32>
      %71 = vector.shape_cast %68 : vector<128x32xf32> to vector<1x128x32xf32>
      tpu.vector_store %arg11[%c0_35, %c0_36, %c0_37], %71 {strides = array<i32>} : memref<4x128x32xf32, #tpu.memory_space<vmem>>, vector<1x128x32xf32>,
      %c0_38 = arith.constant 0 : index
      %c0_39 = arith.constant 0 : index
      %c0_40 = arith.constant 0 : index
      %72 = vector.load %arg9[%c0_38, %c0_39, %c0_40] : memref<4x128x1xf32, #tpu.memory_space<vmem>>, vector<1x128x1xf32>
      %73 = vector.shape_cast %72 : vector<1x128x1xf32> to vector<128x1xf32>
      %74 = vector.shape_cast %47 : vector<128x1xf32> to vector<1x128x1xf32>
      tpu.vector_store %arg9[%c0_38, %c0_39, %c0_40], %74 {strides = array<i32>} : memref<4x128x1xf32, #tpu.memory_space<vmem>>, vector<1x128x1xf32>,
      %75 = vector.extract_strided_slice %16 {offsets = [0, 32], sizes = [128, 32], strides = [1, 1]} : vector<128x128xbf16> to vector<128x32xbf16>
      %76 = vector.extract_strided_slice %18 {offsets = [0, 32], sizes = [128, 32], strides = [1, 1]} : vector<128x128xbf16> to vector<128x32xbf16>
      %77 = vector.extract_strided_slice %20 {offsets = [0, 32], sizes = [128, 32], strides = [1, 1]} : vector<128x128xbf16> to vector<128x32xbf16>
      %cst_41 = arith.constant dense<0.000000e+00> : vector<128x128xf32>
      %78 = tpu.matmul %75, %76, %cst_41 {dimension_numbers = #tpu.dot_dimension_numbers<[1], [1], [0], [0], [0, 0, 1, 0], [], []>} : vector<128x32xbf16>, vector<128x32xbf16>, vector<128x128xf32> -> vector<128x128xf32>
      %79 = vector.broadcast %5 : f32 to vector<128x128xf32>
      %80 = arith.mulf %78, %79 : vector<128x128xf32>
      %81 = arith.addf %80, %35 : vector<128x128xf32>
      %c1 = arith.constant 1 : index
      %c0_42 = arith.constant 0 : index
      %c0_43 = arith.constant 0 : index
      %82 = vector.load %arg9[%c1, %c0_42, %c0_43] : memref<4x128x1xf32, #tpu.memory_space<vmem>>, vector<1x128x1xf32>
      %83 = vector.shape_cast %82 : vector<1x128x1xf32> to vector<128x1xf32>
      %cst_44 = arith.constant dense<0xFF800000> : vector<128xf32>
      %84 = vector.multi_reduction <maximumf>, %81, %cst_44 [1] : vector<128x128xf32> to vector<128xf32>
      %85 = vector.shape_cast %84 : vector<128xf32> to vector<128x1xf32>
      %86 = arith.maximumf %83, %85 : vector<128x1xf32>
      %87 = arith.subf %83, %86 : vector<128x1xf32>
      %88 = math.exp %87 : vector<128x1xf32>
      %89 = vector.broadcast %86 : vector<128x1xf32> to vector<128x128xf32>
      %90 = arith.subf %81, %89 : vector<128x128xf32>
      %91 = math.exp %90 : vector<128x128xf32>
      %c1_45 = arith.constant 1 : index
      %c0_46 = arith.constant 0 : index
      %c0_47 = arith.constant 0 : index
      %92 = vector.load %arg10[%c1_45, %c0_46, %c0_47] : memref<4x128x1xf32, #tpu.memory_space<vmem>>, vector<1x128x1xf32>
      %93 = vector.shape_cast %92 : vector<1x128x1xf32> to vector<128x1xf32>
      %94 = arith.mulf %88, %93 : vector<128x1xf32>
      %cst_48 = arith.constant dense<0.000000e+00> : vector<128xf32>
      %95 = vector.multi_reduction <add>, %91, %cst_48 [1] : vector<128x128xf32> to vector<128xf32>
      %96 = vector.shape_cast %95 : vector<128xf32> to vector<128x1xf32>
      %97 = arith.addf %94, %96 : vector<128x1xf32>
      %c1_49 = arith.constant 1 : index
      %c0_50 = arith.constant 0 : index
      %c0_51 = arith.constant 0 : index
      %98 = vector.load %arg10[%c1_49, %c0_50, %c0_51] : memref<4x128x1xf32, #tpu.memory_space<vmem>>, vector<1x128x1xf32>
      %99 = vector.shape_cast %98 : vector<1x128x1xf32> to vector<128x1xf32>
      %100 = vector.shape_cast %97 : vector<128x1xf32> to vector<1x128x1xf32>
      tpu.vector_store %arg10[%c1_49, %c0_50, %c0_51], %100 {strides = array<i32>} : memref<4x128x1xf32, #tpu.memory_space<vmem>>, vector<1x128x1xf32>,
      %c1_52 = arith.constant 1 : index
      %c0_53 = arith.constant 0 : index
      %c0_54 = arith.constant 0 : index
      %101 = vector.load %arg11[%c1_52, %c0_53, %c0_54] : memref<4x128x32xf32, #tpu.memory_space<vmem>>, vector<1x128x32xf32>
      %102 = vector.shape_cast %101 : vector<1x128x32xf32> to vector<128x32xf32>
      %103 = vector.broadcast %88 : vector<128x1xf32> to vector<128x32xf32>
      %104 = arith.mulf %103, %102 : vector<128x32xf32>
      %105 = arith.truncf %91 : vector<128x128xf32> to vector<128x128xbf16>
      %cst_55 = arith.constant dense<0.000000e+00> : vector<128x32xf32>
      %106 = tpu.matmul %105, %77, %cst_55 {dimension_numbers = #tpu.dot_dimension_numbers<[1], [0], [0], [1], [0, 0, 1, 1], [], []>} : vector<128x128xbf16>, vector<128x32xbf16>, vector<128x32xf32> -> vector<128x32xf32>
      %107 = arith.addf %104, %106 : vector<128x32xf32>
      %c1_56 = arith.constant 1 : index
      %c0_57 = arith.constant 0 : index
      %c0_58 = arith.constant 0 : index
      %108 = vector.load %arg11[%c1_56, %c0_57, %c0_58] : memref<4x128x32xf32, #tpu.memory_space<vmem>>, vector<1x128x32xf32>
      %109 = vector.shape_cast %108 : vector<1x128x32xf32> to vector<128x32xf32>
      %110 = vector.shape_cast %107 : vector<128x32xf32> to vector<1x128x32xf32>
      tpu.vector_store %arg11[%c1_56, %c0_57, %c0_58], %110 {strides = array<i32>} : memref<4x128x32xf32, #tpu.memory_space<vmem>>, vector<1x128x32xf32>,
      %c1_59 = arith.constant 1 : index
      %c0_60 = arith.constant 0 : index
      %c0_61 = arith.constant 0 : index
      %111 = vector.load %arg9[%c1_59, %c0_60, %c0_61] : memref<4x128x1xf32, #tpu.memory_space<vmem>>, vector<1x128x1xf32>
      %112 = vector.shape_cast %111 : vector<1x128x1xf32> to vector<128x1xf32>
      %113 = vector.shape_cast %86 : vector<128x1xf32> to vector<1x128x1xf32>
      tpu.vector_store %arg9[%c1_59, %c0_60, %c0_61], %113 {strides = array<i32>} : memref<4x128x1xf32, #tpu.memory_space<vmem>>, vector<1x128x1xf32>,
      %114 = vector.extract_strided_slice %16 {offsets = [0, 64], sizes = [128, 32], strides = [1, 1]} : vector<128x128xbf16> to vector<128x32xbf16>
      %115 = vector.extract_strided_slice %18 {offsets = [0, 64], sizes = [128, 32], strides = [1, 1]} : vector<128x128xbf16> to vector<128x32xbf16>
      %116 = vector.extract_strided_slice %20 {offsets = [0, 64], sizes = [128, 32], strides = [1, 1]} : vector<128x128xbf16> to vector<128x32xbf16>
      %cst_62 = arith.constant dense<0.000000e+00> : vector<128x128xf32>
      %117 = tpu.matmul %114, %115, %cst_62 {dimension_numbers = #tpu.dot_dimension_numbers<[1], [1], [0], [0], [0, 0, 1, 0], [], []>} : vector<128x32xbf16>, vector<128x32xbf16>, vector<128x128xf32> -> vector<128x128xf32>
      %118 = vector.broadcast %5 : f32 to vector<128x128xf32>
      %119 = arith.mulf %117, %118 : vector<128x128xf32>
      %120 = arith.addf %119, %35 : vector<128x128xf32>
      %c2 = arith.constant 2 : index
      %c0_63 = arith.constant 0 : index
      %c0_64 = arith.constant 0 : index
      %121 = vector.load %arg9[%c2, %c0_63, %c0_64] : memref<4x128x1xf32, #tpu.memory_space<vmem>>, vector<1x128x1xf32>
      %122 = vector.shape_cast %121 : vector<1x128x1xf32> to vector<128x1xf32>
      %cst_65 = arith.constant dense<0xFF800000> : vector<128xf32>
      %123 = vector.multi_reduction <maximumf>, %120, %cst_65 [1] : vector<128x128xf32> to vector<128xf32>
      %124 = vector.shape_cast %123 : vector<128xf32> to vector<128x1xf32>
      %125 = arith.maximumf %122, %124 : vector<128x1xf32>
      %126 = arith.subf %122, %125 : vector<128x1xf32>
      %127 = math.exp %126 : vector<128x1xf32>
      %128 = vector.broadcast %125 : vector<128x1xf32> to vector<128x128xf32>
      %129 = arith.subf %120, %128 : vector<128x128xf32>
      %130 = math.exp %129 : vector<128x128xf32>
      %c2_66 = arith.constant 2 : index
      %c0_67 = arith.constant 0 : index
      %c0_68 = arith.constant 0 : index
      %131 = vector.load %arg10[%c2_66, %c0_67, %c0_68] : memref<4x128x1xf32, #tpu.memory_space<vmem>>, vector<1x128x1xf32>
      %132 = vector.shape_cast %131 : vector<1x128x1xf32> to vector<128x1xf32>
      %133 = arith.mulf %127, %132 : vector<128x1xf32>
      %cst_69 = arith.constant dense<0.000000e+00> : vector<128xf32>
      %134 = vector.multi_reduction <add>, %130, %cst_69 [1] : vector<128x128xf32> to vector<128xf32>
      %135 = vector.shape_cast %134 : vector<128xf32> to vector<128x1xf32>
      %136 = arith.addf %133, %135 : vector<128x1xf32>
      %c2_70 = arith.constant 2 : index
      %c0_71 = arith.constant 0 : index
      %c0_72 = arith.constant 0 : index
      %137 = vector.load %arg10[%c2_70, %c0_71, %c0_72] : memref<4x128x1xf32, #tpu.memory_space<vmem>>, vector<1x128x1xf32>
      %138 = vector.shape_cast %137 : vector<1x128x1xf32> to vector<128x1xf32>
      %139 = vector.shape_cast %136 : vector<128x1xf32> to vector<1x128x1xf32>
      tpu.vector_store %arg10[%c2_70, %c0_71, %c0_72], %139 {strides = array<i32>} : memref<4x128x1xf32, #tpu.memory_space<vmem>>, vector<1x128x1xf32>,
      %c2_73 = arith.constant 2 : index
      %c0_74 = arith.constant 0 : index
      %c0_75 = arith.constant 0 : index
      %140 = vector.load %arg11[%c2_73, %c0_74, %c0_75] : memref<4x128x32xf32, #tpu.memory_space<vmem>>, vector<1x128x32xf32>
      %141 = vector.shape_cast %140 : vector<1x128x32xf32> to vector<128x32xf32>
      %142 = vector.broadcast %127 : vector<128x1xf32> to vector<128x32xf32>
      %143 = arith.mulf %142, %141 : vector<128x32xf32>
      %144 = arith.truncf %130 : vector<128x128xf32> to vector<128x128xbf16>
      %cst_76 = arith.constant dense<0.000000e+00> : vector<128x32xf32>
      %145 = tpu.matmul %144, %116, %cst_76 {dimension_numbers = #tpu.dot_dimension_numbers<[1], [0], [0], [1], [0, 0, 1, 1], [], []>} : vector<128x128xbf16>, vector<128x32xbf16>, vector<128x32xf32> -> vector<128x32xf32>
      %146 = arith.addf %143, %145 : vector<128x32xf32>
      %c2_77 = arith.constant 2 : index
      %c0_78 = arith.constant 0 : index
      %c0_79 = arith.constant 0 : index
      %147 = vector.load %arg11[%c2_77, %c0_78, %c0_79] : memref<4x128x32xf32, #tpu.memory_space<vmem>>, vector<1x128x32xf32>
      %148 = vector.shape_cast %147 : vector<1x128x32xf32> to vector<128x32xf32>
      %149 = vector.shape_cast %146 : vector<128x32xf32> to vector<1x128x32xf32>
      tpu.vector_store %arg11[%c2_77, %c0_78, %c0_79], %149 {strides = array<i32>} : memref<4x128x32xf32, #tpu.memory_space<vmem>>, vector<1x128x32xf32>,
      %c2_80 = arith.constant 2 : index
      %c0_81 = arith.constant 0 : index
      %c0_82 = arith.constant 0 : index
      %150 = vector.load %arg9[%c2_80, %c0_81, %c0_82] : memref<4x128x1xf32, #tpu.memory_space<vmem>>, vector<1x128x1xf32>
      %151 = vector.shape_cast %150 : vector<1x128x1xf32> to vector<128x1xf32>
      %152 = vector.shape_cast %125 : vector<128x1xf32> to vector<1x128x1xf32>
      tpu.vector_store %arg9[%c2_80, %c0_81, %c0_82], %152 {strides = array<i32>} : memref<4x128x1xf32, #tpu.memory_space<vmem>>, vector<1x128x1xf32>,
      %153 = vector.extract_strided_slice %16 {offsets = [0, 96], sizes = [128, 32], strides = [1, 1]} : vector<128x128xbf16> to vector<128x32xbf16>
      %154 = vector.extract_strided_slice %18 {offsets = [0, 96], sizes = [128, 32], strides = [1, 1]} : vector<128x128xbf16> to vector<128x32xbf16>
      %155 = vector.extract_strided_slice %20 {offsets = [0, 96], sizes = [128, 32], strides = [1, 1]} : vector<128x128xbf16> to vector<128x32xbf16>
      %cst_83 = arith.constant dense<0.000000e+00> : vector<128x128xf32>
      %156 = tpu.matmul %153, %154, %cst_83 {dimension_numbers = #tpu.dot_dimension_numbers<[1], [1], [0], [0], [0, 0, 1, 0], [], []>} : vector<128x32xbf16>, vector<128x32xbf16>, vector<128x128xf32> -> vector<128x128xf32>
      %157 = vector.broadcast %5 : f32 to vector<128x128xf32>
      %158 = arith.mulf %156, %157 : vector<128x128xf32>
      %159 = arith.addf %158, %35 : vector<128x128xf32>
      %c3 = arith.constant 3 : index
      %c0_84 = arith.constant 0 : index
      %c0_85 = arith.constant 0 : index
      %160 = vector.load %arg9[%c3, %c0_84, %c0_85] : memref<4x128x1xf32, #tpu.memory_space<vmem>>, vector<1x128x1xf32>
      %161 = vector.shape_cast %160 : vector<1x128x1xf32> to vector<128x1xf32>
      %cst_86 = arith.constant dense<0xFF800000> : vector<128xf32>
      %162 = vector.multi_reduction <maximumf>, %159, %cst_86 [1] : vector<128x128xf32> to vector<128xf32>
      %163 = vector.shape_cast %162 : vector<128xf32> to vector<128x1xf32>
      %164 = arith.maximumf %161, %163 : vector<128x1xf32>
      %165 = arith.subf %161, %164 : vector<128x1xf32>
      %166 = math.exp %165 : vector<128x1xf32>
      %167 = vector.broadcast %164 : vector<128x1xf32> to vector<128x128xf32>
      %168 = arith.subf %159, %167 : vector<128x128xf32>
      %169 = math.exp %168 : vector<128x128xf32>
      %c3_87 = arith.constant 3 : index
      %c0_88 = arith.constant 0 : index
      %c0_89 = arith.constant 0 : index
      %170 = vector.load %arg10[%c3_87, %c0_88, %c0_89] : memref<4x128x1xf32, #tpu.memory_space<vmem>>, vector<1x128x1xf32>
      %171 = vector.shape_cast %170 : vector<1x128x1xf32> to vector<128x1xf32>
      %172 = arith.mulf %166, %171 : vector<128x1xf32>
      %cst_90 = arith.constant dense<0.000000e+00> : vector<128xf32>
      %173 = vector.multi_reduction <add>, %169, %cst_90 [1] : vector<128x128xf32> to vector<128xf32>
      %174 = vector.shape_cast %173 : vector<128xf32> to vector<128x1xf32>
      %175 = arith.addf %172, %174 : vector<128x1xf32>
      %c3_91 = arith.constant 3 : index
      %c0_92 = arith.constant 0 : index
      %c0_93 = arith.constant 0 : index
      %176 = vector.load %arg10[%c3_91, %c0_92, %c0_93] : memref<4x128x1xf32, #tpu.memory_space<vmem>>, vector<1x128x1xf32>
      %177 = vector.shape_cast %176 : vector<1x128x1xf32> to vector<128x1xf32>
      %178 = vector.shape_cast %175 : vector<128x1xf32> to vector<1x128x1xf32>
      tpu.vector_store %arg10[%c3_91, %c0_92, %c0_93], %178 {strides = array<i32>} : memref<4x128x1xf32, #tpu.memory_space<vmem>>, vector<1x128x1xf32>,
      %c3_94 = arith.constant 3 : index
      %c0_95 = arith.constant 0 : index
      %c0_96 = arith.constant 0 : index
      %179 = vector.load %arg11[%c3_94, %c0_95, %c0_96] : memref<4x128x32xf32, #tpu.memory_space<vmem>>, vector<1x128x32xf32>
      %180 = vector.shape_cast %179 : vector<1x128x32xf32> to vector<128x32xf32>
      %181 = vector.broadcast %166 : vector<128x1xf32> to vector<128x32xf32>
      %182 = arith.mulf %181, %180 : vector<128x32xf32>
      %183 = arith.truncf %169 : vector<128x128xf32> to vector<128x128xbf16>
      %cst_97 = arith.constant dense<0.000000e+00> : vector<128x32xf32>
      %184 = tpu.matmul %183, %155, %cst_97 {dimension_numbers = #tpu.dot_dimension_numbers<[1], [0], [0], [1], [0, 0, 1, 1], [], []>} : vector<128x128xbf16>, vector<128x32xbf16>, vector<128x32xf32> -> vector<128x32xf32>
      %185 = arith.addf %182, %184 : vector<128x32xf32>
      %c3_98 = arith.constant 3 : index
      %c0_99 = arith.constant 0 : index
      %c0_100 = arith.constant 0 : index
      %186 = vector.load %arg11[%c3_98, %c0_99, %c0_100] : memref<4x128x32xf32, #tpu.memory_space<vmem>>, vector<1x128x32xf32>
      %187 = vector.shape_cast %186 : vector<1x128x32xf32> to vector<128x32xf32>
      %188 = vector.shape_cast %185 : vector<128x32xf32> to vector<1x128x32xf32>
      tpu.vector_store %arg11[%c3_98, %c0_99, %c0_100], %188 {strides = array<i32>} : memref<4x128x32xf32, #tpu.memory_space<vmem>>, vector<1x128x32xf32>,
      %c3_101 = arith.constant 3 : index
      %c0_102 = arith.constant 0 : index
      %c0_103 = arith.constant 0 : index
      %189 = vector.load %arg9[%c3_101, %c0_102, %c0_103] : memref<4x128x1xf32, #tpu.memory_space<vmem>>, vector<1x128x1xf32>
      %190 = vector.shape_cast %189 : vector<1x128x1xf32> to vector<128x1xf32>
      %191 = vector.shape_cast %164 : vector<128x1xf32> to vector<1x128x1xf32>
      tpu.vector_store %arg9[%c3_101, %c0_102, %c0_103], %191 {strides = array<i32>} : memref<4x128x1xf32, #tpu.memory_space<vmem>>, vector<1x128x1xf32>,
    } else {
    }
    %c1_i32_3 = arith.constant 1 : i32
    %12 = arith.cmpi eq, %arg2, %c1_i32_3 : i32
    %13 = arith.extui %12 : i1 to i32
    %c0_i32_4 = arith.constant 0 : i32
    %14 = arith.cmpi ne, %13, %c0_i32_4 : i32
    scf.if %14 {
      %c0 = arith.constant 0 : index
      %c0_5 = arith.constant 0 : index
      %c0_6 = arith.constant 0 : index
      %15 = vector.load %arg10[%c0, %c0_5, %c0_6] : memref<4x128x1xf32, #tpu.memory_space<vmem>>, vector<1x128x1xf32>
      %16 = vector.shape_cast %15 : vector<1x128x1xf32> to vector<128x1xf32>
      %cst_7 = arith.constant 1.000000e+00 : f32
      %17 = vector.broadcast %cst_7 : f32 to vector<128x1xf32>
      %18 = arith.divf %17, %16 : vector<128x1xf32>
      %c0_8 = arith.constant 0 : index
      %c0_9 = arith.constant 0 : index
      %c0_10 = arith.constant 0 : index
      %19 = vector.load %arg11[%c0_8, %c0_9, %c0_10] : memref<4x128x32xf32, #tpu.memory_space<vmem>>, vector<1x128x32xf32>
      %20 = vector.shape_cast %19 : vector<1x128x32xf32> to vector<128x32xf32>
      %21 = vector.broadcast %18 : vector<128x1xf32> to vector<128x32xf32>
      %22 = arith.mulf %20, %21 : vector<128x32xf32>
      %23 = arith.truncf %22 : vector<128x32xf32> to vector<128x32xbf16>
      %c1 = arith.constant 1 : index
      %c0_11 = arith.constant 0 : index
      %c0_12 = arith.constant 0 : index
      %24 = vector.load %arg10[%c1, %c0_11, %c0_12] : memref<4x128x1xf32, #tpu.memory_space<vmem>>, vector<1x128x1xf32>
      %25 = vector.shape_cast %24 : vector<1x128x1xf32> to vector<128x1xf32>
      %cst_13 = arith.constant 1.000000e+00 : f32
      %26 = vector.broadcast %cst_13 : f32 to vector<128x1xf32>
      %27 = arith.divf %26, %25 : vector<128x1xf32>
      %c1_14 = arith.constant 1 : index
      %c0_15 = arith.constant 0 : index
      %c0_16 = arith.constant 0 : index
      %28 = vector.load %arg11[%c1_14, %c0_15, %c0_16] : memref<4x128x32xf32, #tpu.memory_space<vmem>>, vector<1x128x32xf32>
      %29 = vector.shape_cast %28 : vector<1x128x32xf32> to vector<128x32xf32>
      %30 = vector.broadcast %27 : vector<128x1xf32> to vector<128x32xf32>
      %31 = arith.mulf %29, %30 : vector<128x32xf32>
      %32 = arith.truncf %31 : vector<128x32xf32> to vector<128x32xbf16>
      %c2 = arith.constant 2 : index
      %c0_17 = arith.constant 0 : index
      %c0_18 = arith.constant 0 : index
      %33 = vector.load %arg10[%c2, %c0_17, %c0_18] : memref<4x128x1xf32, #tpu.memory_space<vmem>>, vector<1x128x1xf32>
      %34 = vector.shape_cast %33 : vector<1x128x1xf32> to vector<128x1xf32>
      %cst_19 = arith.constant 1.000000e+00 : f32
      %35 = vector.broadcast %cst_19 : f32 to vector<128x1xf32>
      %36 = arith.divf %35, %34 : vector<128x1xf32>
      %c2_20 = arith.constant 2 : index
      %c0_21 = arith.constant 0 : index
      %c0_22 = arith.constant 0 : index
      %37 = vector.load %arg11[%c2_20, %c0_21, %c0_22] : memref<4x128x32xf32, #tpu.memory_space<vmem>>, vector<1x128x32xf32>
      %38 = vector.shape_cast %37 : vector<1x128x32xf32> to vector<128x32xf32>
      %39 = vector.broadcast %36 : vector<128x1xf32> to vector<128x32xf32>
      %40 = arith.mulf %38, %39 : vector<128x32xf32>
      %41 = arith.truncf %40 : vector<128x32xf32> to vector<128x32xbf16>
      %c3 = arith.constant 3 : index
      %c0_23 = arith.constant 0 : index
      %c0_24 = arith.constant 0 : index
      %42 = vector.load %arg10[%c3, %c0_23, %c0_24] : memref<4x128x1xf32, #tpu.memory_space<vmem>>, vector<1x128x1xf32>
      %43 = vector.shape_cast %42 : vector<1x128x1xf32> to vector<128x1xf32>
      %cst_25 = arith.constant 1.000000e+00 : f32
      %44 = vector.broadcast %cst_25 : f32 to vector<128x1xf32>
      %45 = arith.divf %44, %43 : vector<128x1xf32>
      %c3_26 = arith.constant 3 : index
      %c0_27 = arith.constant 0 : index
      %c0_28 = arith.constant 0 : index
      %46 = vector.load %arg11[%c3_26, %c0_27, %c0_28] : memref<4x128x32xf32, #tpu.memory_space<vmem>>, vector<1x128x32xf32>
      %47 = vector.shape_cast %46 : vector<1x128x32xf32> to vector<128x32xf32>
      %48 = vector.broadcast %45 : vector<128x1xf32> to vector<128x32xf32>
      %49 = arith.mulf %47, %48 : vector<128x32xf32>
      %50 = arith.truncf %49 : vector<128x32xf32> to vector<128x32xbf16>
      %51 = tpu.concatenate %23, %32, %41, %50 in 1 : vector<128x32xbf16>, vector<128x32xbf16>, vector<128x32xbf16>, vector<128x32xbf16> -> vector<128x128xbf16>
      %c0_29 = arith.constant 0 : index
      %c0_30 = arith.constant 0 : index
      %c0_31 = arith.constant 0 : index
      %52 = vector.load %arg8[%c0_29, %c0_30, %c0_31] : memref<1x128x128xbf16, #tpu.memory_space<vmem>>, vector<1x128x128xbf16>
      %53 = vector.shape_cast %52 : vector<1x128x128xbf16> to vector<128x128xbf16>
      %54 = vector.shape_cast %51 : vector<128x128xbf16> to vector<1x128x128xbf16>
      tpu.vector_store %arg8[%c0_29, %c0_30, %c0_31], %54 {strides = array<i32>} : memref<1x128x128xbf16, #tpu.memory_space<vmem>>, vector<1x128x128xbf16>,
    } else {
    }
    return
  }
  func.func @transform_0(%arg0: i32, %arg1: i32, %arg2: i32) -> (i32, i32, i32) {
    %c0_i32 = arith.constant 0 : i32
    %c0_i32_0 = arith.constant 0 : i32
    return %arg0, %arg1, %c0_i32 : i32, i32, i32
  }
  func.func @transform_1(%arg0: i32, %arg1: i32, %arg2: i32) -> (i32, i32, i32) {
    %c0_i32 = arith.constant 0 : i32
    %c0_i32_0 = arith.constant 0 : i32
    return %arg0, %arg2, %c0_i32 : i32, i32, i32
  }
  func.func @transform_2(%arg0: i32, %arg1: i32, %arg2: i32) -> (i32, i32, i32) {
    %c0_i32 = arith.constant 0 : i32
    %c0_i32_0 = arith.constant 0 : i32
    return %arg0, %arg2, %c0_i32 : i32, i32, i32
  }
  func.func @transform_3(%arg0: i32, %arg1: i32, %arg2: i32) -> (i32, i32, i32) {
    %c0_i32 = arith.constant 0 : i32
    %c0_i32_0 = arith.constant 0 : i32
    return %arg0, %c0_i32, %arg2 : i32, i32, i32
  }
  func.func @transform_4(%arg0: i32, %arg1: i32, %arg2: i32) -> i32 {
    %c0_i32 = arith.constant 0 : i32
    %c0_i32_0 = arith.constant 0 : i32
    return %c0_i32 : i32
  }
  func.func @transform_5(%arg0: i32, %arg1: i32, %arg2: i32) -> (i32, i32, i32) {
    %c0_i32 = arith.constant 0 : i32
    %c0_i32_0 = arith.constant 0 : i32
    return %arg0, %arg1, %c0_i32 : i32, i32, i32
  }
}

</mosaic_0001>

<bundles_post_ra>
// kernel: tpu_custom_call.1
= control target key start
LH: loop header
LB: loop body
LE: loop exit
PB: predicated region body
PF: predicated region fallthrough
CT: control target
= control target key end

     0   :  { %s9991_s0 = inlined_call_operand.hbm [shape: bf16[2,256,128], index: 0, kind: input, shape index: {}]   ;;  %s9992_s1 = inlined_call_operand.hbm [shape: bf16[2,256,128], index: 1, kind: input, shape index: {}]   ;;  %s9993_s2 = inlined_call_operand.hbm [shape: bf16[2,256,128], index: 2, kind: input, shape index: {}]   ;;  %s9994_s3 = inlined_call_operand.vmem [shape: f32[2,1,256], index: 3, kind: input, shape index: {}]   ;;  %s9995_s4 = inlined_call_operand.vmem [shape: f32[2], index: 4, kind: input, shape index: {}]   ;;  %s9996_s5 = inlined_call_operand.hbm [shape: bf16[2,256,128], index: 5, kind: output, shape index: {}]  }
   0x1   :  { %10149 = sst [smem:[#allocation140_spill]] %s9991_s0 }
   0x2   :  { %10150 = sst [smem:[#allocation141_spill]] %s9992_s1 }
   0x3   :  { %10151 = sst [smem:[#allocation142_spill]] %s9993_s2 }
   0x4   :  { %10152 = sst [smem:[#allocation143_spill]] %s9994_s3 }
   0x5   :  { %10153 = sst [smem:[#allocation144_spill]] %s9995_s4 }
   0x6   :  { %10154 = sst [smem:[#allocation145_spill]] %s9996_s5 }
   0x7   :  { %10 = vsyncpa [#allocation6], 0 }
   0x8   :  { %12 = vsyncpa [#allocation6 + $0x1], 0 }
   0x9   :  { %13 = vsyncpa [#allocation10], 0 }
   0xa   :  { %15 = vsyncpa [#allocation10 + $0x1], 0 }
   0xb   :  { %16 = vsyncpa [#allocation8], 0 }
   0xc   :  { %17 = vsyncpa [#allocation7], 0 }
   0xd   :  { %19 = vsyncpa [#allocation7 + $0x1], 0  ;;  %s6659_s18 = smov 0   ;;  %s6661_s19 = smov 0  }
   0xe   :  { %s6663_s20 = smov 0   ;;  %s6665_s21 = smov 0  }
   0xf   :  { %s6667_s22 = smov 0   ;;  %s6669_s23 = smov 0  }
  0x10   :  { %s6671_s24 = smov 0   ;;  %s6673_s25 = smov 0  }
  0x11   :  { %s6675_s26 = smov 0   ;;  %s6677_s27 = smov 0  }
  0x12   :  { %s6679_s28 = smov 0   ;;  %s6681_s29 = smov 0  }
  0x13   :  { %s6683_s30 = smov 0  }
  0x14 LB: > { %10155 = sst [smem:[#allocation18_spill]] %s6564_s19  ;;  %s37_s6 = sadd.s32 1, %s6596_s27  ;;  %s6608_s30 = sphi %s6683_s30, %s25_s30   ;;  %s6604_s29 = sphi %s6681_s29, %s10604_s29   ;;  %s6600_s28 = sphi %s6679_s28, %s10594_s28   ;;  %s6596_s27 = sphi %s6677_s27, %s10603_s27   ;;  %s6592_s26 = sphi %s6675_s26, %s10602_s26   ;;  %s6588_s25 = sphi %s6673_s25, %s10601_s25   ;;  %s6584_s24 = sphi %s6671_s24, %s10600_s24   ;;  %s6580_s23 = sphi %s6669_s23, %s10599_s23   ;;  %s6576_s22 = sphi %s6667_s22, %s10598_s22   ;;  %s6572_s21 = sphi %s6665_s21, %s10591_s21   ;;  %s6568_s20 = sphi %s6663_s20, %s10597_s20   ;;  %s6564_s19 = sphi %s6661_s19, %s10596_s19   ;;  %s6560_s18 = sphi %s6659_s18, %s10590_s18  }
  0x15   : > { %10156 = sst [smem:[#allocation19_spill]] %s6572_s21  ;;  %p6726_p0 = scmp.ge.s32.totalorder %s37_s6, 2 }
  0x16   : > { %10157 = sst [smem:[#allocation20_spill]] %s6576_s22  ;;  %p10006_p1 = scmp.eq.s32.totalorder %s6608_s30, 0 }
  0x17   : > { %10158 = sst [smem:[#allocation21_spill]] %s6584_s24  ;;  %p88_p2 = scmp.ne.s32.totalorder %s6568_s20, %s6564_s19 }
  0x18   : > { %10159 = sst [smem:[#allocation22_spill]] %s6588_s25  ;;  %s10606_s6 = smov (%p6726_p0, %s37_s6), 0 }
  0x19   : > { %10160 = sst [smem:[#allocation23_spill]] %s6592_s26  ;;  %p6740_p3 = por %p88_p2, %p10006_p1 }
  0x1a   : > { %10161 = sst [smem:[#allocation24_spill]] %s6600_s28  ;;  %p10003_p4 = scmp.lt.s32.totalorder %s6608_s30, 8 }
  0x1b   : > { %s5233_s12 = sshll.u32 %s6604_s29, 5  ;;  %s257_s13 = sand.u32 1, %s6608_s30  }
  0x1c   : > { %s259_s14 = sand.u32 1, %s6568_s20   ;;  %s5236_s16 = sshll.u32 %s6596_s27, 4 }
  0x1d   : > { %s5235_s15 = sshll.u32 %s259_s14, 6  ;;  %s267_s17 = sadd.s32 %s5236_s16, %s5233_s12 }
  0x1e   : > { %s5238_s9 = sshll.u32 %s267_s17, 6  ;;  %s261_s7 = scalar_lea.vmem [#allocation9], %s5235_s15 }
  0x1f   : > { %s270_s5 = sshll.u32 %s261_s7, 4  ;;  %s10164_s1 = sld [smem:[#allocation141_spill]]  ;;  %s271_s5 = int_to_ptr.vmem [resolvable:$true] %s270_s5 }
  0x20   : > { %p6760_p5 = pnand %p10003_p4, %p6740_p3  ;;  %s10166_s2 = sld [smem:[#allocation142_spill]] }
  0x21   : > { %s284_s16 = scalar_lea.vmem [#allocation11], %s5235_s15  ;;  %s6771_s3 = scalar_lea.sflag [#allocation10], %s257_s13 }
  0x22   : > { %s293_s7 = sshll.u32 %s284_s16, 4  ;;  %p10002_p6 = pneg %p6760_p5  ;;  %s6769_s7 = int_to_ptr.vmem [resolvable:$true] %s293_s7 }
  0x23   : > { %s6378_s25 = scalar_lea.vmem %s271_s5, 1024  ;;  %s6610_s10 = smov [#allocation9]  }
  0x24   : > { %p6379_p7 = scmp.ne.s32.totalorder %s271_s5, %s6378_s25  ;;  %s6383_s0 = sshll.u32 %s6610_s10, 4  ;;  %s6384_s0 = int_to_ptr.vmem [resolvable:$false] %s6383_s0 }
  0x25   : > { %s269_s24 = scalar_lea.hbm %s10164_s1, %s5238_s9  ;;  %s6385_s26 = scalar_lea.vmem %s6384_s0, 2048 }
  0x26   : > { %s6767_s14 = scalar_lea.hbm %s10166_s2, %s5238_s9  ;;  %p6381_p8 = pnand %p6379_p7, %p10002_p6 }
  0x27   : > { %p6386_p10 = scmp.lt.s32.totalorder %s271_s5, %s6384_s0  ;;  %p6387_p11 = scmp.lt.s32.totalorder %s6385_s26, %s6378_s25 }
  0x28   : > { %p6382_p9 = pneg %p6381_p8 }
  0x29   : > { %p6388_p12 = por %p6387_p11, %p6386_p10 }
  0x2b   : > { %p6389_p13 = pnand %p6388_p12, %p6382_p9 }
  0x2d   : > { %6392 = shalt.err (!%p6389_p13)
}
  0x2e   : > { %s10004_s9 = smov 64   ;;  %s10009_s13 = smov 4  }
  0x2f   : > { %5775 = dma.hbm_to_vmem [thread:$0]  (!%p6760_p5), %s269_s24, 1024, %s271_s5, %s6771_s3, %s10004_s9, %s10004_s9, %s10009_s13  }
  0x30   : > { %s6785_s15 = sadd.s32 4294967295, %s6608_s30   ;;  %s5227_s17 = sadd.s32 4294967294, %s6608_s30  }
  0x31   : > { %10167 = sst [smem:[#allocation25_spill]] %s6785_s15  ;;  %p66_p2 = scmp.ne.s32.totalorder %s6576_s22, %s6572_s21 }
  0x32   : > { %p10026_p3 = scmp.eq.s32.totalorder %s6785_s15, 0  ;;  %p94_p7 = scmp.ne.s32.totalorder %s6564_s19, %s6560_s18 }
  0x33   : > { %p203_p10 = scmp.eq.s32.totalorder %s5227_s17, 7  ;;  %p5228_p12 = scmp.ge.s32.totalorder %s6608_s30, 1 }
  0x34   : > { %p6796_p9 = por %p10026_p3, %p66_p2  ;;  %p6802_p11 = por %p94_p7, %p10026_p3 }
  0x35   : > { %p6807_p13 = por %p203_p10, %p66_p2  ;;  %p210_p6 = scmp.lt.s32.totalorder %s6608_s30, 9 }
  0x36   : > { %s10168_s16 = scalar_select %p6796_p9, 1, 0 }
  0x37   : > { %s10170_s5 = scalar_select %p6802_p11, 1, 0 }
  0x38   : > { %10169 = sst [smem:[#allocation26_spill]] %s10168_s16  ;;  %p6815_p4 = pnand %p5228_p12, %p210_p6 }
  0x39   : > { %10171 = sst [smem:[#allocation27_spill]] %s10170_s5  ;;  %s40_s17 = sadd.s32 1, %s6600_s28 }
  0x3a   : > { %s10172_s24 = scalar_select %p6807_p13, 1, 0 }
  0x3b   : > { %s10174_s4 = sld [smem:[#allocation144_spill]]  ;;  %p5765_p7 = pneg %p6815_p4 }
  0x3c   : > { %10173 = sst [smem:[#allocation28_spill]] %s10172_s24  ;;  %s10608_s17 = smov (!%p6726_p0, %s40_s17), %s6600_s28 }
  0x3d   : > { %p6823_p8 = pnand %p5765_p7, %p10026_p3 }
  0x3f   : > { %p6395_p6 = pneg %p6823_p8 }
  0x41   : > { %s223_s10 = sshll.u32 %s10174_s4, 4  ;;  %s224_s10 = int_to_ptr.vmem [resolvable:$true] %s223_s10 }
  0x42   : > { %s6393_s25 = scalar_lea.vmem %s224_s10, 16  ;;  %p6401_p1 = scmp.lt.s32.totalorder %s224_s10, %s224_s10 }
  0x43   : > { %p6394_p2 = scmp.ne.s32.totalorder %s224_s10, %s6393_s25  ;;  %p6402_p13 = scmp.lt.s32.totalorder %s6393_s25, %s6393_s25 }
  0x45   : > { %p6396_p10 = pnand %p6395_p6, %p6394_p2  ;;  %p6403_p11 = por %p6402_p13, %p6401_p1 }
  0x47   : > { %p6397_p12 = pneg %p6396_p10 }
  0x49   : > { %p6404_p9 = pnand %p6403_p11, %p6397_p12 }
  0x4b   : > { %6407 = shalt.err (!%p6404_p9)
}
  0x4c   : > { %s6613_s18 = smov [#allocation12]   ;;  %p42_p0 = scmp.ge.s32.totalorder %s10608_s17, 2 }
  0x4d   : > { %5768 = dma.vmem_to_smem (!%p6823_p8), %s224_s10, 16, %s6613_s18, [#allocation8]  }
  0x4e   : > { %p60_p1 = scmp.ne.s32.totalorder %s6580_s23, %s6576_s22  ;;  %s10019_s8 = sand.u32 1, %s6580_s23  }
  0x4f   : > { %s5232_s25 = sshll.u32 %s6600_s28, 4  ;;  %s10610_s17 = smov (%p42_p0, %s10608_s17), 0 }
  0x50   : > { %10177 = sst [smem:[#allocation29_spill]] %s10610_s17  ;;  %s10178_s26 = sadd.s32 1, %s6604_s29 }
  0x51   : > { %s10612_s26 = smov (!%p42_p0, %s10178_s26), %s6604_s29  ;;  %s49_s13 = ssub.s32 %s6600_s28, %s10610_s17 }
  0x52   : > { %p10179_p9 = scmp.eq.s32.totalorder %s6608_s30, 0  ;;  %p46_p8 = scmp.ge.s32.totalorder %s10612_s26, 2 }
  0x53   : > { %p10181_p13 = scmp.eq.s32.totalorder %s6785_s15, 7  ;;  %s5231_s18 = sshll.u32 %s10019_s8, 6 }
  0x54   : > { %p6849_p11 = por %p10179_p9, %p60_p1  ;;  %s10614_s26 = smov (%p46_p8, %s10612_s26), 0 }
  0x55   : > { %p6855_p7 = por %p10181_p13, %p60_p1  ;;  %s244_s1 = sadd.s32 %s5233_s12, %s5232_s25 }
  0x56   : > { %s48_s2 = ssub.s32 %s6604_s29, %s10614_s26  ;;  %s5234_s4 = sshll.u32 %s244_s1, 6 }
  0x57   : > { %s10182_s10 = scalar_select %p6855_p7, 1, 0 }
  0x58   : > { %s50_s17 = sor.u32 %s49_s13, %s48_s2  ;;  %s10184_s28 = ssub.s32 %s6596_s27, %s10606_s6 }
  0x59   : > { %10183 = sst [smem:[#allocation30_spill]] %s10182_s10  ;;  %s78_s24 = sor.u32 %s10184_s28, %s48_s2 }
  0x5a   : > { %p51_p2 = scmp.eq.s32.totalorder %s50_s17, 0  ;;  %p79_p6 = scmp.eq.s32.totalorder %s78_s24, 0 }
  0x5b   : > { %s10185_s5 = sld [smem:[#allocation140_spill]]  ;;  %s238_s19 = scalar_lea.vmem [#allocation5], %s5231_s18 }
  0x5c   : > { %s247_s15 = sshll.u32 %s238_s19, 4  ;;  %s10186_s16 = sadd.s32 1, %s6580_s23  ;;  %s6885_s15 = int_to_ptr.vmem [resolvable:$true] %s247_s15 }
  0x5d   : > { %s6878_s22 = scalar_select %p51_p2, %s6580_s23, %s10186_s16  }
  0x5e   : > { %s10187_s12 = sadd.s32 1, %s6568_s20  ;;  %p10188_p10 = scmp.lt.s32.totalorder %s6608_s30, 8 }
  0x5f   : > { %s6883_s25 = scalar_select %p79_p6, %s6568_s20, %s10187_s12  }
  0x60   : > { %p6891_p12 = pnand %p10188_p10, %p6849_p11  ;;  %s6421_s2 = scalar_lea.vmem %s6769_s7, 1024 }
  0x61   : > { %s6873_s8 = scalar_lea.hbm %s10185_s5, %s5234_s4  ;;  %p6422_p0 = scmp.ne.s32.totalorder %s6769_s7, %s6421_s2 }
  0x62   : > { %p10190_p1 = pneg %p6760_p5  ;;  %s6614_s4 = smov [#allocation11]  }
  0x63   : > { %s6426_s19 = sshll.u32 %s6614_s4, 4  ;;  %s6427_s19 = int_to_ptr.vmem [resolvable:$false] %s6426_s19 }
  0x64   : > { %p6424_p9 = pnand %p6422_p0, %p10190_p1  ;;  %s6428_s21 = scalar_lea.vmem %s6427_s19, 2048 }
  0x65   : > { %p6429_p13 = scmp.lt.s32.totalorder %s6769_s7, %s6427_s19  ;;  %p6430_p2 = scmp.lt.s32.totalorder %s6428_s21, %s6421_s2 }
  0x66   : > { %p6425_p8 = pneg %p6424_p9 }
  0x67   : > { %p6431_p6 = por %p6430_p2, %p6429_p13 }
  0x69   : > { %p6432_p3 = pnand %p6431_p6, %p6425_p8 }
  0x6b   : > { %6435 = shalt.err (!%p6432_p3)
}
  0x6c   : > { %s10191_s28 = smov 4   ;;  %s10192_s9 = smov 64  }
  0x6d   : > { %5778 = dma.hbm_to_vmem [thread:$0]  (!%p6760_p5), %s6767_s14, 1024, %s6769_s7, %s6771_s3, %s10192_s9, %s10192_s9, %s10191_s28  }
  0x6e   : > { %s10193_s13 = sand.u32 1, %s6580_s23   ;;  %p6438_p11 = pneg %p6891_p12 }
  0x6f   : > { %s235_s16 = scalar_lea.sflag [#allocation6], %s10193_s13  ;;  %s6449_s5 = scalar_lea.vmem %s6885_s15, 1024 }
  0x70   : > { %p6450_p3 = scmp.ne.s32.totalorder %s6885_s15, %s6449_s5  ;;  %s6615_s11 = smov [#allocation5]  }
  0x71   : > { %s6454_s24 = sshll.u32 %s6615_s11, 4  ;;  %s6455_s24 = int_to_ptr.vmem [resolvable:$false] %s6454_s24 }
  0x72   : > { %p6452_p10 = pnand %p6450_p3, %p6438_p11  ;;  %s6456_s17 = scalar_lea.vmem %s6455_s24, 2048 }
  0x73   : > { %p6457_p1 = scmp.lt.s32.totalorder %s6885_s15, %s6455_s24  ;;  %p6458_p9 = scmp.lt.s32.totalorder %s6456_s17, %s6449_s5 }
  0x74   : > { %p6453_p0 = pneg %p6452_p10 }
  0x75   : > { %p6459_p8 = por %p6458_p9, %p6457_p1 }
  0x77   : > { %p6460_p13 = pnand %p6459_p8, %p6453_p0 }
  0x79   : > { %6463 = shalt.err (!%p6460_p13)
}
  0x7a   : > { %5772 = dma.hbm_to_vmem [thread:$0]  (!%p6891_p12), %s6873_s8, 1024, %s6885_s15, %s235_s16, %s10192_s9, %s10192_s9, %s10191_s28  }
  0x7b   : > { %315 = sbr.rel (%p6815_p4) target bundleno = 3256 (0xcb8), region = 40  ;;  %s10194_s14 = sld [smem:[#allocation20_spill]] (!%p6815_p4) }
  0x7c   : > { %s10195_s7 = sld [smem:[#allocation26_spill]] (!%p6815_p4) }
  0x81   : > { %s6926_s3 = sand.u32 1, %s10194_s14  }
  0x82   : > { %s5244_s10 = sshll.u32 %s6926_s3, 6  ;;  %s318_s18 = scalar_lea.sflag [#allocation6], %s6926_s3 }
  0x83   : > { %s6930_s12 = scalar_lea.vmem [#allocation5], %s5244_s10  ;;  %p10196_p5 = scmp.ne.s32.totalorder %s10195_s7, 0 }
  0x85   : > { %6543 = dma.done.wait (%p10196_p5), %s318_s18, 1024  }
  0x86   : > { %6545 = vsyncadd (%p10196_p5), %s318_s18, 4294966272  ;;  %s10197_s1 = sld [smem:[#allocation25_spill]] }
  0x87   : > { %s10198_s15 = sld [smem:[#allocation18_spill]] }
  0x88   : > { %s10199_s8 = sld [smem:[#allocation27_spill]] }
  0x8c   : > { %s326_s0 = sand.u32 1, %s10197_s1  }
  0x8d   : > { %s328_s2 = sand.u32 1, %s10198_s15   ;;  %s327_s19 = scalar_lea.sflag [#allocation10], %s326_s0 }
  0x8e   : > { %s5245_s4 = sshll.u32 %s328_s2, 6  ;;  %p10200_p4 = scmp.ne.s32.totalorder %s10199_s8, 0 }
  0x8f   : > { %s6938_s21 = scalar_lea.vmem [#allocation9], %s5245_s4 }
  0x90   : > { %6547 = dma.done.wait (%p10200_p4), %s327_s19, 2048  }
  0x91   : > { %6549 = vsyncadd (%p10200_p4), %s327_s19, 4294965248  ;;  %s6944_s28 = scalar_lea.vmem [#allocation11], %s5245_s4  ;;  %p10201_p12 = scmp.eq.s32.totalorder %s10197_s1, 0 }
  0x93   : > { %6551 = dma.done.wait (%p10201_p12), [#allocation8], 16   ;;  %p10202_p2 = pmov %p10201_p12 }
  0x95   : > { %6553 = vsyncadd (%p10202_p2), [#allocation8], 4294967280 }
  0x96   : > { %348 = sfence }
  0x97   : > { %s10203_s9 = sld [smem:[#allocation23_spill]]  ;;  %s6960_s18 = scalar_lea.vmem [#allocation13], %s5244_s10 }
  0x98   : > { %s10204_s13 = sld [smem:[#allocation21_spill]] }
  0x99   : > { %s10205_s14 = sld [smem:[#allocation143_spill]] }
  0x9d   : > { %p391_p6 = scmp.lt.s32.totalorder %s10203_s9, 1 }
  0x9e   : > { %p393_p11 = scmp.lt.s32.totalorder %s10204_s13, 1  ;;  %p5250_p3 = scmp.ne.s32.totalorder %s10204_s13, 0 }
  0x9f   : > { %s10616_s9 = smov (!%p391_p6, %s10203_s9), 1 }
  0xa0   : > { %s394_s16 = scalar_select %p393_p11, %s10204_s13, 1 }
  0xa1   : > { %s5249_s5 = sshll.u32 %s10616_s9, 1  ;;  %403 = sbr.rel (%p5250_p3) target bundleno = 263 (0x107), region = 60 }
  0xa2   : > { %s6954_s11 = sadd.s32 %s5249_s5, %s394_s16 }
  0xa3   : > { %s397_s7 = scalar_lea.vmem %s10205_s14, %s6954_s11 }
  0xa6   : > { %vm404_vm0 = vcmask 7168   ;;  %vm533_vm1 = vcmask 261120   ;;  %v6616_v0 = vmov -1e+30   ;;  %v6617_v1 = vmov 0.0  }
  0xa7   : > { %405 = vst.msk [vmem:[#allocation2] sm:$0xff] %vm404_vm0, %v6616_v0  ;;  %406 = vst.msk [vmem:[#allocation2 + $0x8] sm:$0xff] %vm404_vm0, %v6616_v0 }
  0xa8   : > { %407 = vst.msk [vmem:[#allocation2 + $0x10] sm:$0xff] %vm404_vm0, %v6616_v0  ;;  %408 = vst.msk [vmem:[#allocation2 + $0x18] sm:$0xff] %vm404_vm0, %v6616_v0 }
  0xa9   : > { %409 = vst.msk [vmem:[#allocation2 + $0x20] sm:$0xff] %vm404_vm0, %v6616_v0  ;;  %410 = vst.msk [vmem:[#allocation2 + $0x28] sm:$0xff] %vm404_vm0, %v6616_v0 }
  0xaa   : > { %411 = vst.msk [vmem:[#allocation2 + $0x30] sm:$0xff] %vm404_vm0, %v6616_v0  ;;  %412 = vst.msk [vmem:[#allocation2 + $0x38] sm:$0xff] %vm404_vm0, %v6616_v0 }
  0xab   : > { %413 = vst.msk [vmem:[#allocation2 + $0x40] sm:$0xff] %vm404_vm0, %v6616_v0  ;;  %414 = vst.msk [vmem:[#allocation2 + $0x48] sm:$0xff] %vm404_vm0, %v6616_v0 }
  0xac   : > { %415 = vst.msk [vmem:[#allocation2 + $0x50] sm:$0xff] %vm404_vm0, %v6616_v0  ;;  %416 = vst.msk [vmem:[#allocation2 + $0x58] sm:$0xff] %vm404_vm0, %v6616_v0 }
  0xad   : > { %417 = vst.msk [vmem:[#allocation2 + $0x60] sm:$0xff] %vm404_vm0, %v6616_v0  ;;  %418 = vst.msk [vmem:[#allocation2 + $0x68] sm:$0xff] %vm404_vm0, %v6616_v0 }
  0xae   : > { %419 = vst.msk [vmem:[#allocation2 + $0x70] sm:$0xff] %vm404_vm0, %v6616_v0  ;;  %420 = vst.msk [vmem:[#allocation2 + $0x78] sm:$0xff] %vm404_vm0, %v6616_v0 }
  0xaf   : > { %421 = vst.msk [vmem:[#allocation2 + $0x80] sm:$0xff] %vm404_vm0, %v6616_v0  ;;  %422 = vst.msk [vmem:[#allocation2 + $0x88] sm:$0xff] %vm404_vm0, %v6616_v0 }
  0xb0   : > { %423 = vst.msk [vmem:[#allocation2 + $0x90] sm:$0xff] %vm404_vm0, %v6616_v0  ;;  %424 = vst.msk [vmem:[#allocation2 + $0x98] sm:$0xff] %vm404_vm0, %v6616_v0 }
  0xb1   : > { %425 = vst.msk [vmem:[#allocation2 + $0xa0] sm:$0xff] %vm404_vm0, %v6616_v0  ;;  %426 = vst.msk [vmem:[#allocation2 + $0xa8] sm:$0xff] %vm404_vm0, %v6616_v0 }
  0xb2   : > { %427 = vst.msk [vmem:[#allocation2 + $0xb0] sm:$0xff] %vm404_vm0, %v6616_v0  ;;  %428 = vst.msk [vmem:[#allocation2 + $0xb8] sm:$0xff] %vm404_vm0, %v6616_v0 }
  0xb3   : > { %429 = vst.msk [vmem:[#allocation2 + $0xc0] sm:$0xff] %vm404_vm0, %v6616_v0  ;;  %430 = vst.msk [vmem:[#allocation2 + $0xc8] sm:$0xff] %vm404_vm0, %v6616_v0 }
  0xb4   : > { %431 = vst.msk [vmem:[#allocation2 + $0xd0] sm:$0xff] %vm404_vm0, %v6616_v0  ;;  %432 = vst.msk [vmem:[#allocation2 + $0xd8] sm:$0xff] %vm404_vm0, %v6616_v0 }
  0xb5   : > { %433 = vst.msk [vmem:[#allocation2 + $0xe0] sm:$0xff] %vm404_vm0, %v6616_v0  ;;  %434 = vst.msk [vmem:[#allocation2 + $0xe8] sm:$0xff] %vm404_vm0, %v6616_v0 }
  0xb6   : > { %435 = vst.msk [vmem:[#allocation2 + $0xf0] sm:$0xff] %vm404_vm0, %v6616_v0  ;;  %436 = vst.msk [vmem:[#allocation2 + $0xf8] sm:$0xff] %vm404_vm0, %v6616_v0 }
  0xb7   : > { %437 = vst.msk [vmem:[#allocation2 + $0x100] sm:$0xff] %vm404_vm0, %v6616_v0  ;;  %438 = vst.msk [vmem:[#allocation2 + $0x108] sm:$0xff] %vm404_vm0, %v6616_v0 }
  0xb8   : > { %439 = vst.msk [vmem:[#allocation2 + $0x110] sm:$0xff] %vm404_vm0, %v6616_v0  ;;  %440 = vst.msk [vmem:[#allocation2 + $0x118] sm:$0xff] %vm404_vm0, %v6616_v0 }
  0xb9   : > { %441 = vst.msk [vmem:[#allocation2 + $0x120] sm:$0xff] %vm404_vm0, %v6616_v0  ;;  %442 = vst.msk [vmem:[#allocation2 + $0x128] sm:$0xff] %vm404_vm0, %v6616_v0 }
  0xba   : > { %443 = vst.msk [vmem:[#allocation2 + $0x130] sm:$0xff] %vm404_vm0, %v6616_v0  ;;  %444 = vst.msk [vmem:[#allocation2 + $0x138] sm:$0xff] %vm404_vm0, %v6616_v0 }
  0xbb   : > { %445 = vst.msk [vmem:[#allocation2 + $0x140] sm:$0xff] %vm404_vm0, %v6616_v0  ;;  %446 = vst.msk [vmem:[#allocation2 + $0x148] sm:$0xff] %vm404_vm0, %v6616_v0 }
  0xbc   : > { %447 = vst.msk [vmem:[#allocation2 + $0x150] sm:$0xff] %vm404_vm0, %v6616_v0  ;;  %448 = vst.msk [vmem:[#allocation2 + $0x158] sm:$0xff] %vm404_vm0, %v6616_v0 }
  0xbd   : > { %449 = vst.msk [vmem:[#allocation2 + $0x160] sm:$0xff] %vm404_vm0, %v6616_v0  ;;  %450 = vst.msk [vmem:[#allocation2 + $0x168] sm:$0xff] %vm404_vm0, %v6616_v0 }
  0xbe   : > { %451 = vst.msk [vmem:[#allocation2 + $0x170] sm:$0xff] %vm404_vm0, %v6616_v0  ;;  %452 = vst.msk [vmem:[#allocation2 + $0x178] sm:$0xff] %vm404_vm0, %v6616_v0 }
  0xbf   : > { %453 = vst.msk [vmem:[#allocation2 + $0x180] sm:$0xff] %vm404_vm0, %v6616_v0  ;;  %454 = vst.msk [vmem:[#allocation2 + $0x188] sm:$0xff] %vm404_vm0, %v6616_v0 }
  0xc0   : > { %455 = vst.msk [vmem:[#allocation2 + $0x190] sm:$0xff] %vm404_vm0, %v6616_v0  ;;  %456 = vst.msk [vmem:[#allocation2 + $0x198] sm:$0xff] %vm404_vm0, %v6616_v0 }
  0xc1   : > { %457 = vst.msk [vmem:[#allocation2 + $0x1a0] sm:$0xff] %vm404_vm0, %v6616_v0  ;;  %458 = vst.msk [vmem:[#allocation2 + $0x1a8] sm:$0xff] %vm404_vm0, %v6616_v0 }
  0xc2   : > { %459 = vst.msk [vmem:[#allocation2 + $0x1b0] sm:$0xff] %vm404_vm0, %v6616_v0  ;;  %460 = vst.msk [vmem:[#allocation2 + $0x1b8] sm:$0xff] %vm404_vm0, %v6616_v0 }
  0xc3   : > { %461 = vst.msk [vmem:[#allocation2 + $0x1c0] sm:$0xff] %vm404_vm0, %v6616_v0  ;;  %462 = vst.msk [vmem:[#allocation2 + $0x1c8] sm:$0xff] %vm404_vm0, %v6616_v0 }
  0xc4   : > { %463 = vst.msk [vmem:[#allocation2 + $0x1d0] sm:$0xff] %vm404_vm0, %v6616_v0  ;;  %464 = vst.msk [vmem:[#allocation2 + $0x1d8] sm:$0xff] %vm404_vm0, %v6616_v0 }
  0xc5   : > { %465 = vst.msk [vmem:[#allocation2 + $0x1e0] sm:$0xff] %vm404_vm0, %v6616_v0  ;;  %466 = vst.msk [vmem:[#allocation2 + $0x1e8] sm:$0xff] %vm404_vm0, %v6616_v0 }
  0xc6   : > { %467 = vst.msk [vmem:[#allocation2 + $0x1f0] sm:$0xff] %vm404_vm0, %v6616_v0  ;;  %468 = vst.msk [vmem:[#allocation2 + $0x1f8] sm:$0xff] %vm404_vm0, %v6616_v0 }
  0xc7   : > { %469 = vst.msk [vmem:[#allocation3] sm:$0xff] %vm404_vm0, %v6617_v1  ;;  %470 = vst.msk [vmem:[#allocation3 + $0x8] sm:$0xff] %vm404_vm0, %v6617_v1 }
  0xc8   : > { %471 = vst.msk [vmem:[#allocation3 + $0x10] sm:$0xff] %vm404_vm0, %v6617_v1  ;;  %472 = vst.msk [vmem:[#allocation3 + $0x18] sm:$0xff] %vm404_vm0, %v6617_v1 }
  0xc9   : > { %473 = vst.msk [vmem:[#allocation3 + $0x20] sm:$0xff] %vm404_vm0, %v6617_v1  ;;  %474 = vst.msk [vmem:[#allocation3 + $0x28] sm:$0xff] %vm404_vm0, %v6617_v1 }
  0xca   : > { %475 = vst.msk [vmem:[#allocation3 + $0x30] sm:$0xff] %vm404_vm0, %v6617_v1  ;;  %476 = vst.msk [vmem:[#allocation3 + $0x38] sm:$0xff] %vm404_vm0, %v6617_v1 }
  0xcb   : > { %477 = vst.msk [vmem:[#allocation3 + $0x40] sm:$0xff] %vm404_vm0, %v6617_v1  ;;  %478 = vst.msk [vmem:[#allocation3 + $0x48] sm:$0xff] %vm404_vm0, %v6617_v1 }
  0xcc   : > { %479 = vst.msk [vmem:[#allocation3 + $0x50] sm:$0xff] %vm404_vm0, %v6617_v1  ;;  %480 = vst.msk [vmem:[#allocation3 + $0x58] sm:$0xff] %vm404_vm0, %v6617_v1 }
  0xcd   : > { %481 = vst.msk [vmem:[#allocation3 + $0x60] sm:$0xff] %vm404_vm0, %v6617_v1  ;;  %482 = vst.msk [vmem:[#allocation3 + $0x68] sm:$0xff] %vm404_vm0, %v6617_v1 }
  0xce   : > { %483 = vst.msk [vmem:[#allocation3 + $0x70] sm:$0xff] %vm404_vm0, %v6617_v1  ;;  %484 = vst.msk [vmem:[#allocation3 + $0x78] sm:$0xff] %vm404_vm0, %v6617_v1 }
  0xcf   : > { %485 = vst.msk [vmem:[#allocation3 + $0x80] sm:$0xff] %vm404_vm0, %v6617_v1  ;;  %486 = vst.msk [vmem:[#allocation3 + $0x88] sm:$0xff] %vm404_vm0, %v6617_v1 }
  0xd0   : > { %487 = vst.msk [vmem:[#allocation3 + $0x90] sm:$0xff] %vm404_vm0, %v6617_v1  ;;  %488 = vst.msk [vmem:[#allocation3 + $0x98] sm:$0xff] %vm404_vm0, %v6617_v1 }
  0xd1   : > { %489 = vst.msk [vmem:[#allocation3 + $0xa0] sm:$0xff] %vm404_vm0, %v6617_v1  ;;  %490 = vst.msk [vmem:[#allocation3 + $0xa8] sm:$0xff] %vm404_vm0, %v6617_v1 }
  0xd2   : > { %491 = vst.msk [vmem:[#allocation3 + $0xb0] sm:$0xff] %vm404_vm0, %v6617_v1  ;;  %492 = vst.msk [vmem:[#allocation3 + $0xb8] sm:$0xff] %vm404_vm0, %v6617_v1 }
  0xd3   : > { %493 = vst.msk [vmem:[#allocation3 + $0xc0] sm:$0xff] %vm404_vm0, %v6617_v1  ;;  %494 = vst.msk [vmem:[#allocation3 + $0xc8] sm:$0xff] %vm404_vm0, %v6617_v1 }
  0xd4   : > { %495 = vst.msk [vmem:[#allocation3 + $0xd0] sm:$0xff] %vm404_vm0, %v6617_v1  ;;  %496 = vst.msk [vmem:[#allocation3 + $0xd8] sm:$0xff] %vm404_vm0, %v6617_v1 }
  0xd5   : > { %497 = vst.msk [vmem:[#allocation3 + $0xe0] sm:$0xff] %vm404_vm0, %v6617_v1  ;;  %498 = vst.msk [vmem:[#allocation3 + $0xe8] sm:$0xff] %vm404_vm0, %v6617_v1 }
  0xd6   : > { %499 = vst.msk [vmem:[#allocation3 + $0xf0] sm:$0xff] %vm404_vm0, %v6617_v1  ;;  %500 = vst.msk [vmem:[#allocation3 + $0xf8] sm:$0xff] %vm404_vm0, %v6617_v1 }
  0xd7   : > { %501 = vst.msk [vmem:[#allocation3 + $0x100] sm:$0xff] %vm404_vm0, %v6617_v1  ;;  %502 = vst.msk [vmem:[#allocation3 + $0x108] sm:$0xff] %vm404_vm0, %v6617_v1 }
  0xd8   : > { %503 = vst.msk [vmem:[#allocation3 + $0x110] sm:$0xff] %vm404_vm0, %v6617_v1  ;;  %504 = vst.msk [vmem:[#allocation3 + $0x118] sm:$0xff] %vm404_vm0, %v6617_v1 }
  0xd9   : > { %505 = vst.msk [vmem:[#allocation3 + $0x120] sm:$0xff] %vm404_vm0, %v6617_v1  ;;  %506 = vst.msk [vmem:[#allocation3 + $0x128] sm:$0xff] %vm404_vm0, %v6617_v1 }
  0xda   : > { %507 = vst.msk [vmem:[#allocation3 + $0x130] sm:$0xff] %vm404_vm0, %v6617_v1  ;;  %508 = vst.msk [vmem:[#allocation3 + $0x138] sm:$0xff] %vm404_vm0, %v6617_v1 }
  0xdb   : > { %509 = vst.msk [vmem:[#allocation3 + $0x140] sm:$0xff] %vm404_vm0, %v6617_v1  ;;  %510 = vst.msk [vmem:[#allocation3 + $0x148] sm:$0xff] %vm404_vm0, %v6617_v1 }
  0xdc   : > { %511 = vst.msk [vmem:[#allocation3 + $0x150] sm:$0xff] %vm404_vm0, %v6617_v1  ;;  %512 = vst.msk [vmem:[#allocation3 + $0x158] sm:$0xff] %vm404_vm0, %v6617_v1 }
  0xdd   : > { %513 = vst.msk [vmem:[#allocation3 + $0x160] sm:$0xff] %vm404_vm0, %v6617_v1  ;;  %514 = vst.msk [vmem:[#allocation3 + $0x168] sm:$0xff] %vm404_vm0, %v6617_v1 }
  0xde   : > { %515 = vst.msk [vmem:[#allocation3 + $0x170] sm:$0xff] %vm404_vm0, %v6617_v1  ;;  %516 = vst.msk [vmem:[#allocation3 + $0x178] sm:$0xff] %vm404_vm0, %v6617_v1 }
  0xdf   : > { %517 = vst.msk [vmem:[#allocation3 + $0x180] sm:$0xff] %vm404_vm0, %v6617_v1  ;;  %518 = vst.msk [vmem:[#allocation3 + $0x188] sm:$0xff] %vm404_vm0, %v6617_v1 }
  0xe0   : > { %519 = vst.msk [vmem:[#allocation3 + $0x190] sm:$0xff] %vm404_vm0, %v6617_v1  ;;  %520 = vst.msk [vmem:[#allocation3 + $0x198] sm:$0xff] %vm404_vm0, %v6617_v1 }
  0xe1   : > { %521 = vst.msk [vmem:[#allocation3 + $0x1a0] sm:$0xff] %vm404_vm0, %v6617_v1  ;;  %522 = vst.msk [vmem:[#allocation3 + $0x1a8] sm:$0xff] %vm404_vm0, %v6617_v1 }
  0xe2   : > { %523 = vst.msk [vmem:[#allocation3 + $0x1b0] sm:$0xff] %vm404_vm0, %v6617_v1  ;;  %524 = vst.msk [vmem:[#allocation3 + $0x1b8] sm:$0xff] %vm404_vm0, %v6617_v1 }
  0xe3   : > { %525 = vst.msk [vmem:[#allocation3 + $0x1c0] sm:$0xff] %vm404_vm0, %v6617_v1  ;;  %526 = vst.msk [vmem:[#allocation3 + $0x1c8] sm:$0xff] %vm404_vm0, %v6617_v1 }
  0xe4   : > { %527 = vst.msk [vmem:[#allocation3 + $0x1d0] sm:$0xff] %vm404_vm0, %v6617_v1  ;;  %528 = vst.msk [vmem:[#allocation3 + $0x1d8] sm:$0xff] %vm404_vm0, %v6617_v1 }
  0xe5   : > { %529 = vst.msk [vmem:[#allocation3 + $0x1e0] sm:$0xff] %vm404_vm0, %v6617_v1  ;;  %530 = vst.msk [vmem:[#allocation3 + $0x1e8] sm:$0xff] %vm404_vm0, %v6617_v1 }
  0xe6   : > { %531 = vst.msk [vmem:[#allocation3 + $0x1f0] sm:$0xff] %vm404_vm0, %v6617_v1  ;;  %532 = vst.msk [vmem:[#allocation3 + $0x1f8] sm:$0xff] %vm404_vm0, %v6617_v1 }
  0xe7   : > { %534 = vst.msk [vmem:[#allocation4] sm:$0xff] %vm533_vm1, %v6617_v1  ;;  %535 = vst.msk [vmem:[#allocation4 + $0x8] sm:$0xff] %vm533_vm1, %v6617_v1 }
  0xe8   : > { %536 = vst.msk [vmem:[#allocation4 + $0x10] sm:$0xff] %vm533_vm1, %v6617_v1  ;;  %537 = vst.msk [vmem:[#allocation4 + $0x18] sm:$0xff] %vm533_vm1, %v6617_v1 }
  0xe9   : > { %538 = vst.msk [vmem:[#allocation4 + $0x20] sm:$0xff] %vm533_vm1, %v6617_v1  ;;  %539 = vst.msk [vmem:[#allocation4 + $0x28] sm:$0xff] %vm533_vm1, %v6617_v1 }
  0xea   : > { %540 = vst.msk [vmem:[#allocation4 + $0x30] sm:$0xff] %vm533_vm1, %v6617_v1  ;;  %541 = vst.msk [vmem:[#allocation4 + $0x38] sm:$0xff] %vm533_vm1, %v6617_v1 }
  0xeb   : > { %542 = vst.msk [vmem:[#allocation4 + $0x40] sm:$0xff] %vm533_vm1, %v6617_v1  ;;  %543 = vst.msk [vmem:[#allocation4 + $0x48] sm:$0xff] %vm533_vm1, %v6617_v1 }
  0xec   : > { %544 = vst.msk [vmem:[#allocation4 + $0x50] sm:$0xff] %vm533_vm1, %v6617_v1  ;;  %545 = vst.msk [vmem:[#allocation4 + $0x58] sm:$0xff] %vm533_vm1, %v6617_v1 }
  0xed   : > { %546 = vst.msk [vmem:[#allocation4 + $0x60] sm:$0xff] %vm533_vm1, %v6617_v1  ;;  %547 = vst.msk [vmem:[#allocation4 + $0x68] sm:$0xff] %vm533_vm1, %v6617_v1 }
  0xee   : > { %548 = vst.msk [vmem:[#allocation4 + $0x70] sm:$0xff] %vm533_vm1, %v6617_v1  ;;  %549 = vst.msk [vmem:[#allocation4 + $0x78] sm:$0xff] %vm533_vm1, %v6617_v1 }
  0xef   : > { %550 = vst.msk [vmem:[#allocation4 + $0x80] sm:$0xff] %vm533_vm1, %v6617_v1  ;;  %551 = vst.msk [vmem:[#allocation4 + $0x88] sm:$0xff] %vm533_vm1, %v6617_v1 }
  0xf0   : > { %552 = vst.msk [vmem:[#allocation4 + $0x90] sm:$0xff] %vm533_vm1, %v6617_v1  ;;  %553 = vst.msk [vmem:[#allocation4 + $0x98] sm:$0xff] %vm533_vm1, %v6617_v1 }
  0xf1   : > { %554 = vst.msk [vmem:[#allocation4 + $0xa0] sm:$0xff] %vm533_vm1, %v6617_v1  ;;  %555 = vst.msk [vmem:[#allocation4 + $0xa8] sm:$0xff] %vm533_vm1, %v6617_v1 }
  0xf2   : > { %556 = vst.msk [vmem:[#allocation4 + $0xb0] sm:$0xff] %vm533_vm1, %v6617_v1  ;;  %557 = vst.msk [vmem:[#allocation4 + $0xb8] sm:$0xff] %vm533_vm1, %v6617_v1 }
  0xf3   : > { %558 = vst.msk [vmem:[#allocation4 + $0xc0] sm:$0xff] %vm533_vm1, %v6617_v1  ;;  %559 = vst.msk [vmem:[#allocation4 + $0xc8] sm:$0xff] %vm533_vm1, %v6617_v1 }
  0xf4   : > { %560 = vst.msk [vmem:[#allocation4 + $0xd0] sm:$0xff] %vm533_vm1, %v6617_v1  ;;  %561 = vst.msk [vmem:[#allocation4 + $0xd8] sm:$0xff] %vm533_vm1, %v6617_v1 }
  0xf5   : > { %562 = vst.msk [vmem:[#allocation4 + $0xe0] sm:$0xff] %vm533_vm1, %v6617_v1  ;;  %563 = vst.msk [vmem:[#allocation4 + $0xe8] sm:$0xff] %vm533_vm1, %v6617_v1 }
  0xf6   : > { %564 = vst.msk [vmem:[#allocation4 + $0xf0] sm:$0xff] %vm533_vm1, %v6617_v1  ;;  %565 = vst.msk [vmem:[#allocation4 + $0xf8] sm:$0xff] %vm533_vm1, %v6617_v1 }
  0xf7   : > { %566 = vst.msk [vmem:[#allocation4 + $0x100] sm:$0xff] %vm533_vm1, %v6617_v1  ;;  %567 = vst.msk [vmem:[#allocation4 + $0x108] sm:$0xff] %vm533_vm1, %v6617_v1 }
  0xf8   : > { %568 = vst.msk [vmem:[#allocation4 + $0x110] sm:$0xff] %vm533_vm1, %v6617_v1  ;;  %569 = vst.msk [vmem:[#allocation4 + $0x118] sm:$0xff] %vm533_vm1, %v6617_v1 }
  0xf9   : > { %570 = vst.msk [vmem:[#allocation4 + $0x120] sm:$0xff] %vm533_vm1, %v6617_v1  ;;  %571 = vst.msk [vmem:[#allocation4 + $0x128] sm:$0xff] %vm533_vm1, %v6617_v1 }
  0xfa   : > { %572 = vst.msk [vmem:[#allocation4 + $0x130] sm:$0xff] %vm533_vm1, %v6617_v1  ;;  %573 = vst.msk [vmem:[#allocation4 + $0x138] sm:$0xff] %vm533_vm1, %v6617_v1 }
  0xfb   : > { %574 = vst.msk [vmem:[#allocation4 + $0x140] sm:$0xff] %vm533_vm1, %v6617_v1  ;;  %575 = vst.msk [vmem:[#allocation4 + $0x148] sm:$0xff] %vm533_vm1, %v6617_v1 }
  0xfc   : > { %576 = vst.msk [vmem:[#allocation4 + $0x150] sm:$0xff] %vm533_vm1, %v6617_v1  ;;  %577 = vst.msk [vmem:[#allocation4 + $0x158] sm:$0xff] %vm533_vm1, %v6617_v1 }
  0xfd   : > { %578 = vst.msk [vmem:[#allocation4 + $0x160] sm:$0xff] %vm533_vm1, %v6617_v1  ;;  %579 = vst.msk [vmem:[#allocation4 + $0x168] sm:$0xff] %vm533_vm1, %v6617_v1 }
  0xfe   : > { %580 = vst.msk [vmem:[#allocation4 + $0x170] sm:$0xff] %vm533_vm1, %v6617_v1  ;;  %581 = vst.msk [vmem:[#allocation4 + $0x178] sm:$0xff] %vm533_vm1, %v6617_v1 }
  0xff   : > { %582 = vst.msk [vmem:[#allocation4 + $0x180] sm:$0xff] %vm533_vm1, %v6617_v1  ;;  %583 = vst.msk [vmem:[#allocation4 + $0x188] sm:$0xff] %vm533_vm1, %v6617_v1 }
 0x100   : > { %584 = vst.msk [vmem:[#allocation4 + $0x190] sm:$0xff] %vm533_vm1, %v6617_v1  ;;  %585 = vst.msk [vmem:[#allocation4 + $0x198] sm:$0xff] %vm533_vm1, %v6617_v1 }
 0x101   : > { %586 = vst.msk [vmem:[#allocation4 + $0x1a0] sm:$0xff] %vm533_vm1, %v6617_v1  ;;  %587 = vst.msk [vmem:[#allocation4 + $0x1a8] sm:$0xff] %vm533_vm1, %v6617_v1 }
 0x102   : > { %588 = vst.msk [vmem:[#allocation4 + $0x1b0] sm:$0xff] %vm533_vm1, %v6617_v1  ;;  %589 = vst.msk [vmem:[#allocation4 + $0x1b8] sm:$0xff] %vm533_vm1, %v6617_v1 }
 0x103   : > { %590 = vst.msk [vmem:[#allocation4 + $0x1c0] sm:$0xff] %vm533_vm1, %v6617_v1  ;;  %591 = vst.msk [vmem:[#allocation4 + $0x1c8] sm:$0xff] %vm533_vm1, %v6617_v1 }
 0x104   : > { %592 = vst.msk [vmem:[#allocation4 + $0x1d0] sm:$0xff] %vm533_vm1, %v6617_v1  ;;  %593 = vst.msk [vmem:[#allocation4 + $0x1d8] sm:$0xff] %vm533_vm1, %v6617_v1 }
 0x105   : > { %594 = vst.msk [vmem:[#allocation4 + $0x1e0] sm:$0xff] %vm533_vm1, %v6617_v1  ;;  %595 = vst.msk [vmem:[#allocation4 + $0x1e8] sm:$0xff] %vm533_vm1, %v6617_v1 }
 0x106   : > { %596 = vst.msk [vmem:[#allocation4 + $0x1f0] sm:$0xff] %vm533_vm1, %v6617_v1  ;;  %597 = vst.msk [vmem:[#allocation4 + $0x1f8] sm:$0xff] %vm533_vm1, %v6617_v1 }
 0x107 PF: > { %s10206_s10 = sld [smem:[#allocation23_spill]] }
 0x108   : > { %s10207_s1 = sld [smem:[#allocation21_spill]] }
 0x109   : > { %s10208_s15 = sld [smem:[#allocation22_spill]] }
 0x10d   : > { %s7348_s8 = sld [smem:[#allocation12 + %s10206_s10]] }
 0x10e   : > { %s5251_s0 = sshll.u32 %s10207_s1, 7 }
 0x10f   : > { %s5335_s2 = sshll.u32 %s10208_s15, 7 }
 0x110   : > { %s5336_s4 = sadd.s32 128, %s5335_s2 }
 0x111   : > { %p5253_p10 = scmp.ge.s32.totalorder %s5251_s0, %s5336_s4 }
 0x113   : > { %s599_s19 = smul.f32 0.17677669, %s7348_s8 }
 0x114   : > { %606 = sbr.rel (%p5253_p10) target bundleno = 2829 (0xb0d), region = 64 }
 0x119   : > { %v7358_v2 = vld [vmem:[%s6938_s21 + $0x38] sm:$0xff]   ;;  %vm813_vm2 = vcmask 261120   ;;  %v7361_v3 = vld [vmem:[%s6938_s21 + $0x30] sm:$0xff]   ;;  %v7370_v5 = vld [vmem:[%s6938_s21 + $0x28] sm:$0xff]   ;;  %v657_v26 = vlaneseq  ;;  %v7458_v30 = vstv %s5335_s2  ;;  %s6619_s11 = smov 96   ;;  %s6620_s17 = smov 64  }
 0x11a   : > { %5721 = vmatprep.subr.msk.bf16.mxu0 %vm813_vm2, %v7358_v2  ;;  %v860_v4 = vsel %vm813_vm2, %v7358_v2, 0  ;;  %v857_v6 = vsel %vm813_vm2, %v7361_v3, 0  ;;  %v7375_v7 = vld [vmem:[%s6930_s12] sm:$0xff]   ;;  %v854_v8 = vsel %vm813_vm2, %v7370_v5, 0  ;;  %v7391_v11 = vld [vmem:[%s6938_s21 + $0x18] sm:$0xff]   ;;  %v7398_v13 = vld [vmem:[%s6938_s21 + $0x10] sm:$0xff]   ;;  %v693_v31 = vstv %s5251_s0 }
 0x11b   : > { %5466 = vmatpush3.bf16.xpose.msra.mxu0 %v860_v4  ;;  %5481 = vmatprep.mubr.msk.bf16.mxu0 %vm813_vm2, %v7375_v7  ;;  %v7384_v9 = vld [vmem:[%s6938_s21 + $0x20] sm:$0xff]   ;;  %v848_v12 = vsel %vm813_vm2, %v7391_v11, 0  ;;  %v845_v14 = vsel %vm813_vm2, %v7398_v13, 0  ;;  %v7405_v15 = vld [vmem:[%s6938_s21 + $0x8] sm:$0xff]   ;;  %v7422_v20 = vld [vmem:[%s6930_s12 + $0x10] sm:$0xff]   ;;  %v7453_v27 = vshrl.u32 %v657_v26, 7  ;;  %v7481_v40 = vstv %s599_s19 }
 0x11c   : > { %5722 = vmatprep.subr.msk.bf16.mxu0 %vm813_vm2, %v7361_v3  ;;  %v851_v10 = vsel %vm813_vm2, %v7384_v9, 0  ;;  %v842_v16 = vsel %vm813_vm2, %v7405_v15, 0  ;;  %v7412_v17 = vld [vmem:[%s6938_s21] sm:$0xff]   ;;  %v7419_v19 = vld [vmem:[%s6930_s12 + $0x8] sm:$0xff]   ;;  %v7429_v21 = vld [vmem:[%s6930_s12 + $0x18] sm:$0xff]   ;;  %v692_v29 = vand.u32 127, %v657_v26 }
 0x11d   : > { %v839_v18 = vsel %vm813_vm2, %v7412_v17, 0  ;;  %v7432_v22 = vld [vmem:[%s6930_s12 + $0x20] sm:$0xff]   ;;  %v7439_v23 = vld [vmem:[%s6930_s12 + $0x28] sm:$0xff]   ;;  %v7442_v24 = vld [vmem:[%s6930_s12 + $0x30] sm:$0xff]   ;;  %v660_v28 = vadd.s32 16, %v7453_v27  ;;  %v661_v34 = vadd.s32 24, %v7453_v27  ;;  %v675_v35 = vadd.s32 %v7458_v30, %v7453_v27 }
 0x11e   : > { %v7449_v25 = vld [vmem:[%s6930_s12 + $0x38] sm:$0xff]   ;;  %v7463_v33 = vadd.s32 %v693_v31, %v692_v29  ;;  %v659_v36 = vadd.s32 8, %v7453_v27  ;;  %v664_v37 = vadd.s32 48, %v7453_v27  ;;  %v7475_v38 = vld [vmem:[%s397_s7] ss:$0 sm:$0xff]  ;;  %10212 = vst [vmem:[#allocation31_spill] sm:$0xff] %v7481_v40 }
 0x11f   : > { %v677_v32 = vadd.s32 %v7458_v30, %v660_v28  ;;  %v678_v39 = vadd.s32 %v7458_v30, %v661_v34  ;;  %v665_v45 = vadd.s32 56, %v7453_v27  ;;  %v662_v47 = vadd.s32 32, %v7453_v27  ;;  %s6621_s14 = smov 32  }
 0x120   : > { %vm695_vm4 = vcmp.gt.s32.totalorder %v7463_v33, %v675_v35  ;;  %v676_v41 = vadd.s32 %v7458_v30, %v659_v36  ;;  %v681_v44 = vadd.s32 %v7458_v30, %v664_v37  ;;  %v663_v52 = vadd.s32 40, %v7453_v27 }
 0x121   : > { %vm697_vm3 = vcmp.gt.s32.totalorder %v7463_v33, %v677_v32  ;;  %vm698_vm5 = vcmp.gt.s32.totalorder %v7463_v33, %v678_v39  ;;  %v7494_v49 = vsel %vm695_vm4, -1e+30, %v7475_v38  ;;  %v682_v55 = vadd.s32 %v7458_v30, %v665_v45 }
 0x122   : > { %v7486_v43 = vsel %vm697_vm3, -1e+30, %v7475_v38  ;;  %10214 = vst [vmem:[#allocation33_spill] sm:$0xff] %v7494_v49  ;;  %vm696_vm6 = vcmp.gt.s32.totalorder %v7463_v33, %v676_v41  ;;  %v7503_v54 = vsel %vm698_vm5, -1e+30, %v7475_v38  ;;  %vm701_vm7 = vcmp.gt.s32.totalorder %v7463_v33, %v681_v44 }
 0x123   : > { %5468 = vmatpush3.bf16.xpose.msra.mxu0 %v857_v6  ;;  %10213 = vst [vmem:[#allocation32_spill] sm:$0xff] %v7486_v43  ;;  %10215 = vst [vmem:[#allocation34_spill] sm:$0xff] %v7503_v54  ;;  %v679_v58 = vadd.s32 %v7458_v30, %v662_v47  ;;  %v668_v59 = vadd.s32 80, %v7453_v27  ;;  %v7515_v61 = vsel %vm696_vm6, -1e+30, %v7475_v38  ;;  %v680_v0 = vadd.s32 %v7458_v30, %v663_v52 }
 0x124   : > { %5723 = vmatprep.subr.msk.bf16.mxu0 %vm813_vm2, %v7370_v5  ;;  %10216 = vst [vmem:[#allocation35_spill] sm:$0xff] %v7515_v61  ;;  %v7524_v4 = vsel %vm701_vm7, -1e+30, %v7475_v38  ;;  %vm702_vm8 = vcmp.gt.s32.totalorder %v7463_v33, %v682_v55  ;;  %v669_v6 = vadd.s32 88, %v7453_v27  ;;  %v672_v37 = vadd.s32 112, %v7453_v27 }
 0x125   : > { %10217 = vst [vmem:[#allocation36_spill] sm:$0xff] %v7524_v4  ;;  %vm699_vm9 = vcmp.gt.s32.totalorder %v7463_v33, %v679_v58  ;;  %vm700_vm10 = vcmp.gt.s32.totalorder %v7463_v33, %v680_v0  ;;  %v7544_v31 = vsel %vm702_vm8, -1e+30, %v7475_v38  ;;  %v6618_v52 = vmov 0  }
 0x126   : > { %10218 = vst [vmem:[#allocation37_spill] sm:$0xff] %v7544_v31  ;;  %v7547_v32 = vsel %vm699_vm9, -1e+30, %v7475_v38  ;;  %v686_v34 = vadd.s32 %v7458_v30, %v669_v6  ;;  %v7555_v41 = vsel %vm700_vm10, -1e+30, %v7475_v38  ;;  %5907 = vset.pattern.permute.xlu1 %v6618_v52  ;;  %5906 = vset.pattern.permute.xlu0 %v6618_v52  ;;  %v670_v58 = vadd.s32 96, %v7453_v27 }
 0x127   : > { %10219 = vst [vmem:[#allocation38_spill] sm:$0xff] %v7547_v32  ;;  %10220 = vst [vmem:[#allocation39_spill] sm:$0xff] %v7555_v41  ;;  %v671_v0 = vadd.s32 104, %v7453_v27  ;;  %vm1312_vm4 = vcmask 7168  }
 0x128   : > { %vm706_vm12 = vcmp.gt.s32.totalorder %v7463_v33, %v686_v34 }
 0x129   : > { %v7589_v6 = vsel %vm706_vm12, -1e+30, %v7475_v38 }
 0x12a   : > { %10222 = vst [vmem:[#allocation41_spill] sm:$0xff] %v7589_v6 }
 0x12b   : > { %5470 = vmatpush3.bf16.xpose.msra.mxu0 %v854_v8  ;;  %v666_v8 = vadd.s32 64, %v7453_v27 }
 0x12c   : > { %5724 = vmatprep.subr.msk.bf16.mxu0 %vm813_vm2, %v7384_v9 }
 0x12d   : > { %v683_v35 = vadd.s32 %v7458_v30, %v666_v8 }
 0x12f   : > { %vm703_vm13 = vcmp.gt.s32.totalorder %v7463_v33, %v683_v35  ;;  %v688_v35 = vadd.s32 %v7458_v30, %v671_v0 }
 0x130   : > { %v7594_v8 = vsel %vm703_vm13, -1e+30, %v7475_v38 }
 0x131   : > { %10223 = vst [vmem:[#allocation42_spill] sm:$0xff] %v7594_v8  ;;  %vm708_vm3 = vcmp.gt.s32.totalorder %v7463_v33, %v688_v35 }
 0x133   : > { %5472 = vmatpush3.bf16.xpose.msra.mxu0 %v851_v10 }
 0x134   : > { %5725 = vmatprep.subr.msk.bf16.mxu0 %vm813_vm2, %v7391_v11 }
 0x13b   : > { %5474 = vmatpush3.bf16.xpose.msra.mxu0 %v848_v12 }
 0x13c   : > { %5726 = vmatprep.subr.msk.bf16.mxu0 %vm813_vm2, %v7398_v13 }
 0x143   : > { %5476 = vmatpush3.bf16.xpose.msra.mxu0 %v845_v14  ;;  %v685_v14 = vadd.s32 %v7458_v30, %v668_v59 }
 0x144   : > { %5727 = vmatprep.subr.msk.bf16.mxu0 %vm813_vm2, %v7405_v15 }
 0x145   : > { %vm705_vm11 = vcmp.gt.s32.totalorder %v7463_v33, %v685_v14 }
 0x14b   : > { %5478 = vmatpush3.bf16.xpose.msra.mxu0 %v842_v16 }
 0x14c   : > { %5728 = vmatprep.subr.msk.bf16.mxu0 %vm813_vm2, %v7412_v17 }
 0x153   : > { %5480 = vmatpush3.bf16.xpose.msra.mxu0 %v839_v18  ;;  %v667_v18 = vadd.s32 72, %v7453_v27 }
 0x15a   : > { %5482 = vmatmul.mubr.msk.bf16.vlgmr.msra.gmra.mxu0 %vm813_vm2, %v7419_v19 }
 0x15b   : > { %5485 = vmatprep.mubr.msk.bf16.mxu0 %vm813_vm2, %v7422_v20 }
 0x162   : > { %5486 = vmatmul.mubr.msk.bf16.gmra.mxu0 %vm813_vm2, %v7429_v21 }
 0x163   : > { %5489 = vmatprep.mubr.msk.bf16.mxu0 %vm813_vm2, %v7432_v22 }
 0x16a   : > { %5490 = vmatmul.mubr.msk.bf16.gmra.mxu0 %vm813_vm2, %v7439_v23 }
 0x16b   : > { %5493 = vmatprep.mubr.msk.bf16.mxu0 %vm813_vm2, %v7442_v24 }
 0x172   : > { %5494 = vmatmul.mubr.msk.bf16.gmra.mxu0 %vm813_vm2, %v7449_v25 }
 0x21a   : > { %v5483_v42 = vpop.f32.mrf.mxu0 }
 0x21b   : > { %v962_v46 = vmul.f32 %v5483_v42, %v7481_v40  ;;  %v684_v42 = vadd.s32 %v7458_v30, %v667_v18 }
 0x21c   : > { %v896_v48 = vpop.f32.mrf.mxu0 }
 0x21d   : > { %v960_v50 = vmul.f32 %v7481_v40, %v896_v48  ;;  %v7498_v51 = vadd.f32 %v962_v46, %v7486_v43  ;;  %v7567_v48 = vsel %vm705_vm11, -1e+30, %v7475_v38  ;;  %vm704_vm14 = vcmp.gt.s32.totalorder %v7463_v33, %v684_v42 }
 0x21e   : > { %v5484_v53 = vpop.f32.mrf.mxu0  ;;  %10221 = vst [vmem:[#allocation40_spill] sm:$0xff] %v7567_v48  ;;  %v7602_v18 = vsel %vm704_vm14, -1e+30, %v7475_v38 }
 0x21f   : > { %v963_v56 = vmul.f32 %v5484_v53, %v7481_v40  ;;  %1012 = vmax.xlane.f32.xlu1 %v7498_v51  ;;  %v7510_v57 = vadd.f32 %v960_v50, %v7494_v49  ;;  %v673_v50 = vadd.s32 120, %v7453_v27  ;;  %v687_v27 = vadd.s32 %v7458_v30, %v670_v58  ;;  %10224 = vst [vmem:[#allocation43_spill] sm:$0xff] %v7602_v18 }
 0x220   : > { %v899_v60 = vpop.f32.mrf.mxu0 }
 0x221   : > { %v961_v62 = vmul.f32 %v7481_v40, %v899_v60  ;;  %1008 = vmax.xlane.f32.xlu0 %v7510_v57  ;;  %v7520_v63 = vadd.f32 %v963_v56, %v7503_v54  ;;  %v689_v56 = vadd.s32 %v7458_v30, %v672_v37  ;;  %v690_v14 = vadd.s32 %v7458_v30, %v673_v50 }
 0x222   : > { %v5487_v1 = vpop.f32.mrf.mxu0  ;;  %vm707_vm1 = vcmp.gt.s32.totalorder %v7463_v33, %v687_v27  ;;  %v7669_v27 = vld [vmem:[%s6944_s28 + $0x20] sm:$0xff]  }
 0x223   : > { %v966_v10 = vmul.f32 %v5487_v1, %v7481_v40  ;;  %1014 = vmax.xlane.f32.xlu1 %v7520_v63  ;;  %v7532_v12 = vadd.f32 %v961_v62, %v7515_v61  ;;  %vm709_vm15 = vcmp.gt.s32.totalorder %v7463_v33, %v689_v56  ;;  %vm710_vm0 = vcmp.gt.s32.totalorder %v7463_v33, %v690_v14  ;;  %v7664_v14 = vld [vmem:[%s6944_s28 + $0x28] sm:$0xff]  }
 0x224   : > { %v912_v16 = vpop.f32.mrf.mxu0  ;;  %v7614_v37 = vsel %vm709_vm15, -1e+30, %v7475_v38  ;;  %v7630_v52 = vsel %vm710_vm0, -1e+30, %v7475_v38  ;;  %v7638_v33 = vsel %vm708_vm3, -1e+30, %v7475_v38 }
 0x225   : > { %v964_v26 = vmul.f32 %v7481_v40, %v912_v16  ;;  %1010 = vmax.xlane.f32.xlu0 %v7532_v12  ;;  %v7540_v28 = vadd.f32 %v966_v10, %v7524_v4  ;;  %10225 = vst [vmem:[#allocation44_spill] sm:$0xff] %v7614_v37  ;;  %10226 = vst [vmem:[#allocation45_spill] sm:$0xff] %v7630_v52 }
 0x226   : > { %v5488_v29 = vpop.f32.mrf.mxu0  ;;  %10228 = vst [vmem:[#allocation47_spill] sm:$0xff] %v7638_v33  ;;  %10229 = vst [vmem:[#allocation48_spill] sm:$0xff] %v7669_v27 }
 0x227   : > { %v967_v36 = vmul.f32 %v5488_v29, %v7481_v40  ;;  %v7564_v46 = vadd.f32 %v964_v26, %v7547_v32 }
 0x228   : > { %v915_v39 = vpop.f32.mrf.mxu0 }
 0x229   : > { %v965_v44 = vmul.f32 %v7481_v40, %v915_v39  ;;  %1020 = vmax.xlane.f32.xlu0 %v7540_v28  ;;  %v7561_v45 = vadd.f32 %v967_v36, %v7544_v31 }
 0x22a   : > { %v5491_v47 = vpop.f32.mrf.mxu0 }
 0x22b   : > { %v970_v53 = vmul.f32 %v5491_v47, %v7481_v40  ;;  %1022 = vmax.xlane.f32.xlu1 %v7561_v45  ;;  %v7575_v55 = vadd.f32 %v965_v44, %v7555_v41 }
 0x22c   : > { %v928_v59 = vpop.f32.mrf.mxu0 }
 0x22d   : > { %v968_v60 = vmul.f32 %v7481_v40, %v928_v59  ;;  %1016 = vmax.xlane.f32.xlu0 %v7564_v46  ;;  %v7582_v62 = vadd.f32 %v970_v53, %v7567_v48  ;;  %v7633_v53 = vsel %vm707_vm1, -1e+30, %v7475_v38  ;;  %v7655_v38 = vld [vmem:[%s6944_s28 + $0x38] sm:$0xff]  }
 0x22e   : > { %v5492_v1 = vpop.f32.mrf.mxu0  ;;  %10227 = vst [vmem:[#allocation46_spill] sm:$0xff] %v7633_v53  ;;  %5497 = vmatprep.subr.bf16.mxu1 %v7655_v38 }
 0x22f   : > { %v971_v10 = vmul.f32 %v5492_v1, %v7481_v40  ;;  %1018 = vmax.xlane.f32.xlu1 %v7575_v55  ;;  %v7610_v34 = vadd.f32 %v968_v60, %v7594_v8  ;;  %5498 = vmatpush3.bf16.msra.mxu1 %v7655_v38 }
 0x230   : > { %v931_v16 = vpop.f32.mrf.mxu0 }
 0x231   : > { %v969_v26 = vmul.f32 %v7481_v40, %v931_v16  ;;  %1028 = vmax.xlane.f32.xlu0 %v7582_v62  ;;  %v7607_v29 = vadd.f32 %v971_v10, %v7589_v6  ;;  %v7658_v10 = vld [vmem:[%s6944_s28 + $0x30] sm:$0xff]   ;;  %v7675_v16 = vld [vmem:[%s6944_s28 + $0x18] sm:$0xff]  }
 0x232   : > { %v5495_v36 = vpop.f32.mrf.mxu0  ;;  %5499 = vmatprep.subr.bf16.mxu1 %v7658_v10  ;;  %10230 = vst [vmem:[#allocation49_spill] sm:$0xff] %v7675_v16 }
 0x233   : > { %v974_v39 = vmul.f32 %v5495_v36, %v7481_v40  ;;  %1030 = vmax.xlane.f32.xlu1 %v7607_v29  ;;  %v7619_v42 = vadd.f32 %v969_v26, %v7602_v18  ;;  %5500 = vmatpush3.bf16.msra.mxu1 %v7658_v10  ;;  %v7677_v26 = vld [vmem:[#allocation2 + $0x10] sm:$0xff]  ;;  %v7680_v36 = vld [vmem:[#allocation2] sm:$0xff] }
 0x234   : > { %v944_v44 = vpop.f32.mrf.mxu0  ;;  %5501 = vmatprep.subr.bf16.mxu1 %v7664_v14  ;;  %10231 = vst [vmem:[#allocation50_spill] sm:$0xff] %v7677_v26  ;;  %10232 = vst [vmem:[#allocation51_spill] sm:$0xff] %v7680_v36 }
 0x235   : > { %v972_v47 = vmul.f32 %v7481_v40, %v944_v44  ;;  %1024 = vmax.xlane.f32.xlu0 %v7610_v34  ;;  %v7627_v30 = vadd.f32 %v974_v39, %v7614_v37  ;;  %v7687_v44 = vld [vmem:[%s6944_s28 + $0x10] sm:$0xff]  }
 0x236   : > { %v5496_v50 = vpop.f32.mrf.mxu0  ;;  %10234 = vst [vmem:[#allocation53_spill] sm:$0xff] %v7687_v44 }
 0x237   : > { %v975_v56 = vmul.f32 %v5496_v50, %v7481_v40  ;;  %1026 = vmax.xlane.f32.xlu1 %v7619_v42  ;;  %v7646_v0 = vadd.f32 %v972_v47, %v7633_v53  ;;  %5502 = vmatpush3.bf16.msra.mxu1 %v7664_v14  ;;  %v7689_v50 = vld [vmem:[#allocation2 + $0x18] sm:$0xff] }
 0x238   : > { %v947_v58 = vpop.f32.mrf.mxu0  ;;  %5503 = vmatprep.subr.bf16.mxu1 %v7669_v27  ;;  %10235 = vst [vmem:[#allocation54_spill] sm:$0xff] %v7689_v50 }
 0x239   : > { %v973_v59 = vmul.f32 %v7481_v40, %v947_v58  ;;  %v7642_v60 = vadd.f32 %v975_v56, %v7630_v52  ;;  %1036 = vmax.xlane.f32.xlu0 %v7627_v30 }
 0x23b   : > { %1038 = vmax.xlane.f32.xlu1 %v7642_v60  ;;  %v7650_v1 = vadd.f32 %v973_v59, %v7638_v33  ;;  %5504 = vmatpush3.bf16.msra.mxu1 %v7669_v27  ;;  %v7722_v27 = vld [vmem:[#allocation2 + $0x30] sm:$0xff] }
 0x23c   : > { %5505 = vmatprep.subr.bf16.mxu1 %v7675_v16  ;;  %10241 = vst [vmem:[#allocation60_spill] sm:$0xff] %v7722_v27 }
 0x23d   : > { %1032 = vmax.xlane.f32.xlu0 %v7646_v0 }
 0x23f   : > { %1034 = vmax.xlane.f32.xlu1 %v7650_v1  ;;  %5506 = vmatpush3.bf16.msra.mxu1 %v7675_v16  ;;  %v7771_v16 = vld [vmem:[#allocation2 + $0x58] sm:$0xff] }
 0x240   : > { %5507 = vmatprep.subr.bf16.mxu1 %v7687_v44  ;;  %10249 = vst [vmem:[#allocation68_spill] sm:$0xff] %v7771_v16 }
 0x243   : > { %5508 = vmatpush3.bf16.msra.mxu1 %v7687_v44 }
 0x2a8   : > { %v1013_v35 = vpop.xlane.xlu1 %1012 }
 0x2a9   : > { %v7684_v39 = vmax.f32 %v7677_v26, %v1013_v35  ;;  %v7700_v35 = vld [vmem:[#allocation2 + $0x8] sm:$0xff]  ;;  %v7731_v26 = vld [vmem:[%s6944_s28] sm:$0xff]  }
 0x2aa   : > { %v1009_v47 = vpop.xlane.xlu0 %1008  ;;  %10237 = vst [vmem:[#allocation56_spill] sm:$0xff] %v7700_v35  ;;  %10242 = vst [vmem:[#allocation61_spill] sm:$0xff] %v7731_v26 }
 0x2ab   : > { %10233 = vst [vmem:[#allocation52_spill] sm:$0xff] %v7684_v39  ;;  %1628 = vst.msk [vmem:[#allocation2 + $0x10] sm:$0xff] %vm1312_vm4, %v7684_v39  ;;  %v7696_v58 = vmax.f32 %v7680_v36, %v1009_v47  ;;  %1116 = vperm.xlu1 %5907, %v7684_v39   ;;  %v7712_v47 = vld [vmem:[%s6944_s28 + $0x8] sm:$0xff]  }
 0x2ac   : > { %v1015_v59 = vpop.xlane.xlu1 %1014  ;;  %10239 = vst [vmem:[#allocation58_spill] sm:$0xff] %v7712_v47  ;;  %5509 = vmatprep.subr.bf16.mxu1 %v7712_v47 }
 0x2ad   : > { %10236 = vst [vmem:[#allocation55_spill] sm:$0xff] %v7696_v58  ;;  %1626 = vst.msk [vmem:[#allocation2] sm:$0xff] %vm1312_vm4, %v7696_v58  ;;  %v7708_v56 = vmax.f32 %v7689_v50, %v1015_v59  ;;  %1106 = vperm.xlu0 %5906, %v7696_v58   ;;  %5510 = vmatpush3.bf16.msra.mxu1 %v7712_v47  ;;  %v7733_v58 = vld [vmem:[#allocation2 + $0x38] sm:$0xff]  ;;  %v7739_v47 = vld [vmem:[#allocation2 + $0x20] sm:$0xff] }
 0x2ae   : > { %v1011_v39 = vpop.xlane.xlu0 %1010  ;;  %10243 = vst [vmem:[#allocation62_spill] sm:$0xff] %v7733_v58  ;;  %5511 = vmatprep.subr.bf16.mxu1 %v7731_v26  ;;  %10245 = vst [vmem:[#allocation64_spill] sm:$0xff] %v7739_v47 }
 0x2af   : > { %10238 = vst [vmem:[#allocation57_spill] sm:$0xff] %v7708_v56  ;;  %1629 = vst.msk [vmem:[#allocation2 + $0x18] sm:$0xff] %vm1312_vm4, %v7708_v56  ;;  %v7719_v44 = vmax.f32 %v7700_v35, %v1011_v39  ;;  %v7750_v35 = vld [vmem:[#allocation2 + $0x28] sm:$0xff] }
 0x2b0   : > { %10247 = vst [vmem:[#allocation66_spill] sm:$0xff] %v7750_v35 }
 0x2b1   : > { %10240 = vst [vmem:[#allocation59_spill] sm:$0xff] %v7719_v44  ;;  %1627 = vst.msk [vmem:[#allocation2 + $0x8] sm:$0xff] %vm1312_vm4, %v7719_v44  ;;  %1111 = vperm.xlu1 %5907, %v7719_v44   ;;  %5512 = vmatpush3.bf16.msra.mxu1 %v7731_v26 }
 0x2b2   : > { %v1021_v50 = vpop.xlane.xlu0 %1020 }
 0x2b3   : > { %v7736_v39 = vmax.f32 %v7722_v27, %v1021_v50  ;;  %v7760_v27 = vld [vmem:[#allocation2 + $0x50] sm:$0xff] }
 0x2b4   : > { %v1023_v36 = vpop.xlane.xlu1 %1022  ;;  %10248 = vst [vmem:[#allocation67_spill] sm:$0xff] %v7760_v27 }
 0x2b5   : > { %10244 = vst [vmem:[#allocation63_spill] sm:$0xff] %v7736_v39  ;;  %1632 = vst.msk [vmem:[#allocation2 + $0x30] sm:$0xff] %vm1312_vm4, %v7736_v39  ;;  %v7747_v44 = vmax.f32 %v7733_v58, %v1023_v36  ;;  %1121 = vperm.xlu1 %5907, %v7708_v56  }
 0x2b6   : > { %v1017_v50 = vpop.xlane.xlu0 %1016 }
 0x2b7   : > { %10246 = vst [vmem:[#allocation65_spill] sm:$0xff] %v7747_v44  ;;  %1633 = vst.msk [vmem:[#allocation2 + $0x38] sm:$0xff] %vm1312_vm4, %v7747_v44  ;;  %v7757_v26 = vmax.f32 %v7739_v47, %v1017_v50  ;;  %1141 = vperm.xlu0 %5906, %v7747_v44   ;;  %v7780_v47 = vld [vmem:[#allocation2 + $0x40] sm:$0xff] }
 0x2b8   : > { %v1019_v59 = vpop.xlane.xlu1 %1018  ;;  %10251 = vst [vmem:[#allocation70_spill] sm:$0xff] %v7780_v47 }
 0x2b9   : > { %1630 = vst.msk [vmem:[#allocation2 + $0x20] sm:$0xff] %vm1312_vm4, %v7757_v26  ;;  %v7767_v56 = vmax.f32 %v7750_v35, %v1019_v59  ;;  %1672 = vrot.lane.b32.xlu1 %v7358_v2, %s6619_s11  ;;  %v7813_v35 = vld [vmem:[#allocation2 + $0x78] sm:$0xff] }
 0x2ba   : > { %v1029_v50 = vpop.xlane.xlu0 %1028  ;;  %10254 = vst [vmem:[#allocation73_spill] sm:$0xff] %v7813_v35 }
 0x2bb   : > { %1631 = vst.msk [vmem:[#allocation2 + $0x28] sm:$0xff] %vm1312_vm4, %v7767_v56  ;;  %v7778_v36 = vmax.f32 %v7760_v27, %v1029_v50  ;;  %v7792_v50 = vld [vmem:[#allocation2 + $0x48] sm:$0xff] }
 0x2bc   : > { %v1031_v58 = vpop.xlane.xlu1 %1030  ;;  %10252 = vst [vmem:[#allocation71_spill] sm:$0xff] %v7792_v50 }
 0x2bd   : > { %10250 = vst [vmem:[#allocation69_spill] sm:$0xff] %v7778_v36  ;;  %1636 = vst.msk [vmem:[#allocation2 + $0x50] sm:$0xff] %vm1312_vm4, %v7778_v36  ;;  %v7787_v2 = vmax.f32 %v7771_v16, %v1031_v58  ;;  %1156 = vperm.xlu0 %5906, %v7778_v36   ;;  %1670 = vrot.lane.b32.xlu1 %v7361_v3, %s6619_s11  ;;  %v7801_v58 = vld [vmem:[#allocation2 + $0x70] sm:$0xff]  ;;  %v7834_v16 = vld [vmem:[#allocation2 + $0x68] sm:$0xff] }
 0x2be   : > { %v1025_v44 = vpop.xlane.xlu0 %1024 }
 0x2bf   : > { %1637 = vst.msk [vmem:[#allocation2 + $0x58] sm:$0xff] %vm1312_vm4, %v7787_v2  ;;  %v7799_v59 = vmax.f32 %v7780_v47, %v1025_v44 }
 0x2c0   : > { %v1027_v27 = vpop.xlane.xlu1 %1026 }
 0x2c1   : > { %10253 = vst [vmem:[#allocation72_spill] sm:$0xff] %v7799_v59  ;;  %1634 = vst.msk [vmem:[#allocation2 + $0x40] sm:$0xff] %vm1312_vm4, %v7799_v59  ;;  %v7808_v3 = vmax.f32 %v7792_v50, %v1027_v27  ;;  %1146 = vperm.xlu0 %5906, %v7799_v59   ;;  %1668 = vrot.lane.b32.xlu1 %v7370_v5, %s6619_s11  ;;  %v7822_v27 = vld [vmem:[#allocation2 + $0x60] sm:$0xff] }
 0x2c2   : > { %v1037_v44 = vpop.xlane.xlu0 %1036 }
 0x2c3   : > { %1635 = vst.msk [vmem:[#allocation2 + $0x48] sm:$0xff] %vm1312_vm4, %v7808_v3  ;;  %v7820_v36 = vmax.f32 %v7801_v58, %v1037_v44 }
 0x2c4   : > { %v1039_v47 = vpop.xlane.xlu1 %1038 }
 0x2c5   : > { %10255 = vst [vmem:[#allocation74_spill] sm:$0xff] %v7820_v36  ;;  %v7825_v59 = vmax.f32 %v7813_v35, %v1039_v47  ;;  %1136 = vperm.xlu1 %5907, %v7736_v39   ;;  %1666 = vrot.lane.b32.xlu0 %v7384_v9, %s6619_s11  ;;  %1640 = vst.msk [vmem:[#allocation2 + $0x70] sm:$0xff] %vm1312_vm4, %v7820_v36 }
 0x2c6   : > { %v1033_v44 = vpop.xlane.xlu0 %1032 }
 0x2c7   : > { %10256 = vst [vmem:[#allocation75_spill] sm:$0xff] %v7825_v59  ;;  %1641 = vst.msk [vmem:[#allocation2 + $0x78] sm:$0xff] %vm1312_vm4, %v7825_v59  ;;  %v7841_v47 = vmax.f32 %v7822_v27, %v1033_v44 }
 0x2c8   : > { %v1035_v39 = vpop.xlane.xlu1 %1034 }
 0x2c9   : > { %v7844_v9 = vmax.f32 %v7834_v16, %v1035_v39  ;;  %1126 = vperm.xlu1 %5907, %v7757_v26   ;;  %1638 = vst.msk [vmem:[#allocation2 + $0x60] sm:$0xff] %vm1312_vm4, %v7841_v47 }
 0x2cb   : > { %1639 = vst.msk [vmem:[#allocation2 + $0x68] sm:$0xff] %vm1312_vm4, %v7844_v9  ;;  %1171 = vperm.xlu0 %5906, %v7844_v9  }
 0x2cd   : > { %1131 = vperm.xlu1 %5907, %v7767_v56  }
 0x2cf   : > { %1181 = vperm.xlu0 %5906, %v7825_v59  }
 0x2d1   : > { %1161 = vperm.xlu1 %5907, %v7787_v2  }
 0x2d3   : > { %1662 = vrot.lane.b32.xlu0 %v7398_v13, %s6619_s11 }
 0x2d5   : > { %1151 = vperm.xlu1 %5907, %v7808_v3  }
 0x2d7   : > { %1658 = vrot.lane.b32.xlu0 %v7412_v17, %s6619_s11 }
 0x2d9   : > { %1176 = vperm.xlu1 %5907, %v7820_v36  }
 0x2db   : > { %1644 = vrot.lane.b32.xlu0 %v7419_v19, %s6619_s11 }
 0x2dd   : > { %1166 = vperm.xlu1 %5907, %v7841_v47  }
 0x2df   : > { %1648 = vrot.lane.b32.xlu0 %v7429_v21, %s6619_s11 }
 0x2e1   : > { %1664 = vrot.lane.b32.xlu1 %v7391_v11, %s6619_s11 }
 0x2e3   : > { %1652 = vrot.lane.b32.xlu0 %v7439_v23, %s6619_s11 }
 0x2e5   : > { %1660 = vrot.lane.b32.xlu1 %v7405_v15, %s6619_s11 }
 0x2e7   : > { %1656 = vrot.lane.b32.xlu0 %v7449_v25, %s6619_s11 }
 0x2e9   : > { %1642 = vrot.lane.b32.xlu1 %v7375_v7, %s6619_s11 }
 0x2ed   : > { %1646 = vrot.lane.b32.xlu1 %v7422_v20, %s6619_s11 }
 0x2f1   : > { %1650 = vrot.lane.b32.xlu1 %v7432_v22, %s6619_s11 }
 0x2f5   : > { %1654 = vrot.lane.b32.xlu1 %v7442_v24, %s6619_s11 }
 0x326   : > { %v1117_v11 = vpop.permute.xlu1 %1116 }
 0x327   : > { %v1186_v15 = vsub.f32 %v7498_v51, %v1117_v11 }
 0x328   : > { %v1107_v13 = vpop.permute.xlu0 %1106 }
 0x329   : > { %v1184_v17 = vsub.f32 %v7510_v57, %v1107_v13  ;;  %v1204_v25 = vmul.f32 1.442695, %v1186_v15 }
 0x32b   : > { %v1200_v19 = vmul.f32 1.442695, %v1184_v17 }
 0x32c   : > { %v1112_v21 = vpop.permute.xlu1 %1111 }
 0x32d   : > { %v1185_v23 = vsub.f32 %v7532_v12, %v1112_v21  ;;  %5932 = vpow2.f32 %v1200_v19 }
 0x32f   : > { %v1202_v7 = vmul.f32 1.442695, %v1185_v23 }
 0x330   : > { %v1122_v20 = vpop.permute.xlu1 %1121 }
 0x331   : > { %5934 = vpow2.f32 %v1202_v7  ;;  %v1187_v22 = vsub.f32 %v7520_v63, %v1122_v20 }
 0x332   : > { %5936 = vpow2.f32 %v1204_v25  ;;  %v1142_v44 = vpop.permute.xlu0 %1141 }
 0x333   : > { %v1206_v39 = vmul.f32 1.442695, %v1187_v22 }
 0x334   : > { %v1673_v24 = vpop.permute.xlu1 %1672 }
 0x335   : > { %5938 = vpow2.f32 %v1206_v39  ;;  %5729 = vmatprep.subr.msk.bf16.mxu1 %vm813_vm2, %v1673_v24  ;;  %v1720_v22 = vsel %vm813_vm2, %v1673_v24, 0  ;;  %v1191_v39 = vsub.f32 %v7561_v45, %v1142_v44 }
 0x338   : > { %v1671_v57 = vpop.permute.xlu1 %1670  ;;  %v1157_v12 = vpop.permute.xlu0 %1156 }
 0x339   : > { %v1717_v45 = vsel %vm813_vm2, %v1671_v57, 0 }
 0x33a   : > { %v7891_v11 = vpop.eup %5932 }
 0x33c   : > { %v1669_v51 = vpop.permute.xlu1 %1668  ;;  %v1147_v7 = vpop.permute.xlu0 %1146 }
 0x33d   : > { %v1192_v35 = vsub.f32 %v7610_v34, %v1147_v7 }
 0x33e   : > { %v7893_v13 = vpop.eup %5934 }
 0x33f   : > { %v1441_v17 = vpack.c.bf16 %v7893_v13, %v7891_v11  ;;  %v7897_v19 = vpop.eup %5936 }
 0x340   : > { %v1137_v15 = vpop.permute.xlu1 %1136 }
 0x341   : > { %5513 = vmatprep.mubr.bf16.mxu1 %v1441_v17  ;;  %v1190_v21 = vsub.f32 %v7540_v28, %v1137_v15  ;;  %v1667_v17 = vpop.permute.xlu0 %1666  ;;  %v1214_v15 = vmul.f32 1.442695, %v1191_v39 }
 0x342   : > { %v7899_v63 = vpop.eup %5938 }
 0x343   : > { %v1442_v23 = vpack.c.bf16 %v7899_v63, %v7897_v19  ;;  %v1212_v50 = vmul.f32 1.442695, %v1190_v21  ;;  %v1194_v21 = vsub.f32 %v7582_v62, %v1157_v12  ;;  %v1714_v62 = vsel %vm813_vm2, %v1669_v51, 0 }
 0x344   : > { %v1127_v25 = vpop.permute.xlu1 %1126 }
 0x345   : > { %v1188_v20 = vsub.f32 %v7564_v46, %v1127_v25  ;;  %5514 = vmatmul.mubr.bf16.vlgmr.msra.gmra.mxu1 %v1442_v23  ;;  %5940 = vpow2.f32 %v1212_v50  ;;  %v1216_v23 = vmul.f32 1.442695, %v1192_v35  ;;  %v1220_v50 = vmul.f32 1.442695, %v1194_v21 }
 0x346   : > { %5530 = vmatpush3.bf16.xpose.msra.mxu1 %v1720_v22  ;;  %v1172_v44 = vpop.permute.xlu0 %1171 }
 0x347   : > { %5730 = vmatprep.subr.msk.bf16.mxu1 %vm813_vm2, %v1671_v57  ;;  %v1208_v5 = vmul.f32 1.442695, %v1188_v20 }
 0x348   : > { %v1132_v59 = vpop.permute.xlu1 %1131 }
 0x349   : > { %v1189_v28 = vsub.f32 %v7575_v55, %v1132_v59  ;;  %5942 = vpow2.f32 %v1208_v5 }
 0x34b   : > { %v1210_v36 = vmul.f32 1.442695, %v1189_v28 }
 0x34c   : > { %v1162_v46 = vpop.permute.xlu1 %1161 }
 0x34d   : > { %5944 = vpow2.f32 %v1210_v36  ;;  %v1195_v24 = vsub.f32 %v7607_v29, %v1162_v46  ;;  %v1197_v36 = vsub.f32 %v7650_v1, %v1172_v44  ;;  %v1182_v29 = vpop.permute.xlu0 %1181  ;;  %v1711_v46 = vsel %vm813_vm2, %v1667_v17, 0 }
 0x34e   : > { %5532 = vmatpush3.bf16.xpose.msra.mxu1 %v1717_v45  ;;  %5946 = vpow2.f32 %v1214_v15  ;;  %v1199_v12 = vsub.f32 %v7642_v60, %v1182_v29 }
 0x34f   : > { %5731 = vmatprep.subr.msk.bf16.mxu1 %vm813_vm2, %v1669_v51  ;;  %v1222_v55 = vmul.f32 1.442695, %v1195_v24  ;;  %5948 = vpow2.f32 %v1216_v23  ;;  %v1226_v35 = vmul.f32 1.442695, %v1197_v36 }
 0x350   : > { %v1152_v59 = vpop.permute.xlu1 %1151 }
 0x351   : > { %v1193_v34 = vsub.f32 %v7619_v42, %v1152_v59  ;;  %5950 = vpow2.f32 %v1222_v55  ;;  %v1663_v55 = vpop.permute.xlu0 %1662 }
 0x352   : > { %v7920_v42 = vpop.eup %5940 }
 0x353   : > { %v1218_v5 = vmul.f32 1.442695, %v1193_v34 }
 0x354   : > { %v1177_v57 = vpop.permute.xlu1 %1176 }
 0x355   : > { %5952 = vpow2.f32 %v1218_v5  ;;  %v1198_v7 = vsub.f32 %v7627_v30, %v1177_v57  ;;  %v1230_v30 = vmul.f32 1.442695, %v1199_v12  ;;  %v1705_v57 = vsel %vm813_vm2, %v1663_v55, 0 }
 0x356   : > { %5534 = vmatpush3.bf16.xpose.msra.mxu1 %v1714_v62  ;;  %5954 = vpow2.f32 %v1220_v50  ;;  %v7922_v20 = vpop.eup %5942 }
 0x357   : > { %5732 = vmatprep.subr.msk.bf16.mxu1 %vm813_vm2, %v1667_v17  ;;  %v1228_v25 = vmul.f32 1.442695, %v1198_v7  ;;  %5956 = vpow2.f32 %v1226_v35 }
 0x358   : > { %v1167_v1 = vpop.permute.xlu1 %1166 }
 0x359   : > { %v1196_v22 = vsub.f32 %v7646_v0, %v1167_v1  ;;  %5958 = vpow2.f32 %v1228_v25  ;;  %v1659_v25 = vpop.permute.xlu0 %1658 }
 0x35a   : > { %v7925_v39 = vpop.eup %5944  ;;  %v1699_v1 = vsel %vm813_vm2, %v1659_v25, 0 }
 0x35b   : > { %v1224_v51 = vmul.f32 1.442695, %v1196_v22  ;;  %v1443_v28 = vpack.c.bf16 %v7925_v39, %v7922_v20  ;;  %v7929_v15 = vpop.eup %5946 }
 0x35c   : > { %v1665_v60 = vpop.permute.xlu1 %1664  ;;  %v1444_v24 = vpack.c.bf16 %v7929_v15, %v7920_v42  ;;  %v7935_v0 = vpop.eup %5948 }
 0x35d   : > { %5960 = vpow2.f32 %v1224_v51  ;;  %5517 = vmatprep.mubr.bf16.mxu1 %v1443_v28  ;;  %v1708_v23 = vsel %vm813_vm2, %v1665_v60, 0  ;;  %v1645_v22 = vpop.permute.xlu0 %1644 }
 0x35e   : > { %5536 = vmatpush3.bf16.xpose.msra.mxu1 %v1711_v46  ;;  %5962 = vpow2.f32 %v1230_v30  ;;  %v7937_v45 = vpop.eup %5950 }
 0x35f   : > { %5518 = vmatmul.mubr.bf16.gmra.mxu1 %v1444_v24  ;;  %5733 = vmatprep.subr.msk.bf16.mxu1 %vm813_vm2, %v1665_v60 }
 0x360   : > { %v1661_v36 = vpop.permute.xlu1 %1660 }
 0x361   : > { %v1702_v12 = vsel %vm813_vm2, %v1661_v36, 0  ;;  %v1649_v51 = vpop.permute.xlu0 %1648 }
 0x362   : > { %v7939_v44 = vpop.eup %5952 }
 0x363   : > { %v1445_v21 = vpack.c.bf16 %v7939_v44, %v7935_v0  ;;  %v7944_v17 = vpop.eup %5954 }
 0x364   : > { %v1446_v59 = vpack.c.bf16 %v7937_v45, %v7944_v17  ;;  %v7949_v34 = vpop.eup %5956  ;;  %v1643_v35 = vpop.permute.xlu1 %1642 }
 0x365   : > { %5521 = vmatprep.mubr.bf16.mxu1 %v1445_v21  ;;  %v1653_v60 = vpop.permute.xlu0 %1652 }
 0x366   : > { %5538 = vmatpush3.bf16.xpose.msra.mxu1 %v1708_v23  ;;  %v7951_v50 = vpop.eup %5958 }
 0x367   : > { %5522 = vmatmul.mubr.bf16.gmra.mxu1 %v1446_v59  ;;  %5734 = vmatprep.subr.msk.bf16.mxu1 %vm813_vm2, %v1663_v55 }
 0x368   : > { %v1647_v30 = vpop.permute.xlu1 %1646 }
 0x369   : > { %v1657_v24 = vpop.permute.xlu0 %1656 }
 0x36a   : > { %v7953_v5 = vpop.eup %5960 }
 0x36b   : > { %v1447_v29 = vpack.c.bf16 %v7949_v34, %v7953_v5  ;;  %v7958_v7 = vpop.eup %5962 }
 0x36c   : > { %v1448_v62 = vpack.c.bf16 %v7958_v7, %v7951_v50  ;;  %v1651_v28 = vpop.permute.xlu1 %1650 }
 0x36d   : > { %5525 = vmatprep.mubr.bf16.mxu1 %v1447_v29 }
 0x36e   : > { %5540 = vmatpush3.bf16.xpose.msra.mxu1 %v1705_v57 }
 0x36f   : > { %5526 = vmatmul.mubr.bf16.gmra.mxu1 %v1448_v62  ;;  %5735 = vmatprep.subr.msk.bf16.mxu1 %vm813_vm2, %v1661_v36 }
 0x370   : > { %5545 = vmatprep.mubr.msk.bf16.mxu1 %vm813_vm2, %v1643_v35  ;;  %v1655_v46 = vpop.permute.xlu1 %1654 }
 0x376   : > { %5542 = vmatpush3.bf16.xpose.msra.mxu1 %v1702_v12 }
 0x377   : > { %5736 = vmatprep.subr.msk.bf16.mxu1 %vm813_vm2, %v1659_v25 }
 0x37e   : > { %5544 = vmatpush3.bf16.xpose.msra.mxu1 %v1699_v1 }
 0x385   : > { %5546 = vmatmul.mubr.msk.bf16.vlgmr.msra.gmra.mxu1 %vm813_vm2, %v1645_v22 }
 0x386   : > { %5549 = vmatprep.mubr.msk.bf16.mxu1 %vm813_vm2, %v1647_v30 }
 0x38d   : > { %5550 = vmatmul.mubr.msk.bf16.gmra.mxu1 %vm813_vm2, %v1649_v51 }
 0x38e   : > { %5553 = vmatprep.mubr.msk.bf16.mxu1 %vm813_vm2, %v1651_v28 }
 0x395   : > { %5554 = vmatmul.mubr.msk.bf16.gmra.mxu1 %vm813_vm2, %v1653_v60 }
 0x396   : > { %5557 = vmatprep.mubr.msk.bf16.mxu1 %vm813_vm2, %v1655_v46 }
 0x39d   : > { %5558 = vmatmul.mubr.msk.bf16.gmra.mxu1 %vm813_vm2, %v1657_v24 }
 0x405   : > { %v7974_v21 = vpop.f32.mrf.mxu1 }
 0x406   : > { %10257 = vst [vmem:[#allocation76_spill] sm:$0xff] %v7974_v21 }
 0x407   : > { %v7976_v23 = vpop.f32.mrf.mxu1 }
 0x409   : > { %v7978_v55 = vpop.f32.mrf.mxu1 }
 0x40a   : > { %10258 = vst [vmem:[#allocation77_spill] sm:$0xff] %v7978_v55 }
 0x40b   : > { %v7980_v59 = vpop.f32.mrf.mxu1 }
 0x41f   : > { %v7982_v36 = vpop.f32.mrf.mxu1 }
 0x420   : > { %10259 = vst [vmem:[#allocation78_spill] sm:$0xff] %v7982_v36 }
 0x421   : > { %v7984_v29 = vpop.f32.mrf.mxu1 }
 0x422   : > { %10260 = vst [vmem:[#allocation79_spill] sm:$0xff] %v7984_v29 }
 0x423   : > { %v7986_v57 = vpop.f32.mrf.mxu1 }
 0x424   : > { %10261 = vst [vmem:[#allocation80_spill] sm:$0xff] %v7986_v57 }
 0x425   : > { %v7988_v62 = vpop.f32.mrf.mxu1 }
 0x426   : > { %10262 = vst [vmem:[#allocation81_spill] sm:$0xff] %v7988_v62 }
 0x427   : > { %v7990_v35 = vpop.f32.mrf.mxu1 }
 0x428   : > { %10263 = vst [vmem:[#allocation82_spill] sm:$0xff] %v7990_v35 }
 0x429   : > { %v7992_v12 = vpop.f32.mrf.mxu1 }
 0x42a   : > { %10264 = vst [vmem:[#allocation83_spill] sm:$0xff] %v7992_v12 }
 0x42b   : > { %v7994_v25 = vpop.f32.mrf.mxu1 }
 0x42c   : > { %10265 = vst [vmem:[#allocation84_spill] sm:$0xff] %v7994_v25 }
 0x42d   : > { %v7996_v1 = vpop.f32.mrf.mxu1 }
 0x42e   : > { %10266 = vst [vmem:[#allocation85_spill] sm:$0xff] %v7996_v1 }
 0x42f   : > { %v7998_v22 = vpop.f32.mrf.mxu1 }
 0x430   : > { %10267 = vst [vmem:[#allocation86_spill] sm:$0xff] %v7998_v22 }
 0x431   : > { %v8000_v30 = vpop.f32.mrf.mxu1 }
 0x432   : > { %10268 = vst [vmem:[#allocation87_spill] sm:$0xff] %v8000_v30 }
 0x433   : > { %v8002_v51 = vpop.f32.mrf.mxu1 }
 0x434   : > { %10269 = vst [vmem:[#allocation88_spill] sm:$0xff] %v8002_v51 }
 0x435   : > { %v8004_v28 = vpop.f32.mrf.mxu1 }
 0x436   : > { %10270 = vst [vmem:[#allocation89_spill] sm:$0xff] %v8004_v28 }
 0x445   : > { %v5547_v60 = vpop.f32.mrf.mxu1 }
 0x446   : > { %v1821_v46 = vmul.f32 %v5547_v60, %v7481_v40 }
 0x447   : > { %v1756_v24 = vpop.f32.mrf.mxu1 }
 0x448   : > { %v1819_v35 = vmul.f32 %v1756_v24, %v7481_v40  ;;  %v8009_v57 = vadd.f32 %v1821_v46, %v7486_v43 }
 0x449   : > { %v5548_v25 = vpop.f32.mrf.mxu1 }
 0x44a   : > { %v1822_v1 = vmul.f32 %v5548_v25, %v7481_v40  ;;  %1872 = vmax.xlane.f32.xlu0 %v8009_v57  ;;  %v8014_v22 = vadd.f32 %v1819_v35, %v7494_v49 }
 0x44b   : > { %v1759_v51 = vpop.f32.mrf.mxu1 }
 0x44c   : > { %v1820_v28 = vmul.f32 %v1759_v51, %v7481_v40  ;;  %1868 = vmax.xlane.f32.xlu1 %v8014_v22  ;;  %v8019_v60 = vadd.f32 %v1822_v1, %v7503_v54 }
 0x44d   : > { %v5551_v35 = vpop.f32.mrf.mxu1 }
 0x44e   : > { %v8022_v24 = vadd.f32 %v1820_v28, %v7515_v61  ;;  %v1825_v28 = vmul.f32 %v5551_v35, %v7481_v40 }
 0x44f   : > { %v1772_v25 = vpop.f32.mrf.mxu1 }
 0x450   : > { %1874 = vmax.xlane.f32.xlu1 %v8019_v60  ;;  %1870 = vmax.xlane.f32.xlu0 %v8022_v24  ;;  %v1823_v55 = vmul.f32 %v1772_v25, %v7481_v40 }
 0x451   : > { %v5552_v51 = vpop.f32.mrf.mxu1 }
 0x452   : > { %v1826_v62 = vmul.f32 %v5552_v51, %v7481_v40  ;;  %v8045_v61 = vadd.f32 %v1823_v55, %v7547_v32 }
 0x453   : > { %v1775_v46 = vpop.f32.mrf.mxu1 }
 0x454   : > { %v1824_v29 = vmul.f32 %v1775_v46, %v7481_v40 }
 0x455   : > { %v5555_v30 = vpop.f32.mrf.mxu1 }
 0x456   : > { %v1829_v35 = vmul.f32 %v5555_v30, %v7481_v40  ;;  %v8048_v25 = vadd.f32 %v1824_v29, %v7555_v41 }
 0x457   : > { %v1788_v1 = vpop.f32.mrf.mxu1 }
 0x459   : > { %v5556_v12 = vpop.f32.mrf.mxu1 }
 0x45a   : > { %v1830_v51 = vmul.f32 %v5556_v12, %v7481_v40 }
 0x45b   : > { %v1791_v36 = vpop.f32.mrf.mxu1 }
 0x45c   : > { %v8058_v12 = vadd.f32 %v1830_v51, %v7589_v6 }
 0x45d   : > { %v5559_v21 = vpop.f32.mrf.mxu1 }
 0x45e   : > { %v1833_v30 = vmul.f32 %v5559_v21, %v7481_v40 }
 0x45f   : > { %v1804_v46 = vpop.f32.mrf.mxu1 }
 0x460   : > { %v1831_v51 = vmul.f32 %v1804_v46, %v7481_v40  ;;  %v8092_v46 = vld [vmem:[#allocation2 + $0x80] sm:$0xff] }
 0x461   : > { %2322 = vrot.lane.b32.xlu1 %v7658_v10, %s6619_s11  ;;  %v8035_v10 = vadd.f32 %v1825_v28, %v7524_v4  ;;  %v1828_v28 = vmul.f32 %v1791_v36, %v7481_v40  ;;  %v5560_v55 = vpop.f32.mrf.mxu1  ;;  %10272 = vst [vmem:[#allocation91_spill] sm:$0xff] %v8092_v46 }
 0x462   : > { %v1834_v29 = vmul.f32 %v5560_v55, %v7481_v40 }
 0x463   : > { %v8068_v36 = vadd.f32 %v1828_v28, %v7602_v18 }
 0x464   : > { %v8076_v21 = vadd.f32 %v1834_v29, %v7630_v52 }
 0x466   : > { %2324 = vrot.lane.b32.xlu0 %v7655_v38, %s6619_s11  ;;  %v8038_v38 = vadd.f32 %v1826_v62, %v7544_v31  ;;  %v1827_v62 = vmul.f32 %v1788_v1, %v7481_v40  ;;  %v8055_v31 = vadd.f32 %v1829_v35, %v7567_v48  ;;  %v1807_v1 = vpop.f32.mrf.mxu1  ;;  %v8073_v35 = vadd.f32 %v1833_v30, %v7614_v37  ;;  %v8090_v30 = vld [vmem:[#allocation2 + $0x90] sm:$0xff]  ;;  %v8180_v37 = vld [vmem:[#allocation2 + $0xd8] sm:$0xff] }
 0x467   : > { %v1832_v55 = vmul.f32 %v1807_v1, %v7481_v40  ;;  %10271 = vst [vmem:[#allocation90_spill] sm:$0xff] %v8090_v30  ;;  %10293 = vst [vmem:[#allocation102_spill] sm:$0xff] %v8180_v37 }
 0x468   : > { %v8065_v41 = vadd.f32 %v1827_v62, %v7594_v8  ;;  %v8083_v62 = vadd.f32 %v1831_v51, %v7633_v53  ;;  %v8107_v53 = vld [vmem:[#allocation2 + $0x98] sm:$0xff] }
 0x469   : > { %v8086_v28 = vadd.f32 %v1832_v55, %v7638_v33  ;;  %v8105_v33 = vld [vmem:[#allocation2 + $0x88] sm:$0xff]  ;;  %10276 = vst [vmem:[#allocation95_spill] sm:$0xff] %v8107_v53 }
 0x46a   : > { %10275 = vst [vmem:[#allocation94_spill] sm:$0xff] %v8105_v33 }
 0x485   : > { %1880 = vmax.xlane.f32.xlu0 %v8035_v10  ;;  %1882 = vmax.xlane.f32.xlu1 %v8038_v38 }
 0x489   : > { %1876 = vmax.xlane.f32.xlu0 %v8045_v61  ;;  %1878 = vmax.xlane.f32.xlu1 %v8048_v25 }
 0x48d   : > { %1888 = vmax.xlane.f32.xlu0 %v8055_v31  ;;  %1890 = vmax.xlane.f32.xlu1 %v8058_v12 }
 0x491   : > { %1884 = vmax.xlane.f32.xlu0 %v8065_v41  ;;  %1886 = vmax.xlane.f32.xlu1 %v8068_v36 }
 0x495   : > { %1896 = vmax.xlane.f32.xlu0 %v8073_v35  ;;  %1898 = vmax.xlane.f32.xlu1 %v8076_v21 }
 0x499   : > { %1892 = vmax.xlane.f32.xlu0 %v8083_v62  ;;  %1894 = vmax.xlane.f32.xlu1 %v8086_v28 }
 0x4d3   : > { %v1873_v29 = vpop.xlane.xlu0 %1872 }
 0x4d4   : > { %v8095_v1 = vmax.f32 %v8090_v30, %v1873_v29  ;;  %v10280_v29 = vld [vmem:[#allocation48_spill] sm:$0xff] }
 0x4d5   : > { %v1869_v52 = vpop.xlane.xlu1 %1868 }
 0x4d6   : > { %10273 = vst [vmem:[#allocation92_spill] sm:$0xff] %v8095_v1  ;;  %2465 = vst.msk [vmem:[#allocation2 + $0x90] sm:$0xff] %vm1312_vm4, %v8095_v1  ;;  %v8102_v55 = vmax.f32 %v8092_v46, %v1869_v52  ;;  %1976 = vperm.xlu1 %5907, %v8095_v1   ;;  %v10279_v1 = vld [vmem:[#allocation49_spill] sm:$0xff] }
 0x4d8   : > { %10274 = vst [vmem:[#allocation93_spill] sm:$0xff] %v8102_v55  ;;  %2463 = vst.msk [vmem:[#allocation2 + $0x80] sm:$0xff] %vm1312_vm4, %v8102_v55 }
 0x4d9   : > { %v1871_v18 = vpop.xlane.xlu0 %1870  ;;  %v1875_v51 = vpop.xlane.xlu1 %1874 }
 0x4da   : > { %v8114_v30 = vmax.f32 %v8105_v33, %v1871_v18  ;;  %v8117_v52 = vmax.f32 %v8107_v53, %v1875_v51  ;;  %1966 = vperm.xlu1 %5907, %v8102_v55   ;;  %v10281_v53 = vld [vmem:[#allocation58_spill] sm:$0xff]  ;;  %v10282_v55 = vld [vmem:[#allocation53_spill] sm:$0xff] }
 0x4dc   : > { %10277 = vst [vmem:[#allocation96_spill] sm:$0xff] %v8114_v30  ;;  %10278 = vst [vmem:[#allocation97_spill] sm:$0xff] %v8117_v52  ;;  %1971 = vperm.xlu0 %5906, %v8114_v30  }
 0x4dd   : > { %2464 = vst.msk [vmem:[#allocation2 + $0x88] sm:$0xff] %vm1312_vm4, %v8114_v30  ;;  %2466 = vst.msk [vmem:[#allocation2 + $0x98] sm:$0xff] %vm1312_vm4, %v8117_v52  ;;  %v2325_v18 = vpop.permute.xlu0 %2324  ;;  %v2323_v51 = vpop.permute.xlu1 %2322  ;;  %v8158_v30 = vld [vmem:[#allocation2 + $0xa0] sm:$0xff] }
 0x4de   : > { %5561 = vmatprep.subr.bf16.mxu0 %v2325_v18  ;;  %2320 = vrot.lane.b32.xlu1 %v7664_v14, %s6619_s11  ;;  %v6188_v14 = vld [vmem:[%s6938_s21 + $0x38] sm:$0xff]  }
 0x4df   : > { %5562 = vmatpush3.bf16.msra.mxu0 %v2325_v18  ;;  %v10283_v18 = vld [vmem:[#allocation61_spill] sm:$0xff] }
 0x4e0   : > { %1981 = vperm.xlu0 %5906, %v8117_v52   ;;  %5563 = vmatprep.subr.bf16.mxu0 %v2323_v51  ;;  %v6189_v52 = vld [vmem:[%s6938_s21 + $0x28] sm:$0xff]   ;;  %10288 = vst [vmem:[#allocation61_spill] sm:$0xff] %v8158_v30 }
 0x4e2   : > { %2316 = vrot.lane.b32.xlu1 %v10279_v1, %s6619_s11  ;;  %v6190_v1 = vld [vmem:[%s6938_s21 + $0x30] sm:$0xff]  }
 0x4e3   : > { %5564 = vmatpush3.bf16.msra.mxu0 %v2323_v51  ;;  %v8150_v51 = vld [vmem:[#allocation2 + $0xb8] sm:$0xff] }
 0x4e4   : > { %2318 = vrot.lane.b32.xlu0 %v10280_v29, %s6619_s11  ;;  %v8148_v29 = vld [vmem:[#allocation2 + $0xb0] sm:$0xff]  ;;  %10285 = vst [vmem:[#allocation48_spill] sm:$0xff] %v8150_v51 }
 0x4e5   : > { %10284 = vst [vmem:[#allocation49_spill] sm:$0xff] %v8148_v29 }
 0x4e6   : > { %2312 = vrot.lane.b32.xlu1 %v10281_v53, %s6619_s11 }
 0x4e8   : > { %2314 = vrot.lane.b32.xlu0 %v10282_v55, %s6619_s11 }
 0x4ea   : > { %2509 = vrot.lane.b32.xlu1 %v6188_v14, %s6620_s17 }
 0x4ec   : > { %2310 = vrot.lane.b32.xlu0 %v10283_v18, %s6619_s11  ;;  %v8160_v18 = vld [vmem:[#allocation2 + $0xa8] sm:$0xff] }
 0x4ed   : > { %10289 = vst [vmem:[#allocation98_spill] sm:$0xff] %v8160_v18 }
 0x4ee   : > { %2505 = vrot.lane.b32.xlu1 %v6189_v52, %s6620_s17 }
 0x4f0   : > { %2507 = vrot.lane.b32.xlu0 %v6190_v1, %s6620_s17 }
 0x50e   : > { %v1881_v53 = vpop.xlane.xlu0 %1880  ;;  %v1883_v46 = vpop.xlane.xlu1 %1882 }
 0x50f   : > { %v8153_v55 = vmax.f32 %v8148_v29, %v1881_v53  ;;  %v8156_v14 = vmax.f32 %v8150_v51, %v1883_v46  ;;  %v8178_v29 = vld [vmem:[#allocation2 + $0xd0] sm:$0xff] }
 0x510   : > { %10292 = vst [vmem:[#allocation101_spill] sm:$0xff] %v8178_v29 }
 0x511   : > { %10286 = vst [vmem:[#allocation58_spill] sm:$0xff] %v8153_v55  ;;  %10287 = vst [vmem:[#allocation53_spill] sm:$0xff] %v8156_v14  ;;  %1996 = vperm.xlu1 %5907, %v8153_v55   ;;  %2001 = vperm.xlu0 %5906, %v8156_v14  }
 0x512   : > { %2469 = vst.msk [vmem:[#allocation2 + $0xb0] sm:$0xff] %vm1312_vm4, %v8153_v55  ;;  %2470 = vst.msk [vmem:[#allocation2 + $0xb8] sm:$0xff] %vm1312_vm4, %v8156_v14  ;;  %v1877_v46 = vpop.xlane.xlu0 %1876  ;;  %v1879_v53 = vpop.xlane.xlu1 %1878  ;;  %v8198_v55 = vld [vmem:[#allocation2 + $0xc0] sm:$0xff] }
 0x513   : > { %v8173_v33 = vmax.f32 %v8158_v30, %v1877_v46  ;;  %v8176_v52 = vmax.f32 %v8160_v18, %v1879_v53  ;;  %10296 = vst [vmem:[#allocation105_spill] sm:$0xff] %v8198_v55  ;;  %v8200_v30 = vld [vmem:[#allocation2 + $0xc8] sm:$0xff] }
 0x514   : > { %10297 = vst [vmem:[#allocation106_spill] sm:$0xff] %v8200_v30 }
 0x515   : > { %10290 = vst [vmem:[#allocation99_spill] sm:$0xff] %v8173_v33  ;;  %10291 = vst [vmem:[#allocation100_spill] sm:$0xff] %v8176_v52  ;;  %1986 = vperm.xlu1 %5907, %v8173_v33   ;;  %1991 = vperm.xlu0 %5906, %v8176_v52  }
 0x516   : > { %2467 = vst.msk [vmem:[#allocation2 + $0xa0] sm:$0xff] %vm1312_vm4, %v8173_v33  ;;  %2468 = vst.msk [vmem:[#allocation2 + $0xa8] sm:$0xff] %vm1312_vm4, %v8176_v52  ;;  %v1889_v46 = vpop.xlane.xlu0 %1888  ;;  %v1891_v53 = vpop.xlane.xlu1 %1890  ;;  %v8220_v33 = vld [vmem:[#allocation2 + $0xf8] sm:$0xff] }
 0x517   : > { %v8193_v51 = vmax.f32 %v8178_v29, %v1889_v46  ;;  %v8196_v1 = vmax.f32 %v8180_v37, %v1891_v53  ;;  %v8218_v29 = vld [vmem:[#allocation2 + $0xf0] sm:$0xff]  ;;  %10301 = vst [vmem:[#allocation110_spill] sm:$0xff] %v8220_v33 }
 0x518   : > { %10300 = vst [vmem:[#allocation109_spill] sm:$0xff] %v8218_v29 }
 0x519   : > { %10294 = vst [vmem:[#allocation103_spill] sm:$0xff] %v8193_v51  ;;  %10295 = vst [vmem:[#allocation104_spill] sm:$0xff] %v8196_v1  ;;  %2016 = vperm.xlu0 %5906, %v8193_v51   ;;  %2021 = vperm.xlu1 %5907, %v8196_v1  }
 0x51a   : > { %2473 = vst.msk [vmem:[#allocation2 + $0xd0] sm:$0xff] %vm1312_vm4, %v8193_v51  ;;  %2474 = vst.msk [vmem:[#allocation2 + $0xd8] sm:$0xff] %vm1312_vm4, %v8196_v1  ;;  %v1885_v46 = vpop.xlane.xlu0 %1884  ;;  %v1887_v53 = vpop.xlane.xlu1 %1886  ;;  %v8238_v51 = vld [vmem:[#allocation2 + $0xe0] sm:$0xff] }
 0x51b   : > { %v8213_v18 = vmax.f32 %v8198_v55, %v1885_v46  ;;  %v8216_v14 = vmax.f32 %v8200_v30, %v1887_v53  ;;  %10304 = vst [vmem:[#allocation113_spill] sm:$0xff] %v8238_v51  ;;  %v8240_v55 = vld [vmem:[#allocation2 + $0xe8] sm:$0xff] }
 0x51c   : > { %10305 = vst [vmem:[#allocation114_spill] sm:$0xff] %v8240_v55 }
 0x51d   : > { %10298 = vst [vmem:[#allocation107_spill] sm:$0xff] %v8213_v18  ;;  %10299 = vst [vmem:[#allocation108_spill] sm:$0xff] %v8216_v14  ;;  %2006 = vperm.xlu0 %5906, %v8213_v18   ;;  %2011 = vperm.xlu1 %5907, %v8216_v14  }
 0x51e   : > { %2471 = vst.msk [vmem:[#allocation2 + $0xc0] sm:$0xff] %vm1312_vm4, %v8213_v18  ;;  %2472 = vst.msk [vmem:[#allocation2 + $0xc8] sm:$0xff] %vm1312_vm4, %v8216_v14  ;;  %v1897_v46 = vpop.xlane.xlu0 %1896  ;;  %v1899_v53 = vpop.xlane.xlu1 %1898  ;;  %v6195_v14 = vld [vmem:[%s6930_s12] sm:$0xff]  }
 0x51f   : > { %v8233_v37 = vmax.f32 %v8218_v29, %v1897_v46  ;;  %v8236_v52 = vmax.f32 %v8220_v33, %v1899_v53  ;;  %v6191_v46 = vld [vmem:[%s6938_s21 + $0x20] sm:$0xff]  }
 0x520   : > { %v6196_v33 = vld [vmem:[%s6938_s21] sm:$0xff]  }
 0x521   : > { %10302 = vst [vmem:[#allocation111_spill] sm:$0xff] %v8233_v37  ;;  %10303 = vst [vmem:[#allocation112_spill] sm:$0xff] %v8236_v52  ;;  %2503 = vrot.lane.b32.xlu0 %v6191_v46, %s6620_s17  ;;  %2036 = vperm.xlu1 %5907, %v8233_v37   ;;  %v6194_v46 = vld [vmem:[%s6938_s21 + $0x10] sm:$0xff]  }
 0x522   : > { %2477 = vst.msk [vmem:[#allocation2 + $0xf0] sm:$0xff] %vm1312_vm4, %v8233_v37  ;;  %2478 = vst.msk [vmem:[#allocation2 + $0xf8] sm:$0xff] %vm1312_vm4, %v8236_v52  ;;  %v1893_v53 = vpop.xlane.xlu0 %1892  ;;  %v1895_v30 = vpop.xlane.xlu1 %1894 }
 0x523   : > { %v8254_v1 = vmax.f32 %v8238_v51, %v1893_v53  ;;  %v8257_v29 = vmax.f32 %v8240_v55, %v1895_v30  ;;  %v6192_v30 = vld [vmem:[%s6938_s21 + $0x18] sm:$0xff]   ;;  %v6193_v53 = vld [vmem:[%s6938_s21 + $0x8] sm:$0xff]  }
 0x524   : > { %v6202_v55 = vld [vmem:[%s6930_s12 + $0x28] sm:$0xff]  }
 0x525   : > { %10306 = vst [vmem:[#allocation115_spill] sm:$0xff] %v8254_v1  ;;  %10307 = vst [vmem:[#allocation116_spill] sm:$0xff] %v8257_v29  ;;  %2026 = vperm.xlu1 %5907, %v8254_v1   ;;  %2031 = vperm.xlu0 %5906, %v8257_v29  }
 0x526   : > { %2475 = vst.msk [vmem:[#allocation2 + $0xe0] sm:$0xff] %vm1312_vm4, %v8254_v1  ;;  %2476 = vst.msk [vmem:[#allocation2 + $0xe8] sm:$0xff] %vm1312_vm4, %v8257_v29  ;;  %v6197_v29 = vld [vmem:[%s6930_s12 + $0x10] sm:$0xff]  }
 0x529   : > { %2501 = vrot.lane.b32.xlu1 %v6192_v30, %s6620_s17  ;;  %2041 = vperm.xlu0 %5906, %v8236_v52   ;;  %v6198_v30 = vld [vmem:[%s6930_s12 + $0x8] sm:$0xff]   ;;  %v6199_v52 = vld [vmem:[%s6930_s12 + $0x20] sm:$0xff]  }
 0x52d   : > { %2497 = vrot.lane.b32.xlu1 %v6193_v53, %s6620_s17  ;;  %2499 = vrot.lane.b32.xlu0 %v6194_v46, %s6620_s17  ;;  %v6200_v53 = vld [vmem:[%s6930_s12 + $0x18] sm:$0xff]   ;;  %v6201_v46 = vld [vmem:[%s6930_s12 + $0x30] sm:$0xff]  }
 0x531   : > { %2479 = vrot.lane.b32.xlu1 %v6195_v14, %s6620_s17  ;;  %2495 = vrot.lane.b32.xlu0 %v6196_v33, %s6620_s17  ;;  %v6203_v14 = vld [vmem:[%s6930_s12 + $0x38] sm:$0xff]  }
 0x535   : > { %2483 = vrot.lane.b32.xlu1 %v6197_v29, %s6620_s17  ;;  %2481 = vrot.lane.b32.xlu0 %v6198_v30, %s6620_s17 }
 0x539   : > { %2487 = vrot.lane.b32.xlu1 %v6199_v52, %s6620_s17  ;;  %2485 = vrot.lane.b32.xlu0 %v6200_v53, %s6620_s17 }
 0x53d   : > { %2491 = vrot.lane.b32.xlu1 %v6201_v46, %s6620_s17  ;;  %2489 = vrot.lane.b32.xlu0 %v6202_v55, %s6620_s17 }
 0x541   : > { %2493 = vrot.lane.b32.xlu0 %v6203_v14, %s6620_s17 }
 0x551   : > { %v1977_v33 = vpop.permute.xlu1 %1976 }
 0x552   : > { %v2046_v46 = vsub.f32 %v8009_v57, %v1977_v33 }
 0x554   : > { %v2064_v48 = vmul.f32 1.442695, %v2046_v46 }
 0x555   : > { %v1967_v29 = vpop.permute.xlu1 %1966 }
 0x556   : > { %v2044_v37 = vsub.f32 %v8014_v22, %v1967_v29 }
 0x557   : > { %v1972_v30 = vpop.permute.xlu0 %1971 }
 0x558   : > { %v2060_v1 = vmul.f32 1.442695, %v2044_v37  ;;  %v2045_v52 = vsub.f32 %v8022_v24, %v1972_v30 }
 0x559   : > { %v2321_v51 = vpop.permute.xlu1 %2320 }
 0x55a   : > { %v2062_v18 = vmul.f32 1.442695, %v2045_v52  ;;  %5565 = vmatprep.subr.bf16.mxu0 %v2321_v51  ;;  %5964 = vpow2.f32 %v2060_v1 }
 0x55b   : > { %v1982_v53 = vpop.permute.xlu0 %1981  ;;  %5566 = vmatpush3.bf16.msra.mxu0 %v2321_v51 }
 0x55c   : > { %5966 = vpow2.f32 %v2062_v18  ;;  %v2047_v55 = vsub.f32 %v8019_v60, %v1982_v53 }
 0x55d   : > { %v2317_v8 = vpop.permute.xlu1 %2316 }
 0x55e   : > { %v2066_v14 = vmul.f32 1.442695, %v2047_v55 }
 0x55f   : > { %v2319_v6 = vpop.permute.xlu0 %2318 }
 0x560   : > { %1266 = vadd.xlane.f32.xlu0 %v7893_v13  ;;  %5567 = vmatprep.subr.bf16.mxu0 %v2319_v6  ;;  %5968 = vpow2.f32 %v2066_v14 }
 0x561   : > { %1264 = vadd.xlane.f32.xlu1 %v7891_v11  ;;  %5568 = vmatpush3.bf16.msra.mxu0 %v2319_v6  ;;  %5970 = vpow2.f32 %v2064_v48  ;;  %v2313_v57 = vpop.permute.xlu1 %2312 }
 0x562   : > { %5569 = vmatprep.subr.bf16.mxu0 %v2317_v8 }
 0x563   : > { %v2315_v37 = vpop.permute.xlu0 %2314 }
 0x564   : > { %1268 = vadd.xlane.f32.xlu0 %v7897_v19 }
 0x565   : > { %1270 = vadd.xlane.f32.xlu1 %v7899_v63  ;;  %5570 = vmatpush3.bf16.msra.mxu0 %v2317_v8  ;;  %v2510_v11 = vpop.permute.xlu1 %2509 }
 0x566   : > { %5571 = vmatprep.subr.bf16.mxu0 %v2315_v37 }
 0x567   : > { %v8302_v22 = vpop.eup %5964  ;;  %v2311_v6 = vpop.permute.xlu0 %2310 }
 0x568   : > { %1272 = vadd.xlane.f32.xlu0 %v7922_v20 }
 0x569   : > { %v8305_v13 = vpop.eup %5966  ;;  %1274 = vadd.xlane.f32.xlu1 %v7925_v39  ;;  %5572 = vmatpush3.bf16.msra.mxu0 %v2315_v37 }
 0x56a   : > { %5573 = vmatprep.subr.bf16.mxu0 %v2313_v57  ;;  %v2302_v48 = vpack.c.bf16 %v8305_v13, %v8302_v22 }
 0x56b   : > { %v2508_v20 = vpop.permute.xlu0 %2507 }
 0x56c   : > { %1276 = vadd.xlane.f32.xlu0 %v7920_v42  ;;  %5577 = vmatprep.mubr.bf16.mxu0 %v2302_v48  ;;  %v2557_v42 = vsel %vm813_vm2, %v2510_v11, 0  ;;  %v2554_v39 = vsel %vm813_vm2, %v2508_v20, 0 }
 0x56d   : > { %1278 = vadd.xlane.f32.xlu1 %v7929_v15  ;;  %5574 = vmatpush3.bf16.msra.mxu0 %v2313_v57  ;;  %v8312_v8 = vpop.eup %5968  ;;  %v2506_v15 = vpop.permute.xlu1 %2505 }
 0x56e   : > { %5575 = vmatprep.subr.bf16.mxu0 %v2311_v6  ;;  %v8315_v19 = vpop.eup %5970 }
 0x56f   : > { %v2303_v63 = vpack.c.bf16 %v8312_v8, %v8315_v19 }
 0x570   : > { %1280 = vadd.xlane.f32.xlu0 %v7935_v0  ;;  %v10308_v0 = vld [vmem:[#allocation56_spill] sm:$0xff] }
 0x571   : > { %1282 = vadd.xlane.f32.xlu1 %v7939_v44  ;;  %5576 = vmatpush3.bf16.msra.mxu0 %v2311_v6  ;;  %v10309_v44 = vld [vmem:[#allocation59_spill] sm:$0xff] }
 0x572   : > { %5737 = vmatprep.subr.msk.bf16.mxu0 %vm813_vm2, %v2510_v11  ;;  %v10310_v60 = vsub.f32 %v10308_v0, %v10309_v44 }
 0x574   : > { %1284 = vadd.xlane.f32.xlu0 %v7944_v17  ;;  %5578 = vmatmul.mubr.bf16.vlgmr.msra.gmra.mxu0 %v2303_v63  ;;  %v1074_v24 = vmul.f32 1.442695, %v10310_v60  ;;  %v10312_v17 = vld [vmem:[#allocation55_spill] sm:$0xff] }
 0x575   : > { %1286 = vadd.xlane.f32.xlu1 %v7937_v45  ;;  %5594 = vmatpush3.bf16.xpose.msra.mxu0 %v2557_v42  ;;  %v10311_v45 = vld [vmem:[#allocation51_spill] sm:$0xff] }
 0x576   : > { %5738 = vmatprep.subr.msk.bf16.mxu0 %vm813_vm2, %v2508_v20  ;;  %v10313_v51 = vsub.f32 %v10311_v45, %v10312_v17  ;;  %5972 = vpow2.f32 %v1074_v24 }
 0x578   : > { %1288 = vadd.xlane.f32.xlu0 %v7953_v5  ;;  %v1072_v5 = vmul.f32 1.442695, %v10313_v51 }
 0x579   : > { %1290 = vadd.xlane.f32.xlu1 %v7949_v34  ;;  %v2551_v34 = vsel %vm813_vm2, %v2506_v15, 0 }
 0x57a   : > { %5974 = vpow2.f32 %v1072_v5 }
 0x57c   : > { %1292 = vadd.xlane.f32.xlu0 %v7951_v50 }
 0x57d   : > { %1294 = vadd.xlane.f32.xlu1 %v7958_v7  ;;  %5596 = vmatpush3.bf16.xpose.msra.mxu0 %v2554_v39 }
 0x57e   : > { %5739 = vmatprep.subr.msk.bf16.mxu0 %vm813_vm2, %v2506_v15 }
 0x583   : > { %v8338_v33 = vpop.eup %5972 }
 0x585   : > { %5598 = vmatpush3.bf16.xpose.msra.mxu0 %v2551_v34 }
 0x587   : > { %v8343_v46 = vpop.eup %5974 }
 0x58c   : > { %v2002_v18 = vpop.permute.xlu0 %2001  ;;  %v1997_v1 = vpop.permute.xlu1 %1996 }
 0x58d   : > { %v2051_v50 = vsub.f32 %v8038_v38, %v2002_v18  ;;  %v2050_v7 = vsub.f32 %v8035_v10, %v1997_v1 }
 0x58e   : > { %1352 = vperm.xlu1 %5907, %v8338_v33  }
 0x58f   : > { %v2074_v29 = vmul.f32 1.442695, %v2051_v50  ;;  %v2072_v30 = vmul.f32 1.442695, %v2050_v7 }
 0x590   : > { %v1992_v52 = vpop.permute.xlu0 %1991  ;;  %v1987_v53 = vpop.permute.xlu1 %1986 }
 0x591   : > { %v2049_v55 = vsub.f32 %v8048_v25, %v1992_v52  ;;  %v2048_v14 = vsub.f32 %v8045_v61, %v1987_v53  ;;  %5976 = vpow2.f32 %v2074_v29 }
 0x592   : > { %1347 = vperm.xlu0 %5906, %v8343_v46   ;;  %5978 = vpow2.f32 %v2072_v30 }
 0x593   : > { %v2070_v37 = vmul.f32 1.442695, %v2049_v55  ;;  %v2068_v57 = vmul.f32 1.442695, %v2048_v14 }
 0x594   : > { %v2017_v38 = vpop.permute.xlu0 %2016  ;;  %v2022_v10 = vpop.permute.xlu1 %2021 }
 0x595   : > { %5980 = vpow2.f32 %v2070_v37  ;;  %v2054_v48 = vsub.f32 %v8055_v31, %v2017_v38  ;;  %v2055_v6 = vsub.f32 %v8058_v12, %v2022_v10 }
 0x596   : > { %5982 = vpow2.f32 %v2068_v57 }
 0x597   : > { %v2080_v11 = vmul.f32 1.442695, %v2054_v48  ;;  %v2082_v63 = vmul.f32 1.442695, %v2055_v6 }
 0x598   : > { %v2007_v42 = vpop.permute.xlu0 %2006  ;;  %v2012_v25 = vpop.permute.xlu1 %2011 }
 0x599   : > { %v2052_v61 = vsub.f32 %v8065_v41, %v2007_v42  ;;  %v2053_v20 = vsub.f32 %v8068_v36, %v2012_v25  ;;  %5984 = vpow2.f32 %v2080_v11 }
 0x59a   : > { %5986 = vpow2.f32 %v2082_v63 }
 0x59b   : > { %v2076_v39 = vmul.f32 1.442695, %v2052_v61  ;;  %v2078_v15 = vmul.f32 1.442695, %v2053_v20 }
 0x59c   : > { %v2504_v0 = vpop.permute.xlu0 %2503  ;;  %v2037_v44 = vpop.permute.xlu1 %2036 }
 0x59d   : > { %5988 = vpow2.f32 %v2076_v39  ;;  %5740 = vmatprep.subr.msk.bf16.mxu0 %vm813_vm2, %v2504_v0  ;;  %v2548_v31 = vsel %vm813_vm2, %v2504_v0, 0  ;;  %v2058_v60 = vsub.f32 %v8073_v35, %v2037_v44 }
 0x59e   : > { %5990 = vpow2.f32 %v2078_v15  ;;  %5600 = vmatpush3.bf16.xpose.msra.mxu0 %v2548_v31  ;;  %v8354_v12 = vpop.eup %5976 }
 0x59f   : > { %v8357_v36 = vpop.eup %5978  ;;  %v2088_v1 = vmul.f32 1.442695, %v2058_v60 }
 0x5a0   : > { %v2032_v41 = vpop.permute.xlu0 %2031  ;;  %v2027_v24 = vpop.permute.xlu1 %2026 }
 0x5a1   : > { %v2057_v45 = vsub.f32 %v8086_v28, %v2032_v41  ;;  %v2056_v17 = vsub.f32 %v8083_v62, %v2027_v24  ;;  %v2305_v62 = vpack.c.bf16 %v8354_v12, %v8357_v36 }
 0x5a2   : > { %v8361_v51 = vpop.eup %5980 }
 0x5a3   : > { %v8363_v5 = vpop.eup %5982  ;;  %v2086_v34 = vmul.f32 1.442695, %v2057_v45  ;;  %v2084_v18 = vmul.f32 1.442695, %v2056_v17  ;;  %v10314_v45 = vld [vmem:[#allocation50_spill] sm:$0xff]  ;;  %v10315_v17 = vld [vmem:[#allocation52_spill] sm:$0xff] }
 0x5a4   : > { %v2042_v50 = vpop.permute.xlu0 %2041  ;;  %v2502_v7 = vpop.permute.xlu1 %2501  ;;  %v2304_v35 = vpack.c.bf16 %v8361_v51, %v8363_v5 }
 0x5a5   : > { %5992 = vpow2.f32 %v2086_v34  ;;  %v2059_v29 = vsub.f32 %v8076_v21, %v2042_v50  ;;  %5741 = vmatprep.subr.msk.bf16.mxu0 %vm813_vm2, %v2502_v7  ;;  %v2545_v28 = vsel %vm813_vm2, %v2502_v7, 0  ;;  %v10316_v34 = vsub.f32 %v10314_v45, %v10315_v17  ;;  %v10318_v50 = vld [vmem:[#allocation57_spill] sm:$0xff]  ;;  %v1232_v45 = vld [vmem:[#allocation3] sm:$0xff] }
 0x5a6   : > { %5994 = vpow2.f32 %v2084_v18  ;;  %5581 = vmatprep.mubr.bf16.mxu0 %v2304_v35  ;;  %5602 = vmatpush3.bf16.xpose.msra.mxu0 %v2545_v28  ;;  %v8372_v52 = vpop.eup %5984  ;;  %v10335_v17 = vld [vmem:[#allocation67_spill] sm:$0xff] }
 0x5a7   : > { %v2090_v30 = vmul.f32 1.442695, %v2059_v29  ;;  %5582 = vmatmul.mubr.bf16.gmra.mxu0 %v2305_v62  ;;  %5996 = vpow2.f32 %v2088_v1  ;;  %v8374_v55 = vpop.eup %5986  ;;  %v1076_v18 = vmul.f32 1.442695, %v10316_v34  ;;  %v10317_v1 = vld [vmem:[#allocation54_spill] sm:$0xff]  ;;  %v10320_v29 = vld [vmem:[#allocation64_spill] sm:$0xff] }
 0x5a8   : > { %v2500_v53 = vpop.permute.xlu0 %2499  ;;  %v2498_v38 = vpop.permute.xlu1 %2497  ;;  %v2307_v10 = vpack.c.bf16 %v8374_v55, %v8372_v52  ;;  %v10319_v7 = vsub.f32 %v10317_v1, %v10318_v50  ;;  %v10321_v62 = vsub.f32 %v10320_v29, %v7757_v26  ;;  %v10330_v26 = vld [vmem:[#allocation70_spill] sm:$0xff]  ;;  %v10336_v34 = vld [vmem:[#allocation69_spill] sm:$0xff] }
 0x5a9   : > { %5998 = vpow2.f32 %v2090_v30  ;;  %5742 = vmatprep.subr.msk.bf16.mxu0 %vm813_vm2, %v2500_v53  ;;  %v2542_v37 = vsel %vm813_vm2, %v2500_v53, 0  ;;  %v2539_v11 = vsel %vm813_vm2, %v2498_v38, 0  ;;  %v10322_v53 = vld [vmem:[#allocation66_spill] sm:$0xff] }
 0x5aa   : > { %v8377_v21 = vpop.eup %5988  ;;  %v1078_v35 = vmul.f32 1.442695, %v10319_v7  ;;  %6000 = vpow2.f32 %v1076_v18  ;;  %v1080_v28 = vmul.f32 1.442695, %v10321_v62  ;;  %v10337_v18 = vsub.f32 %v10335_v17, %v10336_v34 }
 0x5ab   : > { %v8379_v14 = vpop.eup %5990 }
 0x5ac   : > { %v2306_v57 = vpack.c.bf16 %v8379_v14, %v8377_v21  ;;  %v2496_v42 = vpop.permute.xlu0 %2495  ;;  %v2480_v39 = vpop.permute.xlu1 %2479  ;;  %6002 = vpow2.f32 %v1078_v35  ;;  %v1092_v1 = vmul.f32 1.442695, %v10337_v18  ;;  %v10338_v35 = vld [vmem:[#allocation68_spill] sm:$0xff] }
 0x5ad   : > { %v2536_v15 = vsel %vm813_vm2, %v2496_v42, 0  ;;  %6004 = vpow2.f32 %v1080_v28  ;;  %v10339_v29 = vsub.f32 %v10338_v35, %v7787_v2 }
 0x5ae   : > { %5585 = vmatprep.mubr.bf16.mxu0 %v2306_v57  ;;  %5604 = vmatpush3.bf16.xpose.msra.mxu0 %v2542_v37  ;;  %v10323_v37 = vsub.f32 %v10322_v53, %v7767_v56  ;;  %v10333_v56 = vld [vmem:[#allocation71_spill] sm:$0xff] }
 0x5af   : > { %5586 = vmatmul.mubr.bf16.gmra.mxu0 %v2307_v10  ;;  %5743 = vmatprep.subr.msk.bf16.mxu0 %vm813_vm2, %v2498_v38  ;;  %v10324_v38 = vld [vmem:[#allocation60_spill] sm:$0xff]  ;;  %v10325_v10 = vld [vmem:[#allocation63_spill] sm:$0xff]  ;;  %v1094_v62 = vmul.f32 1.442695, %v10339_v29  ;;  %v1239_v29 = vld [vmem:[#allocation3 + $0x38] sm:$0xff] }
 0x5b0   : > { %v2482_v0 = vpop.permute.xlu0 %2481  ;;  %v2484_v44 = vpop.permute.xlu1 %2483  ;;  %v1082_v57 = vmul.f32 1.442695, %v10323_v37 }
 0x5b2   : > { %v8387_v48 = vpop.eup %5992  ;;  %6006 = vpow2.f32 %v1082_v57 }
 0x5b3   : > { %v8389_v6 = vpop.eup %5994 }
 0x5b4   : > { %v2308_v63 = vpack.c.bf16 %v8387_v48, %v8389_v6  ;;  %v8394_v25 = vpop.eup %5996  ;;  %v2486_v31 = vpop.permute.xlu0 %2485 }
 0x5b5   : > { %v2488_v60 = vpop.permute.xlu1 %2487 }
 0x5b6   : > { %v8396_v61 = vpop.eup %5998  ;;  %5589 = vmatprep.mubr.bf16.mxu0 %v2308_v63  ;;  %5606 = vmatpush3.bf16.xpose.msra.mxu0 %v2539_v11  ;;  %v10326_v11 = vsub.f32 %v10324_v38, %v10325_v10  ;;  %v1235_v38 = vld [vmem:[#allocation3 + $0x18] sm:$0xff] }
 0x5b7   : > { %v2309_v20 = vpack.c.bf16 %v8396_v61, %v8394_v25  ;;  %5744 = vmatprep.subr.msk.bf16.mxu0 %vm813_vm2, %v2496_v42  ;;  %v10327_v42 = vld [vmem:[#allocation62_spill] sm:$0xff]  ;;  %v8438_v7 = vpop.eup %6000 }
 0x5b8   : > { %v2490_v41 = vpop.permute.xlu0 %2489  ;;  %v1084_v63 = vmul.f32 1.442695, %v10326_v11 }
 0x5b9   : > { %5590 = vmatmul.mubr.bf16.gmra.mxu0 %v2309_v20  ;;  %v2492_v24 = vpop.permute.xlu1 %2491  ;;  %v10328_v20 = vld [vmem:[#allocation65_spill] sm:$0xff]  ;;  %v8444_v53 = vpop.eup %6002 }
 0x5ba   : > { %5609 = vmatprep.mubr.msk.bf16.mxu0 %vm813_vm2, %v2480_v39  ;;  %v10329_v39 = vsub.f32 %v10327_v42, %v10328_v20  ;;  %6008 = vpow2.f32 %v1084_v63  ;;  %v8451_v63 = vpop.eup %6004 }
 0x5bc   : > { %v2494_v30 = vpop.permute.xlu0 %2493 }
 0x5be   : > { %5608 = vmatpush3.bf16.xpose.msra.mxu0 %v2536_v15  ;;  %v1086_v15 = vmul.f32 1.442695, %v10329_v39  ;;  %v1251_v39 = vmul.f32 %v8444_v53, %v1235_v38 }
 0x5c0   : > { %6010 = vpow2.f32 %v1086_v15  ;;  %v1236_v15 = vld [vmem:[#allocation3 + $0x20] sm:$0xff] }
 0x5c5   : > { %5610 = vmatmul.mubr.msk.bf16.vlgmr.msra.gmra.mxu0 %vm813_vm2, %v2482_v0  ;;  %v10331_v0 = vld [vmem:[#allocation72_spill] sm:$0xff] }
 0x5c6   : > { %5613 = vmatprep.mubr.msk.bf16.mxu0 %vm813_vm2, %v2484_v44  ;;  %v10332_v44 = vsub.f32 %v10330_v26, %v10331_v0  ;;  %v8458_v26 = vpop.eup %6006  ;;  %v1237_v0 = vld [vmem:[#allocation3 + $0x28] sm:$0xff] }
 0x5c7   : > { %v1253_v18 = vmul.f32 %v8458_v26, %v1237_v0 }
 0x5cd   : > { %5614 = vmatmul.mubr.msk.bf16.gmra.mxu0 %vm813_vm2, %v2486_v31  ;;  %v1088_v31 = vmul.f32 1.442695, %v10332_v44 }
 0x5ce   : > { %5617 = vmatprep.mubr.msk.bf16.mxu0 %vm813_vm2, %v2488_v60  ;;  %v10334_v60 = vsub.f32 %v10333_v56, %v7808_v3  ;;  %v1248_v3 = vmul.f32 %v8343_v46, %v1232_v45  ;;  %v10341_v46 = vsub.f32 %v7834_v16, %v7844_v9  ;;  %v1252_v16 = vmul.f32 %v8451_v63, %v1236_v15  ;;  %v8465_v9 = vpop.eup %6008  ;;  %v1242_v15 = vld [vmem:[#allocation3 + $0x50] sm:$0xff] }
 0x5cf   : > { %6012 = vpow2.f32 %v1088_v31  ;;  %v10342_v31 = vld [vmem:[#allocation74_spill] sm:$0xff] }
 0x5d0   : > { %v1098_v42 = vmul.f32 1.442695, %v10341_v46  ;;  %v10343_v56 = vsub.f32 %v7801_v58, %v10342_v31  ;;  %v8472_v58 = vpop.eup %6010 }
 0x5d5   : > { %5618 = vmatmul.mubr.msk.bf16.gmra.mxu0 %vm813_vm2, %v2490_v41  ;;  %v1090_v41 = vmul.f32 1.442695, %v10334_v60  ;;  %v1100_v60 = vmul.f32 1.442695, %v10343_v56 }
 0x5d6   : > { %5621 = vmatprep.mubr.msk.bf16.mxu0 %vm813_vm2, %v2492_v24  ;;  %v1233_v24 = vld [vmem:[#allocation3 + $0x8] sm:$0xff] }
 0x5d7   : > { %v1249_v50 = vmul.f32 %v8338_v33, %v1233_v24  ;;  %6014 = vpow2.f32 %v1090_v41  ;;  %v10340_v33 = vsub.f32 %v7822_v27, %v7841_v47  ;;  %v10344_v41 = vld [vmem:[#allocation73_spill] sm:$0xff]  ;;  %v10345_v24 = vld [vmem:[#allocation75_spill] sm:$0xff] }
 0x5d8   : > { %6016 = vpow2.f32 %v1092_v1  ;;  %v10346_v45 = vsub.f32 %v10344_v41, %v10345_v24  ;;  %v1238_v1 = vld [vmem:[#allocation3 + $0x30] sm:$0xff]  ;;  %v1244_v24 = vld [vmem:[#allocation3 + $0x60] sm:$0xff] }
 0x5d9   : > { %v1096_v11 = vmul.f32 1.442695, %v10340_v33  ;;  %6018 = vpow2.f32 %v1094_v62 }
 0x5da   : > { %v1102_v17 = vmul.f32 1.442695, %v10346_v45 }
 0x5db   : > { %6020 = vpow2.f32 %v1096_v11  ;;  %v1241_v11 = vld [vmem:[#allocation3 + $0x48] sm:$0xff] }
 0x5dc   : > { %6022 = vpow2.f32 %v1098_v42 }
 0x5dd   : > { %5622 = vmatmul.mubr.msk.bf16.gmra.mxu0 %vm813_vm2, %v2494_v30  ;;  %v1234_v30 = vld [vmem:[#allocation3 + $0x10] sm:$0xff]  ;;  %6024 = vpow2.f32 %v1100_v60 }
 0x5de   : > { %v1250_v2 = vmul.f32 %v8438_v7, %v1234_v30  ;;  %6026 = vpow2.f32 %v1102_v17 }
 0x5e9   : > { %v1267_v28 = vpop.xlane.xlu0 %1266 }
 0x5ea   : > { %v1297_v37 = vadd.f32 %v1267_v28, %v1249_v50  ;;  %v1265_v57 = vpop.xlane.xlu1 %1264  ;;  %v1254_v28 = vmul.f32 %v8465_v9, %v1238_v1 }
 0x5eb   : > { %v1296_v10 = vadd.f32 %v1265_v57, %v1248_v3  ;;  %v8476_v3 = vpop.eup %6012  ;;  %v1240_v57 = vld [vmem:[#allocation3 + $0x40] sm:$0xff] }
 0x5ec   : > { %1314 = vst.msk [vmem:[#allocation3 + $0x8] sm:$0xff] %vm1312_vm4, %v1297_v37  ;;  %v1255_v37 = vmul.f32 %v8472_v58, %v1239_v29  ;;  %v8480_v38 = vpop.eup %6014  ;;  %v1256_v46 = vmul.f32 %v8476_v3, %v1240_v57 }
 0x5ed   : > { %1313 = vst.msk [vmem:[#allocation3] sm:$0xff] %vm1312_vm4, %v1296_v10  ;;  %v1269_v20 = vpop.xlane.xlu0 %1268  ;;  %v8484_v42 = vpop.eup %6016 }
 0x5ee   : > { %v1298_v27 = vadd.f32 %v1269_v20, %v1250_v2  ;;  %v1271_v47 = vpop.xlane.xlu1 %1270  ;;  %v1258_v56 = vmul.f32 %v8484_v42, %v1242_v15 }
 0x5ef   : > { %v1299_v44 = vadd.f32 %v1271_v47, %v1251_v39  ;;  %v1257_v39 = vmul.f32 %v8480_v38, %v1241_v11 }
 0x5f0   : > { %1315 = vst.msk [vmem:[#allocation3 + $0x10] sm:$0xff] %vm1312_vm4, %v1298_v27  ;;  %v8488_v27 = vpop.eup %6018 }
 0x5f1   : > { %1316 = vst.msk [vmem:[#allocation3 + $0x18] sm:$0xff] %vm1312_vm4, %v1299_v44  ;;  %v1273_v34 = vpop.xlane.xlu0 %1272  ;;  %v1243_v44 = vld [vmem:[#allocation3 + $0x58] sm:$0xff]  ;;  %v8492_v60 = vpop.eup %6020 }
 0x5f2   : > { %v1300_v50 = vadd.f32 %v1273_v34, %v1252_v16  ;;  %v1275_v35 = vpop.xlane.xlu1 %1274  ;;  %v1259_v41 = vmul.f32 %v8488_v27, %v1243_v44  ;;  %v8496_v45 = vpop.eup %6022 }
 0x5f3   : > { %v1301_v62 = vadd.f32 %v1275_v35, %v1253_v18  ;;  %v1245_v18 = vld [vmem:[#allocation3 + $0x68] sm:$0xff]  ;;  %v8500_v35 = vpop.eup %6024 }
 0x5f4   : > { %1317 = vst.msk [vmem:[#allocation3 + $0x20] sm:$0xff] %vm1312_vm4, %v1300_v50  ;;  %v1260_v50 = vmul.f32 %v8492_v60, %v1244_v24 }
 0x5f5   : > { %1318 = vst.msk [vmem:[#allocation3 + $0x28] sm:$0xff] %vm1312_vm4, %v1301_v62  ;;  %v1277_v30 = vpop.xlane.xlu0 %1276  ;;  %v1261_v62 = vmul.f32 %v8496_v45, %v1245_v18 }
 0x5f6   : > { %v1302_v10 = vadd.f32 %v1277_v30, %v1254_v28  ;;  %v1279_v33 = vpop.xlane.xlu1 %1278  ;;  %v1246_v28 = vld [vmem:[#allocation3 + $0x70] sm:$0xff]  ;;  %v8504_v30 = vpop.eup %6026 }
 0x5f7   : > { %v1303_v2 = vadd.f32 %v1279_v33, %v1255_v37  ;;  %v1262_v11 = vmul.f32 %v8500_v35, %v1246_v28 }
 0x5f8   : > { %1319 = vst.msk [vmem:[#allocation3 + $0x30] sm:$0xff] %vm1312_vm4, %v1302_v10  ;;  %v1247_v10 = vld [vmem:[#allocation3 + $0x78] sm:$0xff] }
 0x5f9   : > { %1320 = vst.msk [vmem:[#allocation3 + $0x38] sm:$0xff] %vm1312_vm4, %v1303_v2  ;;  %v1281_v20 = vpop.xlane.xlu0 %1280 }
 0x5fa   : > { %v1304_v47 = vadd.f32 %v1281_v20, %v1256_v46  ;;  %v1283_v0 = vpop.xlane.xlu1 %1282  ;;  %v1263_v46 = vmul.f32 %v8504_v30, %v1247_v10 }
 0x5fb   : > { %v1305_v31 = vadd.f32 %v1283_v0, %v1257_v39 }
 0x5fc   : > { %1321 = vst.msk [vmem:[#allocation3 + $0x40] sm:$0xff] %vm1312_vm4, %v1304_v47  ;;  %v1330_v47 = vld [vmem:[#allocation4 + $0x8] sm:$0xff] }
 0x5fd   : > { %1322 = vst.msk [vmem:[#allocation3 + $0x48] sm:$0xff] %vm1312_vm4, %v1305_v31  ;;  %v1285_v16 = vpop.xlane.xlu0 %1284  ;;  %v1329_v31 = vld [vmem:[#allocation4] sm:$0xff] }
 0x5fe   : > { %v1306_v17 = vadd.f32 %v1285_v16, %v1258_v56  ;;  %v1287_v34 = vpop.xlane.xlu1 %1286 }
 0x5ff   : > { %v1307_v1 = vadd.f32 %v1287_v34, %v1259_v41 }
 0x600   : > { %1323 = vst.msk [vmem:[#allocation3 + $0x50] sm:$0xff] %vm1312_vm4, %v1306_v17 }
 0x601   : > { %1324 = vst.msk [vmem:[#allocation3 + $0x58] sm:$0xff] %vm1312_vm4, %v1307_v1  ;;  %v1289_v29 = vpop.xlane.xlu0 %1288 }
 0x602   : > { %v1308_v37 = vadd.f32 %v1289_v29, %v1260_v50  ;;  %v1291_v57 = vpop.xlane.xlu1 %1290 }
 0x603   : > { %v1309_v33 = vadd.f32 %v1291_v57, %v1261_v62 }
 0x604   : > { %1325 = vst.msk [vmem:[#allocation3 + $0x60] sm:$0xff] %vm1312_vm4, %v1308_v37 }
 0x605   : > { %1326 = vst.msk [vmem:[#allocation3 + $0x68] sm:$0xff] %vm1312_vm4, %v1309_v33  ;;  %v1293_v2 = vpop.xlane.xlu0 %1292 }
 0x606   : > { %v1310_v20 = vadd.f32 %v1293_v2, %v1262_v11  ;;  %v1295_v39 = vpop.xlane.xlu1 %1294 }
 0x607   : > { %v1311_v15 = vadd.f32 %v1295_v39, %v1263_v46 }
 0x608   : > { %1327 = vst.msk [vmem:[#allocation3 + $0x70] sm:$0xff] %vm1312_vm4, %v1310_v20 }
 0x609   : > { %1328 = vst.msk [vmem:[#allocation3 + $0x78] sm:$0xff] %vm1312_vm4, %v1311_v15 }
 0x60a   : > { %v1353_v0 = vpop.permute.xlu1 %1352 }
 0x60b   : > { %v1426_v44 = vmul.f32 %v1353_v0, %v1330_v47 }
 0x60d   : > { %v1595_v56 = vadd.f32 %v7980_v59, %v1426_v44  ;;  %v1348_v16 = vpop.permute.xlu0 %1347 }
 0x60e   : > { %v1425_v41 = vmul.f32 %v1348_v16, %v1329_v31 }
 0x60f   : > { %1611 = vst.msk [vmem:[#allocation4 + $0x8] sm:$0xff] %vm813_vm2, %v1595_v56 }
 0x610   : > { %v1594_v24 = vadd.f32 %v7976_v23, %v1425_v41 }
 0x612   : > { %1610 = vst.msk [vmem:[#allocation4] sm:$0xff] %vm813_vm2, %v1594_v24  ;;  %v10363_v24 = vld [vmem:[#allocation35_spill] sm:$0xff] }
 0x634   : > { %v8516_v17 = vpop.f32.mrf.mxu0 }
 0x635   : > { %10347 = vst [vmem:[#allocation56_spill] sm:$0xff] %v8516_v17 }
 0x636   : > { %v8518_v34 = vpop.f32.mrf.mxu0 }
 0x637   : > { %10348 = vst [vmem:[#allocation59_spill] sm:$0xff] %v8518_v34  ;;  %v8715_v34 = vld [vmem:[#allocation2 + $0x138] sm:$0xff] }
 0x638   : > { %v8520_v18 = vpop.f32.mrf.mxu0  ;;  %10387 = vst [vmem:[#allocation123_spill] sm:$0xff] %v8715_v34 }
 0x639   : > { %10349 = vst [vmem:[#allocation51_spill] sm:$0xff] %v8520_v18  ;;  %v8700_v18 = vld [vmem:[#allocation2 + $0x120] sm:$0xff] }
 0x63a   : > { %v8522_v1 = vpop.f32.mrf.mxu0  ;;  %10383 = vst [vmem:[#allocation119_spill] sm:$0xff] %v8700_v18 }
 0x63b   : > { %10350 = vst [vmem:[#allocation55_spill] sm:$0xff] %v8522_v1 }
 0x667   : > { %v8524_v50 = vpop.f32.mrf.mxu0 }
 0x668   : > { %10351 = vst [vmem:[#allocation50_spill] sm:$0xff] %v8524_v50 }
 0x669   : > { %v8526_v29 = vpop.f32.mrf.mxu0 }
 0x66a   : > { %10352 = vst [vmem:[#allocation52_spill] sm:$0xff] %v8526_v29  ;;  %v8713_v29 = vld [vmem:[#allocation2 + $0x150] sm:$0xff] }
 0x66b   : > { %v8528_v59 = vpop.f32.mrf.mxu0  ;;  %10386 = vst [vmem:[#allocation122_spill] sm:$0xff] %v8713_v29 }
 0x66c   : > { %10353 = vst [vmem:[#allocation54_spill] sm:$0xff] %v8528_v59  ;;  %v10367_v59 = vld [vmem:[#allocation37_spill] sm:$0xff] }
 0x66d   : > { %v8530_v62 = vpop.f32.mrf.mxu0 }
 0x66e   : > { %10354 = vst [vmem:[#allocation57_spill] sm:$0xff] %v8530_v62  ;;  %v10373_v62 = vld [vmem:[#allocation45_spill] sm:$0xff] }
 0x66f   : > { %v8532_v28 = vpop.f32.mrf.mxu0 }
 0x670   : > { %10355 = vst [vmem:[#allocation64_spill] sm:$0xff] %v8532_v28 }
 0x671   : > { %v8534_v23 = vpop.f32.mrf.mxu0 }
 0x672   : > { %10356 = vst [vmem:[#allocation66_spill] sm:$0xff] %v8534_v23 }
 0x673   : > { %v8536_v37 = vpop.f32.mrf.mxu0 }
 0x674   : > { %10357 = vst [vmem:[#allocation60_spill] sm:$0xff] %v8536_v37 }
 0x675   : > { %v8538_v57 = vpop.f32.mrf.mxu0 }
 0x676   : > { %10358 = vst [vmem:[#allocation63_spill] sm:$0xff] %v8538_v57 }
 0x679   : > { %v8540_v10 = vpop.f32.mrf.mxu0 }
 0x67a   : > { %10359 = vst [vmem:[#allocation62_spill] sm:$0xff] %v8540_v10 }
 0x67b   : > { %v8542_v33 = vpop.f32.mrf.mxu0 }
 0x67c   : > { %10360 = vst [vmem:[#allocation65_spill] sm:$0xff] %v8542_v33 }
 0x67d   : > { %v8544_v11 = vpop.f32.mrf.mxu0 }
 0x67e   : > { %10361 = vst [vmem:[#allocation70_spill] sm:$0xff] %v8544_v11 }
 0x67f   : > { %v8546_v2 = vpop.f32.mrf.mxu0 }
 0x680   : > { %10362 = vst [vmem:[#allocation72_spill] sm:$0xff] %v8546_v2 }
 0x685   : > { %v5611_v46 = vpop.f32.mrf.mxu0 }
 0x686   : > { %v2658_v20 = vmul.f32 %v5611_v46, %v7481_v40 }
 0x687   : > { %v2593_v39 = vpop.f32.mrf.mxu0 }
 0x688   : > { %v8550_v15 = vadd.f32 %v2658_v20, %v7486_v43  ;;  %v2656_v47 = vmul.f32 %v2593_v39, %v7481_v40  ;;  %v6204_v20 = vld [vmem:[%s6944_s28 + $0x30] sm:$0xff]   ;;  %v8571_v39 = vld [vmem:[%s6944_s28 + $0x38] sm:$0xff]  }
 0x689   : > { %v5612_v0 = vpop.f32.mrf.mxu0  ;;  %10364 = vst [vmem:[#allocation71_spill] sm:$0xff] %v8571_v39 }
 0x68a   : > { %v2659_v44 = vmul.f32 %v5612_v0, %v7481_v40  ;;  %2709 = vmax.xlane.f32.xlu0 %v8550_v15  ;;  %v8556_v56 = vadd.f32 %v2656_v47, %v7494_v49 }
 0x68b   : > { %v2596_v31 = vpop.f32.mrf.mxu0 }
 0x68c   : > { %v8559_v16 = vadd.f32 %v2659_v44, %v7503_v54  ;;  %v2657_v41 = vmul.f32 %v2596_v31, %v7481_v40 }
 0x68d   : > { %v5615_v47 = vpop.f32.mrf.mxu0 }
 0x68e   : > { %2705 = vmax.xlane.f32.xlu0 %v8556_v56  ;;  %2711 = vmax.xlane.f32.xlu1 %v8559_v16  ;;  %v8565_v46 = vadd.f32 %v2657_v41, %v10363_v24  ;;  %v2662_v43 = vmul.f32 %v5615_v47, %v7481_v40  ;;  %v10365_v47 = vld [vmem:[#allocation39_spill] sm:$0xff] }
 0x68f   : > { %v2609_v0 = vpop.f32.mrf.mxu0 }
 0x690   : > { %v8577_v24 = vadd.f32 %v2662_v43, %v7524_v4  ;;  %v2660_v11 = vmul.f32 %v2609_v0, %v7481_v40  ;;  %v10366_v43 = vld [vmem:[#allocation40_spill] sm:$0xff] }
 0x691   : > { %v5616_v44 = vpop.f32.mrf.mxu0 }
 0x692   : > { %2707 = vmax.xlane.f32.xlu1 %v8565_v46  ;;  %v8584_v33 = vadd.f32 %v2660_v11, %v7547_v32  ;;  %v2663_v57 = vmul.f32 %v5616_v44, %v7481_v40  ;;  %v10368_v32 = vld [vmem:[#allocation42_spill] sm:$0xff] }
 0x693   : > { %v2612_v31 = vpop.f32.mrf.mxu0 }
 0x694   : > { %v8598_v11 = vadd.f32 %v2663_v57, %v10367_v59  ;;  %v10372_v59 = vld [vmem:[#allocation46_spill] sm:$0xff] }
 0x695   : > { %v5619_v54 = vpop.f32.mrf.mxu0 }
 0x696   : > { %v2666_v10 = vmul.f32 %v5619_v54, %v7481_v40 }
 0x697   : > { %v2625_v49 = vpop.f32.mrf.mxu0 }
 0x698   : > { %v8591_v4 = vadd.f32 %v2666_v10, %v10366_v43  ;;  %v2664_v0 = vmul.f32 %v2625_v49, %v7481_v40 }
 0x699   : > { %v5620_v41 = vpop.f32.mrf.mxu0 }
 0x69a   : > { %v2667_v54 = vmul.f32 %v5620_v41, %v7481_v40  ;;  %v8601_v44 = vadd.f32 %v2664_v0, %v10368_v32  ;;  %v10370_v41 = vld [vmem:[#allocation44_spill] sm:$0xff] }
 0x69b   : > { %v2628_v2 = vpop.f32.mrf.mxu0 }
 0x69c   : > { %v2665_v43 = vmul.f32 %v2628_v2, %v7481_v40 }
 0x69d   : > { %v5623_v37 = vpop.f32.mrf.mxu0 }
 0x69e   : > { %v2670_v49 = vmul.f32 %v5623_v37, %v7481_v40 }
 0x6a0   : > { %v8611_v23 = vadd.f32 %v2670_v49, %v10370_v41  ;;  %v10374_v41 = vld [vmem:[#allocation47_spill] sm:$0xff] }
 0x6a3   : > { %3159 = vrot.lane.b32.xlu1 %v6204_v20, %s6620_s17  ;;  %v2661_v20 = vmul.f32 %v2612_v31, %v7481_v40  ;;  %v2641_v31 = vpop.f32.mrf.mxu0 }
 0x6a4   : > { %3161 = vrot.lane.b32.xlu0 %v8571_v39, %s6620_s17  ;;  %v2668_v57 = vmul.f32 %v2641_v31, %v7481_v40  ;;  %v8773_v39 = vld [vmem:[#allocation2 + $0x160] sm:$0xff] }
 0x6a5   : > { %v8588_v28 = vadd.f32 %v2661_v20, %v10365_v47  ;;  %v10369_v20 = vld [vmem:[#allocation41_spill] sm:$0xff]  ;;  %v5624_v10 = vpop.f32.mrf.mxu0  ;;  %10399 = vst [vmem:[#allocation135_spill] sm:$0xff] %v8773_v39 }
 0x6a6   : > { %v8604_v47 = vadd.f32 %v2667_v54, %v10369_v20  ;;  %v2671_v0 = vmul.f32 %v5624_v10, %v7481_v40  ;;  %v10371_v20 = vld [vmem:[#allocation43_spill] sm:$0xff]  ;;  %v8621_v37 = vadd.f32 %v2668_v57, %v10372_v59 }
 0x6a7   : > { %v2644_v54 = vpop.f32.mrf.mxu0  ;;  %v8618_v32 = vadd.f32 %v2665_v43, %v10371_v20  ;;  %v8635_v43 = vld [vmem:[#allocation2 + $0x110] sm:$0xff]  ;;  %v8655_v20 = vld [vmem:[#allocation2 + $0x108] sm:$0xff] }
 0x6a8   : > { %v8624_v2 = vadd.f32 %v2671_v0, %v10373_v62  ;;  %v2669_v49 = vmul.f32 %v2644_v54, %v7481_v40  ;;  %10375 = vst [vmem:[#allocation67_spill] sm:$0xff] %v8635_v43  ;;  %v8640_v0 = vld [vmem:[#allocation2 + $0x100] sm:$0xff]  ;;  %v8642_v54 = vld [vmem:[#allocation2 + $0x118] sm:$0xff]  ;;  %v6209_v40 = vld [vmem:[%s6944_s28 + $0x8] sm:$0xff]  }
 0x6a9   : > { %10377 = vst [vmem:[#allocation68_spill] sm:$0xff] %v8642_v54 }
 0x6aa   : > { %v8630_v31 = vadd.f32 %v2669_v49, %v10374_v41  ;;  %v6206_v49 = vld [vmem:[%s6944_s28 + $0x28] sm:$0xff]  }
 0x6c3   : > { %2717 = vmax.xlane.f32.xlu0 %v8577_v24 }
 0x6c7   : > { %2713 = vmax.xlane.f32.xlu1 %v8584_v33  ;;  %2715 = vmax.xlane.f32.xlu0 %v8588_v28 }
 0x6cb   : > { %2719 = vmax.xlane.f32.xlu1 %v8598_v11  ;;  %2725 = vmax.xlane.f32.xlu0 %v8591_v4 }
 0x6cf   : > { %2721 = vmax.xlane.f32.xlu0 %v8601_v44  ;;  %2727 = vmax.xlane.f32.xlu1 %v8604_v47 }
 0x6d3   : > { %2723 = vmax.xlane.f32.xlu1 %v8618_v32  ;;  %2733 = vmax.xlane.f32.xlu0 %v8611_v23 }
 0x6d7   : > { %2735 = vmax.xlane.f32.xlu1 %v8624_v2  ;;  %2729 = vmax.xlane.f32.xlu0 %v8621_v37 }
 0x6db   : > { %2731 = vmax.xlane.f32.xlu1 %v8630_v31 }
 0x713   : > { %v2710_v10 = vpop.xlane.xlu0 %2709 }
 0x714   : > { %v8638_v57 = vmax.f32 %v8635_v43, %v2710_v10  ;;  %v6210_v43 = vld [vmem:[%s6944_s28 + $0x10] sm:$0xff]  }
 0x716   : > { %10376 = vst [vmem:[#allocation69_spill] sm:$0xff] %v8638_v57  ;;  %3302 = vst.msk [vmem:[#allocation2 + $0x110] sm:$0xff] %vm1312_vm4, %v8638_v57  ;;  %2813 = vperm.xlu1 %5907, %v8638_v57  }
 0x717   : > { %v2706_v41 = vpop.xlane.xlu0 %2705  ;;  %v2712_v62 = vpop.xlane.xlu1 %2711 }
 0x718   : > { %v8650_v59 = vmax.f32 %v8640_v0, %v2706_v41  ;;  %v8653_v10 = vmax.f32 %v8642_v54, %v2712_v62 }
 0x71a   : > { %10378 = vst [vmem:[#allocation74_spill] sm:$0xff] %v8650_v59  ;;  %10379 = vst [vmem:[#allocation73_spill] sm:$0xff] %v8653_v10  ;;  %2803 = vperm.xlu1 %5907, %v8650_v59  }
 0x71b   : > { %3300 = vst.msk [vmem:[#allocation2 + $0x100] sm:$0xff] %vm1312_vm4, %v8650_v59  ;;  %3303 = vst.msk [vmem:[#allocation2 + $0x118] sm:$0xff] %vm1312_vm4, %v8653_v10  ;;  %v3162_v41 = vpop.permute.xlu0 %3161  ;;  %v2708_v62 = vpop.xlane.xlu1 %2707 }
 0x71c   : > { %v8667_v57 = vmax.f32 %v8655_v20, %v2708_v62  ;;  %5625 = vmatprep.subr.bf16.mxu1 %v3162_v41  ;;  %v6208_v62 = vld [vmem:[%s6944_s28 + $0x20] sm:$0xff]  }
 0x71d   : > { %5626 = vmatpush3.bf16.msra.mxu1 %v3162_v41  ;;  %v6207_v41 = vld [vmem:[%s6944_s28 + $0x18] sm:$0xff]  }
 0x71e   : > { %3301 = vst.msk [vmem:[#allocation2 + $0x108] sm:$0xff] %vm1312_vm4, %v8667_v57  ;;  %2808 = vperm.xlu0 %5906, %v8667_v57   ;;  %3157 = vrot.lane.b32.xlu1 %v6206_v49, %s6620_s17  ;;  %v6211_v49 = vld [vmem:[%s6938_s21 + $0x38] sm:$0xff]  }
 0x71f   : > { %v3160_v54 = vpop.permute.xlu1 %3159 }
 0x720   : > { %5627 = vmatprep.subr.bf16.mxu1 %v3160_v54 }
 0x721   : > { %5628 = vmatpush3.bf16.msra.mxu1 %v3160_v54  ;;  %v6212_v54 = vld [vmem:[%s6944_s28] sm:$0xff]  }
 0x722   : > { %2818 = vperm.xlu0 %5906, %v8653_v10   ;;  %3153 = vrot.lane.b32.xlu1 %v6207_v41, %s6620_s17  ;;  %v6213_v10 = vld [vmem:[%s6938_s21 + $0x28] sm:$0xff]   ;;  %v6214_v41 = vld [vmem:[%s6938_s21 + $0x30] sm:$0xff]  }
 0x726   : > { %3155 = vrot.lane.b32.xlu0 %v6208_v62, %s6620_s17  ;;  %3149 = vrot.lane.b32.xlu1 %v6209_v40, %s6620_s17  ;;  %v8693_v62 = vld [vmem:[#allocation2 + $0x130] sm:$0xff] }
 0x727   : > { %10380 = vst [vmem:[#allocation75_spill] sm:$0xff] %v8693_v62 }
 0x72a   : > { %3151 = vrot.lane.b32.xlu0 %v6210_v43, %s6620_s17  ;;  %3346 = vrot.lane.b32.xlu1 %v6211_v49, %s6621_s14  ;;  %v8698_v43 = vld [vmem:[#allocation2 + $0x128] sm:$0xff]  ;;  %v8732_v49 = vld [vmem:[#allocation2 + $0x140] sm:$0xff] }
 0x72b   : > { %10382 = vst [vmem:[#allocation118_spill] sm:$0xff] %v8698_v43  ;;  %10390 = vst [vmem:[#allocation126_spill] sm:$0xff] %v8732_v49 }
 0x72e   : > { %3147 = vrot.lane.b32.xlu0 %v6212_v54, %s6620_s17  ;;  %3342 = vrot.lane.b32.xlu1 %v6213_v10, %s6621_s14 }
 0x732   : > { %3344 = vrot.lane.b32.xlu0 %v6214_v41, %s6621_s14 }
 0x74c   : > { %v2718_v50 = vpop.xlane.xlu0 %2717 }
 0x74d   : > { %v8696_v40 = vmax.f32 %v8693_v62, %v2718_v50 }
 0x74f   : > { %10381 = vst [vmem:[#allocation117_spill] sm:$0xff] %v8696_v40  ;;  %3306 = vst.msk [vmem:[#allocation2 + $0x130] sm:$0xff] %vm1312_vm4, %v8696_v40  ;;  %2833 = vperm.xlu1 %5907, %v8696_v40   ;;  %v8751_v40 = vld [vmem:[#allocation2 + $0x148] sm:$0xff] }
 0x750   : > { %v2716_v10 = vpop.xlane.xlu0 %2715  ;;  %v2714_v54 = vpop.xlane.xlu1 %2713  ;;  %10394 = vst [vmem:[#allocation130_spill] sm:$0xff] %v8751_v40 }
 0x751   : > { %v8708_v41 = vmax.f32 %v8698_v43, %v2716_v10  ;;  %v8711_v50 = vmax.f32 %v8700_v18, %v2714_v54  ;;  %v8734_v43 = vld [vmem:[#allocation2 + $0x158] sm:$0xff] }
 0x752   : > { %10391 = vst [vmem:[#allocation127_spill] sm:$0xff] %v8734_v43 }
 0x753   : > { %10384 = vst [vmem:[#allocation120_spill] sm:$0xff] %v8708_v41  ;;  %10385 = vst [vmem:[#allocation121_spill] sm:$0xff] %v8711_v50  ;;  %2823 = vperm.xlu1 %5907, %v8711_v50  }
 0x754   : > { %3305 = vst.msk [vmem:[#allocation2 + $0x128] sm:$0xff] %vm1312_vm4, %v8708_v41  ;;  %3304 = vst.msk [vmem:[#allocation2 + $0x120] sm:$0xff] %vm1312_vm4, %v8711_v50  ;;  %v2726_v10 = vpop.xlane.xlu0 %2725  ;;  %v2720_v54 = vpop.xlane.xlu1 %2719 }
 0x755   : > { %v8727_v62 = vmax.f32 %v8713_v29, %v2726_v10  ;;  %v8730_v17 = vmax.f32 %v8715_v34, %v2720_v54  ;;  %v8753_v29 = vld [vmem:[#allocation2 + $0x170] sm:$0xff] }
 0x756   : > { %10395 = vst [vmem:[#allocation131_spill] sm:$0xff] %v8753_v29 }
 0x757   : > { %10388 = vst [vmem:[#allocation124_spill] sm:$0xff] %v8727_v62  ;;  %10389 = vst [vmem:[#allocation125_spill] sm:$0xff] %v8730_v17  ;;  %2838 = vperm.xlu0 %5906, %v8730_v17  }
 0x758   : > { %3310 = vst.msk [vmem:[#allocation2 + $0x150] sm:$0xff] %vm1312_vm4, %v8727_v62  ;;  %3307 = vst.msk [vmem:[#allocation2 + $0x138] sm:$0xff] %vm1312_vm4, %v8730_v17  ;;  %v2722_v10 = vpop.xlane.xlu0 %2721  ;;  %v2728_v54 = vpop.xlane.xlu1 %2727 }
 0x759   : > { %v8746_v18 = vmax.f32 %v8732_v49, %v2722_v10  ;;  %v8749_v1 = vmax.f32 %v8734_v43, %v2728_v54  ;;  %v8771_v49 = vld [vmem:[#allocation2 + $0x178] sm:$0xff] }
 0x75a   : > { %10398 = vst [vmem:[#allocation134_spill] sm:$0xff] %v8771_v49 }
 0x75b   : > { %10392 = vst [vmem:[#allocation128_spill] sm:$0xff] %v8746_v18  ;;  %10393 = vst [vmem:[#allocation129_spill] sm:$0xff] %v8749_v1  ;;  %2828 = vperm.xlu0 %5906, %v8708_v41   ;;  %2858 = vperm.xlu1 %5907, %v8749_v1  }
 0x75c   : > { %3308 = vst.msk [vmem:[#allocation2 + $0x140] sm:$0xff] %vm1312_vm4, %v8746_v18  ;;  %3311 = vst.msk [vmem:[#allocation2 + $0x158] sm:$0xff] %vm1312_vm4, %v8749_v1  ;;  %v2724_v10 = vpop.xlane.xlu1 %2723  ;;  %v2734_v54 = vpop.xlane.xlu0 %2733 }
 0x75d   : > { %v8766_v34 = vmax.f32 %v8751_v40, %v2724_v10  ;;  %v8769_v50 = vmax.f32 %v8753_v29, %v2734_v54  ;;  %v8791_v40 = vld [vmem:[#allocation2 + $0x168] sm:$0xff] }
 0x75e   : > { %10402 = vst [vmem:[#allocation138_spill] sm:$0xff] %v8791_v40 }
 0x75f   : > { %10396 = vst [vmem:[#allocation132_spill] sm:$0xff] %v8766_v34  ;;  %10397 = vst [vmem:[#allocation133_spill] sm:$0xff] %v8769_v50  ;;  %2853 = vperm.xlu0 %5906, %v8727_v62   ;;  %2848 = vperm.xlu1 %5907, %v8766_v34  }
 0x760   : > { %3309 = vst.msk [vmem:[#allocation2 + $0x148] sm:$0xff] %vm1312_vm4, %v8766_v34  ;;  %3314 = vst.msk [vmem:[#allocation2 + $0x170] sm:$0xff] %vm1312_vm4, %v8769_v50  ;;  %v2736_v54 = vpop.xlane.xlu1 %2735  ;;  %v2730_v1 = vpop.xlane.xlu0 %2729  ;;  %v6218_v34 = vld [vmem:[%s6930_s12] sm:$0xff]  }
 0x761   : > { %v8786_v43 = vmax.f32 %v8771_v49, %v2736_v54  ;;  %v8789_v17 = vmax.f32 %v8773_v39, %v2730_v1  ;;  %v6215_v49 = vld [vmem:[%s6938_s21 + $0x20] sm:$0xff]   ;;  %v6216_v54 = vld [vmem:[%s6938_s21 + $0x18] sm:$0xff]   ;;  %v6226_v39 = vld [vmem:[%s6930_s12 + $0x28] sm:$0xff]  }
 0x763   : > { %10400 = vst [vmem:[#allocation136_spill] sm:$0xff] %v8786_v43  ;;  %10401 = vst [vmem:[#allocation137_spill] sm:$0xff] %v8789_v17  ;;  %2843 = vperm.xlu0 %5906, %v8746_v18   ;;  %2873 = vperm.xlu1 %5907, %v8769_v50  }
 0x764   : > { %3315 = vst.msk [vmem:[#allocation2 + $0x178] sm:$0xff] %vm1312_vm4, %v8786_v43  ;;  %3312 = vst.msk [vmem:[#allocation2 + $0x160] sm:$0xff] %vm1312_vm4, %v8789_v17  ;;  %v2732_v1 = vpop.xlane.xlu1 %2731 }
 0x765   : > { %v8804_v10 = vmax.f32 %v8791_v40, %v2732_v1  ;;  %v6217_v1 = vld [vmem:[%s6938_s21 + $0x8] sm:$0xff]   ;;  %v6220_v40 = vld [vmem:[%s6930_s12 + $0x10] sm:$0xff]  }
 0x767   : > { %10403 = vst [vmem:[#allocation139_spill] sm:$0xff] %v8804_v10  ;;  %3313 = vst.msk [vmem:[#allocation2 + $0x168] sm:$0xff] %vm1312_vm4, %v8804_v10  ;;  %3340 = vrot.lane.b32.xlu0 %v6215_v49, %s6621_s14  ;;  %2863 = vperm.xlu1 %5907, %v8789_v17   ;;  %v6219_v49 = vld [vmem:[%s6938_s21 + $0x10] sm:$0xff]  }
 0x768   : > { %v6224_v17 = vld [vmem:[%s6930_s12 + $0x30] sm:$0xff]  }
 0x76b   : > { %3338 = vrot.lane.b32.xlu1 %v6216_v54, %s6621_s14  ;;  %2868 = vperm.xlu0 %5906, %v8804_v10   ;;  %v6221_v54 = vld [vmem:[%s6938_s21] sm:$0xff]  }
 0x76c   : > { %v6222_v10 = vld [vmem:[%s6930_s12 + $0x20] sm:$0xff]  }
 0x76f   : > { %3334 = vrot.lane.b32.xlu1 %v6217_v1, %s6621_s14  ;;  %2878 = vperm.xlu0 %5906, %v8786_v43   ;;  %v6223_v1 = vld [vmem:[%s6930_s12 + $0x8] sm:$0xff]  }
 0x773   : > { %3316 = vrot.lane.b32.xlu1 %v6218_v34, %s6621_s14  ;;  %3336 = vrot.lane.b32.xlu0 %v6219_v49, %s6621_s14  ;;  %v6225_v34 = vld [vmem:[%s6930_s12 + $0x18] sm:$0xff]  }
 0x774   : > { %v6227_v49 = vld [vmem:[%s6930_s12 + $0x38] sm:$0xff]  }
 0x777   : > { %3320 = vrot.lane.b32.xlu1 %v6220_v40, %s6621_s14  ;;  %3332 = vrot.lane.b32.xlu0 %v6221_v54, %s6621_s14 }
 0x77b   : > { %3324 = vrot.lane.b32.xlu1 %v6222_v10, %s6621_s14  ;;  %3318 = vrot.lane.b32.xlu0 %v6223_v1, %s6621_s14 }
 0x77f   : > { %3328 = vrot.lane.b32.xlu1 %v6224_v17, %s6621_s14  ;;  %3322 = vrot.lane.b32.xlu0 %v6225_v34, %s6621_s14 }
 0x783   : > { %3326 = vrot.lane.b32.xlu0 %v6226_v39, %s6621_s14 }
 0x787   : > { %3330 = vrot.lane.b32.xlu0 %v6227_v49, %s6621_s14 }
 0x791   : > { %v2814_v40 = vpop.permute.xlu1 %2813 }
 0x792   : > { %v2883_v18 = vsub.f32 %v8550_v15, %v2814_v40  ;;  %v10405_v40 = vld [vmem:[#allocation96_spill] sm:$0xff] }
 0x794   : > { %v2901_v59 = vmul.f32 1.442695, %v2883_v18 }
 0x795   : > { %v2804_v54 = vpop.permute.xlu1 %2803 }
 0x796   : > { %v2881_v43 = vsub.f32 %v8556_v56, %v2804_v54 }
 0x798   : > { %v2897_v10 = vmul.f32 1.442695, %v2881_v43 }
 0x799   : > { %v2809_v50 = vpop.permute.xlu0 %2808  ;;  %v3158_v29 = vpop.permute.xlu1 %3157 }
 0x79a   : > { %v2882_v1 = vsub.f32 %v8565_v46, %v2809_v50  ;;  %5629 = vmatprep.subr.bf16.mxu1 %v3158_v29  ;;  %6028 = vpow2.f32 %v2897_v10  ;;  %v10404_v50 = vld [vmem:[#allocation94_spill] sm:$0xff] }
 0x79b   : > { %5630 = vmatpush3.bf16.msra.mxu1 %v3158_v29 }
 0x79c   : > { %v2899_v17 = vmul.f32 1.442695, %v2882_v1 }
 0x79d   : > { %v2819_v34 = vpop.permute.xlu0 %2818  ;;  %v3154_v41 = vpop.permute.xlu1 %3153 }
 0x79e   : > { %6030 = vpow2.f32 %v2899_v17  ;;  %v2884_v39 = vsub.f32 %v8559_v16, %v2819_v34  ;;  %v10408_v17 = vld [vmem:[#allocation92_spill] sm:$0xff] }
 0x7a0   : > { %v2903_v49 = vmul.f32 1.442695, %v2884_v39 }
 0x7a1   : > { %v3156_v62 = vpop.permute.xlu0 %3155  ;;  %v3150_v29 = vpop.permute.xlu1 %3149 }
 0x7a2   : > { %5631 = vmatprep.subr.bf16.mxu1 %v3156_v62  ;;  %6032 = vpow2.f32 %v2903_v49 }
 0x7a3   : > { %2125 = vadd.xlane.f32.xlu1 %v8302_v22  ;;  %5632 = vmatpush3.bf16.msra.mxu1 %v3156_v62  ;;  %6034 = vpow2.f32 %v2901_v59 }
 0x7a4   : > { %5633 = vmatprep.subr.bf16.mxu1 %v3154_v41 }
 0x7a5   : > { %v3152_v56 = vpop.permute.xlu0 %3151 }
 0x7a6   : > { %2127 = vadd.xlane.f32.xlu0 %v8305_v13 }
 0x7a7   : > { %2131 = vadd.xlane.f32.xlu1 %v8312_v8  ;;  %5634 = vmatpush3.bf16.msra.mxu1 %v3154_v41  ;;  %v8846_v15 = vpop.eup %6028  ;;  %v3347_v8 = vpop.permute.xlu1 %3346 }
 0x7a8   : > { %5635 = vmatprep.subr.bf16.mxu1 %v3152_v56 }
 0x7a9   : > { %v3148_v59 = vpop.permute.xlu0 %3147 }
 0x7aa   : > { %2129 = vadd.xlane.f32.xlu0 %v8315_v19 }
 0x7ab   : > { %v8849_v18 = vpop.eup %6030  ;;  %2135 = vadd.xlane.f32.xlu1 %v8361_v51  ;;  %5636 = vmatpush3.bf16.msra.mxu1 %v3152_v56 }
 0x7ac   : > { %5637 = vmatprep.subr.bf16.mxu1 %v3150_v29  ;;  %v3139_v22 = vpack.c.bf16 %v8849_v18, %v8846_v15 }
 0x7ae   : > { %2133 = vadd.xlane.f32.xlu0 %v8363_v5  ;;  %5641 = vmatprep.mubr.bf16.mxu1 %v3139_v22  ;;  %v3394_v5 = vsel %vm813_vm2, %v3347_v8, 0  ;;  %v10411_v22 = vld [vmem:[#allocation93_spill] sm:$0xff] }
 0x7af   : > { %2139 = vadd.xlane.f32.xlu1 %v8354_v12  ;;  %5638 = vmatpush3.bf16.msra.mxu1 %v3150_v29  ;;  %v8856_v13 = vpop.eup %6032  ;;  %v3345_v12 = vpop.permute.xlu0 %3344 }
 0x7b0   : > { %5639 = vmatprep.subr.bf16.mxu1 %v3148_v59  ;;  %v8859_v19 = vpop.eup %6034 }
 0x7b1   : > { %v3140_v51 = vpack.c.bf16 %v8856_v13, %v8859_v19 }
 0x7b2   : > { %2137 = vadd.xlane.f32.xlu0 %v8357_v36  ;;  %v3391_v36 = vsel %vm813_vm2, %v3345_v12, 0 }
 0x7b3   : > { %2143 = vadd.xlane.f32.xlu1 %v8379_v14  ;;  %5640 = vmatpush3.bf16.msra.mxu1 %v3148_v59  ;;  %v3343_v14 = vpop.permute.xlu1 %3342 }
 0x7b4   : > { %5745 = vmatprep.subr.msk.bf16.mxu1 %vm813_vm2, %v3347_v8 }
 0x7b6   : > { %2141 = vadd.xlane.f32.xlu0 %v8377_v21  ;;  %5642 = vmatmul.mubr.bf16.vlgmr.msra.gmra.mxu1 %v3140_v51  ;;  %v10414_v51 = vld [vmem:[#allocation99_spill] sm:$0xff] }
 0x7b7   : > { %2147 = vadd.xlane.f32.xlu1 %v8374_v55  ;;  %5658 = vmatpush3.bf16.xpose.msra.mxu1 %v3394_v5  ;;  %v3388_v55 = vsel %vm813_vm2, %v3343_v14, 0 }
 0x7b8   : > { %5746 = vmatprep.subr.msk.bf16.mxu1 %vm813_vm2, %v3345_v12 }
 0x7ba   : > { %2145 = vadd.xlane.f32.xlu0 %v8372_v52 }
 0x7bb   : > { %2151 = vadd.xlane.f32.xlu1 %v8387_v48 }
 0x7be   : > { %2149 = vadd.xlane.f32.xlu0 %v8389_v6 }
 0x7bf   : > { %2155 = vadd.xlane.f32.xlu1 %v8396_v61  ;;  %5660 = vmatpush3.bf16.xpose.msra.mxu1 %v3391_v36 }
 0x7c0   : > { %5747 = vmatprep.subr.msk.bf16.mxu1 %vm813_vm2, %v3343_v14 }
 0x7c2   : > { %2153 = vadd.xlane.f32.xlu0 %v8394_v25 }
 0x7c7   : > { %5662 = vmatpush3.bf16.xpose.msra.mxu1 %v3388_v55 }
 0x7ca   : > { %v2834_v21 = vpop.permute.xlu1 %2833 }
 0x7cb   : > { %v2887_v6 = vsub.f32 %v8577_v24, %v2834_v21 }
 0x7ce   : > { %v2824_v16 = vpop.permute.xlu1 %2823 }
 0x7cf   : > { %v2885_v52 = vsub.f32 %v8584_v33, %v2824_v16 }
 0x7d0   : > { %1357 = vperm.xlu1 %5907, %v8438_v7   ;;  %v2909_v7 = vmul.f32 1.442695, %v2887_v6 }
 0x7d1   : > { %v2905_v61 = vmul.f32 1.442695, %v2885_v52  ;;  %v10419_v52 = vld [vmem:[#allocation49_spill] sm:$0xff] }
 0x7d2   : > { %v2839_v48 = vpop.permute.xlu0 %2838 }
 0x7d3   : > { %v2888_v46 = vsub.f32 %v8598_v11, %v2839_v48  ;;  %6036 = vpow2.f32 %v2905_v61  ;;  %v10406_v11 = vsub.f32 %v10404_v50, %v10405_v40  ;;  %v10420_v48 = vld [vmem:[#allocation58_spill] sm:$0xff] }
 0x7d4   : > { %1367 = vperm.xlu1 %5907, %v8451_v63  }
 0x7d5   : > { %v2911_v62 = vmul.f32 1.442695, %v2888_v46  ;;  %v1934_v54 = vmul.f32 1.442695, %v10406_v11  ;;  %v10421_v46 = vsub.f32 %v10419_v52, %v10420_v48  ;;  %v10426_v11 = vld [vmem:[#allocation107_spill] sm:$0xff] }
 0x7d6   : > { %v2829_v43 = vpop.permute.xlu0 %2828  ;;  %v2859_v25 = vpop.permute.xlu1 %2858 }
 0x7d7   : > { %v2886_v41 = vsub.f32 %v8588_v28, %v2829_v43  ;;  %6038 = vpow2.f32 %v2911_v62  ;;  %v10407_v28 = vld [vmem:[#allocation90_spill] sm:$0xff]  ;;  %v1944_v6 = vmul.f32 1.442695, %v10421_v46 }
 0x7d8   : > { %1377 = vperm.xlu1 %5907, %v8465_v9   ;;  %1362 = vperm.xlu0 %5906, %v8444_v53   ;;  %v10409_v9 = vsub.f32 %v10407_v28, %v10408_v17  ;;  %v2892_v53 = vsub.f32 %v8604_v47, %v2859_v25  ;;  %v10413_v47 = vld [vmem:[#allocation61_spill] sm:$0xff]  ;;  %v10440_v46 = vld [vmem:[#allocation102_spill] sm:$0xff] }
 0x7d9   : > { %v2907_v33 = vmul.f32 1.442695, %v2886_v41  ;;  %v10415_v5 = vsub.f32 %v10413_v47, %v10414_v51  ;;  %v10434_v47 = vld [vmem:[#allocation106_spill] sm:$0xff]  ;;  %v10435_v51 = vld [vmem:[#allocation108_spill] sm:$0xff] }
 0x7da   : > { %v2854_v63 = vpop.permute.xlu0 %2853  ;;  %v2849_v24 = vpop.permute.xlu1 %2848  ;;  %v1936_v34 = vmul.f32 1.442695, %v10409_v9 }
 0x7db   : > { %6040 = vpow2.f32 %v2907_v33  ;;  %v2891_v10 = vsub.f32 %v8591_v4, %v2854_v63  ;;  %v2890_v1 = vsub.f32 %v8618_v32, %v2849_v24  ;;  %v10410_v32 = vld [vmem:[#allocation91_spill] sm:$0xff]  ;;  %v1940_v12 = vmul.f32 1.442695, %v10415_v5  ;;  %v10423_v33 = vld [vmem:[#allocation100_spill] sm:$0xff] }
 0x7dc   : > { %1387 = vperm.xlu1 %5907, %v8476_v3   ;;  %1372 = vperm.xlu0 %5906, %v8458_v26   ;;  %6042 = vpow2.f32 %v2909_v7  ;;  %v10412_v59 = vsub.f32 %v10410_v32, %v10411_v22  ;;  %v2919_v26 = vmul.f32 1.442695, %v2892_v53  ;;  %v10422_v7 = vld [vmem:[#allocation98_spill] sm:$0xff]  ;;  %v10428_v53 = vld [vmem:[#allocation48_spill] sm:$0xff]  ;;  %v10432_v32 = vld [vmem:[#allocation103_spill] sm:$0xff]  ;;  %v10436_v5 = vsub.f32 %v10434_v47, %v10435_v51 }
 0x7dd   : > { %v2917_v39 = vmul.f32 1.442695, %v2891_v10  ;;  %6044 = vpow2.f32 %v1934_v54  ;;  %v2915_v49 = vmul.f32 1.442695, %v2890_v1  ;;  %v10424_v50 = vsub.f32 %v10422_v7, %v10423_v33 }
 0x7de   : > { %v2844_v56 = vpop.permute.xlu0 %2843  ;;  %v2874_v29 = vpop.permute.xlu1 %2873  ;;  %6046 = vpow2.f32 %v1936_v34  ;;  %v1932_v8 = vmul.f32 1.442695, %v10412_v59 }
 0x7df   : > { %v2889_v4 = vsub.f32 %v8601_v44, %v2844_v56  ;;  %6048 = vpow2.f32 %v2917_v39  ;;  %v2895_v61 = vsub.f32 %v8611_v23, %v2874_v29  ;;  %v1942_v40 = vmul.f32 1.442695, %v10424_v50  ;;  %v10425_v23 = vld [vmem:[#allocation105_spill] sm:$0xff] }
 0x7e0   : > { %1397 = vperm.xlu1 %5907, %v8484_v42   ;;  %1382 = vperm.xlu0 %5906, %v8472_v58   ;;  %6050 = vpow2.f32 %v2915_v49  ;;  %v10416_v42 = vld [vmem:[#allocation95_spill] sm:$0xff]  ;;  %v10417_v58 = vld [vmem:[#allocation97_spill] sm:$0xff]  ;;  %v10427_v54 = vsub.f32 %v10425_v23, %v10426_v11  ;;  %v10446_v11 = vld [vmem:[#allocation114_spill] sm:$0xff] }
 0x7e1   : > { %v2913_v3 = vmul.f32 1.442695, %v2889_v4  ;;  %v10418_v21 = vsub.f32 %v10416_v42, %v10417_v58  ;;  %v2925_v1 = vmul.f32 1.442695, %v2895_v61  ;;  %v10429_v39 = vld [vmem:[#allocation53_spill] sm:$0xff] }
 0x7e2   : > { %v3341_v36 = vpop.permute.xlu0 %3340  ;;  %v2864_v14 = vpop.permute.xlu1 %2863  ;;  %v1948_v63 = vmul.f32 1.442695, %v10427_v54  ;;  %v10430_v49 = vsub.f32 %v10428_v53, %v10429_v39  ;;  %v10431_v4 = vld [vmem:[#allocation101_spill] sm:$0xff]  ;;  %v10447_v54 = vld [vmem:[#allocation116_spill] sm:$0xff] }
 0x7e3   : > { %6052 = vpow2.f32 %v2913_v3  ;;  %v2893_v44 = vsub.f32 %v8621_v37, %v2864_v14  ;;  %5748 = vmatprep.subr.msk.bf16.mxu1 %vm813_vm2, %v3341_v36  ;;  %v3385_v55 = vsel %vm813_vm2, %v3341_v36, 0  ;;  %v1938_v16 = vmul.f32 1.442695, %v10418_v21  ;;  %v8916_v37 = vpop.eup %6036 }
 0x7e4   : > { %6054 = vpow2.f32 %v1932_v8  ;;  %1407 = vperm.xlu1 %5907, %v8492_v60   ;;  %1392 = vperm.xlu0 %5906, %v8480_v38   ;;  %v8919_v41 = vpop.eup %6038  ;;  %v1946_v56 = vmul.f32 1.442695, %v10430_v49  ;;  %v10433_v22 = vsub.f32 %v10431_v4, %v10432_v32 }
 0x7e5   : > { %6056 = vpow2.f32 %v2919_v26  ;;  %5664 = vmatpush3.bf16.xpose.msra.mxu1 %v3385_v55  ;;  %v2921_v62 = vmul.f32 1.442695, %v2893_v44  ;;  %v10437_v44 = vld [vmem:[#allocation113_spill] sm:$0xff]  ;;  %v10438_v55 = vld [vmem:[#allocation115_spill] sm:$0xff] }
 0x7e6   : > { %6058 = vpow2.f32 %v1940_v12  ;;  %v2869_v43 = vpop.permute.xlu0 %2868  ;;  %v3339_v25 = vpop.permute.xlu1 %3338  ;;  %v1952_v59 = vmul.f32 1.442695, %v10433_v22  ;;  %v1950_v12 = vmul.f32 1.442695, %v10436_v5  ;;  %v10439_v42 = vsub.f32 %v10437_v44, %v10438_v55 }
 0x7e7   : > { %v2894_v60 = vsub.f32 %v8630_v31, %v2869_v43  ;;  %5749 = vmatprep.subr.msk.bf16.mxu1 %vm813_vm2, %v3339_v25  ;;  %6060 = vpow2.f32 %v1938_v16  ;;  %v3382_v9 = vsel %vm813_vm2, %v3339_v25, 0  ;;  %v10443_v25 = vld [vmem:[#allocation109_spill] sm:$0xff] }
 0x7e8   : > { %v8923_v38 = vpop.eup %6040  ;;  %1417 = vperm.xlu1 %5907, %v8500_v35   ;;  %1402 = vperm.xlu0 %5906, %v8488_v27   ;;  %6062 = vpow2.f32 %v1944_v6  ;;  %v1956_v58 = vmul.f32 1.442695, %v10439_v42  ;;  %v10441_v6 = vld [vmem:[#allocation104_spill] sm:$0xff] }
 0x7e9   : > { %v2923_v24 = vmul.f32 1.442695, %v2894_v60  ;;  %v3141_v31 = vpack.c.bf16 %v8923_v38, %v8916_v37  ;;  %v8935_v10 = vpop.eup %6042  ;;  %6064 = vpow2.f32 %v2921_v62  ;;  %v10442_v61 = vsub.f32 %v10440_v46, %v10441_v6  ;;  %v10444_v60 = vld [vmem:[#allocation111_spill] sm:$0xff] }
 0x7ea   : > { %v2879_v28 = vpop.permute.xlu0 %2878  ;;  %v8937_v17 = vpop.eup %6044  ;;  %v3142_v27 = vpack.c.bf16 %v8919_v41, %v8935_v10  ;;  %v10445_v7 = vsub.f32 %v10443_v25, %v10444_v60  ;;  %v2093_v60 = vld [vmem:[#allocation3 + $0x80] sm:$0xff] }
 0x7eb   : > { %6066 = vpow2.f32 %v2923_v24  ;;  %v2896_v35 = vsub.f32 %v8624_v2, %v2879_v28  ;;  %5645 = vmatprep.mubr.bf16.mxu1 %v3141_v31  ;;  %v8945_v34 = vpop.eup %6046  ;;  %v3335_v52 = vpop.permute.xlu1 %3334  ;;  %v1954_v62 = vmul.f32 1.442695, %v10442_v61  ;;  %v10449_v28 = vsub.f32 %v8655_v20, %v8667_v57  ;;  %v10450_v20 = vld [vmem:[#allocation110_spill] sm:$0xff]  ;;  %v10451_v57 = vld [vmem:[#allocation112_spill] sm:$0xff] }
 0x7ec   : > { %6068 = vpow2.f32 %v1942_v40  ;;  %2213 = vperm.xlu1 %5907, %v8937_v17   ;;  %1412 = vperm.xlu0 %5906, %v8496_v45   ;;  %v8950_v2 = vpop.eup %6048  ;;  %v1960_v33 = vmul.f32 1.442695, %v10445_v7 }
 0x7ed   : > { %6070 = vpow2.f32 %v1948_v63  ;;  %v2927_v29 = vmul.f32 1.442695, %v2896_v35  ;;  %5646 = vmatmul.mubr.bf16.gmra.mxu1 %v3142_v27  ;;  %v8955_v26 = vpop.eup %6050  ;;  %v10448_v63 = vsub.f32 %v10446_v11, %v10447_v54  ;;  %v2771_v35 = vmul.f32 1.442695, %v10449_v28  ;;  %v2096_v54 = vld [vmem:[#allocation3 + $0x98] sm:$0xff] }
 0x7ee   : > { %6072 = vpow2.f32 %v2925_v1  ;;  %5666 = vmatpush3.bf16.xpose.msra.mxu1 %v3382_v9  ;;  %v3337_v8 = vpop.permute.xlu0 %3336  ;;  %v3376_v9 = vsel %vm813_vm2, %v3335_v52, 0 }
 0x7ef   : > { %6074 = vpow2.f32 %v2927_v29  ;;  %5750 = vmatprep.subr.msk.bf16.mxu1 %vm813_vm2, %v3337_v8  ;;  %v3379_v16 = vsel %vm813_vm2, %v3337_v8, 0  ;;  %v1958_v24 = vmul.f32 1.442695, %v10448_v63  ;;  %v10452_v29 = vsub.f32 %v10450_v20, %v10451_v57  ;;  %v3317_v32 = vpop.permute.xlu1 %3316  ;;  %v10453_v8 = vld [vmem:[#allocation74_spill] sm:$0xff] }
 0x7f0   : > { %v8958_v45 = vpop.eup %6052  ;;  %2218 = vperm.xlu1 %5907, %v8945_v34   ;;  %1422 = vperm.xlu0 %5906, %v8504_v30   ;;  %6076 = vpow2.f32 %v1946_v56  ;;  %v10454_v47 = vsub.f32 %v8640_v0, %v10453_v8 }
 0x7f1   : > { %v8962_v3 = vpop.eup %6054  ;;  %v3143_v36 = vpack.c.bf16 %v8955_v26, %v8958_v45  ;;  %6078 = vpow2.f32 %v1952_v59  ;;  %v1962_v4 = vmul.f32 1.442695, %v10452_v29  ;;  %v2097_v29 = vld [vmem:[#allocation3 + $0xa0] sm:$0xff] }
 0x7f2   : > { %v8969_v14 = vpop.eup %6056  ;;  %6080 = vpow2.f32 %v1950_v12  ;;  %v3333_v39 = vpop.permute.xlu0 %3332  ;;  %v2769_v51 = vmul.f32 1.442695, %v10454_v47  ;;  %v2109_v7 = vmul.f32 %v8962_v3, %v2093_v60 }
 0x7f3   : > { %v8974_v21 = vpop.eup %6058  ;;  %5649 = vmatprep.mubr.bf16.mxu1 %v3143_v36  ;;  %v3144_v30 = vpack.c.bf16 %v8969_v14, %v8950_v2  ;;  %6082 = vpow2.f32 %v1956_v58  ;;  %v3373_v12 = vsel %vm813_vm2, %v3333_v39, 0  ;;  %v3321_v58 = vpop.permute.xlu1 %3320 }
 0x7f4   : > { %2228 = vperm.xlu1 %5907, %v8974_v21   ;;  %2208 = vperm.xlu0 %5906, %v8962_v3   ;;  %v8981_v48 = vpop.eup %6060  ;;  %6084 = vpow2.f32 %v1954_v62  ;;  %v2113_v47 = vmul.f32 %v8974_v21, %v2097_v29 }
 0x7f5   : > { %5650 = vmatmul.mubr.bf16.gmra.mxu1 %v3144_v30  ;;  %v8986_v43 = vpop.eup %6062  ;;  %6086 = vpow2.f32 %v1960_v33  ;;  %v2094_v33 = vld [vmem:[#allocation3 + $0x88] sm:$0xff]  ;;  %v2112_v28 = vmul.f32 %v8981_v48, %v2096_v54 }
 0x7f6   : > { %5668 = vmatpush3.bf16.xpose.msra.mxu1 %v3379_v16  ;;  %v8991_v50 = vpop.eup %6064  ;;  %6088 = vpow2.f32 %v1958_v24  ;;  %v3319_v55 = vpop.permute.xlu0 %3318  ;;  %v10455_v16 = vld [vmem:[#allocation71_spill] sm:$0xff]  ;;  %v2110_v24 = vmul.f32 %v8937_v17, %v2094_v33 }
 0x7f7   : > { %5751 = vmatprep.subr.msk.bf16.mxu1 %vm813_vm2, %v3335_v52  ;;  %6090 = vpow2.f32 %v2771_v35  ;;  %v3325_v6 = vpop.permute.xlu1 %3324  ;;  %v2095_v35 = vld [vmem:[#allocation3 + $0x90] sm:$0xff]  ;;  %v2105_v33 = vld [vmem:[#allocation3 + $0xe0] sm:$0xff] }
 0x7f8   : > { %v8994_v40 = vpop.eup %6066  ;;  %2238 = vperm.xlu1 %5907, %v8986_v43   ;;  %2223 = vperm.xlu0 %5906, %v8981_v48   ;;  %6092 = vpow2.f32 %v1962_v4  ;;  %v2111_v3 = vmul.f32 %v8945_v34, %v2095_v35  ;;  %v1331_v35 = vld [vmem:[#allocation4 + $0x10] sm:$0xff] }
 0x7f9   : > { %v8998_v23 = vpop.eup %6068  ;;  %v3145_v31 = vpack.c.bf16 %v8994_v40, %v8991_v50  ;;  %6094 = vpow2.f32 %v2769_v51  ;;  %v2099_v51 = vld [vmem:[#allocation3 + $0xb0] sm:$0xff] }
 0x7fa   : > { %v9005_v1 = vpop.eup %6070  ;;  %v3323_v52 = vpop.permute.xlu0 %3322 }
 0x7fb   : > { %v9010_v27 = vpop.eup %6072  ;;  %5653 = vmatprep.mubr.bf16.mxu1 %v3145_v31  ;;  %v3329_v62 = vpop.permute.xlu1 %3328 }
 0x7fc   : > { %v9013_v53 = vpop.eup %6074  ;;  %2248 = vperm.xlu1 %5907, %v9005_v1   ;;  %2233 = vperm.xlu0 %5906, %v8998_v23  }
 0x7fd   : > { %v3146_v49 = vpack.c.bf16 %v9013_v53, %v9010_v27  ;;  %v9019_v56 = vpop.eup %6076 }
 0x7fe   : > { %5670 = vmatpush3.bf16.xpose.msra.mxu1 %v3376_v9  ;;  %v9024_v22 = vpop.eup %6078  ;;  %v3327_v61 = vpop.permute.xlu0 %3326 }
 0x7ff   : > { %5654 = vmatmul.mubr.bf16.gmra.mxu1 %v3146_v49  ;;  %5752 = vmatprep.subr.msk.bf16.mxu1 %vm813_vm2, %v3333_v39  ;;  %v9030_v59 = vpop.eup %6080  ;;  %v2098_v49 = vld [vmem:[#allocation3 + $0xa8] sm:$0xff] }
 0x800   : > { %2258 = vperm.xlu1 %5907, %v9024_v22   ;;  %2243 = vperm.xlu0 %5906, %v9019_v56   ;;  %v9035_v5 = vpop.eup %6082  ;;  %v2114_v17 = vmul.f32 %v8998_v23, %v2098_v49 }
 0x801   : > { %5673 = vmatprep.mubr.msk.bf16.mxu1 %vm813_vm2, %v3317_v32  ;;  %v9040_v36 = vpop.eup %6084  ;;  %v2100_v32 = vld [vmem:[#allocation3 + $0xb8] sm:$0xff] }
 0x802   : > { %v9042_v44 = vpop.eup %6086  ;;  %v3331_v25 = vpop.permute.xlu0 %3330 }
 0x803   : > { %v9046_v0 = vpop.eup %6088 }
 0x804   : > { %2268 = vperm.xlu1 %5907, %v9035_v5   ;;  %2253 = vperm.xlu0 %5906, %v9030_v59   ;;  %v9048_v42 = vpop.eup %6090 }
 0x805   : > { %v9054_v30 = vpop.eup %6092 }
 0x806   : > { %5672 = vmatpush3.bf16.xpose.msra.mxu1 %v3373_v12  ;;  %v9059_v46 = vpop.eup %6094 }
 0x808   : > { %2278 = vperm.xlu1 %5907, %v9042_v44   ;;  %2263 = vperm.xlu0 %5906, %v9040_v36  }
 0x80c   : > { %3050 = vperm.xlu1 %5907, %v9048_v42   ;;  %2273 = vperm.xlu0 %5906, %v9046_v0  }
 0x80d   : > { %5674 = vmatmul.mubr.msk.bf16.vlgmr.msra.gmra.mxu1 %vm813_vm2, %v3319_v55 }
 0x80e   : > { %5677 = vmatprep.mubr.msk.bf16.mxu1 %vm813_vm2, %v3321_v58  ;;  %v2115_v58 = vmul.f32 %v8986_v43, %v2099_v51 }
 0x810   : > { %3998 = vrot.lane.b32.xlu1 %v10455_v16, %s6621_s14  ;;  %2283 = vperm.xlu0 %5906, %v9054_v30   ;;  %v2101_v16 = vld [vmem:[#allocation3 + $0xc0] sm:$0xff] }
 0x814   : > { %3045 = vperm.xlu0 %5906, %v9059_v46  }
 0x815   : > { %5678 = vmatmul.mubr.msk.bf16.gmra.mxu1 %vm813_vm2, %v3323_v52 }
 0x816   : > { %5681 = vmatprep.mubr.msk.bf16.mxu1 %vm813_vm2, %v3325_v6 }
 0x81d   : > { %5682 = vmatmul.mubr.msk.bf16.gmra.mxu1 %vm813_vm2, %v3327_v61  ;;  %v2117_v61 = vmul.f32 %v9005_v1, %v2101_v16 }
 0x81e   : > { %5685 = vmatprep.mubr.msk.bf16.mxu1 %vm813_vm2, %v3329_v62  ;;  %v2103_v62 = vld [vmem:[#allocation3 + $0xd0] sm:$0xff] }
 0x825   : > { %5686 = vmatmul.mubr.msk.bf16.gmra.mxu1 %vm813_vm2, %v3331_v25 }
 0x82c   : > { %v2126_v11 = vpop.xlane.xlu1 %2125 }
 0x82d   : > { %v2157_v63 = vadd.f32 %v2126_v11, %v2109_v7  ;;  %v2119_v7 = vmul.f32 %v9024_v22, %v2103_v62  ;;  %v1341_v62 = vld [vmem:[#allocation4 + $0x60] sm:$0xff] }
 0x82f   : > { %2173 = vst.msk [vmem:[#allocation3 + $0x80] sm:$0xff] %vm1312_vm4, %v2157_v63  ;;  %v2128_v31 = vpop.xlane.xlu0 %2127  ;;  %v2121_v63 = vmul.f32 %v9035_v5, %v2105_v33  ;;  %v10464_v33 = vld [vmem:[#allocation85_spill] sm:$0xff] }
 0x830   : > { %v2158_v9 = vadd.f32 %v2128_v31, %v2110_v24  ;;  %v2132_v39 = vpop.xlane.xlu1 %2131  ;;  %v2107_v24 = vld [vmem:[#allocation3 + $0xf0] sm:$0xff] }
 0x831   : > { %v2160_v20 = vadd.f32 %v2132_v39, %v2112_v28  ;;  %v2123_v28 = vmul.f32 %v9042_v44, %v2107_v24  ;;  %v10456_v39 = vld [vmem:[#allocation76_spill] sm:$0xff] }
 0x832   : > { %2174 = vst.msk [vmem:[#allocation3 + $0x88] sm:$0xff] %vm1312_vm4, %v2158_v9 }
 0x833   : > { %2176 = vst.msk [vmem:[#allocation3 + $0x98] sm:$0xff] %vm1312_vm4, %v2160_v20  ;;  %v2130_v57 = vpop.xlane.xlu0 %2129  ;;  %2966 = vadd.xlane.f32.xlu0 %v8859_v19  ;;  %v2116_v19 = vmul.f32 %v9019_v56, %v2100_v32  ;;  %v1334_v32 = vld [vmem:[#allocation4 + $0x28] sm:$0xff] }
 0x834   : > { %v2159_v4 = vadd.f32 %v2130_v57, %v2111_v3  ;;  %2962 = vadd.xlane.f32.xlu1 %v8846_v15  ;;  %v2136_v48 = vpop.xlane.xlu1 %2135  ;;  %v2102_v15 = vld [vmem:[#allocation3 + $0xc8] sm:$0xff]  ;;  %v1332_v3 = vld [vmem:[#allocation4 + $0x18] sm:$0xff]  ;;  %v10457_v57 = vld [vmem:[#allocation79_spill] sm:$0xff] }
 0x835   : > { %v2162_v8 = vadd.f32 %v2136_v48, %v2114_v17 }
 0x836   : > { %2175 = vst.msk [vmem:[#allocation3 + $0x90] sm:$0xff] %vm1312_vm4, %v2159_v4 }
 0x837   : > { %2178 = vst.msk [vmem:[#allocation3 + $0xa8] sm:$0xff] %vm1312_vm4, %v2162_v8  ;;  %v2134_v34 = vpop.xlane.xlu0 %2133  ;;  %2964 = vadd.xlane.f32.xlu0 %v8849_v18  ;;  %v2118_v18 = vmul.f32 %v9030_v59, %v2102_v15  ;;  %v10458_v8 = vld [vmem:[#allocation77_spill] sm:$0xff]  ;;  %v1336_v15 = vld [vmem:[#allocation4 + $0x38] sm:$0xff] }
 0x838   : > { %v2161_v23 = vadd.f32 %v2134_v34, %v2113_v47  ;;  %2968 = vadd.xlane.f32.xlu1 %v8856_v13  ;;  %v2140_v12 = vpop.xlane.xlu1 %2139  ;;  %v2104_v13 = vld [vmem:[#allocation3 + $0xd8] sm:$0xff] }
 0x839   : > { %v2164_v55 = vadd.f32 %v2140_v12, %v2116_v19  ;;  %v10459_v34 = vld [vmem:[#allocation78_spill] sm:$0xff] }
 0x83a   : > { %2177 = vst.msk [vmem:[#allocation3 + $0xa0] sm:$0xff] %vm1312_vm4, %v2161_v23 }
 0x83b   : > { %2180 = vst.msk [vmem:[#allocation3 + $0xb8] sm:$0xff] %vm1312_vm4, %v2164_v55  ;;  %v2138_v21 = vpop.xlane.xlu0 %2137  ;;  %2974 = vadd.xlane.f32.xlu0 %v8935_v10  ;;  %v2120_v10 = vmul.f32 %v9040_v36, %v2104_v13  ;;  %v10460_v55 = vld [vmem:[#allocation81_spill] sm:$0xff] }
 0x83c   : > { %v2163_v56 = vadd.f32 %v2138_v21, %v2115_v58  ;;  %2976 = vadd.xlane.f32.xlu1 %v8919_v41  ;;  %v2144_v52 = vpop.xlane.xlu1 %2143  ;;  %v2106_v41 = vld [vmem:[#allocation3 + $0xe8] sm:$0xff]  ;;  %v1339_v21 = vld [vmem:[#allocation4 + $0x50] sm:$0xff] }
 0x83d   : > { %v2166_v6 = vadd.f32 %v2144_v52, %v2118_v18  ;;  %v10461_v18 = vld [vmem:[#allocation83_spill] sm:$0xff] }
 0x83e   : > { %2179 = vst.msk [vmem:[#allocation3 + $0xb0] sm:$0xff] %vm1312_vm4, %v2163_v56 }
 0x83f   : > { %2182 = vst.msk [vmem:[#allocation3 + $0xc8] sm:$0xff] %vm1312_vm4, %v2166_v6  ;;  %v2142_v43 = vpop.xlane.xlu0 %2141  ;;  %2970 = vadd.xlane.f32.xlu0 %v8916_v37  ;;  %v2122_v37 = vmul.f32 %v9046_v0, %v2106_v41 }
 0x840   : > { %v2165_v59 = vadd.f32 %v2142_v43, %v2117_v61  ;;  %2972 = vadd.xlane.f32.xlu1 %v8923_v38  ;;  %v2148_v25 = vpop.xlane.xlu1 %2147  ;;  %v2108_v38 = vld [vmem:[#allocation3 + $0xf8] sm:$0xff]  ;;  %v1338_v61 = vld [vmem:[#allocation4 + $0x48] sm:$0xff] }
 0x841   : > { %v2168_v60 = vadd.f32 %v2148_v25, %v2120_v10  ;;  %v10462_v43 = vld [vmem:[#allocation80_spill] sm:$0xff] }
 0x842   : > { %2181 = vst.msk [vmem:[#allocation3 + $0xc0] sm:$0xff] %vm1312_vm4, %v2165_v59  ;;  %v10463_v59 = vld [vmem:[#allocation82_spill] sm:$0xff] }
 0x843   : > { %2184 = vst.msk [vmem:[#allocation3 + $0xd8] sm:$0xff] %vm1312_vm4, %v2168_v60  ;;  %v2146_v1 = vpop.xlane.xlu0 %2145  ;;  %2982 = vadd.xlane.f32.xlu0 %v8950_v2  ;;  %v2124_v2 = vmul.f32 %v9054_v30, %v2108_v38  ;;  %v10465_v38 = vld [vmem:[#allocation87_spill] sm:$0xff] }
 0x844   : > { %v2167_v36 = vadd.f32 %v2146_v1, %v2119_v7  ;;  %2984 = vadd.xlane.f32.xlu1 %v8969_v14  ;;  %v2152_v11 = vpop.xlane.xlu1 %2151 }
 0x845   : > { %v2170_v54 = vadd.f32 %v2152_v11, %v2122_v37  ;;  %v1340_v37 = vld [vmem:[#allocation4 + $0x58] sm:$0xff]  ;;  %v1343_v11 = vld [vmem:[#allocation4 + $0x70] sm:$0xff] }
 0x846   : > { %2183 = vst.msk [vmem:[#allocation3 + $0xd0] sm:$0xff] %vm1312_vm4, %v2167_v36 }
 0x847   : > { %2186 = vst.msk [vmem:[#allocation3 + $0xe8] sm:$0xff] %vm1312_vm4, %v2170_v54  ;;  %v2150_v22 = vpop.xlane.xlu0 %2149  ;;  %2978 = vadd.xlane.f32.xlu0 %v8958_v45 }
 0x848   : > { %v2169_v0 = vadd.f32 %v2150_v22, %v2121_v63  ;;  %2980 = vadd.xlane.f32.xlu1 %v8955_v26  ;;  %v2156_v31 = vpop.xlane.xlu1 %2155  ;;  %v1333_v26 = vld [vmem:[#allocation4 + $0x20] sm:$0xff] }
 0x849   : > { %v2172_v14 = vadd.f32 %v2156_v31, %v2124_v2  ;;  %v10466_v31 = vld [vmem:[#allocation84_spill] sm:$0xff] }
 0x84a   : > { %2185 = vst.msk [vmem:[#allocation3 + $0xe0] sm:$0xff] %vm1312_vm4, %v2169_v0  ;;  %v1342_v0 = vld [vmem:[#allocation4 + $0x68] sm:$0xff] }
 0x84b   : > { %2188 = vst.msk [vmem:[#allocation3 + $0xf8] sm:$0xff] %vm1312_vm4, %v2172_v14  ;;  %v2154_v5 = vpop.xlane.xlu0 %2153  ;;  %2990 = vadd.xlane.f32.xlu0 %v9010_v27  ;;  %v1335_v27 = vld [vmem:[#allocation4 + $0x30] sm:$0xff] }
 0x84c   : > { %v2171_v9 = vadd.f32 %v2154_v5, %v2123_v28  ;;  %2992 = vadd.xlane.f32.xlu1 %v9013_v53  ;;  %v1358_v45 = vpop.permute.xlu1 %1357  ;;  %v2191_v28 = vld [vmem:[#allocation4 + $0x88] sm:$0xff] }
 0x84d   : > { %v1427_v30 = vmul.f32 %v1358_v45, %v1331_v35  ;;  %v10467_v35 = vld [vmem:[#allocation86_spill] sm:$0xff] }
 0x84e   : > { %2187 = vst.msk [vmem:[#allocation3 + $0xf0] sm:$0xff] %vm1312_vm4, %v2171_v9 }
 0x84f   : > { %v1596_v49 = vadd.f32 %v10456_v39, %v1427_v30  ;;  %2986 = vadd.xlane.f32.xlu0 %v8991_v50  ;;  %v1337_v50 = vld [vmem:[#allocation4 + $0x40] sm:$0xff]  ;;  %v1344_v39 = vld [vmem:[#allocation4 + $0x78] sm:$0xff] }
 0x850   : > { %2988 = vadd.xlane.f32.xlu1 %v8994_v40  ;;  %v1368_v44 = vpop.permute.xlu1 %1367 }
 0x851   : > { %1612 = vst.msk [vmem:[#allocation4 + $0x10] sm:$0xff] %vm813_vm2, %v1596_v49  ;;  %v1429_v20 = vmul.f32 %v1368_v44, %v1333_v26  ;;  %v10468_v49 = vld [vmem:[#allocation89_spill] sm:$0xff] }
 0x853   : > { %v1598_v17 = vadd.f32 %v10457_v57, %v1429_v20  ;;  %v1363_v53 = vpop.permute.xlu0 %1362  ;;  %v2192_v20 = vld [vmem:[#allocation4 + $0x90] sm:$0xff] }
 0x854   : > { %v1428_v29 = vmul.f32 %v1363_v53, %v1332_v3  ;;  %v1378_v4 = vpop.permute.xlu1 %1377  ;;  %v10469_v3 = vld [vmem:[#allocation55_spill] sm:$0xff] }
 0x855   : > { %1614 = vst.msk [vmem:[#allocation4 + $0x20] sm:$0xff] %vm813_vm2, %v1598_v17  ;;  %v1431_v48 = vmul.f32 %v1378_v4, %v1335_v27  ;;  %v2190_v4 = vld [vmem:[#allocation4 + $0x80] sm:$0xff] }
 0x856   : > { %v1597_v47 = vadd.f32 %v10458_v8, %v1428_v29  ;;  %v2194_v8 = vld [vmem:[#allocation4 + $0xa0] sm:$0xff] }
 0x857   : > { %v1600_v40 = vadd.f32 %v10459_v34, %v1431_v48  ;;  %v1373_v19 = vpop.permute.xlu0 %1372  ;;  %v10470_v48 = vld [vmem:[#allocation88_spill] sm:$0xff] }
 0x858   : > { %1613 = vst.msk [vmem:[#allocation4 + $0x18] sm:$0xff] %vm813_vm2, %v1597_v47  ;;  %v1430_v51 = vmul.f32 %v1373_v19, %v1334_v32  ;;  %v1388_v23 = vpop.permute.xlu1 %1387  ;;  %v10471_v47 = vld [vmem:[#allocation56_spill] sm:$0xff] }
 0x859   : > { %1616 = vst.msk [vmem:[#allocation4 + $0x30] sm:$0xff] %vm813_vm2, %v1600_v40  ;;  %v1433_v12 = vmul.f32 %v1388_v23, %v1337_v50  ;;  %v2193_v23 = vld [vmem:[#allocation4 + $0x98] sm:$0xff] }
 0x85a   : > { %v1599_v58 = vadd.f32 %v10460_v55, %v1430_v51  ;;  %v2196_v55 = vld [vmem:[#allocation4 + $0xb0] sm:$0xff] }
 0x85b   : > { %v1602_v16 = vadd.f32 %v10461_v18, %v1433_v12  ;;  %v1383_v56 = vpop.permute.xlu0 %1382  ;;  %v10472_v12 = vld [vmem:[#allocation59_spill] sm:$0xff] }
 0x85c   : > { %1615 = vst.msk [vmem:[#allocation4 + $0x28] sm:$0xff] %vm813_vm2, %v1599_v58  ;;  %v1432_v52 = vmul.f32 %v1383_v56, %v1336_v15  ;;  %v1398_v13 = vpop.permute.xlu1 %1397  ;;  %v10473_v58 = vld [vmem:[#allocation52_spill] sm:$0xff] }
 0x85d   : > { %1618 = vst.msk [vmem:[#allocation4 + $0x40] sm:$0xff] %vm813_vm2, %v1602_v16  ;;  %v1435_v6 = vmul.f32 %v1398_v13, %v1339_v21  ;;  %v2195_v13 = vld [vmem:[#allocation4 + $0xa8] sm:$0xff] }
 0x85e   : > { %v1601_v10 = vadd.f32 %v10462_v43, %v1432_v52  ;;  %v2198_v43 = vld [vmem:[#allocation4 + $0xc0] sm:$0xff] }
 0x85f   : > { %v1604_v25 = vadd.f32 %v10463_v59, %v1435_v6  ;;  %v1393_v41 = vpop.permute.xlu0 %1392  ;;  %v10474_v6 = vld [vmem:[#allocation51_spill] sm:$0xff] }
 0x860   : > { %1617 = vst.msk [vmem:[#allocation4 + $0x38] sm:$0xff] %vm813_vm2, %v1601_v10  ;;  %v1434_v60 = vmul.f32 %v1393_v41, %v1338_v61  ;;  %v1408_v7 = vpop.permute.xlu1 %1407  ;;  %v10475_v10 = vld [vmem:[#allocation50_spill] sm:$0xff] }
 0x861   : > { %1620 = vst.msk [vmem:[#allocation4 + $0x50] sm:$0xff] %vm813_vm2, %v1604_v25  ;;  %v1437_v1 = vmul.f32 %v1408_v7, %v1341_v62  ;;  %v2197_v7 = vld [vmem:[#allocation4 + $0xb8] sm:$0xff] }
 0x862   : > { %v1603_v36 = vadd.f32 %v10464_v33, %v1434_v60  ;;  %v2200_v33 = vld [vmem:[#allocation4 + $0xd0] sm:$0xff] }
 0x863   : > { %v1606_v54 = vadd.f32 %v10465_v38, %v1437_v1  ;;  %v1403_v63 = vpop.permute.xlu0 %1402  ;;  %v10476_v1 = vld [vmem:[#allocation57_spill] sm:$0xff] }
 0x864   : > { %1619 = vst.msk [vmem:[#allocation4 + $0x48] sm:$0xff] %vm813_vm2, %v1603_v36  ;;  %v1436_v22 = vmul.f32 %v1403_v63, %v1340_v37  ;;  %v1418_v2 = vpop.permute.xlu1 %1417  ;;  %v10477_v36 = vld [vmem:[#allocation66_spill] sm:$0xff] }
 0x865   : > { %1622 = vst.msk [vmem:[#allocation4 + $0x60] sm:$0xff] %vm813_vm2, %v1606_v54  ;;  %v1439_v24 = vmul.f32 %v1418_v2, %v1343_v11  ;;  %v2199_v2 = vld [vmem:[#allocation4 + $0xc8] sm:$0xff] }
 0x866   : > { %v1605_v14 = vadd.f32 %v10466_v31, %v1436_v22 }
 0x867   : > { %v1608_v5 = vadd.f32 %v10467_v35, %v1439_v24  ;;  %v1413_v9 = vpop.permute.xlu0 %1412 }
 0x868   : > { %1621 = vst.msk [vmem:[#allocation4 + $0x58] sm:$0xff] %vm813_vm2, %v1605_v14  ;;  %v1438_v45 = vmul.f32 %v1413_v9, %v1342_v0  ;;  %v2214_v30 = vpop.permute.xlu1 %2213  ;;  %v10478_v0 = vld [vmem:[#allocation54_spill] sm:$0xff]  ;;  %v2202_v14 = vld [vmem:[#allocation4 + $0xe0] sm:$0xff] }
 0x869   : > { %1624 = vst.msk [vmem:[#allocation4 + $0x70] sm:$0xff] %vm813_vm2, %v1608_v5  ;;  %v2287_v26 = vmul.f32 %v2214_v30, %v2191_v28  ;;  %v10479_v28 = vld [vmem:[#allocation64_spill] sm:$0xff] }
 0x86a   : > { %v1607_v44 = vadd.f32 %v10468_v49, %v1438_v45  ;;  %v10480_v49 = vld [vmem:[#allocation63_spill] sm:$0xff] }
 0x86b   : > { %v2432_v27 = vadd.f32 %v10469_v3, %v2287_v26  ;;  %v1423_v57 = vpop.permute.xlu0 %1422  ;;  %v2201_v26 = vld [vmem:[#allocation4 + $0xd8] sm:$0xff]  ;;  %v10481_v3 = vld [vmem:[#allocation65_spill] sm:$0xff] }
 0x86c   : > { %1623 = vst.msk [vmem:[#allocation4 + $0x68] sm:$0xff] %vm813_vm2, %v1607_v44  ;;  %v1440_v17 = vmul.f32 %v1423_v57, %v1344_v39  ;;  %v2219_v53 = vpop.permute.xlu1 %2218 }
 0x86d   : > { %2448 = vst.msk [vmem:[#allocation4 + $0x88] sm:$0xff] %vm813_vm2, %v2432_v27  ;;  %v2288_v29 = vmul.f32 %v2219_v53, %v2192_v20  ;;  %v2204_v20 = vld [vmem:[#allocation4 + $0xf0] sm:$0xff] }
 0x86e   : > { %v1609_v32 = vadd.f32 %v10470_v48, %v1440_v17 }
 0x86f   : > { %v2433_v50 = vadd.f32 %v10471_v47, %v2288_v29  ;;  %v2209_v34 = vpop.permute.xlu0 %2208  ;;  %v3028_v47 = vld [vmem:[#allocation4 + $0x108] sm:$0xff] }
 0x870   : > { %1625 = vst.msk [vmem:[#allocation4 + $0x78] sm:$0xff] %vm813_vm2, %v1609_v32  ;;  %v2286_v40 = vmul.f32 %v2209_v34, %v2190_v4  ;;  %v2229_v19 = vpop.permute.xlu1 %2228  ;;  %v2203_v4 = vld [vmem:[#allocation4 + $0xe8] sm:$0xff] }
 0x871   : > { %2449 = vst.msk [vmem:[#allocation4 + $0x90] sm:$0xff] %vm813_vm2, %v2433_v50  ;;  %v2290_v51 = vmul.f32 %v2229_v19, %v2194_v8  ;;  %v10482_v32 = vld [vmem:[#allocation60_spill] sm:$0xff]  ;;  %v10483_v50 = vld [vmem:[#allocation62_spill] sm:$0xff] }
 0x872   : > { %v2431_v15 = vadd.f32 %v10472_v12, %v2286_v40  ;;  %v2205_v12 = vld [vmem:[#allocation4 + $0xf8] sm:$0xff] }
 0x873   : > { %v2435_v21 = vadd.f32 %v10473_v58, %v2290_v51  ;;  %v2224_v18 = vpop.permute.xlu0 %2223 }
 0x874   : > { %2447 = vst.msk [vmem:[#allocation4 + $0x80] sm:$0xff] %vm813_vm2, %v2431_v15  ;;  %v2289_v16 = vmul.f32 %v2224_v18, %v2193_v23  ;;  %v2239_v56 = vpop.permute.xlu1 %2238 }
 0x875   : > { %2451 = vst.msk [vmem:[#allocation4 + $0xa0] sm:$0xff] %vm813_vm2, %v2435_v21  ;;  %v2292_v52 = vmul.f32 %v2239_v56, %v2196_v55  ;;  %v10484_v55 = vld [vmem:[#allocation72_spill] sm:$0xff] }
 0x876   : > { %v2434_v61 = vadd.f32 %v10474_v6, %v2289_v16  ;;  %v9159_v24 = vpop.f32.mrf.mxu1 }
 0x877   : > { %v2437_v62 = vadd.f32 %v10475_v10, %v2292_v52  ;;  %v2234_v59 = vpop.permute.xlu0 %2233  ;;  %v3027_v52 = vld [vmem:[#allocation4 + $0x100] sm:$0xff] }
 0x878   : > { %2450 = vst.msk [vmem:[#allocation4 + $0x98] sm:$0xff] %vm813_vm2, %v2434_v61  ;;  %v2291_v25 = vmul.f32 %v2234_v59, %v2195_v13  ;;  %v2249_v41 = vpop.permute.xlu1 %2248  ;;  %v3205_v39 = vpop.f32.mrf.mxu1  ;;  %v10485_v13 = vld [vmem:[#allocation70_spill] sm:$0xff]  ;;  %v10487_v59 = vld [vmem:[#allocation69_spill] sm:$0xff] }
 0x879   : > { %2453 = vst.msk [vmem:[#allocation4 + $0xb0] sm:$0xff] %vm813_vm2, %v2437_v62  ;;  %v2294_v60 = vmul.f32 %v2249_v41, %v2198_v43  ;;  %v10486_v62 = vld [vmem:[#allocation67_spill] sm:$0xff] }
 0x87a   : > { %v2436_v37 = vadd.f32 %v10476_v1, %v2291_v25  ;;  %v9169_v48 = vpop.f32.mrf.mxu1  ;;  %v10488_v25 = vsub.f32 %v10486_v62, %v10487_v59  ;;  %v10523_v62 = vld [vmem:[#allocation131_spill] sm:$0xff]  ;;  %v10524_v59 = vld [vmem:[#allocation133_spill] sm:$0xff] }
 0x87b   : > { %v2439_v11 = vadd.f32 %v10477_v36, %v2294_v60  ;;  %v2244_v38 = vpop.permute.xlu0 %2243  ;;  %v10489_v60 = vld [vmem:[#allocation68_spill] sm:$0xff]  ;;  %v10493_v36 = vld [vmem:[#allocation75_spill] sm:$0xff] }
 0x87c   : > { %2452 = vst.msk [vmem:[#allocation4 + $0xa8] sm:$0xff] %vm813_vm2, %v2436_v37  ;;  %v2293_v54 = vmul.f32 %v2244_v38, %v2197_v7  ;;  %v2259_v63 = vpop.permute.xlu1 %2258  ;;  %v3208_v15 = vpop.f32.mrf.mxu1  ;;  %v2773_v41 = vmul.f32 1.442695, %v10488_v25  ;;  %v10490_v7 = vld [vmem:[#allocation73_spill] sm:$0xff]  ;;  %v10525_v25 = vsub.f32 %v10523_v62, %v10524_v59 }
 0x87d   : > { %2455 = vst.msk [vmem:[#allocation4 + $0xc0] sm:$0xff] %vm813_vm2, %v2439_v11  ;;  %v2296_v22 = vmul.f32 %v2259_v63, %v2200_v33  ;;  %v10491_v1 = vsub.f32 %v10489_v60, %v10490_v7  ;;  %v10494_v11 = vld [vmem:[#allocation117_spill] sm:$0xff] }
 0x87e   : > { %v2438_v31 = vadd.f32 %v10478_v0, %v2293_v54  ;;  %6096 = vpow2.f32 %v2773_v41  ;;  %v10495_v38 = vsub.f32 %v10493_v36, %v10494_v11  ;;  %v2797_v41 = vmul.f32 1.442695, %v10525_v25  ;;  %v2938_v25 = vld [vmem:[#allocation3 + $0x140] sm:$0xff] }
 0x87f   : > { %v2441_v35 = vadd.f32 %v10479_v28, %v2296_v22  ;;  %v2254_v5 = vpop.permute.xlu0 %2253  ;;  %v2775_v37 = vmul.f32 1.442695, %v10491_v1  ;;  %v10497_v22 = vld [vmem:[#allocation123_spill] sm:$0xff]  ;;  %v10527_v1 = vld [vmem:[#allocation134_spill] sm:$0xff] }
 0x880   : > { %2454 = vst.msk [vmem:[#allocation4 + $0xb8] sm:$0xff] %vm813_vm2, %v2438_v31  ;;  %v2295_v9 = vmul.f32 %v2254_v5, %v2199_v2  ;;  %v2269_v45 = vpop.permute.xlu1 %2268  ;;  %v2781_v54 = vmul.f32 1.442695, %v10495_v38  ;;  %v10498_v2 = vld [vmem:[#allocation125_spill] sm:$0xff]  ;;  %v10501_v28 = vld [vmem:[#allocation119_spill] sm:$0xff] }
 0x881   : > { %2457 = vst.msk [vmem:[#allocation4 + $0xd0] sm:$0xff] %vm813_vm2, %v2441_v35  ;;  %v2298_v30 = vmul.f32 %v2269_v45, %v2202_v14  ;;  %6098 = vpow2.f32 %v2775_v37  ;;  %v10499_v0 = vsub.f32 %v10497_v22, %v10498_v2  ;;  %v10502_v35 = vld [vmem:[#allocation121_spill] sm:$0xff]  ;;  %v10528_v37 = vld [vmem:[#allocation136_spill] sm:$0xff] }
 0x882   : > { %v2440_v44 = vadd.f32 %v10480_v49, %v2295_v9  ;;  %6100 = vpow2.f32 %v2781_v54  ;;  %v10503_v5 = vsub.f32 %v10501_v28, %v10502_v35  ;;  %v10529_v36 = vsub.f32 %v10527_v1, %v10528_v37  ;;  %v2936_v22 = vld [vmem:[#allocation3 + $0x130] sm:$0xff]  ;;  %v2937_v28 = vld [vmem:[#allocation3 + $0x138] sm:$0xff] }
 0x883   : > { %v2443_v27 = vadd.f32 %v10481_v3, %v2298_v30  ;;  %v2264_v57 = vpop.permute.xlu0 %2263  ;;  %v2783_v31 = vmul.f32 1.442695, %v10499_v0  ;;  %v10504_v30 = vld [vmem:[#allocation118_spill] sm:$0xff]  ;;  %v10509_v3 = vld [vmem:[#allocation124_spill] sm:$0xff] }
 0x884   : > { %2456 = vst.msk [vmem:[#allocation4 + $0xc8] sm:$0xff] %vm813_vm2, %v2440_v44  ;;  %v2297_v17 = vmul.f32 %v2264_v57, %v2201_v26  ;;  %v2279_v53 = vpop.permute.xlu1 %2278  ;;  %v2777_v9 = vmul.f32 1.442695, %v10503_v5  ;;  %v10505_v26 = vld [vmem:[#allocation120_spill] sm:$0xff]  ;;  %v2799_v11 = vmul.f32 1.442695, %v10529_v36 }
 0x885   : > { %2459 = vst.msk [vmem:[#allocation4 + $0xe0] sm:$0xff] %vm813_vm2, %v2443_v27  ;;  %v2300_v29 = vmul.f32 %v2279_v53, %v2204_v20  ;;  %6102 = vpow2.f32 %v2783_v31  ;;  %v10508_v20 = vld [vmem:[#allocation122_spill] sm:$0xff]  ;;  %v10531_v5 = vld [vmem:[#allocation137_spill] sm:$0xff]  ;;  %v2939_v36 = vld [vmem:[#allocation3 + $0x148] sm:$0xff] }
 0x886   : > { %v2442_v8 = vadd.f32 %v10482_v32, %v2297_v17  ;;  %6104 = vpow2.f32 %v2777_v9  ;;  %v10510_v27 = vsub.f32 %v10508_v20, %v10509_v3  ;;  %v10534_v20 = vld [vmem:[#allocation138_spill] sm:$0xff]  ;;  %v10535_v3 = vld [vmem:[#allocation139_spill] sm:$0xff] }
 0x887   : > { %v2445_v34 = vadd.f32 %v10483_v50, %v2300_v29  ;;  %v2274_v40 = vpop.permute.xlu0 %2273  ;;  %v10512_v29 = vld [vmem:[#allocation127_spill] sm:$0xff] }
 0x888   : > { %2458 = vst.msk [vmem:[#allocation4 + $0xd8] sm:$0xff] %vm813_vm2, %v2442_v8  ;;  %v2299_v19 = vmul.f32 %v2274_v40, %v2203_v4  ;;  %v3051_v51 = vpop.permute.xlu1 %3050  ;;  %v2789_v57 = vmul.f32 1.442695, %v10510_v27  ;;  %v10513_v4 = vld [vmem:[#allocation129_spill] sm:$0xff]  ;;  %v10516_v40 = vld [vmem:[#allocation126_spill] sm:$0xff]  ;;  %v10536_v27 = vsub.f32 %v10534_v20, %v10535_v3 }
 0x889   : > { %2461 = vst.msk [vmem:[#allocation4 + $0xf0] sm:$0xff] %vm813_vm2, %v2445_v34  ;;  %v3124_v23 = vmul.f32 %v3051_v51, %v3028_v47  ;;  %v10514_v32 = vsub.f32 %v10512_v29, %v10513_v4  ;;  %v2932_v47 = vld [vmem:[#allocation3 + $0x110] sm:$0xff]  ;;  %v2930_v34 = vld [vmem:[#allocation3 + $0x100] sm:$0xff] }
 0x88a   : > { %v2444_v58 = vadd.f32 %v10484_v55, %v2299_v19  ;;  %v10517_v19 = vld [vmem:[#allocation128_spill] sm:$0xff] }
 0x88b   : > { %v3269_v21 = vadd.f32 %v3208_v15, %v3124_v23  ;;  %v2284_v18 = vpop.permute.xlu0 %2283  ;;  %v9214_v53 = vpop.eup %6096  ;;  %v2791_v8 = vmul.f32 1.442695, %v10514_v32  ;;  %v10518_v51 = vsub.f32 %v10516_v40, %v10517_v19  ;;  %v10519_v15 = vld [vmem:[#allocation130_spill] sm:$0xff]  ;;  %v10520_v55 = vld [vmem:[#allocation132_spill] sm:$0xff]  ;;  %v2934_v32 = vld [vmem:[#allocation3 + $0x120] sm:$0xff] }
 0x88c   : > { %2460 = vst.msk [vmem:[#allocation4 + $0xe8] sm:$0xff] %vm813_vm2, %v2444_v58  ;;  %v2301_v16 = vmul.f32 %v2284_v18, %v2205_v12  ;;  %v3999_v56 = vpop.permute.xlu1 %3998  ;;  %v2948_v12 = vmul.f32 %v9214_v53, %v2932_v47  ;;  %v10521_v58 = vsub.f32 %v10519_v15, %v10520_v55  ;;  %v2935_v40 = vld [vmem:[#allocation3 + $0x128] sm:$0xff] }
 0x88d   : > { %3285 = vst.msk [vmem:[#allocation4 + $0x108] sm:$0xff] %vm813_vm2, %v3269_v21  ;;  %5689 = vmatprep.subr.bf16.mxu0 %v3999_v56  ;;  %v2785_v23 = vmul.f32 1.442695, %v10518_v51 }
 0x88e   : > { %v2446_v6 = vadd.f32 %v10485_v13, %v2301_v16  ;;  %5690 = vmatpush3.bf16.msra.mxu0 %v3999_v56  ;;  %v2787_v21 = vmul.f32 1.442695, %v10521_v58  ;;  %v2946_v16 = vmul.f32 %v9059_v46, %v2930_v34  ;;  %v2931_v56 = vld [vmem:[#allocation3 + $0x108] sm:$0xff]  ;;  %v2940_v58 = vld [vmem:[#allocation3 + $0x150] sm:$0xff] }
 0x88f   : > { %v3046_v61 = vpop.permute.xlu0 %3045  ;;  %v2947_v46 = vmul.f32 %v9048_v42, %v2931_v56  ;;  %v10530_v42 = vld [vmem:[#allocation135_spill] sm:$0xff]  ;;  %v2941_v56 = vld [vmem:[#allocation3 + $0x158] sm:$0xff] }
 0x890   : > { %2462 = vst.msk [vmem:[#allocation4 + $0xf8] sm:$0xff] %vm813_vm2, %v2446_v6  ;;  %v3123_v43 = vmul.f32 %v3046_v61, %v3027_v52  ;;  %v9229_v52 = vpop.eup %6098  ;;  %v10532_v9 = vsub.f32 %v10530_v42, %v10531_v5 }
 0x891   : > { %v9240_v7 = vpop.eup %6100 }
 0x892   : > { %v3268_v10 = vadd.f32 %v3205_v39, %v3123_v43  ;;  %v10506_v39 = vsub.f32 %v10504_v30, %v10505_v26  ;;  %v2933_v43 = vld [vmem:[#allocation3 + $0x118] sm:$0xff]  ;;  %v9247_v2 = vpop.eup %6102  ;;  %v2793_v30 = vmul.f32 1.442695, %v10532_v9 }
 0x893   : > { %v2949_v54 = vmul.f32 %v9229_v52, %v2933_v43  ;;  %v2953_v4 = vmul.f32 %v9247_v2, %v2937_v28  ;;  %v10540_v28 = vld [vmem:[#allocation32_spill] sm:$0xff] }
 0x894   : > { %3284 = vst.msk [vmem:[#allocation4 + $0x100] sm:$0xff] %vm813_vm2, %v3268_v10  ;;  %v2779_v49 = vmul.f32 1.442695, %v10506_v39  ;;  %v2952_v39 = vmul.f32 %v9240_v7, %v2936_v22 }
 0x896   : > { %6106 = vpow2.f32 %v2779_v49  ;;  %v9256_v49 = vpop.eup %6104 }
 0x897   : > { %6108 = vpow2.f32 %v2789_v57  ;;  %v2795_v57 = vmul.f32 1.442695, %v10536_v27 }
 0x898   : > { %6110 = vpow2.f32 %v2791_v8 }
 0x899   : > { %6112 = vpow2.f32 %v2785_v23  ;;  %v2950_v23 = vmul.f32 %v9256_v49, %v2934_v32 }
 0x89a   : > { %6114 = vpow2.f32 %v2787_v21 }
 0x89b   : > { %6116 = vpow2.f32 %v2797_v41 }
 0x89c   : > { %6118 = vpow2.f32 %v2799_v11  ;;  %v10539_v11 = vld [vmem:[#allocation31_spill] sm:$0xff] }
 0x89d   : > { %6120 = vpow2.f32 %v2793_v30  ;;  %v2944_v30 = vld [vmem:[#allocation3 + $0x170] sm:$0xff] }
 0x89e   : > { %6122 = vpow2.f32 %v2795_v57  ;;  %v2945_v57 = vld [vmem:[#allocation3 + $0x178] sm:$0xff] }
 0x8a3   : > { %v9263_v8 = vpop.eup %6106 }
 0x8a4   : > { %v2951_v55 = vmul.f32 %v9263_v8, %v2935_v40  ;;  %v10541_v40 = vld [vmem:[#allocation33_spill] sm:$0xff] }
 0x8ad   : > { %v9187_v33 = vpop.f32.mrf.mxu1 }
 0x8ae   : > { %10492 = vst [vmem:[#allocation94_spill] sm:$0xff] %v9187_v33  ;;  %v9488_v33 = vld [vmem:[#allocation2 + $0x1f0] sm:$0xff] }
 0x8af   : > { %v9192_v63 = vpop.f32.mrf.mxu1  ;;  %10558 = vst [vmem:[#allocation100_spill] sm:$0xff] %v9488_v33 }
 0x8b0   : > { %10496 = vst [vmem:[#allocation96_spill] sm:$0xff] %v9192_v63  ;;  %v6234_v63 = vld [vmem:[%s6944_s28] sm:$0xff]  }
 0x8b1   : > { %v9197_v14 = vpop.f32.mrf.mxu1 }
 0x8b2   : > { %10500 = vst [vmem:[#allocation90_spill] sm:$0xff] %v9197_v14 }
 0x8b3   : > { %v9202_v45 = vpop.f32.mrf.mxu1 }
 0x8b5   : > { %v9207_v44 = vpop.f32.mrf.mxu1 }
 0x8b6   : > { %10507 = vst [vmem:[#allocation92_spill] sm:$0xff] %v9207_v44 }
 0x8b7   : > { %v9212_v17 = vpop.f32.mrf.mxu1 }
 0x8b8   : > { %10511 = vst [vmem:[#allocation91_spill] sm:$0xff] %v9212_v17 }
 0x8b9   : > { %v9219_v50 = vpop.f32.mrf.mxu1 }
 0x8ba   : > { %10515 = vst [vmem:[#allocation93_spill] sm:$0xff] %v9219_v50 }
 0x8bb   : > { %v9231_v13 = vpop.f32.mrf.mxu1 }
 0x8bc   : > { %v2967_v18 = vpop.xlane.xlu0 %2966  ;;  %10522 = vst [vmem:[#allocation61_spill] sm:$0xff] %v9231_v13 }
 0x8bd   : > { %v2996_v6 = vadd.f32 %v2967_v18, %v2948_v12  ;;  %v2963_v61 = vpop.xlane.xlu1 %2962  ;;  %v9269_v12 = vpop.eup %6108 }
 0x8be   : > { %v2994_v10 = vadd.f32 %v2963_v61, %v2946_v16  ;;  %v9273_v21 = vpop.eup %6110  ;;  %v2956_v43 = vmul.f32 %v9269_v12, %v2940_v58 }
 0x8bf   : > { %3012 = vst.msk [vmem:[#allocation3 + $0x110] sm:$0xff] %vm1312_vm4, %v2996_v6  ;;  %v9237_v60 = vpop.f32.mrf.mxu1  ;;  %v2957_v59 = vmul.f32 %v9273_v21, %v2941_v56 }
 0x8c0   : > { %10526 = vst [vmem:[#allocation99_spill] sm:$0xff] %v9237_v60  ;;  %3010 = vst.msk [vmem:[#allocation3 + $0x100] sm:$0xff] %vm1312_vm4, %v2994_v10  ;;  %v2965_v38 = vpop.xlane.xlu0 %2964  ;;  %v9279_v10 = vpop.eup %6112  ;;  %v9472_v60 = vld [vmem:[#allocation2 + $0x1c0] sm:$0xff] }
 0x8c1   : > { %v2995_v0 = vadd.f32 %v2965_v38, %v2947_v46  ;;  %v2969_v31 = vpop.xlane.xlu1 %2968  ;;  %v9253_v26 = vpop.f32.mrf.mxu1 }
 0x8c2   : > { %v2997_v35 = vadd.f32 %v2969_v31, %v2949_v54  ;;  %10533 = vst [vmem:[#allocation95_spill] sm:$0xff] %v9253_v26  ;;  %v9283_v41 = vpop.eup %6114  ;;  %v3535_v26 = vld [vmem:[#allocation2 + $0x1c8] sm:$0xff] }
 0x8c3   : > { %3011 = vst.msk [vmem:[#allocation3 + $0x108] sm:$0xff] %vm1312_vm4, %v2995_v0  ;;  %v9265_v51 = vpop.f32.mrf.mxu1  ;;  %v2954_v0 = vmul.f32 %v9279_v10, %v2938_v25  ;;  %v9288_v31 = vpop.eup %6116  ;;  %v2955_v9 = vmul.f32 %v9283_v41, %v2939_v36  ;;  %v10543_v36 = vld [vmem:[#allocation35_spill] sm:$0xff] }
 0x8c4   : > { %3013 = vst.msk [vmem:[#allocation3 + $0x118] sm:$0xff] %vm1312_vm4, %v2997_v35  ;;  %v2975_v29 = vpop.xlane.xlu0 %2974  ;;  %10537 = vst [vmem:[#allocation97_spill] sm:$0xff] %v9265_v51  ;;  %v9499_v51 = vld [vmem:[#allocation2 + $0x1e0] sm:$0xff] }
 0x8c5   : > { %v3000_v47 = vadd.f32 %v2975_v29, %v2952_v39  ;;  %v2977_v34 = vpop.xlane.xlu1 %2976  ;;  %v9275_v61 = vpop.f32.mrf.mxu1 }
 0x8c6   : > { %v3001_v19 = vadd.f32 %v2977_v34, %v2953_v4  ;;  %10538 = vst [vmem:[#allocation49_spill] sm:$0xff] %v9275_v61  ;;  %v9296_v39 = vpop.eup %6118  ;;  %v6233_v61 = vld [vmem:[%s6944_s28 + $0x8] sm:$0xff]  }
 0x8c7   : > { %3016 = vst.msk [vmem:[#allocation3 + $0x130] sm:$0xff] %vm1312_vm4, %v3000_v47  ;;  %v2960_v47 = vmul.f32 %v9288_v31, %v2944_v30  ;;  %v9302_v34 = vpop.eup %6120 }
 0x8c8   : > { %3017 = vst.msk [vmem:[#allocation3 + $0x138] sm:$0xff] %vm1312_vm4, %v3001_v19  ;;  %v2971_v15 = vpop.xlane.xlu0 %2970  ;;  %v9313_v56 = vpop.eup %6122 }
 0x8c9   : > { %v2998_v18 = vadd.f32 %v2971_v15, %v2950_v23  ;;  %v2973_v16 = vpop.xlane.xlu1 %2972  ;;  %v10542_v23 = vld [vmem:[#allocation34_spill] sm:$0xff] }
 0x8ca   : > { %v2999_v6 = vadd.f32 %v2973_v16, %v2951_v55  ;;  %v2942_v16 = vld [vmem:[#allocation3 + $0x160] sm:$0xff] }
 0x8cb   : > { %3014 = vst.msk [vmem:[#allocation3 + $0x120] sm:$0xff] %vm1312_vm4, %v2998_v18  ;;  %v2961_v18 = vmul.f32 %v9296_v39, %v2945_v57  ;;  %v10545_v57 = vld [vmem:[#allocation38_spill] sm:$0xff] }
 0x8cc   : > { %3015 = vst.msk [vmem:[#allocation3 + $0x128] sm:$0xff] %vm1312_vm4, %v2999_v6  ;;  %v2983_v62 = vpop.xlane.xlu0 %2982 }
 0x8cd   : > { %v5675_v46 = vpop.f32.mrf.mxu1  ;;  %v3004_v1 = vadd.f32 %v2983_v62, %v2956_v43  ;;  %v2985_v37 = vpop.xlane.xlu1 %2984 }
 0x8ce   : > { %v3495_v38 = vmul.f32 %v5675_v46, %v10539_v11  ;;  %v3005_v54 = vadd.f32 %v2985_v37, %v2957_v59  ;;  %v2943_v59 = vld [vmem:[#allocation3 + $0x168] sm:$0xff]  ;;  %v2958_v37 = vmul.f32 %v9302_v34, %v2942_v16 }
 0x8cf   : > { %3020 = vst.msk [vmem:[#allocation3 + $0x150] sm:$0xff] %vm1312_vm4, %v3004_v1  ;;  %v3430_v22 = vpop.f32.mrf.mxu1  ;;  %v10548_v16 = vld [vmem:[#allocation40_spill] sm:$0xff] }
 0x8d0   : > { %v9291_v35 = vadd.f32 %v3495_v38, %v10540_v28  ;;  %v3493_v42 = vmul.f32 %v3430_v22, %v10539_v11  ;;  %3021 = vst.msk [vmem:[#allocation3 + $0x158] sm:$0xff] %vm1312_vm4, %v3005_v54  ;;  %v2979_v5 = vpop.xlane.xlu0 %2978  ;;  %v10544_v54 = vld [vmem:[#allocation36_spill] sm:$0xff] }
 0x8d1   : > { %v5676_v20 = vpop.f32.mrf.mxu1  ;;  %v3002_v3 = vadd.f32 %v2979_v5, %v2954_v0  ;;  %v2981_v27 = vpop.xlane.xlu1 %2980 }
 0x8d2   : > { %v3496_v29 = vmul.f32 %v5676_v20, %v10539_v11  ;;  %3546 = vmax.xlane.f32.xlu0 %v9291_v35  ;;  %v3003_v4 = vadd.f32 %v2981_v27, %v2955_v9  ;;  %v9305_v19 = vadd.f32 %v3493_v42, %v10541_v40  ;;  %v2959_v42 = vmul.f32 %v9313_v56, %v2943_v59 }
 0x8d3   : > { %3018 = vst.msk [vmem:[#allocation3 + $0x140] sm:$0xff] %vm1312_vm4, %v3002_v3  ;;  %v3433_v32 = vpop.f32.mrf.mxu1 }
 0x8d4   : > { %v9308_v15 = vadd.f32 %v3496_v29, %v10542_v23  ;;  %v3494_v55 = vmul.f32 %v3433_v32, %v10539_v11  ;;  %3019 = vst.msk [vmem:[#allocation3 + $0x148] sm:$0xff] %vm1312_vm4, %v3003_v4  ;;  %v2991_v58 = vpop.xlane.xlu0 %2990  ;;  %v10546_v4 = vld [vmem:[#allocation37_spill] sm:$0xff] }
 0x8d5   : > { %v5679_v6 = vpop.f32.mrf.mxu1  ;;  %v3008_v43 = vadd.f32 %v2991_v58, %v2960_v47  ;;  %v2993_v62 = vpop.xlane.xlu1 %2992  ;;  %v10547_v58 = vld [vmem:[#allocation39_spill] sm:$0xff] }
 0x8d6   : > { %v3499_v25 = vmul.f32 %v5679_v6, %v10539_v11  ;;  %3542 = vmax.xlane.f32.xlu0 %v9305_v19  ;;  %3548 = vmax.xlane.f32.xlu1 %v9308_v15  ;;  %v3009_v46 = vadd.f32 %v2993_v62, %v2961_v18  ;;  %v9321_v38 = vadd.f32 %v3494_v55, %v10543_v36 }
 0x8d7   : > { %3024 = vst.msk [vmem:[#allocation3 + $0x170] sm:$0xff] %vm1312_vm4, %v3008_v43  ;;  %v3446_v1 = vpop.f32.mrf.mxu1 }
 0x8d8   : > { %v9324_v22 = vadd.f32 %v3499_v25, %v10544_v54  ;;  %v3497_v0 = vmul.f32 %v3446_v1, %v10539_v11  ;;  %3025 = vst.msk [vmem:[#allocation3 + $0x178] sm:$0xff] %vm1312_vm4, %v3009_v46  ;;  %v2987_v28 = vpop.xlane.xlu0 %2986  ;;  %v10549_v46 = vld [vmem:[#allocation42_spill] sm:$0xff] }
 0x8d9   : > { %v5680_v5 = vpop.f32.mrf.mxu1  ;;  %v3006_v9 = vadd.f32 %v2987_v28, %v2958_v37  ;;  %v2989_v30 = vpop.xlane.xlu1 %2988  ;;  %v10550_v37 = vld [vmem:[#allocation41_spill] sm:$0xff] }
 0x8da   : > { %v3500_v20 = vmul.f32 %v5680_v5, %v10539_v11  ;;  %3544 = vmax.xlane.f32.xlu1 %v9321_v38  ;;  %3554 = vmax.xlane.f32.xlu0 %v9324_v22  ;;  %v3007_v3 = vadd.f32 %v2989_v30, %v2959_v42  ;;  %v9334_v29 = vadd.f32 %v3497_v0, %v10545_v57  ;;  %v10551_v5 = vld [vmem:[#allocation43_spill] sm:$0xff]  ;;  %v10552_v30 = vld [vmem:[#allocation44_spill] sm:$0xff] }
 0x8db   : > { %3022 = vst.msk [vmem:[#allocation3 + $0x160] sm:$0xff] %vm1312_vm4, %v3006_v9  ;;  %v3449_v27 = vpop.f32.mrf.mxu1 }
 0x8dc   : > { %v9337_v32 = vadd.f32 %v3500_v20, %v10546_v4  ;;  %v3498_v47 = vmul.f32 %v3449_v27, %v10539_v11  ;;  %3023 = vst.msk [vmem:[#allocation3 + $0x168] sm:$0xff] %vm1312_vm4, %v3007_v3  ;;  %v10553_v27 = vld [vmem:[#allocation46_spill] sm:$0xff]  ;;  %v6228_v4 = vld [vmem:[%s6944_s28 + $0x30] sm:$0xff]  }
 0x8dd   : > { %v5683_v40 = vpop.f32.mrf.mxu1 }
 0x8de   : > { %v3503_v23 = vmul.f32 %v5683_v40, %v10539_v11  ;;  %3550 = vmax.xlane.f32.xlu0 %v9334_v29  ;;  %3556 = vmax.xlane.f32.xlu1 %v9337_v32  ;;  %v9345_v18 = vadd.f32 %v3498_v47, %v10547_v58  ;;  %v6229_v47 = vld [vmem:[%s6944_s28 + $0x28] sm:$0xff]   ;;  %v6230_v40 = vld [vmem:[%s6944_s28 + $0x18] sm:$0xff]  }
 0x8df   : > { %v3462_v55 = vpop.f32.mrf.mxu1 }
 0x8e0   : > { %v9348_v6 = vadd.f32 %v3503_v23, %v10548_v16  ;;  %v3501_v43 = vmul.f32 %v3462_v55, %v10539_v11  ;;  %v10554_v16 = vld [vmem:[#allocation45_spill] sm:$0xff] }
 0x8e1   : > { %v5684_v62 = vpop.f32.mrf.mxu1 }
 0x8e2   : > { %v3504_v59 = vmul.f32 %v5684_v62, %v10539_v11  ;;  %3552 = vmax.xlane.f32.xlu1 %v9345_v18  ;;  %3562 = vmax.xlane.f32.xlu0 %v9348_v6  ;;  %v9355_v1 = vadd.f32 %v3501_v43, %v10549_v46  ;;  %v6232_v46 = vld [vmem:[%s6944_s28 + $0x10] sm:$0xff]  }
 0x8e3   : > { %v3465_v25 = vpop.f32.mrf.mxu1 }
 0x8e4   : > { %v9358_v36 = vadd.f32 %v3504_v59, %v10550_v37  ;;  %v3502_v54 = vmul.f32 %v3465_v25, %v10539_v11  ;;  %v10556_v59 = vld [vmem:[#allocation47_spill] sm:$0xff]  ;;  %v9398_v37 = vld [vmem:[#allocation2 + $0x190] sm:$0xff] }
 0x8e5   : > { %v5687_v0 = vpop.f32.mrf.mxu1 }
 0x8e6   : > { %v3507_v28 = vmul.f32 %v5687_v0, %v10539_v11  ;;  %3558 = vmax.xlane.f32.xlu0 %v9355_v1  ;;  %3564 = vmax.xlane.f32.xlu1 %v9358_v36  ;;  %v9365_v9 = vadd.f32 %v3502_v54, %v10551_v5 }
 0x8e7   : > { %v3478_v42 = vpop.f32.mrf.mxu1 }
 0x8e8   : > { %v9368_v20 = vadd.f32 %v3507_v28, %v10552_v30  ;;  %v3505_v3 = vmul.f32 %v3478_v42, %v10539_v11  ;;  %v9405_v28 = vld [vmem:[#allocation2 + $0x198] sm:$0xff] }
 0x8e9   : > { %v5688_v23 = vpop.f32.mrf.mxu1 }
 0x8ea   : > { %v9372_v57 = vadd.f32 %v3505_v3, %v10553_v27  ;;  %3560 = vmax.xlane.f32.xlu1 %v9365_v9  ;;  %3570 = vmax.xlane.f32.xlu0 %v9368_v20  ;;  %v3508_v55 = vmul.f32 %v5688_v23, %v10539_v11 }
 0x8eb   : > { %v3481_v58 = vpop.f32.mrf.mxu1 }
 0x8ec   : > { %v9386_v43 = vadd.f32 %v3508_v55, %v10554_v16  ;;  %v3506_v62 = vmul.f32 %v3481_v58, %v10539_v11  ;;  %v9403_v11 = vld [vmem:[#allocation2 + $0x180] sm:$0xff] }
 0x8ed   : > { %v9434_v16 = vld [vmem:[#allocation2 + $0x1a0] sm:$0xff] }
 0x8ee   : > { %3566 = vmax.xlane.f32.xlu0 %v9372_v57  ;;  %10555 = vst [vmem:[#allocation58_spill] sm:$0xff] %v9386_v43  ;;  %v9391_v25 = vadd.f32 %v3506_v62, %v10556_v59  ;;  %v9436_v62 = vld [vmem:[#allocation2 + $0x1b8] sm:$0xff] }
 0x8ef   : > { %v9474_v59 = vld [vmem:[#allocation2 + $0x1d8] sm:$0xff] }
 0x8f0   : > { %10557 = vst [vmem:[#allocation98_spill] sm:$0xff] %v9391_v25 }
 0x8fb   : > { %3996 = vrot.lane.b32.xlu1 %v6228_v4, %s6621_s14  ;;  %v9418_v4 = vld [vmem:[#allocation2 + $0x1b0] sm:$0xff] }
 0x904   : > { %3055 = vperm.xlu0 %5906, %v9214_v53   ;;  %v6231_v53 = vld [vmem:[%s6944_s28 + $0x20] sm:$0xff]  }
 0x908   : > { %3994 = vrot.lane.b32.xlu0 %v6229_v47, %s6621_s14  ;;  %v9420_v47 = vld [vmem:[#allocation2 + $0x188] sm:$0xff] }
 0x90c   : > { %3990 = vrot.lane.b32.xlu0 %v6230_v40, %s6621_s14 }
 0x91f   : > { %3572 = vmax.xlane.f32.xlu1 %v9386_v43 }
 0x923   : > { %3568 = vmax.xlane.f32.xlu1 %v9391_v25 }
 0x934   : > { %3992 = vrot.lane.b32.xlu1 %v6231_v53, %s6621_s14 }
 0x938   : > { %3988 = vrot.lane.b32.xlu1 %v6232_v46, %s6621_s14 }
 0x95b   : > { %v3547_v54 = vpop.xlane.xlu0 %3546 }
 0x95c   : > { %v9401_v0 = vmax.f32 %v9398_v37, %v3547_v54 }
 0x95e   : > { %4139 = vst.msk [vmem:[#allocation2 + $0x190] sm:$0xff] %vm1312_vm4, %v9401_v0  ;;  %3650 = vperm.xlu0 %5906, %v9401_v0  }
 0x95f   : > { %v3543_v5 = vpop.xlane.xlu0 %3542  ;;  %v3549_v30 = vpop.xlane.xlu1 %3548 }
 0x960   : > { %v9413_v3 = vmax.f32 %v9403_v11, %v3543_v5  ;;  %v9416_v27 = vmax.f32 %v9405_v28, %v3549_v30 }
 0x962   : > { %4137 = vst.msk [vmem:[#allocation2 + $0x180] sm:$0xff] %vm1312_vm4, %v9413_v3  ;;  %4140 = vst.msk [vmem:[#allocation2 + $0x198] sm:$0xff] %vm1312_vm4, %v9416_v27  ;;  %3640 = vperm.xlu0 %5906, %v9413_v3   ;;  %3655 = vperm.xlu1 %5907, %v9416_v27  }
 0x963   : > { %v3555_v40 = vpop.xlane.xlu0 %3554  ;;  %v3545_v23 = vpop.xlane.xlu1 %3544 }
 0x964   : > { %v9429_v55 = vmax.f32 %v9418_v4, %v3555_v40  ;;  %v9432_v58 = vmax.f32 %v9420_v47, %v3545_v23  ;;  %v9454_v40 = vld [vmem:[#allocation2 + $0x1d0] sm:$0xff]  ;;  %v9456_v23 = vld [vmem:[#allocation2 + $0x1a8] sm:$0xff] }
 0x966   : > { %4143 = vst.msk [vmem:[#allocation2 + $0x1b0] sm:$0xff] %vm1312_vm4, %v9429_v55  ;;  %4138 = vst.msk [vmem:[#allocation2 + $0x188] sm:$0xff] %vm1312_vm4, %v9432_v58  ;;  %3670 = vperm.xlu0 %5906, %v9429_v55   ;;  %3645 = vperm.xlu1 %5907, %v9432_v58  }
 0x967   : > { %v3551_v46 = vpop.xlane.xlu0 %3550  ;;  %v3557_v54 = vpop.xlane.xlu1 %3556 }
 0x968   : > { %v9449_v5 = vmax.f32 %v9434_v16, %v3551_v46  ;;  %v9452_v30 = vmax.f32 %v9436_v62, %v3557_v54 }
 0x96a   : > { %4141 = vst.msk [vmem:[#allocation2 + $0x1a0] sm:$0xff] %vm1312_vm4, %v9449_v5  ;;  %4144 = vst.msk [vmem:[#allocation2 + $0x1b8] sm:$0xff] %vm1312_vm4, %v9452_v30  ;;  %3660 = vperm.xlu0 %5906, %v9449_v5   ;;  %3675 = vperm.xlu1 %5907, %v9452_v30  }
 0x96b   : > { %v3563_v46 = vpop.xlane.xlu0 %3562  ;;  %v3553_v54 = vpop.xlane.xlu1 %3552 }
 0x96c   : > { %v9467_v42 = vmax.f32 %v9454_v40, %v3563_v46  ;;  %v9470_v53 = vmax.f32 %v9456_v23, %v3553_v54 }
 0x96e   : > { %4147 = vst.msk [vmem:[#allocation2 + $0x1d0] sm:$0xff] %vm1312_vm4, %v9467_v42  ;;  %4142 = vst.msk [vmem:[#allocation2 + $0x1a8] sm:$0xff] %vm1312_vm4, %v9470_v53  ;;  %3690 = vperm.xlu0 %5906, %v9467_v42   ;;  %3665 = vperm.xlu1 %5907, %v9470_v53  }
 0x96f   : > { %v3559_v46 = vpop.xlane.xlu0 %3558  ;;  %v3565_v54 = vpop.xlane.xlu1 %3564 }
 0x970   : > { %v9485_v44 = vmax.f32 %v9472_v60, %v3559_v46  ;;  %v3585_v17 = vmax.f32 %v9474_v59, %v3565_v54 }
 0x972   : > { %4145 = vst.msk [vmem:[#allocation2 + $0x1c0] sm:$0xff] %vm1312_vm4, %v9485_v44  ;;  %4148 = vst.msk [vmem:[#allocation2 + $0x1d8] sm:$0xff] %vm1312_vm4, %v3585_v17  ;;  %3680 = vperm.xlu0 %5906, %v9485_v44   ;;  %3695 = vperm.xlu1 %5907, %v3585_v17  }
 0x973   : > { %v3571_v43 = vpop.xlane.xlu0 %3570  ;;  %v3561_v46 = vpop.xlane.xlu1 %3560 }
 0x974   : > { %v9497_v25 = vmax.f32 %v9488_v33, %v3571_v43  ;;  %v3583_v54 = vmax.f32 %v3535_v26, %v3561_v46  ;;  %v3590_v46 = vsub.f32 %v9403_v11, %v9413_v3  ;;  %v3601_v11 = vsub.f32 %v9474_v59, %v3585_v17  ;;  %v9546_v17 = vld [vmem:[#allocation2 + $0x1f8] sm:$0xff]  ;;  %v3539_v59 = vld [vmem:[#allocation2 + $0x1e8] sm:$0xff] }
 0x976   : > { %4151 = vst.msk [vmem:[#allocation2 + $0x1f0] sm:$0xff] %vm1312_vm4, %v9497_v25  ;;  %4146 = vst.msk [vmem:[#allocation2 + $0x1c8] sm:$0xff] %vm1312_vm4, %v3583_v54  ;;  %3986 = vrot.lane.b32.xlu0 %v6233_v61, %s6621_s14  ;;  %3685 = vperm.xlu1 %5907, %v3583_v54   ;;  %v3029_v61 = vld [vmem:[#allocation4 + $0x110] sm:$0xff] }
 0x977   : > { %v3567_v50 = vpop.xlane.xlu0 %3566  ;;  %v3997_v13 = vpop.permute.xlu1 %3996 }
 0x978   : > { %v9509_v43 = vmax.f32 %v9499_v51, %v3567_v50  ;;  %5691 = vmatprep.subr.bf16.mxu0 %v3997_v13 }
 0x979   : > { %5692 = vmatpush3.bf16.msra.mxu0 %v3997_v13 }
 0x97a   : > { %4149 = vst.msk [vmem:[#allocation2 + $0x1e0] sm:$0xff] %vm1312_vm4, %v9509_v43  ;;  %3700 = vperm.xlu0 %5906, %v9509_v43   ;;  %3984 = vrot.lane.b32.xlu1 %v6234_v63, %s6621_s14  ;;  %v3606_v63 = vmul.f32 1.442695, %v3590_v46 }
 0x97c   : > { %6124 = vpow2.f32 %v3606_v63 }
 0x97e   : > { %3710 = vperm.xlu0 %5906, %v9497_v25  }
 0x97f   : > { %v3056_v33 = vpop.permute.xlu0 %3055 }
 0x980   : > { %v3125_v14 = vmul.f32 %v3056_v33, %v3029_v61  ;;  %v3593_v33 = vsub.f32 %v9405_v28, %v9416_v27  ;;  %v3599_v28 = vsub.f32 %v3535_v26, %v3583_v54 }
 0x982   : > { %v3270_v50 = vadd.f32 %v9159_v24, %v3125_v14  ;;  %3060 = vperm.xlu0 %5906, %v9229_v52   ;;  %v3612_v24 = vmul.f32 1.442695, %v3593_v33  ;;  %v3597_v14 = vsub.f32 %v9436_v62, %v9452_v30 }
 0x983   : > { %v3995_v13 = vpop.permute.xlu0 %3994 }
 0x984   : > { %3286 = vst.msk [vmem:[#allocation4 + $0x110] sm:$0xff] %vm813_vm2, %v3270_v50  ;;  %5693 = vmatprep.subr.bf16.mxu0 %v3995_v13  ;;  %6126 = vpow2.f32 %v3612_v24  ;;  %v3620_v52 = vmul.f32 1.442695, %v3597_v14  ;;  %v10559_v24 = vsub.f32 %v9420_v47, %v9432_v58 }
 0x985   : > { %5694 = vmatpush3.bf16.msra.mxu0 %v3995_v13 }
 0x986   : > { %3070 = vperm.xlu0 %5906, %v9263_v8   ;;  %v3595_v8 = vsub.f32 %v9456_v23, %v9470_v53  ;;  %6128 = vpow2.f32 %v3620_v52  ;;  %v3608_v14 = vmul.f32 1.442695, %v10559_v24 }
 0x987   : > { %v3991_v63 = vpop.permute.xlu0 %3990 }
 0x989   : > { %v9537_v3 = vpop.eup %6124 }
 0x98a   : > { %3080 = vperm.xlu0 %5906, %v9247_v2   ;;  %v3616_v2 = vmul.f32 1.442695, %v3595_v8  ;;  %v10560_v8 = vsub.f32 %v9398_v37, %v9401_v0  ;;  %v10563_v37 = vsub.f32 %v9454_v40, %v9467_v42 }
 0x98c   : > { %6130 = vpow2.f32 %v3616_v2  ;;  %v3610_v2 = vmul.f32 1.442695, %v10560_v8  ;;  %v3626_v0 = vmul.f32 1.442695, %v10563_v37 }
 0x98e   : > { %3090 = vperm.xlu0 %5906, %v9283_v41   ;;  %v3628_v41 = vmul.f32 1.442695, %v3601_v11 }
 0x990   : > { %6132 = vpow2.f32 %v3628_v41 }
 0x991   : > { %v9540_v27 = vpop.eup %6126 }
 0x992   : > { %3100 = vperm.xlu0 %5906, %v9273_v21   ;;  %v3624_v21 = vmul.f32 1.442695, %v3599_v28 }
 0x994   : > { %6134 = vpow2.f32 %v3624_v21 }
 0x996   : > { %3110 = vperm.xlu0 %5906, %v9313_v56   ;;  %v9543_v56 = vpop.eup %6128 }
 0x999   : > { %v9548_v62 = vpop.eup %6130 }
 0x99a   : > { %3120 = vperm.xlu0 %5906, %v9296_v39  }
 0x99d   : > { %v9558_v23 = vpop.eup %6132 }
 0x99e   : > { %3882 = vperm.xlu0 %5906, %v9537_v3  }
 0x9a1   : > { %v9562_v50 = vpop.eup %6134 }
 0x9a2   : > { %3897 = vperm.xlu0 %5906, %v9540_v27  }
 0x9a6   : > { %3917 = vperm.xlu0 %5906, %v9543_v56  }
 0x9a8   : > { %v3573_v39 = vpop.xlane.xlu1 %3572 }
 0x9a9   : > { %v9551_v26 = vmax.f32 %v9546_v17, %v3573_v39 }
 0x9aa   : > { %3907 = vperm.xlu0 %5906, %v9548_v62  }
 0x9ab   : > { %v3605_v53 = vsub.f32 %v9546_v17, %v9551_v26  ;;  %4152 = vst.msk [vmem:[#allocation2 + $0x1f8] sm:$0xff] %vm1312_vm4, %v9551_v26 }
 0x9ac   : > { %v3569_v30 = vpop.xlane.xlu1 %3568 }
 0x9ad   : > { %v3587_v54 = vmax.f32 %v3539_v59, %v3569_v30 }
 0x9ae   : > { %3937 = vperm.xlu0 %5906, %v9558_v23  }
 0x9af   : > { %v3603_v46 = vsub.f32 %v3539_v59, %v3587_v54  ;;  %4150 = vst.msk [vmem:[#allocation2 + $0x1e8] sm:$0xff] %vm1312_vm4, %v3587_v54  ;;  %3705 = vperm.xlu1 %5907, %v3587_v54  }
 0x9b0   : > { %v3993_v61 = vpop.permute.xlu1 %3992 }
 0x9b1   : > { %v3632_v13 = vmul.f32 1.442695, %v3603_v46  ;;  %5695 = vmatprep.subr.bf16.mxu0 %v3993_v61 }
 0x9b2   : > { %3927 = vperm.xlu0 %5906, %v9562_v50   ;;  %5696 = vmatpush3.bf16.msra.mxu0 %v3993_v61 }
 0x9b3   : > { %6136 = vpow2.f32 %v3632_v13  ;;  %3715 = vperm.xlu1 %5907, %v9551_v26   ;;  %5697 = vmatprep.subr.bf16.mxu0 %v3991_v63  ;;  %v10571_v26 = vld [vmem:[#allocation98_spill] sm:$0xff] }
 0x9b4   : > { %v3989_v33 = vpop.permute.xlu1 %3988  ;;  %6138 = vpow2.f32 %v3608_v14 }
 0x9b5   : > { %6140 = vpow2.f32 %v3610_v2 }
 0x9b6   : > { %5698 = vmatpush3.bf16.msra.mxu0 %v3991_v63 }
 0x9b7   : > { %3065 = vperm.xlu1 %5907, %v9256_v49   ;;  %5699 = vmatprep.subr.bf16.mxu0 %v3989_v33 }
 0x9ba   : > { %5700 = vmatpush3.bf16.msra.mxu0 %v3989_v33 }
 0x9bb   : > { %3075 = vperm.xlu1 %5907, %v9240_v7   ;;  %v10561_v7 = vsub.f32 %v9434_v16, %v9449_v5 }
 0x9bd   : > { %v3614_v49 = vmul.f32 1.442695, %v10561_v7 }
 0x9bf   : > { %3085 = vperm.xlu1 %5907, %v9279_v10   ;;  %v10562_v10 = vsub.f32 %v9418_v4, %v9429_v55  ;;  %6142 = vpow2.f32 %v3614_v49 }
 0x9c0   : > { %v9572_v52 = vpop.eup %6136 }
 0x9c1   : > { %3947 = vperm.xlu0 %5906, %v9572_v52   ;;  %v3618_v47 = vmul.f32 1.442695, %v10562_v10 }
 0x9c3   : > { %3095 = vperm.xlu1 %5907, %v9269_v12   ;;  %6144 = vpow2.f32 %v3618_v47  ;;  %v9590_v12 = vpop.eup %6138 }
 0x9c4   : > { %6146 = vpow2.f32 %v3626_v0  ;;  %v9596_v16 = vpop.eup %6140 }
 0x9c7   : > { %3105 = vperm.xlu1 %5907, %v9302_v34   ;;  %v10564_v34 = vsub.f32 %v9472_v60, %v9485_v44 }
 0x9c9   : > { %v3622_v58 = vmul.f32 1.442695, %v10564_v34 }
 0x9cb   : > { %3115 = vperm.xlu1 %5907, %v9288_v31   ;;  %6148 = vpow2.f32 %v3622_v58  ;;  %v10565_v31 = vsub.f32 %v9499_v51, %v9509_v43 }
 0x9cc   : > { %v9602_v42 = vpop.eup %6142 }
 0x9cd   : > { %v3630_v4 = vmul.f32 1.442695, %v10565_v31 }
 0x9cf   : > { %3887 = vperm.xlu1 %5907, %v9590_v12   ;;  %6150 = vpow2.f32 %v3630_v4 }
 0x9d0   : > { %v9605_v5 = vpop.eup %6144 }
 0x9d1   : > { %v9609_v41 = vpop.eup %6146 }
 0x9d3   : > { %3892 = vperm.xlu1 %5907, %v9596_v16  }
 0x9d7   : > { %3902 = vperm.xlu1 %5907, %v9602_v42  }
 0x9d8   : > { %v9614_v39 = vpop.eup %6148 }
 0x9d9   : > { %v3651_v55 = vpop.permute.xlu0 %3650 }
 0x9da   : > { %v3720_v44 = vsub.f32 %v9291_v35, %v3651_v55 }
 0x9db   : > { %3912 = vperm.xlu1 %5907, %v9605_v5  }
 0x9dc   : > { %v3738_v60 = vmul.f32 1.442695, %v3720_v44 }
 0x9dd   : > { %v3641_v40 = vpop.permute.xlu0 %3640  ;;  %v3656_v11 = vpop.permute.xlu1 %3655 }
 0x9de   : > { %6152 = vpow2.f32 %v3738_v60  ;;  %v3718_v51 = vsub.f32 %v9305_v19, %v3641_v40  ;;  %v3721_v43 = vsub.f32 %v9308_v15, %v3656_v11  ;;  %v9619_v19 = vpop.eup %6150 }
 0x9df   : > { %3932 = vperm.xlu1 %5907, %v9609_v41  }
 0x9e0   : > { %v3734_v59 = vmul.f32 1.442695, %v3718_v51  ;;  %v3740_v54 = vmul.f32 1.442695, %v3721_v43 }
 0x9e1   : > { %v3671_v28 = vpop.permute.xlu0 %3670  ;;  %v3646_v21 = vpop.permute.xlu1 %3645 }
 0x9e2   : > { %v3719_v35 = vsub.f32 %v9321_v38, %v3646_v21  ;;  %v3724_v30 = vsub.f32 %v9324_v22, %v3671_v28  ;;  %6154 = vpow2.f32 %v3734_v59  ;;  %v3030_v21 = vld [vmem:[#allocation4 + $0x118] sm:$0xff] }
 0x9e3   : > { %3922 = vperm.xlu1 %5907, %v9614_v39  }
 0x9e4   : > { %v3736_v46 = vmul.f32 1.442695, %v3719_v35  ;;  %v3746_v63 = vmul.f32 1.442695, %v3724_v30 }
 0x9e5   : > { %v3661_v61 = vpop.permute.xlu0 %3660  ;;  %v3676_v13 = vpop.permute.xlu1 %3675 }
 0x9e6   : > { %v3722_v15 = vsub.f32 %v9334_v29, %v3661_v61  ;;  %6156 = vpow2.f32 %v3736_v46  ;;  %v3725_v38 = vsub.f32 %v9337_v32, %v3676_v13 }
 0x9e7   : > { %3942 = vperm.xlu1 %5907, %v9619_v19   ;;  %6158 = vpow2.f32 %v3740_v54 }
 0x9e8   : > { %v3742_v24 = vmul.f32 1.442695, %v3722_v15  ;;  %6160 = vpow2.f32 %v3746_v63  ;;  %v3748_v7 = vmul.f32 1.442695, %v3725_v38  ;;  %v3032_v15 = vld [vmem:[#allocation4 + $0x128] sm:$0xff] }
 0x9e9   : > { %v3691_v33 = vpop.permute.xlu0 %3690  ;;  %v3666_v22 = vpop.permute.xlu1 %3665 }
 0x9ea   : > { %v3723_v14 = vsub.f32 %v9345_v18, %v3666_v22  ;;  %v3728_v2 = vsub.f32 %v9348_v6, %v3691_v33  ;;  %6162 = vpow2.f32 %v3742_v24 }
 0x9eb   : > { %v6153_v8 = vpop.eup %6152 }
 0x9ec   : > { %v3744_v49 = vmul.f32 1.442695, %v3723_v14  ;;  %3803 = vadd.xlane.f32.xlu0 %v6153_v8  ;;  %v3754_v37 = vmul.f32 1.442695, %v3728_v2  ;;  %v3034_v14 = vld [vmem:[#allocation4 + $0x138] sm:$0xff] }
 0x9ed   : > { %v3681_v29 = vpop.permute.xlu0 %3680  ;;  %v3696_v10 = vpop.permute.xlu1 %3695 }
 0x9ee   : > { %v3726_v47 = vsub.f32 %v9355_v1, %v3681_v29  ;;  %6164 = vpow2.f32 %v3744_v49  ;;  %v3729_v32 = vsub.f32 %v9358_v36, %v3696_v10  ;;  %v3036_v29 = vld [vmem:[#allocation4 + $0x148] sm:$0xff]  ;;  %v10566_v10 = vld [vmem:[#allocation90_spill] sm:$0xff] }
 0x9ef   : > { %6166 = vpow2.f32 %v3748_v7  ;;  %v9629_v6 = vpop.eup %6154 }
 0x9f0   : > { %v3750_v0 = vmul.f32 1.442695, %v3726_v47  ;;  %6168 = vpow2.f32 %v3754_v37  ;;  %v3756_v4 = vmul.f32 1.442695, %v3729_v32 }
 0x9f1   : > { %v3987_v34 = vpop.permute.xlu0 %3986  ;;  %v3686_v18 = vpop.permute.xlu1 %3685 }
 0x9f2   : > { %v3727_v58 = vsub.f32 %v9365_v9, %v3686_v18  ;;  %5701 = vmatprep.subr.bf16.mxu0 %v3987_v34  ;;  %6170 = vpow2.f32 %v3750_v0  ;;  %v10567_v18 = vld [vmem:[#allocation61_spill] sm:$0xff] }
 0x9f3   : > { %5702 = vmatpush3.bf16.msra.mxu0 %v3987_v34  ;;  %v6157_v31 = vpop.eup %6156 }
 0x9f4   : > { %v3752_v55 = vmul.f32 1.442695, %v3727_v58  ;;  %v9631_v44 = vpop.eup %6158  ;;  %3801 = vadd.xlane.f32.xlu0 %v6157_v31  ;;  %v3976_v36 = vpack.c.bf16 %v6157_v31, %v9629_v6 }
 0x9f5   : > { %v3701_v1 = vpop.permute.xlu0 %3700  ;;  %v3985_v60 = vpop.permute.xlu1 %3984  ;;  %v3977_v40 = vpack.c.bf16 %v9631_v44, %v6153_v8 }
 0x9f6   : > { %6172 = vpow2.f32 %v3752_v55  ;;  %5703 = vmatprep.subr.bf16.mxu0 %v3985_v60  ;;  %5705 = vmatprep.mubr.bf16.mxu0 %v3976_v36  ;;  %v6161_v9 = vpop.eup %6160  ;;  %v3730_v51 = vsub.f32 %v9372_v57, %v3701_v1  ;;  %v3040_v1 = vld [vmem:[#allocation4 + $0x168] sm:$0xff] }
 0x9f7   : > { %5704 = vmatpush3.bf16.msra.mxu0 %v3985_v60  ;;  %6174 = vpow2.f32 %v3756_v4  ;;  %v6163_v28 = vpop.eup %6162  ;;  %v10568_v60 = vld [vmem:[#allocation93_spill] sm:$0xff] }
 0x9f8   : > { %3811 = vadd.xlane.f32.xlu0 %v6161_v9  ;;  %v3758_v61 = vmul.f32 1.442695, %v3730_v51  ;;  %v10569_v51 = vld [vmem:[#allocation49_spill] sm:$0xff] }
 0x9f9   : > { %v3711_v11 = vpop.permute.xlu0 %3710 }
 0x9fa   : > { %v3732_v43 = vsub.f32 %v9368_v20, %v3711_v11  ;;  %5706 = vmatmul.mubr.bf16.vlgmr.msra.gmra.mxu0 %v3977_v40  ;;  %v3042_v40 = vld [vmem:[#allocation4 + $0x178] sm:$0xff]  ;;  %v3636_v11 = vmul.f32 1.442695, %v3605_v53 }
 0x9fb   : > { %v6165_v59 = vpop.eup %6164 }
 0x9fc   : > { %v3762_v35 = vmul.f32 1.442695, %v3732_v43  ;;  %v6167_v30 = vpop.eup %6166  ;;  %3807 = vadd.xlane.f32.xlu0 %v6163_v28  ;;  %v3978_v46 = vpack.c.bf16 %v6165_v59, %v6163_v28 }
 0x9fd   : > { %v3061_v54 = vpop.permute.xlu0 %3060  ;;  %v6169_v63 = vpop.eup %6168  ;;  %v3979_v57 = vpack.c.bf16 %v6167_v30, %v6161_v9 }
 0x9fe   : > { %6176 = vpow2.f32 %v3762_v35  ;;  %v3126_v13 = vmul.f32 %v3061_v54, %v3030_v21  ;;  %5709 = vmatprep.mubr.bf16.mxu0 %v3978_v46  ;;  %v10570_v21 = vld [vmem:[#allocation97_spill] sm:$0xff] }
 0x9ff   : > { %v6171_v33 = vpop.eup %6170  ;;  %6178 = vpow2.f32 %v3758_v61  ;;  %v10572_v61 = vld [vmem:[#allocation58_spill] sm:$0xff] }
 0xa00   : > { %v3271_v38 = vadd.f32 %v9169_v48, %v3126_v13  ;;  %3819 = vadd.xlane.f32.xlu0 %v6169_v63  ;;  %6180 = vpow2.f32 %v3636_v11 }
 0xa01   : > { %v3071_v20 = vpop.permute.xlu0 %3070 }
 0xa02   : > { %3287 = vst.msk [vmem:[#allocation4 + $0x118] sm:$0xff] %vm813_vm2, %v3271_v38  ;;  %v3128_v22 = vmul.f32 %v3071_v20, %v3032_v15  ;;  %5710 = vmatmul.mubr.bf16.gmra.mxu0 %v3979_v57  ;;  %v3033_v57 = vld [vmem:[#allocation4 + $0x130] sm:$0xff]  ;;  %v10573_v20 = vld [vmem:[#allocation96_spill] sm:$0xff] }
 0xa03   : > { %v6173_v24 = vpop.eup %6172 }
 0xa04   : > { %v3273_v8 = vadd.f32 %v9202_v45, %v3128_v22  ;;  %v3980_v2 = vpack.c.bf16 %v6173_v24, %v6171_v33  ;;  %v6175_v7 = vpop.eup %6174  ;;  %3815 = vadd.xlane.f32.xlu0 %v6171_v33  ;;  %v3038_v45 = vld [vmem:[#allocation4 + $0x158] sm:$0xff] }
 0xa05   : > { %v3081_v49 = vpop.permute.xlu0 %3080  ;;  %v3981_v37 = vpack.c.bf16 %v6175_v7, %v6169_v63 }
 0xa06   : > { %3289 = vst.msk [vmem:[#allocation4 + $0x128] sm:$0xff] %vm813_vm2, %v3273_v8  ;;  %v3130_v48 = vmul.f32 %v3081_v49, %v3034_v14  ;;  %5713 = vmatprep.mubr.bf16.mxu0 %v3980_v2  ;;  %v3035_v14 = vld [vmem:[#allocation4 + $0x140] sm:$0xff]  ;;  %v10574_v8 = vld [vmem:[#allocation94_spill] sm:$0xff] }
 0xa08   : > { %v3275_v47 = vadd.f32 %v10566_v10, %v3130_v48  ;;  %v10575_v10 = vld [vmem:[#allocation91_spill] sm:$0xff] }
 0xa09   : > { %v3091_v32 = vpop.permute.xlu0 %3090 }
 0xa0a   : > { %3291 = vst.msk [vmem:[#allocation4 + $0x138] sm:$0xff] %vm813_vm2, %v3275_v47  ;;  %v3132_v0 = vmul.f32 %v3091_v32, %v3036_v29  ;;  %5714 = vmatmul.mubr.bf16.gmra.mxu0 %v3981_v37  ;;  %v3037_v29 = vld [vmem:[#allocation4 + $0x150] sm:$0xff] }
 0xa0b   : > { %v9643_v34 = vpop.eup %6176  ;;  %3799 = vadd.xlane.f32.xlu1 %v9629_v6 }
 0xa0c   : > { %v3277_v58 = vadd.f32 %v10567_v18, %v3132_v0  ;;  %3827 = vadd.xlane.f32.xlu0 %v9643_v34  ;;  %v6179_v55 = vpop.eup %6178  ;;  %v3039_v18 = vld [vmem:[#allocation4 + $0x160] sm:$0xff] }
 0xa0d   : > { %v3101_v31 = vpop.permute.xlu0 %3100 }
 0xa0e   : > { %3293 = vst.msk [vmem:[#allocation4 + $0x148] sm:$0xff] %vm813_vm2, %v3277_v58  ;;  %v3134_v4 = vmul.f32 %v3101_v31, %v3038_v45  ;;  %v10576_v58 = vld [vmem:[#allocation92_spill] sm:$0xff] }
 0xa0f   : > { %3805 = vadd.xlane.f32.xlu1 %v9631_v44 }
 0xa10   : > { %v3279_v36 = vadd.f32 %v10568_v60, %v3134_v4  ;;  %3823 = vadd.xlane.f32.xlu0 %v6179_v55 }
 0xa11   : > { %v3111_v9 = vpop.permute.xlu0 %3110 }
 0xa12   : > { %3295 = vst.msk [vmem:[#allocation4 + $0x158] sm:$0xff] %vm813_vm2, %v3279_v36  ;;  %v3136_v6 = vmul.f32 %v3111_v9, %v3040_v1  ;;  %v10577_v36 = vld [vmem:[#allocation100_spill] sm:$0xff] }
 0xa13   : > { %3813 = vadd.xlane.f32.xlu1 %v6167_v30  ;;  %v9659_v30 = vpop.eup %6180 }
 0xa14   : > { %v3281_v43 = vadd.f32 %v10569_v51, %v3136_v6  ;;  %v3041_v6 = vld [vmem:[#allocation4 + $0x170] sm:$0xff] }
 0xa15   : > { %v3121_v28 = vpop.permute.xlu0 %3120 }
 0xa16   : > { %3297 = vst.msk [vmem:[#allocation4 + $0x168] sm:$0xff] %vm813_vm2, %v3281_v43  ;;  %v3138_v44 = vmul.f32 %v3121_v28, %v3042_v40  ;;  %v10579_v40 = vld [vmem:[#allocation95_spill] sm:$0xff] }
 0xa17   : > { %3809 = vadd.xlane.f32.xlu1 %v6165_v59  ;;  %v3031_v59 = vld [vmem:[#allocation4 + $0x120] sm:$0xff] }
 0xa18   : > { %v3283_v35 = vadd.f32 %v10570_v21, %v3138_v44  ;;  %v10580_v28 = vld [vmem:[#allocation99_spill] sm:$0xff] }
 0xa19   : > { %v9680_v44 = vpop.permute.xlu0 %3882 }
 0xa1a   : > { %3299 = vst.msk [vmem:[#allocation4 + $0x178] sm:$0xff] %vm813_vm2, %v3283_v35 }
 0xa1b   : > { %3821 = vadd.xlane.f32.xlu1 %v6175_v7 }
 0xa1d   : > { %v9682_v35 = vpop.permute.xlu0 %3897 }
 0xa1f   : > { %3817 = vadd.xlane.f32.xlu1 %v6173_v24 }
 0xa26   : > { %3957 = vperm.xlu0 %5906, %v9659_v30  }
 0xa2a   : > { %v3706_v17 = vpop.permute.xlu1 %3705 }
 0xa2b   : > { %v3731_v53 = vsub.f32 %v10571_v26, %v3706_v17 }
 0xa2d   : > { %v3760_v54 = vmul.f32 1.442695, %v3731_v53 }
 0xa2e   : > { %v3716_v46 = vpop.permute.xlu1 %3715 }
 0xa2f   : > { %6182 = vpow2.f32 %v3760_v54  ;;  %v3733_v13 = vsub.f32 %v10572_v61, %v3716_v46  ;;  %v3769_v61 = vld [vmem:[#allocation3 + $0x190] sm:$0xff] }
 0xa31   : > { %v3764_v15 = vmul.f32 1.442695, %v3733_v13 }
 0xa32   : > { %v3066_v63 = vpop.permute.xlu1 %3065 }
 0xa33   : > { %6184 = vpow2.f32 %v3764_v15  ;;  %v3127_v38 = vmul.f32 %v3066_v63, %v3031_v59  ;;  %v3785_v59 = vmul.f32 %v9596_v16, %v3769_v61  ;;  %v3771_v16 = vld [vmem:[#allocation3 + $0x1a0] sm:$0xff] }
 0xa35   : > { %v3272_v33 = vadd.f32 %v10573_v20, %v3127_v38 }
 0xa36   : > { %v3076_v22 = vpop.permute.xlu1 %3075 }
 0xa37   : > { %3288 = vst.msk [vmem:[#allocation4 + $0x120] sm:$0xff] %vm813_vm2, %v3272_v33  ;;  %v3129_v24 = vmul.f32 %v3076_v22, %v3033_v57  ;;  %v3768_v57 = vld [vmem:[#allocation3 + $0x188] sm:$0xff] }
 0xa38   : > { %v3784_v20 = vmul.f32 %v9590_v12, %v3768_v57  ;;  %v3777_v12 = vld [vmem:[#allocation3 + $0x1d0] sm:$0xff]  ;;  %v3778_v57 = vld [vmem:[#allocation3 + $0x1d8] sm:$0xff] }
 0xa39   : > { %v3274_v2 = vadd.f32 %v10574_v8, %v3129_v24  ;;  %v3773_v24 = vld [vmem:[#allocation3 + $0x1b0] sm:$0xff] }
 0xa3a   : > { %v3086_v7 = vpop.permute.xlu1 %3085  ;;  %v3789_v8 = vmul.f32 %v9605_v5, %v3773_v24  ;;  %v3775_v5 = vld [vmem:[#allocation3 + $0x1c0] sm:$0xff]  ;;  %v3776_v24 = vld [vmem:[#allocation3 + $0x1c8] sm:$0xff] }
 0xa3b   : > { %3290 = vst.msk [vmem:[#allocation4 + $0x130] sm:$0xff] %vm813_vm2, %v3274_v2  ;;  %v3131_v49 = vmul.f32 %v3086_v7, %v3035_v14 }
 0xa3c   : > { %v6183_v48 = vpop.eup %6182 }
 0xa3d   : > { %v3276_v47 = vadd.f32 %v10575_v10, %v3131_v49  ;;  %v3982_v37 = vpack.c.bf16 %v6183_v48, %v6179_v55  ;;  %v10578_v55 = vsub.f32 %v10577_v36, %v9497_v25  ;;  %v9684_v25 = vpop.permute.xlu0 %3917  ;;  %v3770_v36 = vld [vmem:[#allocation3 + $0x198] sm:$0xff] }
 0xa3e   : > { %v3096_v32 = vpop.permute.xlu1 %3095 }
 0xa3f   : > { %3292 = vst.msk [vmem:[#allocation4 + $0x140] sm:$0xff] %vm813_vm2, %v3276_v47  ;;  %v3133_v0 = vmul.f32 %v3096_v32, %v3037_v29  ;;  %5717 = vmatprep.mubr.bf16.mxu0 %v3982_v37  ;;  %v3634_v9 = vmul.f32 1.442695, %v10578_v55  ;;  %v3793_v47 = vmul.f32 %v9609_v41, %v3777_v12 }
 0xa40   : > { %v6185_v45 = vpop.eup %6184 }
 0xa41   : > { %v3278_v31 = vadd.f32 %v10576_v58, %v3133_v0  ;;  %3829 = vadd.xlane.f32.xlu1 %v6185_v45  ;;  %v3983_v4 = vpack.c.bf16 %v6185_v45, %v9643_v34  ;;  %6186 = vpow2.f32 %v3634_v9  ;;  %v9686_v17 = vpop.permute.xlu0 %3907  ;;  %v3791_v45 = vmul.f32 %v9614_v39, %v3775_v5  ;;  %v3870_v5 = vld [vmem:[#allocation4 + $0x1b0] sm:$0xff] }
 0xa42   : > { %v3106_v1 = vpop.permute.xlu1 %3105  ;;  %v3786_v39 = vmul.f32 %v9540_v27, %v3770_v36 }
 0xa43   : > { %3294 = vst.msk [vmem:[#allocation4 + $0x150] sm:$0xff] %vm813_vm2, %v3278_v31  ;;  %v3135_v60 = vmul.f32 %v3106_v1, %v3039_v18  ;;  %5718 = vmatmul.mubr.bf16.gmra.mxu0 %v3983_v4  ;;  %v3781_v4 = vld [vmem:[#allocation3 + $0x1f0] sm:$0xff] }
 0xa45   : > { %v3280_v11 = vadd.f32 %v10579_v40, %v3135_v60  ;;  %3825 = vadd.xlane.f32.xlu1 %v6183_v48  ;;  %v9688_v26 = vpop.permute.xlu0 %3937  ;;  %v3787_v48 = vmul.f32 %v9602_v42, %v3771_v16  ;;  %v3767_v42 = vld [vmem:[#allocation3 + $0x180] sm:$0xff]  ;;  %v3866_v16 = vld [vmem:[#allocation4 + $0x190] sm:$0xff] }
 0xa46   : > { %v3116_v51 = vpop.permute.xlu1 %3115  ;;  %v3783_v1 = vmul.f32 %v9537_v3, %v3767_v42 }
 0xa47   : > { %3296 = vst.msk [vmem:[#allocation4 + $0x160] sm:$0xff] %vm813_vm2, %v3280_v11  ;;  %v3137_v43 = vmul.f32 %v3116_v51, %v3041_v6  ;;  %v3779_v6 = vld [vmem:[#allocation3 + $0x1e0] sm:$0xff] }
 0xa48   : > { %v3795_v51 = vmul.f32 %v9619_v19, %v3779_v6 }
 0xa49   : > { %v3282_v34 = vadd.f32 %v10580_v28, %v3137_v43  ;;  %v9692_v54 = vpop.permute.xlu0 %3927  ;;  %v3774_v43 = vld [vmem:[#allocation3 + $0x1b8] sm:$0xff] }
 0xa4a   : > { %v9690_v53 = vpop.permute.xlu1 %3887 }
 0xa4b   : > { %3298 = vst.msk [vmem:[#allocation4 + $0x170] sm:$0xff] %vm813_vm2, %v3282_v34 }
 0xa4d   : > { %v9694_v46 = vpop.permute.xlu0 %3947 }
 0xa4e   : > { %v6187_v21 = vpop.eup %6186  ;;  %v9696_v13 = vpop.permute.xlu1 %3892 }
 0xa4f   : > { %v3797_v60 = vmul.f32 %v6187_v21, %v3781_v4  ;;  %v3871_v4 = vld [vmem:[#allocation4 + $0x1b8] sm:$0xff] }
 0xa52   : > { %v9699_v38 = vpop.permute.xlu1 %3902 }
 0xa56   : > { %3952 = vperm.xlu1 %5907, %v6187_v21   ;;  %v9703_v33 = vpop.permute.xlu1 %3912  ;;  %v3790_v21 = vmul.f32 %v9543_v56, %v3774_v43  ;;  %v3792_v56 = vmul.f32 %v9562_v50, %v3776_v24 }
 0xa57   : > { %v3966_v42 = vmul.f32 %v9703_v33, %v3870_v5  ;;  %v3782_v33 = vld [vmem:[#allocation3 + $0x1f8] sm:$0xff] }
 0xa5a   : > { %v9707_v49 = vpop.permute.xlu1 %3932 }
 0xa5e   : > { %v9713_v37 = vpop.permute.xlu1 %3922 }
 0xa62   : > { %v9717_v31 = vpop.permute.xlu1 %3942 }
 0xa75   : > { %v3804_v15 = vpop.xlane.xlu0 %3803 }
 0xa76   : > { %v3833_v63 = vadd.f32 %v3804_v15, %v3785_v59  ;;  %v3772_v59 = vld [vmem:[#allocation3 + $0x1a8] sm:$0xff] }
 0xa77   : > { %v3788_v27 = vmul.f32 %v9548_v62, %v3772_v59  ;;  %v3864_v62 = vld [vmem:[#allocation4 + $0x180] sm:$0xff] }
 0xa78   : > { %3849 = vst.msk [vmem:[#allocation3 + $0x190] sm:$0xff] %vm1312_vm4, %v3833_v63  ;;  %v3960_v12 = vmul.f32 %v9680_v44, %v3864_v62 }
 0xa7d   : > { %v3802_v22 = vpop.xlane.xlu0 %3801 }
 0xa7e   : > { %v3832_v14 = vadd.f32 %v3802_v22, %v3784_v20  ;;  %v3794_v20 = vmul.f32 %v9558_v23, %v3778_v57 }
 0xa80   : > { %3848 = vst.msk [vmem:[#allocation3 + $0x188] sm:$0xff] %vm1312_vm4, %v3832_v14 }
 0xa81   : > { %v3812_v2 = vpop.xlane.xlu0 %3811 }
 0xa82   : > { %v3837_v7 = vadd.f32 %v3812_v2, %v3789_v8 }
 0xa84   : > { %3853 = vst.msk [vmem:[#allocation3 + $0x1b0] sm:$0xff] %vm1312_vm4, %v3837_v7  ;;  %v3962_v7 = vmul.f32 %v9696_v13, %v3866_v16  ;;  %v3868_v13 = vld [vmem:[#allocation4 + $0x1a0] sm:$0xff] }
 0xa85   : > { %v3808_v29 = vpop.xlane.xlu0 %3807 }
 0xa86   : > { %v3835_v10 = vadd.f32 %v3808_v29, %v3787_v48  ;;  %v3867_v48 = vld [vmem:[#allocation4 + $0x198] sm:$0xff] }
 0xa88   : > { %3851 = vst.msk [vmem:[#allocation3 + $0x1a0] sm:$0xff] %vm1312_vm4, %v3835_v10  ;;  %v3865_v10 = vld [vmem:[#allocation4 + $0x188] sm:$0xff] }
 0xa89   : > { %v3820_v32 = vpop.xlane.xlu0 %3819 }
 0xa8a   : > { %v3841_v0 = vadd.f32 %v3820_v32, %v3793_v47  ;;  %v3963_v32 = vmul.f32 %v9682_v35, %v3867_v48  ;;  %v3964_v35 = vmul.f32 %v9699_v38, %v3868_v13  ;;  %v3877_v48 = vld [vmem:[#allocation4 + $0x1e8] sm:$0xff] }
 0xa8c   : > { %3857 = vst.msk [vmem:[#allocation3 + $0x1d0] sm:$0xff] %vm1312_vm4, %v3841_v0 }
 0xa8d   : > { %v3816_v18 = vpop.xlane.xlu0 %3815 }
 0xa8e   : > { %v3839_v58 = vadd.f32 %v3816_v18, %v3791_v45  ;;  %v3961_v45 = vmul.f32 %v9690_v53, %v3865_v10  ;;  %v3967_v53 = vmul.f32 %v9684_v25, %v3871_v4  ;;  %v3798_v25 = vmul.f32 %v9659_v30, %v3782_v33 }
 0xa90   : > { %3855 = vst.msk [vmem:[#allocation3 + $0x1c0] sm:$0xff] %vm1312_vm4, %v3839_v58 }
 0xa94   : > { %v3800_v41 = vpop.xlane.xlu1 %3799 }
 0xa95   : > { %v3831_v55 = vadd.f32 %v3800_v41, %v3783_v1  ;;  %v3828_v9 = vpop.xlane.xlu0 %3827 }
 0xa96   : > { %v3845_v40 = vadd.f32 %v3828_v9, %v3797_v60  ;;  %v3869_v60 = vld [vmem:[#allocation4 + $0x1a8] sm:$0xff]  ;;  %v3874_v9 = vld [vmem:[#allocation4 + $0x1d0] sm:$0xff] }
 0xa97   : > { %3847 = vst.msk [vmem:[#allocation3 + $0x180] sm:$0xff] %vm1312_vm4, %v3831_v55 }
 0xa98   : > { %3861 = vst.msk [vmem:[#allocation3 + $0x1f0] sm:$0xff] %vm1312_vm4, %v3845_v40  ;;  %v3806_v11 = vpop.xlane.xlu1 %3805  ;;  %v3965_v40 = vmul.f32 %v9686_v17, %v3869_v60 }
 0xa99   : > { %v3834_v28 = vadd.f32 %v3806_v11, %v3786_v39  ;;  %v3824_v34 = vpop.xlane.xlu0 %3823  ;;  %v3872_v11 = vld [vmem:[#allocation4 + $0x1c0] sm:$0xff] }
 0xa9a   : > { %v3843_v3 = vadd.f32 %v3824_v34, %v3795_v51  ;;  %v3970_v51 = vmul.f32 %v9707_v49, %v3874_v9 }
 0xa9b   : > { %3850 = vst.msk [vmem:[#allocation3 + $0x198] sm:$0xff] %vm1312_vm4, %v3834_v28  ;;  %v3875_v28 = vld [vmem:[#allocation4 + $0x1d8] sm:$0xff] }
 0xa9c   : > { %3859 = vst.msk [vmem:[#allocation3 + $0x1e0] sm:$0xff] %vm1312_vm4, %v3843_v3  ;;  %v3814_v61 = vpop.xlane.xlu1 %3813 }
 0xa9d   : > { %v3838_v15 = vadd.f32 %v3814_v61, %v3790_v21  ;;  %v3780_v21 = vld [vmem:[#allocation3 + $0x1e8] sm:$0xff]  ;;  %v3968_v61 = vmul.f32 %v9713_v37, %v3872_v11 }
 0xa9e   : > { %v3796_v30 = vmul.f32 %v9572_v52, %v3780_v21 }
 0xa9f   : > { %3854 = vst.msk [vmem:[#allocation3 + $0x1b8] sm:$0xff] %vm1312_vm4, %v3838_v15  ;;  %v3873_v15 = vld [vmem:[#allocation4 + $0x1c8] sm:$0xff] }
 0xaa0   : > { %v3810_v63 = vpop.xlane.xlu1 %3809 }
 0xaa1   : > { %v3836_v19 = vadd.f32 %v3810_v63, %v3788_v27  ;;  %v3971_v63 = vmul.f32 %v9688_v26, %v3875_v28  ;;  %v3958_v16 = vpop.permute.xlu0 %3957 }
 0xaa3   : > { %3852 = vst.msk [vmem:[#allocation3 + $0x1a8] sm:$0xff] %vm1312_vm4, %v3836_v19 }
 0xaa4   : > { %v3822_v22 = vpop.xlane.xlu1 %3821 }
 0xaa5   : > { %v3842_v14 = vadd.f32 %v3822_v22, %v3794_v20  ;;  %v3969_v20 = vmul.f32 %v9692_v54, %v3873_v15 }
 0xaa7   : > { %3858 = vst.msk [vmem:[#allocation3 + $0x1d8] sm:$0xff] %vm1312_vm4, %v3842_v14  ;;  %v3878_v14 = vld [vmem:[#allocation4 + $0x1f0] sm:$0xff] }
 0xaa8   : > { %v3818_v8 = vpop.xlane.xlu1 %3817 }
 0xaa9   : > { %v3840_v2 = vadd.f32 %v3818_v8, %v3792_v56  ;;  %v3876_v8 = vld [vmem:[#allocation4 + $0x1e0] sm:$0xff] }
 0xaaa   : > { %v3972_v54 = vmul.f32 %v9717_v31, %v3876_v8 }
 0xaab   : > { %3856 = vst.msk [vmem:[#allocation3 + $0x1c8] sm:$0xff] %vm1312_vm4, %v3840_v2  ;;  %v3879_v2 = vld [vmem:[#allocation4 + $0x1f8] sm:$0xff] }
 0xaba   : > { %v5707_v29 = vpop.f32.mrf.mxu0 }
 0xabb   : > { %v4107_v23 = vadd.f32 %v5707_v29, %v3962_v7 }
 0xabc   : > { %v4042_v47 = vpop.f32.mrf.mxu0 }
 0xabd   : > { %4123 = vst.msk [vmem:[#allocation4 + $0x190] sm:$0xff] %vm813_vm2, %v4107_v23  ;;  %v4105_v50 = vadd.f32 %v4042_v47, %v3960_v12  ;;  %v3975_v12 = vmul.f32 %v3958_v16, %v3879_v2  ;;  %v3973_v47 = vmul.f32 %v9694_v46, %v3877_v48 }
 0xabe   : > { %v5708_v0 = vpop.f32.mrf.mxu0 }
 0xabf   : > { %4121 = vst.msk [vmem:[#allocation4 + $0x180] sm:$0xff] %vm813_vm2, %v4105_v50  ;;  %v4108_v18 = vadd.f32 %v5708_v0, %v3963_v32 }
 0xac0   : > { %v4045_v58 = vpop.f32.mrf.mxu0 }
 0xac1   : > { %4124 = vst.msk [vmem:[#allocation4 + $0x198] sm:$0xff] %vm813_vm2, %v4108_v18  ;;  %v4106_v44 = vadd.f32 %v4045_v58, %v3961_v45 }
 0xac2   : > { %v5711_v1 = vpop.f32.mrf.mxu0 }
 0xac3   : > { %4122 = vst.msk [vmem:[#allocation4 + $0x188] sm:$0xff] %vm813_vm2, %v4106_v44  ;;  %v4111_v41 = vadd.f32 %v5711_v1, %v3966_v42 }
 0xac4   : > { %v4058_v36 = vpop.f32.mrf.mxu0 }
 0xac5   : > { %4127 = vst.msk [vmem:[#allocation4 + $0x1b0] sm:$0xff] %vm813_vm2, %v4111_v41  ;;  %v4109_v55 = vadd.f32 %v4058_v36, %v3964_v35 }
 0xac6   : > { %v5712_v6 = vpop.f32.mrf.mxu0 }
 0xac7   : > { %4125 = vst.msk [vmem:[#allocation4 + $0x1a0] sm:$0xff] %vm813_vm2, %v4109_v55  ;;  %v4112_v39 = vadd.f32 %v5712_v6, %v3967_v53 }
 0xac8   : > { %v4061_v38 = vpop.f32.mrf.mxu0 }
 0xac9   : > { %4128 = vst.msk [vmem:[#allocation4 + $0x1b8] sm:$0xff] %vm813_vm2, %v4112_v39  ;;  %v4110_v43 = vadd.f32 %v4061_v38, %v3965_v40 }
 0xaca   : > { %v5715_v34 = vpop.f32.mrf.mxu0  ;;  %v3830_v3 = vpop.xlane.xlu1 %3829 }
 0xacb   : > { %4126 = vst.msk [vmem:[#allocation4 + $0x1a8] sm:$0xff] %vm813_vm2, %v4110_v43  ;;  %v4115_v17 = vadd.f32 %v5715_v34, %v3970_v51  ;;  %v3846_v59 = vadd.f32 %v3830_v3, %v3798_v25 }
 0xacc   : > { %v4074_v27 = vpop.f32.mrf.mxu0 }
 0xacd   : > { %4131 = vst.msk [vmem:[#allocation4 + $0x1d0] sm:$0xff] %vm813_vm2, %v4115_v17  ;;  %v4113_v49 = vadd.f32 %v4074_v27, %v3968_v61 }
 0xace   : > { %3862 = vst.msk [vmem:[#allocation3 + $0x1f8] sm:$0xff] %vm1312_vm4, %v3846_v59  ;;  %v5716_v57 = vpop.f32.mrf.mxu0  ;;  %v3826_v19 = vpop.xlane.xlu1 %3825 }
 0xacf   : > { %4129 = vst.msk [vmem:[#allocation4 + $0x1c0] sm:$0xff] %vm813_vm2, %v4113_v49  ;;  %v4116_v37 = vadd.f32 %v5716_v57, %v3971_v63  ;;  %v3844_v22 = vadd.f32 %v3826_v19, %v3796_v30 }
 0xad0   : > { %v4077_v24 = vpop.f32.mrf.mxu0 }
 0xad1   : > { %4132 = vst.msk [vmem:[#allocation4 + $0x1d8] sm:$0xff] %vm813_vm2, %v4116_v37  ;;  %v4114_v26 = vadd.f32 %v4077_v24, %v3969_v20 }
 0xad2   : > { %3860 = vst.msk [vmem:[#allocation3 + $0x1e8] sm:$0xff] %vm1312_vm4, %v3844_v22  ;;  %v3953_v56 = vpop.permute.xlu1 %3952 }
 0xad3   : > { %4130 = vst.msk [vmem:[#allocation4 + $0x1c8] sm:$0xff] %vm813_vm2, %v4114_v26  ;;  %v3974_v52 = vmul.f32 %v3953_v56, %v3878_v14 }
 0xb03   : > { %v5719_v62 = vpop.f32.mrf.mxu0 }
 0xb04   : > { %v4119_v7 = vadd.f32 %v5719_v62, %v3974_v52 }
 0xb05   : > { %v4090_v29 = vpop.f32.mrf.mxu0 }
 0xb06   : > { %4135 = vst.msk [vmem:[#allocation4 + $0x1f0] sm:$0xff] %vm813_vm2, %v4119_v7  ;;  %v4117_v23 = vadd.f32 %v4090_v29, %v3972_v54 }
 0xb07   : > { %v5720_v10 = vpop.f32.mrf.mxu0 }
 0xb08   : > { %4133 = vst.msk [vmem:[#allocation4 + $0x1e0] sm:$0xff] %vm813_vm2, %v4117_v23  ;;  %v4120_v32 = vadd.f32 %v5720_v10, %v3975_v12 }
 0xb09   : > { %v4093_v50 = vpop.f32.mrf.mxu0 }
 0xb0a   : > { %4136 = vst.msk [vmem:[#allocation4 + $0x1f8] sm:$0xff] %vm813_vm2, %v4120_v32  ;;  %v4118_v5 = vadd.f32 %v4093_v50, %v3973_v47 }
 0xb0c   : > { %4134 = vst.msk [vmem:[#allocation4 + $0x1e8] sm:$0xff] %vm813_vm2, %v4118_v5 }
 0xb0d PF: > { %s10581_s12 = sld [smem:[#allocation21_spill]] }
 0xb13   : > { %p5312_p0 = scmp.ne.s32.totalorder %s10581_s12, 1 }
 0xb14   : > { %s6623_s21 = smov (!%p5312_p0), 32   ;;  %s6624_s28 = smov (!%p5312_p0), 64  }
 0xb15   : > { %4156 = sbr.rel (%p5312_p0) target bundleno = 3229 (0xc9d), region = 68  ;;  %s6625_s7 = smov (!%p5312_p0), 96  }
 0xb1a   : > { %v4159_v31 = vld [vmem:[#allocation3 + $0x10] sm:$0xff]  ;;  %v4157_v0 = vld [vmem:[#allocation3] sm:$0xff]  ;;  %v4160_v45 = vld [vmem:[#allocation3 + $0x18] sm:$0xff]  ;;  %v6622_v18 = vmov 0   ;;  %vm4907_vm2 = vcmask 261120   ;;  %vm4932_vm5 = vcmask 523264  }
 0xb1b   : > { %6236 = vset.pattern.permute.xlu1 %v6622_v18  ;;  %6235 = vset.pattern.permute.xlu0 %v6622_v18  ;;  %6237 = vrcp.f32 %v4159_v31  ;;  %v4158_v46 = vld [vmem:[#allocation3 + $0x8] sm:$0xff]  ;;  %v4161_v58 = vld [vmem:[#allocation3 + $0x20] sm:$0xff]  ;;  %v4164_v42 = vld [vmem:[#allocation3 + $0x38] sm:$0xff]  ;;  %vm4949_vm6 = vcmask 785408  }
 0xb1c   : > { %6239 = vrcp.f32 %v4157_v0  ;;  %v4162_v13 = vld [vmem:[#allocation3 + $0x28] sm:$0xff]  ;;  %v4163_v44 = vld [vmem:[#allocation3 + $0x30] sm:$0xff]  ;;  %v4165_v1 = vld [vmem:[#allocation3 + $0x40] sm:$0xff] }
 0xb1d   : > { %6241 = vrcp.f32 %v4160_v45  ;;  %v4166_v4 = vld [vmem:[#allocation3 + $0x48] sm:$0xff]  ;;  %v4168_v36 = vld [vmem:[#allocation3 + $0x58] sm:$0xff]  ;;  %v4167_v55 = vld [vmem:[#allocation3 + $0x50] sm:$0xff] }
 0xb1e   : > { %6243 = vrcp.f32 %v4158_v46  ;;  %v4170_v6 = vld [vmem:[#allocation3 + $0x68] sm:$0xff]  ;;  %v4169_v40 = vld [vmem:[#allocation3 + $0x60] sm:$0xff]  ;;  %v4172_v11 = vld [vmem:[#allocation3 + $0x78] sm:$0xff] }
 0xb1f   : > { %6245 = vrcp.f32 %v4162_v13  ;;  %v4171_v51 = vld [vmem:[#allocation3 + $0x70] sm:$0xff]  ;;  %v4327_v25 = vld [vmem:[#allocation3 + $0x88] sm:$0xff]  ;;  %v4326_v34 = vld [vmem:[#allocation3 + $0x80] sm:$0xff] }
 0xb20   : > { %6247 = vrcp.f32 %v4161_v58  ;;  %v4329_v21 = vld [vmem:[#allocation3 + $0x98] sm:$0xff]  ;;  %v4328_v17 = vld [vmem:[#allocation3 + $0x90] sm:$0xff]  ;;  %v4331_v15 = vld [vmem:[#allocation3 + $0xa8] sm:$0xff] }
 0xb21   : > { %6249 = vrcp.f32 %v4164_v42  ;;  %v4330_v63 = vld [vmem:[#allocation3 + $0xa0] sm:$0xff]  ;;  %v4333_v30 = vld [vmem:[#allocation3 + $0xb8] sm:$0xff]  ;;  %v4332_v19 = vld [vmem:[#allocation3 + $0xb0] sm:$0xff] }
 0xb22   : > { %6251 = vrcp.f32 %v4163_v44  ;;  %v4335_v37 = vld [vmem:[#allocation3 + $0xc8] sm:$0xff]  ;;  %v4334_v24 = vld [vmem:[#allocation3 + $0xc0] sm:$0xff]  ;;  %v4337_v14 = vld [vmem:[#allocation3 + $0xd8] sm:$0xff] }
 0xb23   : > { %6253 = vrcp.f32 %v4166_v4  ;;  %v4336_v8 = vld [vmem:[#allocation3 + $0xd0] sm:$0xff]  ;;  %v4339_v2 = vld [vmem:[#allocation3 + $0xe8] sm:$0xff]  ;;  %v4338_v62 = vld [vmem:[#allocation3 + $0xe0] sm:$0xff] }
 0xb24   : > { %6255 = vrcp.f32 %v4165_v1  ;;  %v4341_v7 = vld [vmem:[#allocation3 + $0xf8] sm:$0xff]  ;;  %v4340_v29 = vld [vmem:[#allocation3 + $0xf0] sm:$0xff]  ;;  %v4497_v23 = vld [vmem:[#allocation3 + $0x108] sm:$0xff] }
 0xb25   : > { %6257 = vrcp.f32 %v4168_v36  ;;  %v4496_v47 = vld [vmem:[#allocation3 + $0x100] sm:$0xff]  ;;  %v4499_v50 = vld [vmem:[#allocation3 + $0x118] sm:$0xff]  ;;  %v4498_v31 = vld [vmem:[#allocation3 + $0x110] sm:$0xff] }
 0xb26   : > { %6259 = vrcp.f32 %v4167_v55  ;;  %v4501_v45 = vld [vmem:[#allocation3 + $0x128] sm:$0xff]  ;;  %v4500_v46 = vld [vmem:[#allocation3 + $0x120] sm:$0xff]  ;;  %v4503_v58 = vld [vmem:[#allocation3 + $0x138] sm:$0xff] }
 0xb27   : > { %6261 = vrcp.f32 %v4170_v6  ;;  %v4502_v44 = vld [vmem:[#allocation3 + $0x130] sm:$0xff]  ;;  %v4505_v1 = vld [vmem:[#allocation3 + $0x148] sm:$0xff]  ;;  %v4507_v36 = vld [vmem:[#allocation3 + $0x158] sm:$0xff] }
 0xb28   : > { %v6238_v35 = vpop.eup %6237  ;;  %6263 = vrcp.f32 %v4169_v40  ;;  %v4506_v55 = vld [vmem:[#allocation3 + $0x150] sm:$0xff]  ;;  %v4509_v6 = vld [vmem:[#allocation3 + $0x168] sm:$0xff]  ;;  %v4508_v40 = vld [vmem:[#allocation3 + $0x160] sm:$0xff] }
 0xb29   : > { %v6240_v41 = vpop.eup %6239  ;;  %4233 = vperm.xlu1 %6236, %v6238_v35   ;;  %6265 = vrcp.f32 %v4172_v11  ;;  %v4511_v11 = vld [vmem:[#allocation3 + $0x178] sm:$0xff] }
 0xb2a   : > { %v6242_v60 = vpop.eup %6241  ;;  %4223 = vperm.xlu0 %6235, %v6240_v41   ;;  %6267 = vrcp.f32 %v4171_v51  ;;  %v4504_v41 = vld [vmem:[#allocation3 + $0x140] sm:$0xff]  ;;  %v4510_v51 = vld [vmem:[#allocation3 + $0x170] sm:$0xff] }
 0xb2b   : > { %v6244_v53 = vpop.eup %6243  ;;  %6269 = vrcp.f32 %v4327_v25  ;;  %v4667_v25 = vld [vmem:[#allocation3 + $0x188] sm:$0xff] }
 0xb2c   : > { %v6246_v9 = vpop.eup %6245  ;;  %6271 = vrcp.f32 %v4326_v34  ;;  %v4666_v34 = vld [vmem:[#allocation3 + $0x180] sm:$0xff] }
 0xb2d   : > { %4238 = vperm.xlu1 %6236, %v6242_v60   ;;  %v6248_v33 = vpop.eup %6247  ;;  %6273 = vrcp.f32 %v4329_v21  ;;  %v4669_v21 = vld [vmem:[#allocation3 + $0x198] sm:$0xff] }
 0xb2e   : > { %4228 = vperm.xlu0 %6235, %v6244_v53   ;;  %v6250_v39 = vpop.eup %6249  ;;  %6275 = vrcp.f32 %v4328_v17  ;;  %v4668_v17 = vld [vmem:[#allocation3 + $0x190] sm:$0xff] }
 0xb2f   : > { %v6252_v38 = vpop.eup %6251  ;;  %6277 = vrcp.f32 %v4331_v15  ;;  %v4671_v15 = vld [vmem:[#allocation3 + $0x1a8] sm:$0xff] }
 0xb30   : > { %v6254_v43 = vpop.eup %6253  ;;  %6279 = vrcp.f32 %v4330_v63  ;;  %v4670_v63 = vld [vmem:[#allocation3 + $0x1a0] sm:$0xff] }
 0xb31   : > { %4248 = vperm.xlu1 %6236, %v6246_v9   ;;  %v6256_v28 = vpop.eup %6255  ;;  %6281 = vrcp.f32 %v4333_v30  ;;  %v4673_v30 = vld [vmem:[#allocation3 + $0x1b8] sm:$0xff] }
 0xb32   : > { %4243 = vperm.xlu0 %6235, %v6248_v33   ;;  %v6258_v3 = vpop.eup %6257  ;;  %6283 = vrcp.f32 %v4332_v19  ;;  %v4672_v19 = vld [vmem:[#allocation3 + $0x1b0] sm:$0xff] }
 0xb33   : > { %v6260_v61 = vpop.eup %6259  ;;  %6285 = vrcp.f32 %v4335_v37  ;;  %v4675_v37 = vld [vmem:[#allocation3 + $0x1c8] sm:$0xff] }
 0xb34   : > { %v6262_v59 = vpop.eup %6261  ;;  %6287 = vrcp.f32 %v4334_v24  ;;  %v4674_v24 = vld [vmem:[#allocation3 + $0x1c0] sm:$0xff] }
 0xb35   : > { %4258 = vperm.xlu1 %6236, %v6250_v39   ;;  %v6264_v27 = vpop.eup %6263  ;;  %6289 = vrcp.f32 %v4337_v14  ;;  %v4677_v14 = vld [vmem:[#allocation3 + $0x1d8] sm:$0xff] }
 0xb36   : > { %4253 = vperm.xlu0 %6235, %v6252_v38   ;;  %v6266_v49 = vpop.eup %6265  ;;  %6291 = vrcp.f32 %v4336_v8  ;;  %v4676_v8 = vld [vmem:[#allocation3 + $0x1d0] sm:$0xff] }
 0xb37   : > { %v6268_v57 = vpop.eup %6267  ;;  %6293 = vrcp.f32 %v4339_v2  ;;  %v4679_v2 = vld [vmem:[#allocation3 + $0x1e8] sm:$0xff] }
 0xb38   : > { %v6270_v20 = vpop.eup %6269  ;;  %6295 = vrcp.f32 %v4338_v62  ;;  %v4678_v62 = vld [vmem:[#allocation3 + $0x1e0] sm:$0xff] }
 0xb39   : > { %4268 = vperm.xlu1 %6236, %v6254_v43   ;;  %v6272_v22 = vpop.eup %6271  ;;  %6297 = vrcp.f32 %v4341_v7  ;;  %v4681_v7 = vld [vmem:[#allocation3 + $0x1f8] sm:$0xff] }
 0xb3a   : > { %4263 = vperm.xlu0 %6235, %v6256_v28   ;;  %v6274_v26 = vpop.eup %6273  ;;  %6299 = vrcp.f32 %v4340_v29  ;;  %v4680_v29 = vld [vmem:[#allocation3 + $0x1f0] sm:$0xff] }
 0xb3b   : > { %v6276_v56 = vpop.eup %6275  ;;  %6301 = vrcp.f32 %v4497_v23 }
 0xb3c   : > { %v6278_v52 = vpop.eup %6277  ;;  %6303 = vrcp.f32 %v4496_v47 }
 0xb3d   : > { %4278 = vperm.xlu1 %6236, %v6258_v3   ;;  %v6280_v16 = vpop.eup %6279  ;;  %6305 = vrcp.f32 %v4499_v50 }
 0xb3e   : > { %4273 = vperm.xlu0 %6235, %v6260_v61   ;;  %v6282_v54 = vpop.eup %6281  ;;  %6307 = vrcp.f32 %v4498_v31 }
 0xb3f   : > { %v6284_v48 = vpop.eup %6283  ;;  %6309 = vrcp.f32 %v4501_v45 }
 0xb40   : > { %v6286_v12 = vpop.eup %6285  ;;  %6311 = vrcp.f32 %v4500_v46  ;;  %v4208_v46 = vld [vmem:[#allocation4 + $0x18] sm:$0xff] }
 0xb41   : > { %4288 = vperm.xlu1 %6236, %v6262_v59   ;;  %v6288_v10 = vpop.eup %6287  ;;  %6313 = vrcp.f32 %v4503_v58  ;;  %v4206_v58 = vld [vmem:[#allocation4 + $0x8] sm:$0xff] }
 0xb42   : > { %4283 = vperm.xlu0 %6235, %v6264_v27   ;;  %v6290_v32 = vpop.eup %6289  ;;  %6315 = vrcp.f32 %v4502_v44 }
 0xb43   : > { %v6292_v5 = vpop.eup %6291  ;;  %6317 = vrcp.f32 %v4505_v1 }
 0xb44   : > { %v6294_v0 = vpop.eup %6293  ;;  %6319 = vrcp.f32 %v4504_v41 }
 0xb45   : > { %4298 = vperm.xlu1 %6236, %v6266_v49   ;;  %v6296_v18 = vpop.eup %6295  ;;  %6321 = vrcp.f32 %v4507_v36 }
 0xb46   : > { %4293 = vperm.xlu0 %6235, %v6268_v57   ;;  %v6298_v13 = vpop.eup %6297  ;;  %6323 = vrcp.f32 %v4506_v55 }
 0xb47   : > { %v6300_v42 = vpop.eup %6299  ;;  %6325 = vrcp.f32 %v4509_v6 }
 0xb48   : > { %v6302_v4 = vpop.eup %6301  ;;  %6327 = vrcp.f32 %v4508_v40 }
 0xb49   : > { %4398 = vperm.xlu1 %6236, %v6270_v20   ;;  %v6304_v35 = vpop.eup %6303  ;;  %6329 = vrcp.f32 %v4511_v11  ;;  %v4211_v11 = vld [vmem:[#allocation4 + $0x30] sm:$0xff] }
 0xb4a   : > { %4393 = vperm.xlu0 %6235, %v6272_v22   ;;  %v6306_v60 = vpop.eup %6305  ;;  %6331 = vrcp.f32 %v4510_v51 }
 0xb4b   : > { %v6308_v53 = vpop.eup %6307  ;;  %6333 = vrcp.f32 %v4667_v25 }
 0xb4c   : > { %v6310_v9 = vpop.eup %6309  ;;  %6335 = vrcp.f32 %v4666_v34  ;;  %v4214_v34 = vld [vmem:[#allocation4 + $0x48] sm:$0xff] }
 0xb4d   : > { %4408 = vperm.xlu1 %6236, %v6274_v26   ;;  %v6312_v33 = vpop.eup %6311  ;;  %6337 = vrcp.f32 %v4669_v21 }
 0xb4e   : > { %4403 = vperm.xlu0 %6235, %v6276_v56   ;;  %v6314_v39 = vpop.eup %6313  ;;  %6339 = vrcp.f32 %v4668_v17 }
 0xb4f   : > { %v6316_v38 = vpop.eup %6315  ;;  %6341 = vrcp.f32 %v4671_v15 }
 0xb50   : > { %v6318_v43 = vpop.eup %6317  ;;  %6343 = vrcp.f32 %v4670_v63  ;;  %v4215_v63 = vld [vmem:[#allocation4 + $0x50] sm:$0xff] }
 0xb51   : > { %4418 = vperm.xlu1 %6236, %v6278_v52   ;;  %v6320_v28 = vpop.eup %6319  ;;  %6345 = vrcp.f32 %v4673_v30 }
 0xb52   : > { %4413 = vperm.xlu0 %6235, %v6280_v16   ;;  %v6322_v3 = vpop.eup %6321  ;;  %6347 = vrcp.f32 %v4672_v19 }
 0xb53   : > { %v6324_v61 = vpop.eup %6323  ;;  %6349 = vrcp.f32 %v4675_v37  ;;  %v4218_v37 = vld [vmem:[#allocation4 + $0x68] sm:$0xff] }
 0xb54   : > { %v6326_v59 = vpop.eup %6325  ;;  %6351 = vrcp.f32 %v4674_v24 }
 0xb55   : > { %4428 = vperm.xlu1 %6236, %v6282_v54   ;;  %v6328_v27 = vpop.eup %6327  ;;  %6353 = vrcp.f32 %v4677_v14 }
 0xb56   : > { %4423 = vperm.xlu0 %6235, %v6284_v48   ;;  %v6330_v49 = vpop.eup %6329  ;;  %6355 = vrcp.f32 %v4676_v8 }
 0xb57   : > { %v6332_v57 = vpop.eup %6331  ;;  %6357 = vrcp.f32 %v4679_v2  ;;  %v4219_v2 = vld [vmem:[#allocation4 + $0x70] sm:$0xff] }
 0xb58   : > { %v6334_v20 = vpop.eup %6333  ;;  %6359 = vrcp.f32 %v4678_v62 }
 0xb59   : > { %4438 = vperm.xlu1 %6236, %v6286_v12   ;;  %v6336_v22 = vpop.eup %6335  ;;  %6361 = vrcp.f32 %v4681_v7 }
 0xb5a   : > { %4433 = vperm.xlu0 %6235, %v6288_v10   ;;  %v6338_v26 = vpop.eup %6337  ;;  %6363 = vrcp.f32 %v4680_v29  ;;  %v4376_v29 = vld [vmem:[#allocation4 + $0x88] sm:$0xff] }
 0xb5b   : > { %v6340_v56 = vpop.eup %6339 }
 0xb5c   : > { %v6342_v52 = vpop.eup %6341 }
 0xb5d   : > { %4448 = vperm.xlu1 %6236, %v6290_v32   ;;  %v6344_v16 = vpop.eup %6343 }
 0xb5e   : > { %4443 = vperm.xlu0 %6235, %v6292_v5   ;;  %v6346_v54 = vpop.eup %6345 }
 0xb5f   : > { %v6348_v48 = vpop.eup %6347 }
 0xb60   : > { %v6350_v12 = vpop.eup %6349 }
 0xb61   : > { %4458 = vperm.xlu1 %6236, %v6294_v0   ;;  %v6352_v23 = vpop.eup %6351 }
 0xb62   : > { %4453 = vperm.xlu0 %6235, %v6296_v18   ;;  %v6354_v10 = vpop.eup %6353  ;;  %v4207_v18 = vld [vmem:[#allocation4 + $0x10] sm:$0xff] }
 0xb63   : > { %v6356_v47 = vpop.eup %6355 }
 0xb64   : > { %v6358_v32 = vpop.eup %6357 }
 0xb65   : > { %4468 = vperm.xlu1 %6236, %v6298_v13   ;;  %v6360_v50 = vpop.eup %6359  ;;  %v4205_v13 = vld [vmem:[#allocation4] sm:$0xff] }
 0xb66   : > { %4463 = vperm.xlu0 %6235, %v6300_v42   ;;  %v6362_v5 = vpop.eup %6361 }
 0xb67   : > { %v6364_v31 = vpop.eup %6363 }
 0xb69   : > { %4568 = vperm.xlu1 %6236, %v6302_v4  }
 0xb6a   : > { %4563 = vperm.xlu0 %6235, %v6304_v35  }
 0xb6d   : > { %4578 = vperm.xlu1 %6236, %v6306_v60   ;;  %v4210_v60 = vld [vmem:[#allocation4 + $0x28] sm:$0xff] }
 0xb6e   : > { %4573 = vperm.xlu0 %6235, %v6308_v53   ;;  %v4209_v53 = vld [vmem:[#allocation4 + $0x20] sm:$0xff] }
 0xb71   : > { %4588 = vperm.xlu1 %6236, %v6310_v9  }
 0xb72   : > { %4583 = vperm.xlu0 %6235, %v6312_v33  }
 0xb75   : > { %4598 = vperm.xlu1 %6236, %v6314_v39   ;;  %v4212_v39 = vld [vmem:[#allocation4 + $0x38] sm:$0xff] }
 0xb76   : > { %4593 = vperm.xlu0 %6235, %v6316_v38  }
 0xb79   : > { %4608 = vperm.xlu1 %6236, %v6318_v43  }
 0xb7a   : > { %4603 = vperm.xlu0 %6235, %v6320_v28  }
 0xb7d   : > { %4618 = vperm.xlu1 %6236, %v6322_v3   ;;  %v4213_v3 = vld [vmem:[#allocation4 + $0x40] sm:$0xff] }
 0xb7e   : > { %4613 = vperm.xlu0 %6235, %v6324_v61  }
 0xb81   : > { %4628 = vperm.xlu1 %6236, %v6326_v59  }
 0xb82   : > { %4623 = vperm.xlu0 %6235, %v6328_v27   ;;  %v4216_v27 = vld [vmem:[#allocation4 + $0x58] sm:$0xff] }
 0xb85   : > { %4638 = vperm.xlu1 %6236, %v6330_v49  }
 0xb86   : > { %4633 = vperm.xlu0 %6235, %v6332_v57  }
 0xb89   : > { %4738 = vperm.xlu1 %6236, %v6334_v20  }
 0xb8a   : > { %4733 = vperm.xlu0 %6235, %v6336_v22   ;;  %v4217_v22 = vld [vmem:[#allocation4 + $0x60] sm:$0xff] }
 0xb8d   : > { %4748 = vperm.xlu1 %6236, %v6338_v26  }
 0xb8e   : > { %4743 = vperm.xlu0 %6235, %v6340_v56  }
 0xb91   : > { %4758 = vperm.xlu1 %6236, %v6342_v52   ;;  %v4220_v52 = vld [vmem:[#allocation4 + $0x78] sm:$0xff] }
 0xb92   : > { %4753 = vperm.xlu0 %6235, %v6344_v16  }
 0xb95   : > { %4768 = vperm.xlu1 %6236, %v6346_v54  }
 0xb96   : > { %4763 = vperm.xlu0 %6235, %v6348_v48  }
 0xb99   : > { %4778 = vperm.xlu1 %6236, %v6350_v12   ;;  %v4375_v12 = vld [vmem:[#allocation4 + $0x80] sm:$0xff] }
 0xb9a   : > { %4773 = vperm.xlu0 %6235, %v6352_v23  }
 0xb9d   : > { %4788 = vperm.xlu1 %6236, %v6354_v10  }
 0xb9e   : > { %4783 = vperm.xlu0 %6235, %v6356_v47  }
 0xba1   : > { %4798 = vperm.xlu1 %6236, %v6358_v32  }
 0xba2   : > { %4793 = vperm.xlu0 %6235, %v6360_v50  }
 0xba4   : > { %v4234_v0 = vpop.permute.xlu1 %4233 }
 0xba5   : > { %v4224_v45 = vpop.permute.xlu0 %4223  ;;  %4808 = vperm.xlu1 %6236, %v6362_v5   ;;  %v9770_v44 = vmul.f32 %v4234_v0, %v4207_v18  ;;  %v4378_v5 = vld [vmem:[#allocation4 + $0x98] sm:$0xff] }
 0xba6   : > { %4803 = vperm.xlu0 %6235, %v6364_v31   ;;  %v9774_v35 = vmul.f32 %v4224_v45, %v4205_v13  ;;  %v4377_v31 = vld [vmem:[#allocation4 + $0x90] sm:$0xff] }
 0xba8   : > { %v4239_v42 = vpop.permute.xlu1 %4238 }
 0xba9   : > { %v9772_v4 = vmul.f32 %v4239_v42, %v4208_v46  ;;  %v4229_v1 = vpop.permute.xlu0 %4228  ;;  %v4379_v42 = vld [vmem:[#allocation4 + $0xa0] sm:$0xff] }
 0xbaa   : > { %v9776_v41 = vmul.f32 %v4229_v1, %v4206_v58  ;;  %v4380_v58 = vld [vmem:[#allocation4 + $0xa8] sm:$0xff] }
 0xbab   : > { %v4318_v36 = vpack.c.bf16 %v9772_v4, %v9770_v44 }
 0xbac   : > { %v4317_v55 = vpack.c.bf16 %v9776_v41, %v9774_v35  ;;  %v4249_v9 = vpop.permute.xlu1 %4248 }
 0xbad   : > { %v9782_v6 = vmul.f32 %v4249_v9, %v4210_v60  ;;  %v4244_v33 = vpop.permute.xlu0 %4243 }
 0xbae   : > { %v9784_v40 = vmul.f32 %v4244_v33, %v4209_v53 }
 0xbb0   : > { %v4319_v38 = vpack.c.bf16 %v9782_v6, %v9784_v40  ;;  %v4259_v51 = vpop.permute.xlu1 %4258 }
 0xbb1   : > { %v9788_v43 = vmul.f32 %v4259_v51, %v4212_v39  ;;  %v4254_v25 = vpop.permute.xlu0 %4253  ;;  %v4382_v39 = vld [vmem:[#allocation4 + $0xb8] sm:$0xff] }
 0xbb2   : > { %v9790_v28 = vmul.f32 %v4254_v25, %v4211_v11  ;;  %v4381_v11 = vld [vmem:[#allocation4 + $0xb0] sm:$0xff] }
 0xbb4   : > { %v4320_v21 = vpack.c.bf16 %v9788_v43, %v9790_v28  ;;  %v4269_v61 = vpop.permute.xlu1 %4268 }
 0xbb5   : > { %v9794_v17 = vmul.f32 %v4269_v61, %v4214_v34  ;;  %v4264_v59 = vpop.permute.xlu0 %4263 }
 0xbb6   : > { %v9796_v15 = vmul.f32 %v4264_v59, %v4213_v3  ;;  %v4384_v59 = vld [vmem:[#allocation4 + $0xc8] sm:$0xff] }
 0xbb8   : > { %v4321_v49 = vpack.c.bf16 %v9794_v17, %v9796_v15  ;;  %v4279_v30 = vpop.permute.xlu1 %4278 }
 0xbb9   : > { %v9800_v57 = vmul.f32 %v4279_v30, %v4216_v27  ;;  %v4274_v19 = vpop.permute.xlu0 %4273  ;;  %v4383_v27 = vld [vmem:[#allocation4 + $0xc0] sm:$0xff] }
 0xbba   : > { %v9802_v20 = vmul.f32 %v4274_v19, %v4215_v63 }
 0xbbc   : > { %v4322_v24 = vpack.c.bf16 %v9800_v57, %v9802_v20  ;;  %v4289_v26 = vpop.permute.xlu1 %4288 }
 0xbbd   : > { %v9806_v14 = vmul.f32 %v4289_v26, %v4218_v37  ;;  %v4284_v56 = vpop.permute.xlu0 %4283  ;;  %v4386_v26 = vld [vmem:[#allocation4 + $0xd8] sm:$0xff] }
 0xbbe   : > { %v9808_v8 = vmul.f32 %v4284_v56, %v4217_v22  ;;  %v4385_v56 = vld [vmem:[#allocation4 + $0xd0] sm:$0xff] }
 0xbc0   : > { %v4323_v16 = vpack.c.bf16 %v9806_v14, %v9808_v8  ;;  %v4299_v62 = vpop.permute.xlu1 %4298 }
 0xbc1   : > { %v9812_v54 = vmul.f32 %v4299_v62, %v4220_v52  ;;  %v4294_v7 = vpop.permute.xlu0 %4293 }
 0xbc2   : > { %v9814_v48 = vmul.f32 %v4294_v7, %v4219_v2 }
 0xbc4   : > { %v4324_v23 = vpack.c.bf16 %v9812_v54, %v9814_v48  ;;  %v4399_v10 = vpop.permute.xlu1 %4398 }
 0xbc5   : > { %v4472_v47 = vmul.f32 %v4399_v10, %v4376_v29  ;;  %v4394_v32 = vpop.permute.xlu0 %4393  ;;  %v4387_v10 = vld [vmem:[#allocation4 + $0xe0] sm:$0xff] }
 0xbc6   : > { %v4471_v50 = vmul.f32 %v4394_v32, %v4375_v12  ;;  %v4388_v12 = vld [vmem:[#allocation4 + $0xe8] sm:$0xff] }
 0xbc8   : > { %v4487_v0 = vpack.c.bf16 %v4472_v47, %v4471_v50  ;;  %v4409_v45 = vpop.permute.xlu1 %4408 }
 0xbc9   : > { %v4474_v18 = vmul.f32 %v4409_v45, %v4378_v5  ;;  %v4404_v46 = vpop.permute.xlu0 %4403  ;;  %v4389_v45 = vld [vmem:[#allocation4 + $0xf0] sm:$0xff] }
 0xbca   : > { %v4473_v13 = vmul.f32 %v4404_v46, %v4377_v31  ;;  %4843 = vrot.lane.b32.xlu0 %v4487_v0, %s6623_s21  ;;  %v4390_v0 = vld [vmem:[#allocation4 + $0xf8] sm:$0xff] }
 0xbcc   : > { %v4488_v1 = vpack.c.bf16 %v4474_v18, %v4473_v13  ;;  %v4419_v60 = vpop.permute.xlu1 %4418 }
 0xbcd   : > { %v4476_v53 = vmul.f32 %v4419_v60, %v4380_v58  ;;  %v4414_v9 = vpop.permute.xlu0 %4413  ;;  %v4545_v60 = vld [vmem:[#allocation4 + $0x100] sm:$0xff] }
 0xbce   : > { %v4475_v33 = vmul.f32 %v4414_v9, %v4379_v42  ;;  %4845 = vrot.lane.b32.xlu1 %v4488_v1, %s6623_s21  ;;  %v4546_v1 = vld [vmem:[#allocation4 + $0x108] sm:$0xff] }
 0xbd0   : > { %v4489_v51 = vpack.c.bf16 %v4476_v53, %v4475_v33  ;;  %v4429_v25 = vpop.permute.xlu1 %4428 }
 0xbd1   : > { %v4478_v34 = vmul.f32 %v4429_v25, %v4382_v39  ;;  %v4424_v3 = vpop.permute.xlu0 %4423  ;;  %v4547_v25 = vld [vmem:[#allocation4 + $0x110] sm:$0xff] }
 0xbd2   : > { %v4477_v61 = vmul.f32 %v4424_v3, %v4381_v11  ;;  %4847 = vrot.lane.b32.xlu0 %v4489_v51, %s6623_s21  ;;  %v4548_v51 = vld [vmem:[#allocation4 + $0x118] sm:$0xff] }
 0xbd4   : > { %v4490_v63 = vpack.c.bf16 %v4478_v34, %v4477_v61  ;;  %v4439_v30 = vpop.permute.xlu1 %4438 }
 0xbd5   : > { %v4480_v19 = vmul.f32 %v4439_v30, %v4384_v59  ;;  %v4434_v37 = vpop.permute.xlu0 %4433  ;;  %v4549_v30 = vld [vmem:[#allocation4 + $0x120] sm:$0xff] }
 0xbd6   : > { %v4479_v22 = vmul.f32 %v4434_v37, %v4383_v27  ;;  %4849 = vrot.lane.b32.xlu1 %v4490_v63, %s6623_s21  ;;  %v4550_v63 = vld [vmem:[#allocation4 + $0x128] sm:$0xff] }
 0xbd8   : > { %v4491_v52 = vpack.c.bf16 %v4480_v19, %v4479_v22  ;;  %v4449_v2 = vpop.permute.xlu1 %4448 }
 0xbd9   : > { %v4482_v62 = vmul.f32 %v4449_v2, %v4386_v26  ;;  %v4444_v7 = vpop.permute.xlu0 %4443  ;;  %v4551_v2 = vld [vmem:[#allocation4 + $0x130] sm:$0xff] }
 0xbda   : > { %v4481_v29 = vmul.f32 %v4444_v7, %v4385_v56  ;;  %4851 = vrot.lane.b32.xlu0 %v4491_v52, %s6623_s21  ;;  %v4552_v52 = vld [vmem:[#allocation4 + $0x138] sm:$0xff] }
 0xbdc   : > { %v4492_v47 = vpack.c.bf16 %v4482_v62, %v4481_v29  ;;  %v4459_v32 = vpop.permute.xlu1 %4458 }
 0xbdd   : > { %v4484_v50 = vmul.f32 %v4459_v32, %v4388_v12  ;;  %v4454_v5 = vpop.permute.xlu0 %4453  ;;  %v4553_v32 = vld [vmem:[#allocation4 + $0x140] sm:$0xff] }
 0xbde   : > { %v4483_v31 = vmul.f32 %v4454_v5, %v4387_v10  ;;  %4853 = vrot.lane.b32.xlu1 %v4492_v47, %s6623_s21  ;;  %v4554_v47 = vld [vmem:[#allocation4 + $0x148] sm:$0xff] }
 0xbe0   : > { %v4493_v18 = vpack.c.bf16 %v4484_v50, %v4483_v31  ;;  %v4469_v46 = vpop.permute.xlu1 %4468 }
 0xbe1   : > { %v4486_v13 = vmul.f32 %v4469_v46, %v4390_v0  ;;  %v4464_v58 = vpop.permute.xlu0 %4463  ;;  %v4555_v46 = vld [vmem:[#allocation4 + $0x150] sm:$0xff] }
 0xbe2   : > { %v4485_v42 = vmul.f32 %v4464_v58, %v4389_v45  ;;  %4855 = vrot.lane.b32.xlu0 %v4493_v18, %s6623_s21  ;;  %v4556_v18 = vld [vmem:[#allocation4 + $0x158] sm:$0xff] }
 0xbe4   : > { %v4494_v53 = vpack.c.bf16 %v4486_v13, %v4485_v42  ;;  %v4569_v9 = vpop.permute.xlu1 %4568 }
 0xbe5   : > { %v4642_v33 = vmul.f32 %v4569_v9, %v4546_v1  ;;  %v4564_v39 = vpop.permute.xlu0 %4563  ;;  %v4557_v9 = vld [vmem:[#allocation4 + $0x160] sm:$0xff] }
 0xbe6   : > { %v4641_v11 = vmul.f32 %v4564_v39, %v4545_v60  ;;  %4857 = vrot.lane.b32.xlu1 %v4494_v53, %s6623_s21  ;;  %v4558_v53 = vld [vmem:[#allocation4 + $0x168] sm:$0xff] }
 0xbe8   : > { %v4657_v34 = vpack.c.bf16 %v4642_v33, %v4641_v11  ;;  %v4579_v3 = vpop.permute.xlu1 %4578 }
 0xbe9   : > { %v4644_v61 = vmul.f32 %v4579_v3, %v4548_v51  ;;  %v4574_v59 = vpop.permute.xlu0 %4573  ;;  %v4559_v3 = vld [vmem:[#allocation4 + $0x170] sm:$0xff] }
 0xbea   : > { %v4643_v27 = vmul.f32 %v4574_v59, %v4547_v25  ;;  %4867 = vrot.lane.b32.xlu0 %v4657_v34, %s6624_s28  ;;  %v4560_v34 = vld [vmem:[#allocation4 + $0x178] sm:$0xff] }
 0xbec   : > { %v4658_v19 = vpack.c.bf16 %v4644_v61, %v4643_v27  ;;  %v4589_v37 = vpop.permute.xlu1 %4588 }
 0xbed   : > { %v4646_v22 = vmul.f32 %v4589_v37, %v4550_v63  ;;  %v4584_v26 = vpop.permute.xlu0 %4583  ;;  %v4715_v37 = vld [vmem:[#allocation4 + $0x180] sm:$0xff] }
 0xbee   : > { %v4645_v56 = vmul.f32 %v4584_v26, %v4549_v30  ;;  %4869 = vrot.lane.b32.xlu1 %v4658_v19, %s6624_s28  ;;  %v4716_v19 = vld [vmem:[#allocation4 + $0x188] sm:$0xff] }
 0xbf0   : > { %v4659_v62 = vpack.c.bf16 %v4646_v22, %v4645_v56  ;;  %v4599_v7 = vpop.permute.xlu1 %4598 }
 0xbf1   : > { %v4648_v29 = vmul.f32 %v4599_v7, %v4552_v52  ;;  %v4594_v12 = vpop.permute.xlu0 %4593  ;;  %v4717_v7 = vld [vmem:[#allocation4 + $0x190] sm:$0xff] }
 0xbf2   : > { %v4647_v10 = vmul.f32 %v4594_v12, %v4551_v2  ;;  %4871 = vrot.lane.b32.xlu0 %v4659_v62, %s6624_s28  ;;  %v4718_v62 = vld [vmem:[#allocation4 + $0x198] sm:$0xff] }
 0xbf4   : > { %v4660_v50 = vpack.c.bf16 %v4648_v29, %v4647_v10  ;;  %v4609_v5 = vpop.permute.xlu1 %4608 }
 0xbf5   : > { %v4650_v31 = vmul.f32 %v4609_v5, %v4554_v47  ;;  %v4604_v0 = vpop.permute.xlu0 %4603  ;;  %v4719_v5 = vld [vmem:[#allocation4 + $0x1a0] sm:$0xff] }
 0xbf6   : > { %v4649_v45 = vmul.f32 %v4604_v0, %v4553_v32  ;;  %4873 = vrot.lane.b32.xlu1 %v4660_v50, %s6624_s28  ;;  %v4720_v50 = vld [vmem:[#allocation4 + $0x1a8] sm:$0xff] }
 0xbf8   : > { %v4661_v13 = vpack.c.bf16 %v4650_v31, %v4649_v45  ;;  %v4619_v58 = vpop.permute.xlu1 %4618 }
 0xbf9   : > { %v4652_v42 = vmul.f32 %v4619_v58, %v4556_v18  ;;  %v4614_v1 = vpop.permute.xlu0 %4613  ;;  %v4721_v58 = vld [vmem:[#allocation4 + $0x1b0] sm:$0xff] }
 0xbfa   : > { %v4651_v60 = vmul.f32 %v4614_v1, %v4555_v46  ;;  %4875 = vrot.lane.b32.xlu0 %v4661_v13, %s6624_s28  ;;  %v4722_v13 = vld [vmem:[#allocation4 + $0x1b8] sm:$0xff] }
 0xbfc   : > { %v4662_v33 = vpack.c.bf16 %v4652_v42, %v4651_v60  ;;  %v4629_v39 = vpop.permute.xlu1 %4628 }
 0xbfd   : > { %v4654_v11 = vmul.f32 %v4629_v39, %v4558_v53  ;;  %v4624_v51 = vpop.permute.xlu0 %4623  ;;  %v4723_v39 = vld [vmem:[#allocation4 + $0x1c0] sm:$0xff] }
 0xbfe   : > { %v4653_v25 = vmul.f32 %v4624_v51, %v4557_v9  ;;  %4877 = vrot.lane.b32.xlu1 %v4662_v33, %s6624_s28  ;;  %v4724_v33 = vld [vmem:[#allocation4 + $0x1c8] sm:$0xff] }
 0xc00   : > { %v4663_v61 = vpack.c.bf16 %v4654_v11, %v4653_v25  ;;  %v4639_v59 = vpop.permute.xlu1 %4638 }
 0xc01   : > { %v4656_v27 = vmul.f32 %v4639_v59, %v4560_v34  ;;  %v4634_v63 = vpop.permute.xlu0 %4633  ;;  %v4725_v59 = vld [vmem:[#allocation4 + $0x1d0] sm:$0xff] }
 0xc02   : > { %v4655_v30 = vmul.f32 %v4634_v63, %v4559_v3  ;;  %4879 = vrot.lane.b32.xlu0 %v4663_v61, %s6624_s28  ;;  %v4726_v61 = vld [vmem:[#allocation4 + $0x1d8] sm:$0xff] }
 0xc04   : > { %v4664_v22 = vpack.c.bf16 %v4656_v27, %v4655_v30  ;;  %v4739_v26 = vpop.permute.xlu1 %4738 }
 0xc05   : > { %v4812_v56 = vmul.f32 %v4739_v26, %v4716_v19  ;;  %v4734_v52 = vpop.permute.xlu0 %4733  ;;  %v4727_v26 = vld [vmem:[#allocation4 + $0x1e0] sm:$0xff] }
 0xc06   : > { %v4811_v2 = vmul.f32 %v4734_v52, %v4715_v37  ;;  %4881 = vrot.lane.b32.xlu1 %v4664_v22, %s6624_s28  ;;  %v4728_v22 = vld [vmem:[#allocation4 + $0x1e8] sm:$0xff] }
 0xc08   : > { %v4827_v29 = vpack.c.bf16 %v4812_v56, %v4811_v2  ;;  %v4749_v12 = vpop.permute.xlu1 %4748 }
 0xc09   : > { %v4814_v10 = vmul.f32 %v4749_v12, %v4718_v62  ;;  %v4744_v47 = vpop.permute.xlu0 %4743  ;;  %v4729_v12 = vld [vmem:[#allocation4 + $0x1f0] sm:$0xff] }
 0xc0a   : > { %v4813_v32 = vmul.f32 %v4744_v47, %v4717_v7  ;;  %4891 = vrot.lane.b32.xlu0 %v4827_v29, %s6625_s7  ;;  %v4730_v29 = vld [vmem:[#allocation4 + $0x1f8] sm:$0xff] }
 0xc0c   : > { %v4828_v31 = vpack.c.bf16 %v4814_v10, %v4813_v32  ;;  %v4759_v0 = vpop.permute.xlu1 %4758 }
 0xc0d   : > { %v4816_v45 = vmul.f32 %v4759_v0, %v4720_v50  ;;  %v4754_v18 = vpop.permute.xlu0 %4753 }
 0xc0e   : > { %v4815_v46 = vmul.f32 %v4754_v18, %v4719_v5  ;;  %4893 = vrot.lane.b32.xlu1 %v4828_v31, %s6625_s7 }
 0xc10   : > { %v4829_v42 = vpack.c.bf16 %v4816_v45, %v4815_v46  ;;  %v4769_v1 = vpop.permute.xlu1 %4768 }
 0xc11   : > { %v4818_v60 = vmul.f32 %v4769_v1, %v4722_v13  ;;  %v4764_v53 = vpop.permute.xlu0 %4763 }
 0xc12   : > { %v4817_v9 = vmul.f32 %v4764_v53, %v4721_v58  ;;  %4895 = vrot.lane.b32.xlu0 %v4829_v42, %s6625_s7 }
 0xc14   : > { %v4830_v11 = vpack.c.bf16 %v4818_v60, %v4817_v9  ;;  %v4779_v51 = vpop.permute.xlu1 %4778 }
 0xc15   : > { %v4820_v25 = vmul.f32 %v4779_v51, %v4724_v33  ;;  %v4774_v34 = vpop.permute.xlu0 %4773 }
 0xc16   : > { %v4819_v3 = vmul.f32 %v4774_v34, %v4723_v39  ;;  %4897 = vrot.lane.b32.xlu1 %v4830_v11, %s6625_s7 }
 0xc18   : > { %v4831_v27 = vpack.c.bf16 %v4820_v25, %v4819_v3  ;;  %v4789_v63 = vpop.permute.xlu1 %4788 }
 0xc19   : > { %v4822_v30 = vmul.f32 %v4789_v63, %v4726_v61  ;;  %v4784_v19 = vpop.permute.xlu0 %4783 }
 0xc1a   : > { %v4821_v37 = vmul.f32 %v4784_v19, %v4725_v59  ;;  %4899 = vrot.lane.b32.xlu0 %v4831_v27, %s6625_s7 }
 0xc1c   : > { %v4832_v56 = vpack.c.bf16 %v4822_v30, %v4821_v37  ;;  %v4799_v52 = vpop.permute.xlu1 %4798 }
 0xc1d   : > { %v4824_v2 = vmul.f32 %v4799_v52, %v4728_v22  ;;  %v4794_v62 = vpop.permute.xlu0 %4793 }
 0xc1e   : > { %v4823_v7 = vmul.f32 %v4794_v62, %v4727_v26  ;;  %4901 = vrot.lane.b32.xlu1 %v4832_v56, %s6625_s7 }
 0xc20   : > { %v4833_v10 = vpack.c.bf16 %v4824_v2, %v4823_v7  ;;  %v4809_v47 = vpop.permute.xlu1 %4808 }
 0xc21   : > { %v4826_v32 = vmul.f32 %v4809_v47, %v4730_v29  ;;  %v4804_v50 = vpop.permute.xlu0 %4803 }
 0xc22   : > { %v4825_v5 = vmul.f32 %v4804_v50, %v4729_v12  ;;  %4903 = vrot.lane.b32.xlu0 %v4833_v10, %s6625_s7 }
 0xc24   : > { %v4834_v31 = vpack.c.bf16 %v4826_v32, %v4825_v5 }
 0xc26   : > { %4905 = vrot.lane.b32.xlu1 %v4834_v31, %s6625_s7 }
 0xc3c   : > { %v4844_v0 = vpop.permute.xlu0 %4843 }
 0xc3d   : > { %v4910_v25 = vsel %vm4907_vm2, %v4317_v55, %v4844_v0 }
 0xc40   : > { %v4846_v45 = vpop.permute.xlu1 %4845 }
 0xc41   : > { %v4913_v30 = vsel %vm4907_vm2, %v4318_v36, %v4846_v45 }
 0xc44   : > { %v4848_v18 = vpop.permute.xlu0 %4847 }
 0xc45   : > { %v4916_v22 = vsel %vm4907_vm2, %v4319_v38, %v4848_v18 }
 0xc48   : > { %v4850_v46 = vpop.permute.xlu1 %4849 }
 0xc49   : > { %v4919_v52 = vsel %vm4907_vm2, %v4320_v21, %v4850_v46 }
 0xc4c   : > { %v4852_v13 = vpop.permute.xlu0 %4851 }
 0xc4d   : > { %v4922_v7 = vsel %vm4907_vm2, %v4321_v49, %v4852_v13 }
 0xc50   : > { %v4854_v58 = vpop.permute.xlu1 %4853 }
 0xc51   : > { %v4925_v10 = vsel %vm4907_vm2, %v4322_v24, %v4854_v58 }
 0xc54   : > { %v4856_v42 = vpop.permute.xlu0 %4855 }
 0xc55   : > { %v4928_v50 = vsel %vm4907_vm2, %v4323_v16, %v4856_v42 }
 0xc58   : > { %v9842_v1 = vpop.permute.xlu1 %4857 }
 0xc59   : > { %v4931_v0 = vsel %vm4907_vm2, %v4324_v23, %v9842_v1 }
 0xc5c   : > { %v4868_v60 = vpop.permute.xlu0 %4867 }
 0xc5d   : > { %v4934_v34 = vsel %vm4932_vm5, %v4910_v25, %v4868_v60 }
 0xc60   : > { %v4870_v53 = vpop.permute.xlu1 %4869 }
 0xc61   : > { %v4936_v19 = vsel %vm4932_vm5, %v4913_v30, %v4870_v53 }
 0xc64   : > { %v4872_v9 = vpop.permute.xlu0 %4871 }
 0xc65   : > { %v4938_v44 = vsel %vm4932_vm5, %v4916_v22, %v4872_v9 }
 0xc68   : > { %v4874_v33 = vpop.permute.xlu1 %4873 }
 0xc69   : > { %v4940_v6 = vsel %vm4932_vm5, %v4919_v52, %v4874_v33 }
 0xc6c   : > { %v4876_v39 = vpop.permute.xlu0 %4875 }
 0xc6d   : > { %v4942_v43 = vsel %vm4932_vm5, %v4922_v7, %v4876_v39 }
 0xc70   : > { %v4878_v11 = vpop.permute.xlu1 %4877 }
 0xc71   : > { %v4944_v17 = vsel %vm4932_vm5, %v4925_v10, %v4878_v11 }
 0xc74   : > { %v4880_v51 = vpop.permute.xlu0 %4879 }
 0xc75   : > { %v4946_v57 = vsel %vm4932_vm5, %v4928_v50, %v4880_v51 }
 0xc78   : > { %v4882_v3 = vpop.permute.xlu1 %4881 }
 0xc79   : > { %v4948_v14 = vsel %vm4932_vm5, %v4931_v0, %v4882_v3 }
 0xc7c   : > { %v4892_v61 = vpop.permute.xlu0 %4891 }
 0xc7d   : > { %v4951_v59 = vsel %vm4949_vm6, %v4934_v34, %v4892_v61 }
 0xc7e   : > { %v5313_v27 = vcombine.low %v4951_v59, %v4951_v59  ;;  %v5314_v63 = vcombine.high %v4951_v59, %v4951_v59 }
 0xc80   : > { %5022 = vst [vmem:[%s6960_s18] sm:$0xf] %v5313_v27  ;;  %5023 = vst [vmem:[%s6960_s18 + $0x4] sm:$0xf] %v5314_v63  ;;  %v4894_v35 = vpop.permute.xlu1 %4893 }
 0xc81   : > { %v4953_v41 = vsel %vm4949_vm6, %v4936_v19, %v4894_v35 }
 0xc82   : > { %v5315_v55 = vcombine.low %v4953_v41, %v4953_v41  ;;  %v5316_v37 = vcombine.high %v4953_v41, %v4953_v41 }
 0xc84   : > { %5024 = vst [vmem:[%s6960_s18 + $0x8] sm:$0xf] %v5315_v55  ;;  %5025 = vst [vmem:[%s6960_s18 + $0xc] sm:$0xf] %v5316_v37  ;;  %v4896_v4 = vpop.permute.xlu0 %4895 }
 0xc85   : > { %v4955_v36 = vsel %vm4949_vm6, %v4938_v44, %v4896_v4 }
 0xc86   : > { %v5317_v26 = vcombine.low %v4955_v36, %v4955_v36  ;;  %v5318_v56 = vcombine.high %v4955_v36, %v4955_v36 }
 0xc88   : > { %5026 = vst [vmem:[%s6960_s18 + $0x10] sm:$0xf] %v5317_v26  ;;  %5027 = vst [vmem:[%s6960_s18 + $0x14] sm:$0xf] %v5318_v56  ;;  %v4898_v40 = vpop.permute.xlu1 %4897 }
 0xc89   : > { %v4957_v38 = vsel %vm4949_vm6, %v4940_v6, %v4898_v40 }
 0xc8a   : > { %v5319_v2 = vcombine.low %v4957_v38, %v4957_v38  ;;  %v5320_v62 = vcombine.high %v4957_v38, %v4957_v38 }
 0xc8c   : > { %5028 = vst [vmem:[%s6960_s18 + $0x18] sm:$0xf] %v5319_v2  ;;  %5029 = vst [vmem:[%s6960_s18 + $0x1c] sm:$0xf] %v5320_v62  ;;  %v4900_v28 = vpop.permute.xlu0 %4899 }
 0xc8d   : > { %v4959_v21 = vsel %vm4949_vm6, %v4942_v43, %v4900_v28 }
 0xc8e   : > { %v5321_v29 = vcombine.low %v4959_v21, %v4959_v21  ;;  %v5322_v12 = vcombine.high %v4959_v21, %v4959_v21 }
 0xc90   : > { %5030 = vst [vmem:[%s6960_s18 + $0x20] sm:$0xf] %v5321_v29  ;;  %5031 = vst [vmem:[%s6960_s18 + $0x24] sm:$0xf] %v5322_v12  ;;  %v4902_v15 = vpop.permute.xlu1 %4901 }
 0xc91   : > { %v4961_v49 = vsel %vm4949_vm6, %v4944_v17, %v4902_v15 }
 0xc92   : > { %v5323_v47 = vcombine.low %v4961_v49, %v4961_v49  ;;  %v5324_v32 = vcombine.high %v4961_v49, %v4961_v49 }
 0xc94   : > { %5032 = vst [vmem:[%s6960_s18 + $0x28] sm:$0xf] %v5323_v47  ;;  %5033 = vst [vmem:[%s6960_s18 + $0x2c] sm:$0xf] %v5324_v32  ;;  %v4904_v20 = vpop.permute.xlu0 %4903 }
 0xc95   : > { %v4963_v24 = vsel %vm4949_vm6, %v4946_v57, %v4904_v20 }
 0xc96   : > { %v5325_v5 = vcombine.low %v4963_v24, %v4963_v24  ;;  %v5326_v31 = vcombine.high %v4963_v24, %v4963_v24 }
 0xc98   : > { %5034 = vst [vmem:[%s6960_s18 + $0x30] sm:$0xf] %v5325_v5  ;;  %5035 = vst [vmem:[%s6960_s18 + $0x34] sm:$0xf] %v5326_v31  ;;  %v4906_v8 = vpop.permute.xlu1 %4905 }
 0xc99   : > { %v4965_v16 = vsel %vm4949_vm6, %v4948_v14, %v4906_v8 }
 0xc9a   : > { %v5327_v45 = vcombine.low %v4965_v16, %v4965_v16  ;;  %v5328_v18 = vcombine.high %v4965_v16, %v4965_v16 }
 0xc9c   : > { %5036 = vst [vmem:[%s6960_s18 + $0x38] sm:$0xf] %v5327_v45  ;;  %5037 = vst [vmem:[%s6960_s18 + $0x3c] sm:$0xf] %v5328_v18 }
 0xc9d PF: > { %s10582_s10 = sld [smem:[#allocation22_spill]]  ;;  %s5054_s2 = sshll.u32 %s6960_s18, 4  ;;  %s9912_s2 = int_to_ptr.vmem [resolvable:$true] %s5054_s2 }
 0xc9e   : > { %s10583_s1 = sld [smem:[#allocation23_spill]]  ;;  %s5039_s24 = scalar_lea.sflag [#allocation7], %s6926_s3 }
 0xc9f   : > { %s10585_s16 = sld [smem:[#allocation145_spill]]  ;;  %s6464_s11 = scalar_lea.vmem %s9912_s2, 1024 }
 0xca0   : > { %p6465_p1 = scmp.ne.s32.totalorder %s9912_s2, %s6464_s11  ;;  %s6626_s17 = smov [#allocation13]  }
 0xca1   : > { %s6468_s18 = sshll.u32 %s6626_s17, 4  ;;  %s6469_s18 = int_to_ptr.vmem [resolvable:$false] %s6468_s18 }
 0xca2   : > { %p6466_p9 = pnand %p6465_p1, %p6855_p7  ;;  %s6470_s14 = scalar_lea.vmem %s6469_s18, 2048 }
 0xca3   : > { %s5330_s8 = sshll.u32 %s10582_s10, 4  ;;  %p6471_p13 = scmp.lt.s32.totalorder %s9912_s2, %s6469_s18 }
 0xca4   : > { %s5331_s0 = sshll.u32 %s10583_s1, 5  ;;  %p6467_p8 = pneg %p6466_p9 }
 0xca5   : > { %s5051_s4 = sadd.s32 %s5331_s0, %s5330_s8  ;;  %p6472_p5 = scmp.lt.s32.totalorder %s6470_s14, %s6464_s11 }
 0xca6   : > { %s5332_s19 = sshll.u32 %s5051_s4, 6 }
 0xca7   : > { %s9917_s5 = scalar_lea.hbm %s10585_s16, %s5332_s19  ;;  %p6473_p4 = por %p6472_p5, %p6471_p13 }
 0xca9   : > { %p6474_p12 = pnand %p6473_p4, %p6467_p8 }
 0xcab   : > { %6477 = shalt.err (!%p6474_p12)
}
 0xcac   : > { %s6478_s12 = scalar_lea.hbm %s9917_s5, 1024  ;;  %s6482_s7 = scalar_lea.hbm %s10585_s16, 4096 }
 0xcad   : > { %p6479_p2 = scmp.ne.s32.totalorder %s9917_s5, %s6478_s12  ;;  %p6483_p3 = scmp.lt.s32.totalorder %s9917_s5, %s10585_s16 }
 0xcae   : > { %p6484_p10 = scmp.lt.s32.totalorder %s6482_s7, %s6478_s12 }
 0xcaf   : > { %p6480_p6 = pnand %p6479_p2, %p6855_p7 }
 0xcb0   : > { %p6485_p0 = por %p6484_p10, %p6483_p3 }
 0xcb1   : > { %p6481_p11 = pneg %p6480_p6 }
 0xcb3   : > { %p6486_p1 = pnand %p6485_p0, %p6481_p11 }
 0xcb5   : > { %6489 = shalt.err (!%p6486_p1)
}
 0xcb6   : > { %s6627_s8 = smov 64   ;;  %s6628_s0 = smov 4  }
 0xcb7   : > { %5763 = dma.vmem_to_hbm [thread:$0]  (%p6855_p7), %s9912_s2, 1024, %s9917_s5, %s5039_s24, %s6627_s8, %s6627_s8, %s6628_s0  }
 0xcb8 PF: > { %s10586_s4 = sld [smem:[#allocation19_spill]]  ;;  %p5786_p9 = scmp.ge.s32.totalorder %s6608_s30, 2 }
 0xcb9   : > { %s10587_s19 = sld [smem:[#allocation28_spill]] }
 0xcbe   : > { %s5069_s9 = sand.u32 1, %s10586_s4  }
 0xcbf   : > { %p10588_p8 = scmp.ne.s32.totalorder %s10587_s19, 0  ;;  %s5070_s13 = scalar_lea.sflag [#allocation7], %s5069_s9 }
 0xcc1   : > { %p5780_p13 = pnand %p5786_p9, %p10588_p8 }
 0xcc3   : > { %p5781_p5 = pneg %p5780_p13 }
 0xcc5   : > { %6555 = dma.done.wait (%p5781_p5), %s5070_s13, 1024  }
 0xcc6   : > { %6557 = vsyncadd (%p5781_p5), %s5070_s13, 4294966272  ;;  %s25_s30 = sadd.s32 1, %s6608_s30   ;;  %s10590_s18 = sld [smem:[#allocation18_spill]] }
 0xcc7   : > { %p9947_p4 = scmp.ge.s32.totalorder %s25_s30, 10   ;;  %s10591_s21 = sld [smem:[#allocation20_spill]] }
 0xcc8   : > { %s10592_s3 = smov %s6878_s22  ;;  %s10593_s15 = sld [smem:[#allocation24_spill]] }
 0xcc9   : > { %s10594_s28 = sld [smem:[#allocation29_spill]]  ;;  %s10595_s2 = smov %s10614_s26 }
 0xcca   : > { %s10596_s19 = smov %s6568_s20  ;;  %s10597_s20 = smov %s6883_s25 }
 0xccb   : > { %s10598_s22 = smov %s6580_s23  ;;  %s10599_s23 = smov %s10592_s3 }
 0xccc   : > { %s10600_s24 = smov %s6596_s27  ;;  %s10602_s26 = smov %s6604_s29 }
 0xccd   : > { %s10603_s27 = smov %s10606_s6  ;;  %s10604_s29 = smov %s10595_s2 }
 0xcce   : > { %s10601_s25 = smov %s10593_s15  ;;  %24 = sbr.rel (!%p9947_p4) target bundleno = 20 (0x14), region = 144 }
 0xcd3   :  { %5075 = vsyncpa [#allocation6], 1 }
 0xcd4   :  { %5077 = vsyncpa [#allocation6 + $0x1], 1 }
 0xcd5   :  { %5078 = vsyncpa [#allocation10], 1 }
 0xcd6   :  { %5080 = vsyncpa [#allocation10 + $0x1], 1 }
 0xcd7   :  { %5081 = vsyncpa [#allocation7], 1 }
 0xcd8   :  { %5083 = vsyncpa [#allocation7 + $0x1], 1 }
 0xcd9   :  { %5084 = vsyncpa [#allocation8], 1 }
 0xcda   :  { %5086 = vsyncpa [#allocation8 + $0x1], 1 }

</bundles_post_ra>
